<compile_context>
chip_gen: v6e
topology: v6e:2x2x1
jax: 0.10.0
libtpu: 0.0.40
codegen_flags: <defaults>
</compile_context>

<pallas_src>
import jax
import jax.numpy as jnp
from jax import lax
from jax.experimental import pallas as pl
from jax.experimental.pallas import tpu as pltpu

_BN_EPS = 1e-5
_LN_EPS = 1e-5


# --------------------------------------------------------------------------- #
# Generation-aware knobs
# --------------------------------------------------------------------------- #
def _pick_elementwise_dtype():
    """bf16 elementwise on chips with a bf16 VPU (v6e/v7x); f32 on v2-v5e."""
    try:
        kind = jax.devices()[0].device_kind.lower()
    except Exception:
        return jnp.bfloat16
    if any(t in kind for t in ("v2", "v3", "v4", "v5 lite", "v5e")):
        return jnp.float32
    return jnp.bfloat16


def _vmem_limit_bytes():
    """Scoped-VMEM limit: ~3/4 of physical (96 MiB on v5e/v6e, ~48 MiB on v7x)."""
    try:
        cap = int(pltpu.get_tpu_info().vmem_capacity_bytes)
    except Exception:
        cap = 64 * 1024 * 1024          # conservative default (safe on v7x)
    return int(min(96 * 1024 * 1024, cap * 3 // 4))


# --------------------------------------------------------------------------- #
# Parameter preparation (host side, done once)
# --------------------------------------------------------------------------- #
def _prepare_params(params, hw, n_classes, ew_dtype):
    """Fold BN into the 1x1 conv, fold the hswish /6 and 1/HW pooling scale into
    w2, pad classes to a lane-dense multiple of 128, cast MXU operands to bf16."""
    scale = params['bn_gamma'] / jnp.sqrt(params['bn_var'] + _BN_EPS)        # (1, w0)
    w1 = (params['w1'] * scale).astype(jnp.bfloat16)                          # (C, w0)
    b1 = (params['bn_beta'] - params['bn_mean'] * scale).astype(ew_dtype)     # (1, w0)
    # Kernel computes hswish as x*relu6(x+3) (no /6) and pooling as a masked
    # SUM, so fold 1/(6*HW) into the following linear weight (LN-invariant too).
    w2 = (params['w2'] * (1.0 / (6.0 * hw))).astype(jnp.bfloat16)             # (w0, w1d)
    ln_g = params['ln_gamma'].astype(jnp.float32)
    ln_b = params['ln_beta'].astype(jnp.float32)

    nc_pad = max(128, ((n_classes + 127) // 128) * 128)
    w3 = params['w3'].astype(jnp.float32)
    b3 = params['b3'].astype(jnp.float32)
    if nc_pad != n_classes:
        w3 = jnp.pad(w3, ((0, 0), (0, nc_pad - n_classes)))
        b3 = jnp.pad(b3, ((0, 0), (0, nc_pad - n_classes)))
    w3 = w3.astype(jnp.bfloat16)
    return dict(w1=w1, b1=b1, w2=w2, ln_g=ln_g, ln_b=ln_b, w3=w3, b3=b3,
                nc_pad=nc_pad)


# --------------------------------------------------------------------------- #
# Kernel
# --------------------------------------------------------------------------- #
def _make_kernel(ew_dtype):
    def kernel(x_ref, sel_ref, w1_ref, b1_ref, w2_ref, lng_ref, lnb_ref,
               w3_ref, b3_ref, out_ref):
        tile_n, hw_p, cin = x_ref.shape
        m = tile_n * hw_p

        # --- ConvLayer(C, w0, 1, norm=bn2d, act=hswish), BN folded ----------
        # One tall MXU matmul; the leading-dim merge is layout-free (hw_p % 8 == 0).
        x2d = x_ref[...].reshape(m, cin)
        h = jnp.dot(x2d, w1_ref[...], preferred_element_type=jnp.float32)    # (m, w0) f32
        # Bias + scaled hswish (x*relu6(x+3); the /6 lives in w2) in bf16 on
        # v6e/v7x to halve VPU pressure on the largest elementwise tensor.
        hb = h.astype(ew_dtype) + b1_ref[...]
        hb = hb * jnp.clip(hb + 3.0, 0.0, 6.0)

        # --- AdaptiveAvgPool2d(1) + flatten ---------------------------------
        # Block-diagonal ones matmul: lands on the MXU with f32 accumulation
        # and also masks any HW padding; the 1/HW scale is folded into w2.
        pooled = jnp.dot(sel_ref[...], hb,
                         preferred_element_type=jnp.float32)                 # (tile_n, w0)

        # --- LinearLayer(w0, w1d, bias=False, norm=ln, act=hswish) ----------
        z = jnp.dot(pooled.astype(jnp.bfloat16), w2_ref[...],
                    preferred_element_type=jnp.float32)                      # (tile_n, w1d)
        mu = jnp.mean(z, axis=-1, keepdims=True)
        var = jnp.mean(jnp.square(z - mu), axis=-1, keepdims=True)
        z = (z - mu) * lax.rsqrt(var + _LN_EPS)
        z = z * lng_ref[...] + lnb_ref[...]
        z = z * jnp.clip(z + 3.0, 0.0, 6.0) * (1.0 / 6.0)

        # --- LinearLayer(w1d, n_classes, bias=True), dropout=0 in eval ------
        out = jnp.dot(z.astype(jnp.bfloat16), w3_ref[...],
                      preferred_element_type=jnp.float32) + b3_ref[...]
        out_ref[...] = out.astype(out_ref.dtype)

    return kernel


# --------------------------------------------------------------------------- #
# Wrapper
# --------------------------------------------------------------------------- #
def nchw_to_tokens(x_nchw):
    """PyTorch-layout adapter (costs one extra HBM pass over the features;
    prefer a backbone that emits channels-last tokens directly)."""
    n, c, h, w = x_nchw.shape
    return jnp.transpose(x_nchw, (0, 2, 3, 1)).reshape(n, h * w, c)


def efficientvit_cls_head_forward(x_tokens, params, *, tile_n=32, ew_dtype=None):
    """ClsHead forward.  x_tokens: (N, HW, C) channels-last 'stage_final'
    features.  Returns f32 logits of shape (N, n_classes)."""
    if ew_dtype is None:
        ew_dtype = _pick_elementwise_dtype()

    N, HW, C = x_tokens.shape
    w0 = params['w1'].shape[1]
    w1d = params['w2'].shape[1]
    n_classes = params['w3'].shape[1]

    prep = _prepare_params(params, HW, n_classes, ew_dtype)
    nc_pad = prep['nc_pad']

    # Big batch tiles amortize the ~0.35us/step pipeline overhead, but keep the
    # grid length >= 2 so a v7x megacore can split it across both TensorCores.
    tile_n = max(8, (min(tile_n, max(8, pl.cdiv(N, 2))) // 8) * 8)
    n_pad = pl.cdiv(N, tile_n) * tile_n
    hw_p = ((HW + 7) // 8) * 8            # sublane-aligned token count

    x_p = x_tokens.astype(jnp.bfloat16)
    if (n_pad, hw_p) != (N, HW):
        x_p = jnp.pad(x_p, ((0, n_pad - N), (0, hw_p - HW), (0, 0)))

    # Block-diagonal pooling matrix: pooled[n] = sum_{s < HW} hb[n*hw_p + s].
    col = jnp.arange(tile_n * hw_p)[None, :]
    seg = jnp.arange(tile_n)[:, None]
    sel = ((col // hw_p == seg) & ((col % hw_p) < HW)).astype(ew_dtype)

    grid = (n_pad // tile_n,)
    kernel = _make_kernel(ew_dtype)

    flops = int(2 * n_pad * hw_p * C * w0 + 2 * n_pad * hw_p * w0
                + 2 * n_pad * w0 * w1d + 2 * n_pad * w1d * nc_pad)
    bytes_accessed = int(x_p.size * 2 + prep['w1'].size * 2 + prep['w2'].size * 2
                         + prep['w3'].size * 2 + n_pad * nc_pad * 4
                         + (prep['b1'].size + prep['ln_g'].size + prep['ln_b'].size
                            + prep['b3'].size + sel.size) * 4)
    cost = pl.CostEstimate(flops=flops, transcendentals=0,
                           bytes_accessed=bytes_accessed)

    args = (x_p, sel, prep['w1'], prep['b1'], prep['w2'], prep['ln_g'],
            prep['ln_b'], prep['w3'], prep['b3'])

    def _call(single_buffer_weights):
        def const_spec(shape):
            zeros = (0,) * len(shape)
            if single_buffer_weights:
                # Grid-invariant operands: one VMEM buffer, DMA'd once.  At
                # production head sizes (e.g. w2 = 2304x2560) this halves weight
                # VMEM vs. default double buffering — important on v7x (64 MiB).
                return pl.BlockSpec(shape, lambda i: zeros,
                                    pipeline_mode=pl.Buffered(1))
            return pl.BlockSpec(shape, lambda i: zeros)

        in_specs = [
            pl.BlockSpec((tile_n, hw_p, C), lambda i: (i, 0, 0)),  # activation tile
            const_spec((tile_n, tile_n * hw_p)),                   # pooling selector
            const_spec((C, w0)),                                   # folded conv weight
            const_spec((1, w0)),                                   # folded BN bias
            const_spec((w0, w1d)),                                 # linear-1 weight (scaled)
            const_spec((1, w1d)),                                  # LN gamma
            const_spec((1, w1d)),                                  # LN beta
            const_spec((w1d, nc_pad)),                             # linear-2 weight
            const_spec((1, nc_pad)),                               # linear-2 bias
        ]
        out_specs = pl.BlockSpec((tile_n, nc_pad), lambda i: (i, 0))

        fn = pl.pallas_call(
            kernel,
            out_shape=jax.ShapeDtypeStruct((n_pad, nc_pad), jnp.float32),
            grid_spec=pltpu.PrefetchScalarGridSpec(
                num_scalar_prefetch=0, grid=grid,
                in_specs=in_specs, out_specs=out_specs),
            compiler_params=pltpu.CompilerParams(
                dimension_semantics=("parallel",),
                vmem_limit_bytes=_vmem_limit_bytes()),
            cost_estimate=cost,
        )
        return fn(*args)

    try:
        out = _call(True)
    except Exception:
        # This JAX build does not support per-spec pipeline_mode; fall back to
        # default double-buffered weights (identical results, more VMEM used).
        out = _call(False)

    return out[:N, :n_classes]


# --------------------------------------------------------------------------- #
# References
# --------------------------------------------------------------------------- #
def _reference_torch(x_tokens, params):
    """Faithful f32 eval-mode math of ClsHead (semantic check, loose tol vs bf16)."""
    scale = params['bn_gamma'] / jnp.sqrt(params['bn_var'] + _BN_EPS)
    y = jnp.einsum('nsc,co->nso', x_tokens, params['w1'])
    y = (y - params['bn_mean']) * scale + params['bn_beta']
    y = y * jnp.clip(y + 3.0, 0.0, 6.0) / 6.0
    pooled = jnp.mean(y, axis=1)
    z = pooled @ params['w2']
    mu = jnp.mean(z, axis=-1, keepdims=True)
    var = jnp.mean((z - mu) ** 2, axis=-1, keepdims=True)
    z = (z - mu) / jnp.sqrt(var + _LN_EPS) * params['ln_gamma'] + params['ln_beta']
    z = z * jnp.clip(z + 3.0, 0.0, 6.0) / 6.0
    return z @ params['w3'] + params['b3']


def _reference_mirror(x_tokens, params, ew_dtype):
    """Same folded params / dtypes as the kernel (apples-to-apples tight check)."""
    N, HW, C = x_tokens.shape
    n_classes = params['w3'].shape[1]
    prep = _prepare_params(params, HW, n_classes, ew_dtype)
    h = jnp.einsum('nsc,co->nso', x_tokens.astype(jnp.bfloat16), prep['w1'],
                   preferred_element_type=jnp.float32)
    hb = h.astype(ew_dtype) + prep['b1']
    hb = hb * jnp.clip(hb + 3.0, 0.0, 6.0)
    pooled = jnp.sum(hb.astype(jnp.float32), axis=1)
    z = jnp.dot(pooled.astype(jnp.bfloat16), prep['w2'],
                preferred_element_type=jnp.float32)
    mu = jnp.mean(z, axis=-1, keepdims=True)
    var = jnp.mean(jnp.square(z - mu), axis=-1, keepdims=True)
    z = (z - mu) * lax.rsqrt(var + _LN_EPS)
    z = z * prep['ln_g'] + prep['ln_b']
    z = z * jnp.clip(z + 3.0, 0.0, 6.0) * (1.0 / 6.0)
    out = jnp.dot(z.astype(jnp.bfloat16), prep['w3'],
                  preferred_element_type=jnp.float32) + prep['b3']
    return out[:, :n_classes]


# --------------------------------------------------------------------------- #
# Test
# --------------------------------------------------------------------------- #
if __name__ == "__main__":
    # Small shapes consistent with ClsHead(in_channels, [w0, w1], n_classes).
    N, C_in, H, W = 64, 32, 8, 8
    w0, w1d, n_classes = 64, 128, 16
    HW = H * W

    key = jax.random.PRNGKey(0)
    ks = jax.random.split(key, 11)

    params = {
        # 1x1 conv weight stored as (Cin, w0) (== torch (w0, Cin, 1, 1) transposed)
        'w1': 0.1 * jax.random.normal(ks[0], (C_in, w0), jnp.float32),
        'bn_gamma': 1.0 + 0.05 * jax.random.normal(ks[1], (1, w0), jnp.float32),
        'bn_beta': 0.05 * jax.random.normal(ks[2], (1, w0), jnp.float32),
        'bn_mean': 0.05 * jax.random.normal(ks[3], (1, w0), jnp.float32),
        'bn_var': 0.5 + jnp.abs(jax.random.normal(ks[4], (1, w0), jnp.float32)),
        # Linear weights stored transposed: (in_features, out_features)
        'w2': 0.1 * jax.random.normal(ks[5], (w0, w1d), jnp.float32),
        'ln_gamma': 1.0 + 0.05 * jax.random.normal(ks[6], (1, w1d), jnp.float32),
        'ln_beta': 0.05 * jax.random.normal(ks[7], (1, w1d), jnp.float32),
        'w3': 0.1 * jax.random.normal(ks[8], (w1d, n_classes), jnp.float32),
        'b3': 0.05 * jax.random.normal(ks[9], (1, n_classes), jnp.float32),
    }

    # 'stage_final' features stand in for the (not provided) backbone output and
    # are produced channels-last so the head never needs an NCHW->NHWC HBM pass.
    x_tokens = jax.random.normal(ks[10], (N, HW, C_in), jnp.float32)

    ew_dtype = _pick_elementwise_dtype()
    out = efficientvit_cls_head_forward(x_tokens, params, tile_n=32,
                                        ew_dtype=ew_dtype)
    out = jax.block_until_ready(out)
    assert out.shape == (N, n_classes)

    ref_mirror = _reference_mirror(x_tokens, params, ew_dtype)
    ref_torch = _reference_torch(x_tokens, params)
    err_m = float(jnp.max(jnp.abs(out - ref_mirror)))
    err_t = float(jnp.max(jnp.abs(out - ref_torch)))
    assert jnp.allclose(out, ref_mirror, atol=2e-3, rtol=2e-3), \
        f"mirror max err {err_m}"
    assert jnp.allclose(out, ref_torch, atol=1e-1, rtol=1e-1), \
        f"f32 reference max err {err_t}"

    print("KERNEL_OK")
</pallas_src>

<mosaic_0001>
module attributes {stable_mosaic.version = 11 : i64} {
  func.func @kernel(%arg0: i32, %arg1: memref<32x64x32xbf16, #tpu.memory_space<vmem>>, %arg2: memref<32x2048xbf16, #tpu.memory_space<vmem>>, %arg3: memref<32x64xbf16, #tpu.memory_space<vmem>>, %arg4: memref<1x64xbf16, #tpu.memory_space<vmem>>, %arg5: memref<64x128xbf16, #tpu.memory_space<vmem>>, %arg6: memref<1x128xf32, #tpu.memory_space<vmem>>, %arg7: memref<1x128xf32, #tpu.memory_space<vmem>>, %arg8: memref<128x128xbf16, #tpu.memory_space<vmem>>, %arg9: memref<1x128xf32, #tpu.memory_space<vmem>>, %arg10: memref<32x128xf32, #tpu.memory_space<vmem>>) attributes {dimension_semantics = [#tpu.dimension_semantics<parallel>], iteration_bounds = array<i64: 2>, scalar_prefetch = 0 : i64, scratch_operands = 0 : i64, tpu.core_type = #tpu.core_type<tc>, window_params = [{transform_indices = @transform_0, window_bounds = array<i64: 32, 64, 32>}, {pipeline_mode = #tpu.pipeline_mode<synchronous>, transform_indices = @transform_1, window_bounds = array<i64: 32, 2048>}, {pipeline_mode = #tpu.pipeline_mode<synchronous>, transform_indices = @transform_2, window_bounds = array<i64: 32, 64>}, {pipeline_mode = #tpu.pipeline_mode<synchronous>, transform_indices = @transform_3, window_bounds = array<i64: 1, 64>}, {pipeline_mode = #tpu.pipeline_mode<synchronous>, transform_indices = @transform_4, window_bounds = array<i64: 64, 128>}, {pipeline_mode = #tpu.pipeline_mode<synchronous>, transform_indices = @transform_5, window_bounds = array<i64: 1, 128>}, {pipeline_mode = #tpu.pipeline_mode<synchronous>, transform_indices = @transform_6, window_bounds = array<i64: 1, 128>}, {pipeline_mode = #tpu.pipeline_mode<synchronous>, transform_indices = @transform_7, window_bounds = array<i64: 128, 128>}, {pipeline_mode = #tpu.pipeline_mode<synchronous>, transform_indices = @transform_8, window_bounds = array<i64: 1, 128>}, {transform_indices = @transform_9, window_bounds = array<i64: 32, 128>}]} {
    %c0 = arith.constant 0 : index
    %c0_0 = arith.constant 0 : index
    %c0_1 = arith.constant 0 : index
    %0 = vector.load %arg1[%c0, %c0_0, %c0_1] : memref<32x64x32xbf16, #tpu.memory_space<vmem>>, vector<32x64x32xbf16>
    %1 = vector.shape_cast %0 : vector<32x64x32xbf16> to vector<2048x32xbf16>
    %c0_2 = arith.constant 0 : index
    %c0_3 = arith.constant 0 : index
    %2 = vector.load %arg3[%c0_2, %c0_3] : memref<32x64xbf16, #tpu.memory_space<vmem>>, vector<32x64xbf16>
    %cst = arith.constant dense<0.000000e+00> : vector<2048x64xf32>
    %3 = tpu.matmul %1, %2, %cst {dimension_numbers = #tpu.dot_dimension_numbers<[1], [0], [0], [1], [0, 0, 1, 1], [], []>} : vector<2048x32xbf16>, vector<32x64xbf16>, vector<2048x64xf32> -> vector<2048x64xf32>
    %4 = arith.truncf %3 : vector<2048x64xf32> to vector<2048x64xbf16>
    %c0_4 = arith.constant 0 : index
    %c0_5 = arith.constant 0 : index
    %5 = vector.load %arg4[%c0_4, %c0_5] : memref<1x64xbf16, #tpu.memory_space<vmem>>, vector<1x64xbf16>
    %6 = vector.broadcast %5 : vector<1x64xbf16> to vector<2048x64xbf16>
    %7 = arith.addf %4, %6 : vector<2048x64xbf16>
    %cst_6 = arith.constant 3.000000e+00 : bf16
    %8 = vector.broadcast %cst_6 : bf16 to vector<2048x64xbf16>
    %9 = arith.addf %7, %8 : vector<2048x64xbf16>
    %cst_7 = arith.constant 0.000000e+00 : f32
    %cst_8 = arith.constant 6.000000e+00 : f32
    %10 = arith.truncf %cst_7 : f32 to bf16
    %11 = vector.broadcast %10 : bf16 to vector<2048x64xbf16>
    %12 = arith.maximumf %11, %9 : vector<2048x64xbf16>
    %13 = arith.truncf %cst_8 : f32 to bf16
    %14 = vector.broadcast %13 : bf16 to vector<2048x64xbf16>
    %15 = arith.minimumf %14, %12 : vector<2048x64xbf16>
    %16 = arith.mulf %7, %15 : vector<2048x64xbf16>
    %c0_9 = arith.constant 0 : index
    %c0_10 = arith.constant 0 : index
    %17 = vector.load %arg2[%c0_9, %c0_10] : memref<32x2048xbf16, #tpu.memory_space<vmem>>, vector<32x2048xbf16>
    %cst_11 = arith.constant dense<0.000000e+00> : vector<32x64xf32>
    %18 = tpu.matmul %17, %16, %cst_11 {dimension_numbers = #tpu.dot_dimension_numbers<[1], [0], [0], [1], [0, 0, 1, 1], [], []>} : vector<32x2048xbf16>, vector<2048x64xbf16>, vector<32x64xf32> -> vector<32x64xf32>
    %19 = arith.truncf %18 : vector<32x64xf32> to vector<32x64xbf16>
    %c0_12 = arith.constant 0 : index
    %c0_13 = arith.constant 0 : index
    %20 = vector.load %arg5[%c0_12, %c0_13] : memref<64x128xbf16, #tpu.memory_space<vmem>>, vector<64x128xbf16>
    %cst_14 = arith.constant dense<0.000000e+00> : vector<32x128xf32>
    %21 = tpu.matmul %19, %20, %cst_14 {dimension_numbers = #tpu.dot_dimension_numbers<[1], [0], [0], [1], [0, 0, 1, 1], [], []>} : vector<32x64xbf16>, vector<64x128xbf16>, vector<32x128xf32> -> vector<32x128xf32>
    %cst_15 = arith.constant dense<0.000000e+00> : vector<32xf32>
    %22 = vector.multi_reduction <add>, %21, %cst_15 [1] : vector<32x128xf32> to vector<32xf32>
    %23 = vector.shape_cast %22 : vector<32xf32> to vector<32x1xf32>
    %cst_16 = arith.constant 1.280000e+02 : f32
    %24 = vector.broadcast %cst_16 : f32 to vector<32x1xf32>
    %25 = arith.divf %23, %24 : vector<32x1xf32>
    %26 = vector.broadcast %25 : vector<32x1xf32> to vector<32x128xf32>
    %27 = arith.subf %21, %26 : vector<32x128xf32>
    %28 = arith.mulf %27, %27 : vector<32x128xf32>
    %cst_17 = arith.constant dense<0.000000e+00> : vector<32xf32>
    %29 = vector.multi_reduction <add>, %28, %cst_17 [1] : vector<32x128xf32> to vector<32xf32>
    %30 = vector.shape_cast %29 : vector<32xf32> to vector<32x1xf32>
    %cst_18 = arith.constant 1.280000e+02 : f32
    %31 = vector.broadcast %cst_18 : f32 to vector<32x1xf32>
    %32 = arith.divf %30, %31 : vector<32x1xf32>
    %33 = vector.broadcast %25 : vector<32x1xf32> to vector<32x128xf32>
    %34 = arith.subf %21, %33 : vector<32x128xf32>
    %cst_19 = arith.constant 9.99999974E-6 : f32
    %35 = vector.broadcast %cst_19 : f32 to vector<32x1xf32>
    %36 = arith.addf %32, %35 : vector<32x1xf32>
    %37 = math.rsqrt %36 : vector<32x1xf32>
    %38 = vector.broadcast %37 : vector<32x1xf32> to vector<32x128xf32>
    %39 = arith.mulf %34, %38 : vector<32x128xf32>
    %c0_20 = arith.constant 0 : index
    %c0_21 = arith.constant 0 : index
    %40 = vector.load %arg6[%c0_20, %c0_21] : memref<1x128xf32, #tpu.memory_space<vmem>>, vector<1x128xf32>
    %41 = vector.broadcast %40 : vector<1x128xf32> to vector<32x128xf32>
    %42 = arith.mulf %39, %41 : vector<32x128xf32>
    %c0_22 = arith.constant 0 : index
    %c0_23 = arith.constant 0 : index
    %43 = vector.load %arg7[%c0_22, %c0_23] : memref<1x128xf32, #tpu.memory_space<vmem>>, vector<1x128xf32>
    %44 = vector.broadcast %43 : vector<1x128xf32> to vector<32x128xf32>
    %45 = arith.addf %42, %44 : vector<32x128xf32>
    %cst_24 = arith.constant 3.000000e+00 : f32
    %46 = vector.broadcast %cst_24 : f32 to vector<32x128xf32>
    %47 = arith.addf %45, %46 : vector<32x128xf32>
    %cst_25 = arith.constant 0.000000e+00 : f32
    %cst_26 = arith.constant 6.000000e+00 : f32
    %48 = vector.broadcast %cst_25 : f32 to vector<32x128xf32>
    %49 = arith.maximumf %48, %47 : vector<32x128xf32>
    %50 = vector.broadcast %cst_26 : f32 to vector<32x128xf32>
    %51 = arith.minimumf %50, %49 : vector<32x128xf32>
    %52 = arith.mulf %45, %51 : vector<32x128xf32>
    %cst_27 = arith.constant 0.166666672 : f32
    %53 = vector.broadcast %cst_27 : f32 to vector<32x128xf32>
    %54 = arith.mulf %52, %53 : vector<32x128xf32>
    %55 = arith.truncf %54 : vector<32x128xf32> to vector<32x128xbf16>
    %c0_28 = arith.constant 0 : index
    %c0_29 = arith.constant 0 : index
    %56 = vector.load %arg8[%c0_28, %c0_29] : memref<128x128xbf16, #tpu.memory_space<vmem>>, vector<128x128xbf16>
    %cst_30 = arith.constant dense<0.000000e+00> : vector<32x128xf32>
    %57 = tpu.matmul %55, %56, %cst_30 {dimension_numbers = #tpu.dot_dimension_numbers<[1], [0], [0], [1], [0, 0, 1, 1], [], []>} : vector<32x128xbf16>, vector<128x128xbf16>, vector<32x128xf32> -> vector<32x128xf32>
    %c0_31 = arith.constant 0 : index
    %c0_32 = arith.constant 0 : index
    %58 = vector.load %arg9[%c0_31, %c0_32] : memref<1x128xf32, #tpu.memory_space<vmem>>, vector<1x128xf32>
    %59 = vector.broadcast %58 : vector<1x128xf32> to vector<32x128xf32>
    %60 = arith.addf %57, %59 : vector<32x128xf32>
    %c0_33 = arith.constant 0 : index
    %c0_34 = arith.constant 0 : index
    %61 = vector.load %arg10[%c0_33, %c0_34] : memref<32x128xf32, #tpu.memory_space<vmem>>, vector<32x128xf32>
    tpu.vector_store %arg10[%c0_33, %c0_34], %60 {strides = array<i32>} : memref<32x128xf32, #tpu.memory_space<vmem>>, vector<32x128xf32>,
    return
  }
  func.func @transform_0(%arg0: i32) -> (i32, i32, i32) {
    %c0_i32 = arith.constant 0 : i32
    %c0_i32_0 = arith.constant 0 : i32
    %c0_i32_1 = arith.constant 0 : i32
    return %arg0, %c0_i32, %c0_i32_0 : i32, i32, i32
  }
  func.func @transform_1(%arg0: i32) -> (i32, i32) {
    %c0_i32 = arith.constant 0 : i32
    %c0_i32_0 = arith.constant 0 : i32
    %c0_i32_1 = arith.constant 0 : i32
    return %c0_i32, %c0_i32_0 : i32, i32
  }
  func.func @transform_2(%arg0: i32) -> (i32, i32) {
    %c0_i32 = arith.constant 0 : i32
    %c0_i32_0 = arith.constant 0 : i32
    %c0_i32_1 = arith.constant 0 : i32
    return %c0_i32, %c0_i32_0 : i32, i32
  }
  func.func @transform_3(%arg0: i32) -> (i32, i32) {
    %c0_i32 = arith.constant 0 : i32
    %c0_i32_0 = arith.constant 0 : i32
    %c0_i32_1 = arith.constant 0 : i32
    return %c0_i32, %c0_i32_0 : i32, i32
  }
  func.func @transform_4(%arg0: i32) -> (i32, i32) {
    %c0_i32 = arith.constant 0 : i32
    %c0_i32_0 = arith.constant 0 : i32
    %c0_i32_1 = arith.constant 0 : i32
    return %c0_i32, %c0_i32_0 : i32, i32
  }
  func.func @transform_5(%arg0: i32) -> (i32, i32) {
    %c0_i32 = arith.constant 0 : i32
    %c0_i32_0 = arith.constant 0 : i32
    %c0_i32_1 = arith.constant 0 : i32
    return %c0_i32, %c0_i32_0 : i32, i32
  }
  func.func @transform_6(%arg0: i32) -> (i32, i32) {
    %c0_i32 = arith.constant 0 : i32
    %c0_i32_0 = arith.constant 0 : i32
    %c0_i32_1 = arith.constant 0 : i32
    return %c0_i32, %c0_i32_0 : i32, i32
  }
  func.func @transform_7(%arg0: i32) -> (i32, i32) {
    %c0_i32 = arith.constant 0 : i32
    %c0_i32_0 = arith.constant 0 : i32
    %c0_i32_1 = arith.constant 0 : i32
    return %c0_i32, %c0_i32_0 : i32, i32
  }
  func.func @transform_8(%arg0: i32) -> (i32, i32) {
    %c0_i32 = arith.constant 0 : i32
    %c0_i32_0 = arith.constant 0 : i32
    %c0_i32_1 = arith.constant 0 : i32
    return %c0_i32, %c0_i32_0 : i32, i32
  }
  func.func @transform_9(%arg0: i32) -> (i32, i32) {
    %c0_i32 = arith.constant 0 : i32
    %c0_i32_0 = arith.constant 0 : i32
    return %arg0, %c0_i32 : i32, i32
  }
}

module attributes {stable_mosaic.version = 11 : i64} {
  func.func @kernel(%arg0: i32, %arg1: memref<32x64x32xbf16, #tpu.memory_space<vmem>>, %arg2: memref<32x2048xbf16, #tpu.memory_space<vmem>>, %arg3: memref<32x64xbf16, #tpu.memory_space<vmem>>, %arg4: memref<1x64xbf16, #tpu.memory_space<vmem>>, %arg5: memref<64x128xbf16, #tpu.memory_space<vmem>>, %arg6: memref<1x128xf32, #tpu.memory_space<vmem>>, %arg7: memref<1x128xf32, #tpu.memory_space<vmem>>, %arg8: memref<128x128xbf16, #tpu.memory_space<vmem>>, %arg9: memref<1x128xf32, #tpu.memory_space<vmem>>, %arg10: memref<32x128xf32, #tpu.memory_space<vmem>>) attributes {dimension_semantics = [#tpu.dimension_semantics<parallel>], iteration_bounds = array<i64: 2>, scalar_prefetch = 0 : i64, scratch_operands = 0 : i64, tpu.core_type = #tpu.core_type<tc>, window_params = [{transform_indices = @transform_0, window_bounds = array<i64: 32, 64, 32>}, {pipeline_mode = #tpu.pipeline_mode<synchronous>, transform_indices = @transform_1, window_bounds = array<i64: 32, 2048>}, {pipeline_mode = #tpu.pipeline_mode<synchronous>, transform_indices = @transform_2, window_bounds = array<i64: 32, 64>}, {pipeline_mode = #tpu.pipeline_mode<synchronous>, transform_indices = @transform_3, window_bounds = array<i64: 1, 64>}, {pipeline_mode = #tpu.pipeline_mode<synchronous>, transform_indices = @transform_4, window_bounds = array<i64: 64, 128>}, {pipeline_mode = #tpu.pipeline_mode<synchronous>, transform_indices = @transform_5, window_bounds = array<i64: 1, 128>}, {pipeline_mode = #tpu.pipeline_mode<synchronous>, transform_indices = @transform_6, window_bounds = array<i64: 1, 128>}, {pipeline_mode = #tpu.pipeline_mode<synchronous>, transform_indices = @transform_7, window_bounds = array<i64: 128, 128>}, {pipeline_mode = #tpu.pipeline_mode<synchronous>, transform_indices = @transform_8, window_bounds = array<i64: 1, 128>}, {transform_indices = @transform_9, window_bounds = array<i64: 32, 128>}]} {
    %c0 = arith.constant 0 : index
    %c0_0 = arith.constant 0 : index
    %c0_1 = arith.constant 0 : index
    %0 = vector.load %arg1[%c0, %c0_0, %c0_1] : memref<32x64x32xbf16, #tpu.memory_space<vmem>>, vector<32x64x32xbf16>
    %1 = vector.shape_cast %0 : vector<32x64x32xbf16> to vector<2048x32xbf16>
    %c0_2 = arith.constant 0 : index
    %c0_3 = arith.constant 0 : index
    %2 = vector.load %arg3[%c0_2, %c0_3] : memref<32x64xbf16, #tpu.memory_space<vmem>>, vector<32x64xbf16>
    %cst = arith.constant dense<0.000000e+00> : vector<2048x64xf32>
    %3 = tpu.matmul %1, %2, %cst {dimension_numbers = #tpu.dot_dimension_numbers<[1], [0], [0], [1], [0, 0, 1, 1], [], []>} : vector<2048x32xbf16>, vector<32x64xbf16>, vector<2048x64xf32> -> vector<2048x64xf32>
    %4 = arith.truncf %3 : vector<2048x64xf32> to vector<2048x64xbf16>
    %c0_4 = arith.constant 0 : index
    %c0_5 = arith.constant 0 : index
    %5 = vector.load %arg4[%c0_4, %c0_5] : memref<1x64xbf16, #tpu.memory_space<vmem>>, vector<1x64xbf16>
    %6 = vector.broadcast %5 : vector<1x64xbf16> to vector<2048x64xbf16>
    %7 = arith.addf %4, %6 : vector<2048x64xbf16>
    %cst_6 = arith.constant 3.000000e+00 : bf16
    %8 = vector.broadcast %cst_6 : bf16 to vector<2048x64xbf16>
    %9 = arith.addf %7, %8 : vector<2048x64xbf16>
    %cst_7 = arith.constant 0.000000e+00 : f32
    %cst_8 = arith.constant 6.000000e+00 : f32
    %10 = arith.truncf %cst_7 : f32 to bf16
    %11 = vector.broadcast %10 : bf16 to vector<2048x64xbf16>
    %12 = arith.maximumf %11, %9 : vector<2048x64xbf16>
    %13 = arith.truncf %cst_8 : f32 to bf16
    %14 = vector.broadcast %13 : bf16 to vector<2048x64xbf16>
    %15 = arith.minimumf %14, %12 : vector<2048x64xbf16>
    %16 = arith.mulf %7, %15 : vector<2048x64xbf16>
    %c0_9 = arith.constant 0 : index
    %c0_10 = arith.constant 0 : index
    %17 = vector.load %arg2[%c0_9, %c0_10] : memref<32x2048xbf16, #tpu.memory_space<vmem>>, vector<32x2048xbf16>
    %cst_11 = arith.constant dense<0.000000e+00> : vector<32x64xf32>
    %18 = tpu.matmul %17, %16, %cst_11 {dimension_numbers = #tpu.dot_dimension_numbers<[1], [0], [0], [1], [0, 0, 1, 1], [], []>} : vector<32x2048xbf16>, vector<2048x64xbf16>, vector<32x64xf32> -> vector<32x64xf32>
    %19 = arith.truncf %18 : vector<32x64xf32> to vector<32x64xbf16>
    %c0_12 = arith.constant 0 : index
    %c0_13 = arith.constant 0 : index
    %20 = vector.load %arg5[%c0_12, %c0_13] : memref<64x128xbf16, #tpu.memory_space<vmem>>, vector<64x128xbf16>
    %cst_14 = arith.constant dense<0.000000e+00> : vector<32x128xf32>
    %21 = tpu.matmul %19, %20, %cst_14 {dimension_numbers = #tpu.dot_dimension_numbers<[1], [0], [0], [1], [0, 0, 1, 1], [], []>} : vector<32x64xbf16>, vector<64x128xbf16>, vector<32x128xf32> -> vector<32x128xf32>
    %cst_15 = arith.constant dense<0.000000e+00> : vector<32xf32>
    %22 = vector.multi_reduction <add>, %21, %cst_15 [1] : vector<32x128xf32> to vector<32xf32>
    %23 = vector.shape_cast %22 : vector<32xf32> to vector<32x1xf32>
    %cst_16 = arith.constant 1.280000e+02 : f32
    %24 = vector.broadcast %cst_16 : f32 to vector<32x1xf32>
    %25 = arith.divf %23, %24 : vector<32x1xf32>
    %26 = vector.broadcast %25 : vector<32x1xf32> to vector<32x128xf32>
    %27 = arith.subf %21, %26 : vector<32x128xf32>
    %28 = arith.mulf %27, %27 : vector<32x128xf32>
    %cst_17 = arith.constant dense<0.000000e+00> : vector<32xf32>
    %29 = vector.multi_reduction <add>, %28, %cst_17 [1] : vector<32x128xf32> to vector<32xf32>
    %30 = vector.shape_cast %29 : vector<32xf32> to vector<32x1xf32>
    %cst_18 = arith.constant 1.280000e+02 : f32
    %31 = vector.broadcast %cst_18 : f32 to vector<32x1xf32>
    %32 = arith.divf %30, %31 : vector<32x1xf32>
    %33 = vector.broadcast %25 : vector<32x1xf32> to vector<32x128xf32>
    %34 = arith.subf %21, %33 : vector<32x128xf32>
    %cst_19 = arith.constant 9.99999974E-6 : f32
    %35 = vector.broadcast %cst_19 : f32 to vector<32x1xf32>
    %36 = arith.addf %32, %35 : vector<32x1xf32>
    %37 = math.rsqrt %36 : vector<32x1xf32>
    %38 = vector.broadcast %37 : vector<32x1xf32> to vector<32x128xf32>
    %39 = arith.mulf %34, %38 : vector<32x128xf32>
    %c0_20 = arith.constant 0 : index
    %c0_21 = arith.constant 0 : index
    %40 = vector.load %arg6[%c0_20, %c0_21] : memref<1x128xf32, #tpu.memory_space<vmem>>, vector<1x128xf32>
    %41 = vector.broadcast %40 : vector<1x128xf32> to vector<32x128xf32>
    %42 = arith.mulf %39, %41 : vector<32x128xf32>
    %c0_22 = arith.constant 0 : index
    %c0_23 = arith.constant 0 : index
    %43 = vector.load %arg7[%c0_22, %c0_23] : memref<1x128xf32, #tpu.memory_space<vmem>>, vector<1x128xf32>
    %44 = vector.broadcast %43 : vector<1x128xf32> to vector<32x128xf32>
    %45 = arith.addf %42, %44 : vector<32x128xf32>
    %cst_24 = arith.constant 3.000000e+00 : f32
    %46 = vector.broadcast %cst_24 : f32 to vector<32x128xf32>
    %47 = arith.addf %45, %46 : vector<32x128xf32>
    %cst_25 = arith.constant 0.000000e+00 : f32
    %cst_26 = arith.constant 6.000000e+00 : f32
    %48 = vector.broadcast %cst_25 : f32 to vector<32x128xf32>
    %49 = arith.maximumf %48, %47 : vector<32x128xf32>
    %50 = vector.broadcast %cst_26 : f32 to vector<32x128xf32>
    %51 = arith.minimumf %50, %49 : vector<32x128xf32>
    %52 = arith.mulf %45, %51 : vector<32x128xf32>
    %cst_27 = arith.constant 0.166666672 : f32
    %53 = vector.broadcast %cst_27 : f32 to vector<32x128xf32>
    %54 = arith.mulf %52, %53 : vector<32x128xf32>
    %55 = arith.truncf %54 : vector<32x128xf32> to vector<32x128xbf16>
    %c0_28 = arith.constant 0 : index
    %c0_29 = arith.constant 0 : index
    %56 = vector.load %arg8[%c0_28, %c0_29] : memref<128x128xbf16, #tpu.memory_space<vmem>>, vector<128x128xbf16>
    %cst_30 = arith.constant dense<0.000000e+00> : vector<32x128xf32>
    %57 = tpu.matmul %55, %56, %cst_30 {dimension_numbers = #tpu.dot_dimension_numbers<[1], [0], [0], [1], [0, 0, 1, 1], [], []>} : vector<32x128xbf16>, vector<128x128xbf16>, vector<32x128xf32> -> vector<32x128xf32>
    %c0_31 = arith.constant 0 : index
    %c0_32 = arith.constant 0 : index
    %58 = vector.load %arg9[%c0_31, %c0_32] : memref<1x128xf32, #tpu.memory_space<vmem>>, vector<1x128xf32>
    %59 = vector.broadcast %58 : vector<1x128xf32> to vector<32x128xf32>
    %60 = arith.addf %57, %59 : vector<32x128xf32>
    %c0_33 = arith.constant 0 : index
    %c0_34 = arith.constant 0 : index
    %61 = vector.load %arg10[%c0_33, %c0_34] : memref<32x128xf32, #tpu.memory_space<vmem>>, vector<32x128xf32>
    tpu.vector_store %arg10[%c0_33, %c0_34], %60 {strides = array<i32>} : memref<32x128xf32, #tpu.memory_space<vmem>>, vector<32x128xf32>,
    return
  }
  func.func @transform_0(%arg0: i32) -> (i32, i32, i32) {
    %c0_i32 = arith.constant 0 : i32
    %c0_i32_0 = arith.constant 0 : i32
    %c0_i32_1 = arith.constant 0 : i32
    return %arg0, %c0_i32, %c0_i32_0 : i32, i32, i32
  }
  func.func @transform_1(%arg0: i32) -> (i32, i32) {
    %c0_i32 = arith.constant 0 : i32
    %c0_i32_0 = arith.constant 0 : i32
    %c0_i32_1 = arith.constant 0 : i32
    return %c0_i32, %c0_i32_0 : i32, i32
  }
  func.func @transform_2(%arg0: i32) -> (i32, i32) {
    %c0_i32 = arith.constant 0 : i32
    %c0_i32_0 = arith.constant 0 : i32
    %c0_i32_1 = arith.constant 0 : i32
    return %c0_i32, %c0_i32_0 : i32, i32
  }
  func.func @transform_3(%arg0: i32) -> (i32, i32) {
    %c0_i32 = arith.constant 0 : i32
    %c0_i32_0 = arith.constant 0 : i32
    %c0_i32_1 = arith.constant 0 : i32
    return %c0_i32, %c0_i32_0 : i32, i32
  }
  func.func @transform_4(%arg0: i32) -> (i32, i32) {
    %c0_i32 = arith.constant 0 : i32
    %c0_i32_0 = arith.constant 0 : i32
    %c0_i32_1 = arith.constant 0 : i32
    return %c0_i32, %c0_i32_0 : i32, i32
  }
  func.func @transform_5(%arg0: i32) -> (i32, i32) {
    %c0_i32 = arith.constant 0 : i32
    %c0_i32_0 = arith.constant 0 : i32
    %c0_i32_1 = arith.constant 0 : i32
    return %c0_i32, %c0_i32_0 : i32, i32
  }
  func.func @transform_6(%arg0: i32) -> (i32, i32) {
    %c0_i32 = arith.constant 0 : i32
    %c0_i32_0 = arith.constant 0 : i32
    %c0_i32_1 = arith.constant 0 : i32
    return %c0_i32, %c0_i32_0 : i32, i32
  }
  func.func @transform_7(%arg0: i32) -> (i32, i32) {
    %c0_i32 = arith.constant 0 : i32
    %c0_i32_0 = arith.constant 0 : i32
    %c0_i32_1 = arith.constant 0 : i32
    return %c0_i32, %c0_i32_0 : i32, i32
  }
  func.func @transform_8(%arg0: i32) -> (i32, i32) {
    %c0_i32 = arith.constant 0 : i32
    %c0_i32_0 = arith.constant 0 : i32
    %c0_i32_1 = arith.constant 0 : i32
    return %c0_i32, %c0_i32_0 : i32, i32
  }
  func.func @transform_9(%arg0: i32) -> (i32, i32) {
    %c0_i32 = arith.constant 0 : i32
    %c0_i32_0 = arith.constant 0 : i32
    return %arg0, %c0_i32 : i32, i32
  }
}

</mosaic_0001>

<bundles_post_ra>
// kernel: tpu_custom_call.1
= control target key start
LH: loop header
LB: loop body
LE: loop exit
PB: predicated region body
PF: predicated region fallthrough
CT: control target
= control target key end

     0   :  { %14 = vsyncpa [#allocation3], 0  ;;  %s7751_s0 = inlined_call_operand.vmem [shape: bf16[64,64,32], index: 0, kind: input, shape index: {}]   ;;  %s7752_s1 = inlined_call_operand.vmem [shape: bf16[32,2048], index: 1, kind: input, shape index: {}]   ;;  %s7753_s2 = inlined_call_operand.vmem [shape: bf16[32,64], index: 2, kind: input, shape index: {}]   ;;  %s7754_s3 = inlined_call_operand.vmem [shape: bf16[1,64], index: 3, kind: input, shape index: {}]   ;;  %s7755_s4 = inlined_call_operand.vmem [shape: bf16[64,128], index: 4, kind: input, shape index: {}]   ;;  %s7756_s5 = inlined_call_operand.vmem [shape: f32[1,128], index: 5, kind: input, shape index: {}]   ;;  %s7757_s6 = inlined_call_operand.vmem [shape: f32[1,128], index: 6, kind: input, shape index: {}]   ;;  %s7758_s7 = inlined_call_operand.vmem [shape: bf16[128,128], index: 7, kind: input, shape index: {}]   ;;  %s7759_s8 = inlined_call_operand.vmem [shape: f32[1,128], index: 8, kind: input, shape index: {}]   ;;  %s7760_s9 = inlined_call_operand.hbm [shape: f32[64,128], index: 9, kind: output, shape index: {}]  }
   0x1   :  { %16 = vsyncpa [#allocation3 + $0x1], 0  ;;  %s5731_s30 = smov 0   ;;  %s5733_s10 = smov 0  }
   0x2   :  { %s5735_s11 = smov 0   ;;  %s5737_s12 = smov 0  }
   0x3 LB: > { %s5752_s13 = sadd.s32 4294967295, %s5674_s12   ;;  %s4433_s14 = sadd.s32 4294967294, %s5674_s12   ;;  %s5674_s12 = sphi %s5737_s12, %s7895_s12   ;;  %s5670_s11 = sphi %s5735_s11, %s7894_s11   ;;  %s5666_s10 = sphi %s5733_s10, %s7893_s10   ;;  %s5662_s30 = sphi %s5731_s30, %s7892_s30  }
   0x4   : > { %s5756_s15 = sadd.s32 1, %s5674_s12   ;;  %s223_s16 = sadd.s32 1, %s5670_s11 }
   0x5   : > { %s220_s17 = ssub.s32 %s5674_s12, %s5756_s15  ;;  %p233_p0 = scmp.ne.s32.totalorder %s5670_s11, %s5666_s10 }
   0x6   : > { %p221_p1 = scmp.eq.s32.totalorder %s220_s17, 0  ;;  %p234_p2 = scmp.eq.s32.totalorder %s5752_s13, 1 }
   0x7   : > { %p239_p3 = scmp.ne.s32.totalorder %s5666_s10, %s5662_s30  ;;  %p240_p4 = scmp.eq.s32.totalorder %s4433_s14, 1 }
   0x8   : > { %s5767_s18 = scalar_select %p221_p1, %s5670_s11, %s223_s16  }
   0x9   : > { %p5769_p5 = por %p234_p2, %p233_p0  ;;  %p5773_p6 = por %p240_p4, %p239_p3 }
   0xa   : > { %p4436_p7 = scmp.ge.s32.totalorder %s5674_s12, 1  ;;  %p292_p8 = scmp.lt.s32.totalorder %s5674_s12, 3 }
   0xc   : > { %p293_p9 = pnand %p4436_p7, %p292_p8 }
   0xe   : > { %296 = sbr.rel (%p293_p9) target bundleno = 1658 (0x67a), region = 56 }
  0x13   : > { %v5464_v0 = vld [vmem:[%s7753_s2 + $0x8] sm:$0xff]   ;;  %s4438_s23 = sshll.u32 %s5752_s13, 5  ;;  %v5465_v1 = vld [vmem:[%s7753_s2] sm:$0xff]   ;;  %vm1252_vm0 = vcmask 261120   ;;  %vm4088_vm1 = vcmask 523264  }
  0x14   : > { %p330_p10 = scmp.lt.s32.totalorder %s4438_s23, 63  ;;  %5125 = vmatprep.subr.bf16.mxu0 %v5464_v0  ;;  %5417 = vmatprep.subr.bf16.mxu1 %v5464_v0 }
  0x15   : > { %5126 = vmatpush3.bf16.msra.mxu0 %v5464_v0  ;;  %5419 = vmatpush3.bf16.msra.mxu1 %v5464_v0 }
  0x16   : > { %s7897_s23 = smov (!%p330_p10, %s4438_s23), 63  ;;  %5127 = vmatprep.subr.bf16.mxu0 %v5465_v1  ;;  %5418 = vmatprep.subr.bf16.mxu1 %v5465_v1 }
  0x17   : > { %s4753_s26 = sshll.u32 %s7897_s23, 5  ;;  %s4754_s23 = sshll.u32 %s5752_s13, 9 }
  0x18   : > { %s5789_s29 = scalar_lea.vmem %s7751_s0, %s4753_s26  ;;  %s7709_s26 = scalar_lea.hbm %s7760_s9, %s4754_s23 }
  0x19   : > { %5128 = vmatpush3.bf16.msra.mxu0 %v5465_v1  ;;  %v5466_v2 = vld [vmem:[%s5789_s29] sm:$0xff]   ;;  %5420 = vmatpush3.bf16.msra.mxu1 %v5465_v1  ;;  %v5467_v3 = vld [vmem:[%s5789_s29 + $0x8] sm:$0xff]   ;;  %v5468_v4 = vld [vmem:[%s5789_s29 + $0x10] sm:$0xff]   ;;  %s5678_s13 = smov [#allocation2]  }
  0x1a   : > { %5129 = vmatprep.mubr.msk.bf16.mxu0 %vm1252_vm0, %v5466_v2  ;;  %v5469_v5 = vld [vmem:[%s5789_s29 + $0x18] sm:$0xff]   ;;  %v5470_v6 = vld [vmem:[%s5789_s29 + $0x20] sm:$0xff]   ;;  %v5471_v7 = vld [vmem:[%s5789_s29 + $0x28] sm:$0xff]  }
  0x1b   : > { %v5472_v8 = vld [vmem:[%s5789_s29 + $0x30] sm:$0xff]   ;;  %v5473_v9 = vld [vmem:[%s5789_s29 + $0x38] sm:$0xff]   ;;  %v5474_v10 = vld [vmem:[%s5789_s29 + $0x40] sm:$0xff]  }
  0x1c   : > { %5130 = vmatmul.mubr.msk.bf16.vlgmr.msra.gmra.mxu0 %vm1252_vm0, %v5467_v3  ;;  %v5475_v11 = vld [vmem:[%s5789_s29 + $0x48] sm:$0xff]   ;;  %v5476_v12 = vld [vmem:[%s5789_s29 + $0x50] sm:$0xff]   ;;  %v5477_v13 = vld [vmem:[%s5789_s29 + $0x58] sm:$0xff]  }
  0x1d   : > { %5133 = vmatprep.mubr.msk.bf16.mxu0 %vm1252_vm0, %v5468_v4  ;;  %v5478_v14 = vld [vmem:[%s5789_s29 + $0x60] sm:$0xff]   ;;  %v5479_v15 = vld [vmem:[%s5789_s29 + $0x68] sm:$0xff]   ;;  %v5480_v16 = vld [vmem:[%s5789_s29 + $0x70] sm:$0xff]  }
  0x1e   : > { %v5481_v17 = vld [vmem:[%s5789_s29 + $0x78] sm:$0xff]   ;;  %v5482_v18 = vld [vmem:[%s5789_s29 + $0x80] sm:$0xff]   ;;  %v5483_v19 = vld [vmem:[%s5789_s29 + $0x88] sm:$0xff]  }
  0x1f   : > { %v5484_v20 = vld [vmem:[%s5789_s29 + $0x90] sm:$0xff]   ;;  %v5485_v21 = vld [vmem:[%s5789_s29 + $0x98] sm:$0xff]   ;;  %v5486_v22 = vld [vmem:[%s5789_s29 + $0xa0] sm:$0xff]  }
  0x20   : > { %v5487_v23 = vld [vmem:[%s5789_s29 + $0xa8] sm:$0xff]   ;;  %v5488_v24 = vld [vmem:[%s5789_s29 + $0xb0] sm:$0xff]   ;;  %v5489_v25 = vld [vmem:[%s5789_s29 + $0xb8] sm:$0xff]  }
  0x21   : > { %v5490_v26 = vld [vmem:[%s5789_s29 + $0xc0] sm:$0xff]   ;;  %v5523_v28 = vld [vmem:[%s5789_s29 + $0x328] sm:$0xff]   ;;  %v5492_v30 = vld [vmem:[%s5789_s29 + $0xd0] sm:$0xff]  }
  0x22   : > { %v5522_v27 = vld [vmem:[%s5789_s29 + $0x320] sm:$0xff]   ;;  %v5491_v29 = vld [vmem:[%s5789_s29 + $0xc8] sm:$0xff]   ;;  %v5526_v31 = vld [vmem:[%s5789_s29 + $0x330] sm:$0xff]  }
  0x23   : > { %5329 = vmatprep.mubr.msk.bf16.mxu1 %vm1252_vm0, %v5522_v27  ;;  %v5527_v32 = vld [vmem:[%s5789_s29 + $0x338] sm:$0xff]   ;;  %v5494_v34 = vld [vmem:[%s5789_s29 + $0xe0] sm:$0xff]   ;;  %v5531_v36 = vld [vmem:[%s5789_s29 + $0x348] sm:$0xff]  }
  0x24   : > { %5134 = vmatmul.mubr.msk.bf16.gmra.mxu0 %vm1252_vm0, %v5469_v5  ;;  %5330 = vmatmul.mubr.msk.bf16.vlgmr.msra.gmra.mxu1 %vm1252_vm0, %v5523_v28  ;;  %v5493_v33 = vld [vmem:[%s5789_s29 + $0xd8] sm:$0xff]   ;;  %v5530_v35 = vld [vmem:[%s5789_s29 + $0x340] sm:$0xff]   ;;  %v5495_v37 = vld [vmem:[%s5789_s29 + $0xe8] sm:$0xff]  }
  0x25   : > { %5137 = vmatprep.mubr.msk.bf16.mxu0 %vm1252_vm0, %v5470_v6  ;;  %5333 = vmatprep.mubr.msk.bf16.mxu1 %vm1252_vm0, %v5526_v31  ;;  %v5496_v38 = vld [vmem:[%s5789_s29 + $0xf0] sm:$0xff]   ;;  %v5535_v40 = vld [vmem:[%s5789_s29 + $0x358] sm:$0xff]   ;;  %v5498_v42 = vld [vmem:[%s5789_s29 + $0x100] sm:$0xff]  }
  0x26   : > { %v5534_v39 = vld [vmem:[%s5789_s29 + $0x350] sm:$0xff]   ;;  %v5497_v41 = vld [vmem:[%s5789_s29 + $0xf8] sm:$0xff]   ;;  %v5538_v43 = vld [vmem:[%s5789_s29 + $0x360] sm:$0xff]  }
  0x27   : > { %v5539_v44 = vld [vmem:[%s5789_s29 + $0x368] sm:$0xff]   ;;  %v5500_v46 = vld [vmem:[%s5789_s29 + $0x110] sm:$0xff]   ;;  %v5543_v48 = vld [vmem:[%s5789_s29 + $0x378] sm:$0xff]  }
  0x28   : > { %v5499_v45 = vld [vmem:[%s5789_s29 + $0x108] sm:$0xff]   ;;  %v5542_v47 = vld [vmem:[%s5789_s29 + $0x370] sm:$0xff]   ;;  %v5501_v49 = vld [vmem:[%s5789_s29 + $0x118] sm:$0xff]  }
  0x29   : > { %v5502_v50 = vld [vmem:[%s5789_s29 + $0x120] sm:$0xff]   ;;  %v5547_v52 = vld [vmem:[%s5789_s29 + $0x388] sm:$0xff]   ;;  %v5504_v54 = vld [vmem:[%s5789_s29 + $0x130] sm:$0xff]  }
  0x2a   : > { %v5546_v51 = vld [vmem:[%s5789_s29 + $0x380] sm:$0xff]   ;;  %v5503_v53 = vld [vmem:[%s5789_s29 + $0x128] sm:$0xff]   ;;  %v5550_v55 = vld [vmem:[%s5789_s29 + $0x390] sm:$0xff]  }
  0x2b   : > { %v5551_v56 = vld [vmem:[%s5789_s29 + $0x398] sm:$0xff]   ;;  %v5506_v58 = vld [vmem:[%s5789_s29 + $0x140] sm:$0xff]   ;;  %v5555_v60 = vld [vmem:[%s5789_s29 + $0x3a8] sm:$0xff]  }
  0x2c   : > { %5138 = vmatmul.mubr.msk.bf16.gmra.mxu0 %vm1252_vm0, %v5471_v7  ;;  %5334 = vmatmul.mubr.msk.bf16.gmra.mxu1 %vm1252_vm0, %v5527_v32  ;;  %v5505_v57 = vld [vmem:[%s5789_s29 + $0x138] sm:$0xff]   ;;  %v5554_v59 = vld [vmem:[%s5789_s29 + $0x3a0] sm:$0xff]   ;;  %v5507_v61 = vld [vmem:[%s5789_s29 + $0x148] sm:$0xff]  }
  0x2d   : > { %5141 = vmatprep.mubr.msk.bf16.mxu0 %vm1252_vm0, %v5472_v8  ;;  %5337 = vmatprep.mubr.msk.bf16.mxu1 %vm1252_vm0, %v5530_v35  ;;  %v5508_v62 = vld [vmem:[%s5789_s29 + $0x150] sm:$0xff]   ;;  %v5559_v0 = vld [vmem:[%s5789_s29 + $0x3b8] sm:$0xff]   ;;  %v5510_v2 = vld [vmem:[%s5789_s29 + $0x160] sm:$0xff]  }
  0x2e   : > { %v5558_v63 = vld [vmem:[%s5789_s29 + $0x3b0] sm:$0xff]   ;;  %v5509_v1 = vld [vmem:[%s5789_s29 + $0x158] sm:$0xff]   ;;  %v5562_v3 = vld [vmem:[%s5789_s29 + $0x3c0] sm:$0xff]  }
  0x2f   : > { %v5563_v4 = vld [vmem:[%s5789_s29 + $0x3c8] sm:$0xff]   ;;  %v5512_v6 = vld [vmem:[%s5789_s29 + $0x170] sm:$0xff]   ;;  %v5567_v8 = vld [vmem:[%s5789_s29 + $0x3d8] sm:$0xff]  }
  0x30   : > { %v5511_v5 = vld [vmem:[%s5789_s29 + $0x168] sm:$0xff]   ;;  %v5566_v7 = vld [vmem:[%s5789_s29 + $0x3d0] sm:$0xff]  }
  0x31   : > { %v5519_v32 = vld [vmem:[%s5789_s29 + $0x1a8] sm:$0xff]  }
  0x34   : > { %5142 = vmatmul.mubr.msk.bf16.gmra.mxu0 %vm1252_vm0, %v5473_v9  ;;  %5338 = vmatmul.mubr.msk.bf16.gmra.mxu1 %vm1252_vm0, %v5531_v36  ;;  %v5513_v9 = vld [vmem:[%s5789_s29 + $0x178] sm:$0xff]  }
  0x35   : > { %5145 = vmatprep.mubr.msk.bf16.mxu0 %vm1252_vm0, %v5474_v10  ;;  %5341 = vmatprep.mubr.msk.bf16.mxu1 %vm1252_vm0, %v5534_v39  ;;  %v5514_v10 = vld [vmem:[%s5789_s29 + $0x180] sm:$0xff]  }
  0x3c   : > { %5146 = vmatmul.mubr.msk.bf16.gmra.mxu0 %vm1252_vm0, %v5475_v11  ;;  %5342 = vmatmul.mubr.msk.bf16.gmra.mxu1 %vm1252_vm0, %v5535_v40  ;;  %v5570_v11 = vld [vmem:[%s5789_s29 + $0x3e0] sm:$0xff]   ;;  %v5521_v40 = vld [vmem:[%s5789_s29 + $0x1b8] sm:$0xff]  }
  0x3d   : > { %5149 = vmatprep.mubr.msk.bf16.mxu0 %vm1252_vm0, %v5476_v12  ;;  %5345 = vmatprep.mubr.msk.bf16.mxu1 %vm1252_vm0, %v5538_v43  ;;  %v5571_v12 = vld [vmem:[%s5789_s29 + $0x3e8] sm:$0xff]  }
  0x44   : > { %5150 = vmatmul.mubr.msk.bf16.gmra.mxu0 %vm1252_vm0, %v5477_v13  ;;  %5346 = vmatmul.mubr.msk.bf16.gmra.mxu1 %vm1252_vm0, %v5539_v44  ;;  %v5515_v13 = vld [vmem:[%s5789_s29 + $0x188] sm:$0xff]  }
  0x45   : > { %5153 = vmatprep.mubr.msk.bf16.mxu0 %vm1252_vm0, %v5478_v14  ;;  %5349 = vmatprep.mubr.msk.bf16.mxu1 %vm1252_vm0, %v5542_v47  ;;  %v5516_v14 = vld [vmem:[%s5789_s29 + $0x190] sm:$0xff]  }
  0x46   : > { %v5528_v47 = vld [vmem:[%s5789_s29 + $0x1d0] sm:$0xff]  }
  0x4c   : > { %5154 = vmatmul.mubr.msk.bf16.gmra.mxu0 %vm1252_vm0, %v5479_v15  ;;  %5350 = vmatmul.mubr.msk.bf16.gmra.mxu1 %vm1252_vm0, %v5543_v48  ;;  %v5574_v15 = vld [vmem:[%s5789_s29 + $0x3f0] sm:$0xff]  }
  0x4d   : > { %5157 = vmatprep.mubr.msk.bf16.mxu0 %vm1252_vm0, %v5480_v16  ;;  %5353 = vmatprep.mubr.msk.bf16.mxu1 %vm1252_vm0, %v5546_v51 }
  0x54   : > { %5158 = vmatmul.mubr.msk.bf16.gmra.mxu0 %vm1252_vm0, %v5481_v17  ;;  %5354 = vmatmul.mubr.msk.bf16.gmra.mxu1 %vm1252_vm0, %v5547_v52  ;;  %v5575_v17 = vld [vmem:[%s5789_s29 + $0x3f8] sm:$0xff]  }
  0x55   : > { %5161 = vmatprep.mubr.msk.bf16.mxu0 %vm1252_vm0, %v5482_v18  ;;  %5357 = vmatprep.mubr.msk.bf16.mxu1 %vm1252_vm0, %v5550_v55  ;;  %v5529_v52 = vld [vmem:[%s5789_s29 + $0x1d8] sm:$0xff]  }
  0x5c   : > { %5162 = vmatmul.mubr.msk.bf16.gmra.mxu0 %vm1252_vm0, %v5483_v19  ;;  %5358 = vmatmul.mubr.msk.bf16.gmra.mxu1 %vm1252_vm0, %v5551_v56  ;;  %v2826_v56 = vlaneseq }
  0x5d   : > { %5165 = vmatprep.mubr.msk.bf16.mxu0 %vm1252_vm0, %v5484_v20  ;;  %5361 = vmatprep.mubr.msk.bf16.mxu1 %vm1252_vm0, %v5554_v59  ;;  %v5517_v20 = vld [vmem:[%s5789_s29 + $0x198] sm:$0xff]   ;;  %v5533_v59 = vld [vmem:[%s5789_s29 + $0x1e8] sm:$0xff]  }
  0x64   : > { %5166 = vmatmul.mubr.msk.bf16.gmra.mxu0 %vm1252_vm0, %v5485_v21  ;;  %5362 = vmatmul.mubr.msk.bf16.gmra.mxu1 %vm1252_vm0, %v5555_v60  ;;  %v2827_v60 = vshrl.u32 %v2826_v56, 7 }
  0x65   : > { %5169 = vmatprep.mubr.msk.bf16.mxu0 %vm1252_vm0, %v5486_v22  ;;  %5365 = vmatprep.mubr.msk.bf16.mxu1 %vm1252_vm0, %v5558_v63  ;;  %v5518_v22 = vld [vmem:[%s5789_s29 + $0x1a0] sm:$0xff]  }
  0x6c   : > { %5170 = vmatmul.mubr.msk.bf16.gmra.mxu0 %vm1252_vm0, %v5487_v23  ;;  %5366 = vmatmul.mubr.msk.bf16.gmra.mxu1 %vm1252_vm0, %v5559_v0 }
  0x6d   : > { %5173 = vmatprep.mubr.msk.bf16.mxu0 %vm1252_vm0, %v5488_v24  ;;  %5369 = vmatprep.mubr.msk.bf16.mxu1 %vm1252_vm0, %v5562_v3  ;;  %v5964_v24 = vld [vmem:[%s7752_s1] sm:$0xff] }
  0x74   : > { %5174 = vmatmul.mubr.msk.bf16.gmra.mxu0 %vm1252_vm0, %v5489_v25  ;;  %5370 = vmatmul.mubr.msk.bf16.gmra.mxu1 %vm1252_vm0, %v5563_v4  ;;  %v5969_v25 = vld [vmem:[%s7752_s1 + $0x40] sm:$0xff] }
  0x75   : > { %5177 = vmatprep.mubr.msk.bf16.mxu0 %vm1252_vm0, %v5490_v26  ;;  %5373 = vmatprep.mubr.msk.bf16.mxu1 %vm1252_vm0, %v5566_v7  ;;  %v4700_v27 = vcombine.high %v5964_v24, %v5969_v25 }
  0x7c   : > { %5178 = vmatmul.mubr.msk.bf16.gmra.mxu0 %vm1252_vm0, %v5491_v29  ;;  %5374 = vmatmul.mubr.msk.bf16.gmra.mxu1 %vm1252_vm0, %v5567_v8  ;;  %v4699_v29 = vcombine.low %v5964_v24, %v5969_v25  ;;  %v5540_v8 = vld [vmem:[%s5789_s29 + $0x200] sm:$0xff]  }
  0x7d   : > { %5181 = vmatprep.mubr.msk.bf16.mxu0 %vm1252_vm0, %v5492_v30  ;;  %5377 = vmatprep.mubr.msk.bf16.mxu1 %vm1252_vm0, %v5570_v11 }
  0x84   : > { %5182 = vmatmul.mubr.msk.bf16.gmra.mxu0 %vm1252_vm0, %v5493_v33  ;;  %5378 = vmatmul.mubr.msk.bf16.gmra.mxu1 %vm1252_vm0, %v5571_v12 }
  0x85   : > { %5185 = vmatprep.mubr.msk.bf16.mxu0 %vm1252_vm0, %v5494_v34  ;;  %5381 = vmatprep.mubr.msk.bf16.mxu1 %vm1252_vm0, %v5574_v15  ;;  %v5520_v34 = vld [vmem:[%s5789_s29 + $0x1b0] sm:$0xff]  }
  0x8c   : > { %5186 = vmatmul.mubr.msk.bf16.gmra.mxu0 %vm1252_vm0, %v5495_v37  ;;  %5382 = vmatmul.mubr.msk.bf16.gmra.mxu1 %vm1252_vm0, %v5575_v17 }
  0x8d   : > { %5189 = vmatprep.mubr.msk.bf16.mxu0 %vm1252_vm0, %v5496_v38  ;;  %3694 = vmatprep.mubr.bf16.mxu1 %v4700_v27 }
  0x94   : > { %5190 = vmatmul.mubr.msk.bf16.gmra.mxu0 %vm1252_vm0, %v5497_v41  ;;  %v5524_v41 = vld [vmem:[%s5789_s29 + $0x1c0] sm:$0xff]  }
  0x95   : > { %5193 = vmatprep.mubr.msk.bf16.mxu0 %vm1252_vm0, %v5498_v42 }
  0x9c   : > { %5194 = vmatmul.mubr.msk.bf16.gmra.mxu0 %vm1252_vm0, %v5499_v45 }
  0x9d   : > { %5197 = vmatprep.mubr.msk.bf16.mxu0 %vm1252_vm0, %v5500_v46  ;;  %v5525_v46 = vld [vmem:[%s5789_s29 + $0x1c8] sm:$0xff]  }
  0xa4   : > { %5198 = vmatmul.mubr.msk.bf16.gmra.mxu0 %vm1252_vm0, %v5501_v49 }
  0xa5   : > { %5201 = vmatprep.mubr.msk.bf16.mxu0 %vm1252_vm0, %v5502_v50 }
  0xac   : > { %5202 = vmatmul.mubr.msk.bf16.gmra.mxu0 %vm1252_vm0, %v5503_v53  ;;  %v5532_v53 = vld [vmem:[%s5789_s29 + $0x1e0] sm:$0xff]  }
  0xad   : > { %5205 = vmatprep.mubr.msk.bf16.mxu0 %vm1252_vm0, %v5504_v54 }
  0xb4   : > { %5206 = vmatmul.mubr.msk.bf16.gmra.mxu0 %vm1252_vm0, %v5505_v57 }
  0xb5   : > { %5209 = vmatprep.mubr.msk.bf16.mxu0 %vm1252_vm0, %v5506_v58 }
  0xbc   : > { %5210 = vmatmul.mubr.msk.bf16.gmra.mxu0 %vm1252_vm0, %v5507_v61  ;;  %v5536_v61 = vld [vmem:[%s5789_s29 + $0x1f0] sm:$0xff]  }
  0xbd   : > { %5213 = vmatprep.mubr.msk.bf16.mxu0 %vm1252_vm0, %v5508_v62  ;;  %v2822_v62 = vld [vmem:[%s7754_s3] sm:$0x1] }
  0xc4   : > { %5214 = vmatmul.mubr.msk.bf16.gmra.mxu0 %vm1252_vm0, %v5509_v1  ;;  %v2824_v1 = vpack.i.b16 %v2822_v62, %v2822_v62 }
  0xc5   : > { %5217 = vmatprep.mubr.msk.bf16.mxu0 %vm1252_vm0, %v5510_v2  ;;  %v2828_v2 = vsub.s32 0, %v2827_v60 }
  0xc7   : > { %v6035_v7 = vrot.slane %v2824_v1, %v2828_v2 }
  0xcc   : > { %5218 = vmatmul.mubr.msk.bf16.gmra.mxu0 %vm1252_vm0, %v5511_v5 }
  0xcd   : > { %5221 = vmatprep.mubr.msk.bf16.mxu0 %vm1252_vm0, %v5512_v6  ;;  %v5537_v6 = vld [vmem:[%s5789_s29 + $0x1f8] sm:$0xff]  }
  0xd4   : > { %5222 = vmatmul.mubr.msk.bf16.gmra.mxu0 %vm1252_vm0, %v5513_v9 }
  0xd5   : > { %5225 = vmatprep.mubr.msk.bf16.mxu0 %vm1252_vm0, %v5514_v10 }
  0xdc   : > { %v5944_v16 = vpop.f32.mrf.mxu0  ;;  %5226 = vmatmul.mubr.msk.bf16.gmra.mxu0 %vm1252_vm0, %v5515_v13 }
  0xdd   : > { %5229 = vmatprep.mubr.msk.bf16.mxu0 %vm1252_vm0, %v5516_v14 }
  0xde   : > { %v5950_v18 = vpop.f32.mrf.mxu0 }
  0xe0   : > { %v5953_v19 = vpop.f32.mrf.mxu0 }
  0xe1   : > { %v2695_v21 = vpack.c.bf16 %v5953_v19, %v5944_v16 }
  0xe2   : > { %v5959_v23 = vpop.f32.mrf.mxu0 }
  0xe3   : > { %v2694_v26 = vpack.c.bf16 %v5959_v23, %v5950_v18 }
  0xe4   : > { %v5975_v28 = vpop.f32.mrf.mxu0  ;;  %5230 = vmatmul.mubr.msk.bf16.gmra.mxu0 %vm1252_vm0, %v5517_v20 }
  0xe5   : > { %5233 = vmatprep.mubr.msk.bf16.mxu0 %vm1252_vm0, %v5518_v22 }
  0xe6   : > { %v5981_v30 = vpop.f32.mrf.mxu0 }
  0xe8   : > { %v5983_v31 = vpop.f32.mrf.mxu0 }
  0xe9   : > { %v2697_v33 = vpack.c.bf16 %v5983_v31, %v5975_v28 }
  0xea   : > { %v5989_v35 = vpop.f32.mrf.mxu0 }
  0xeb   : > { %v2696_v36 = vpack.c.bf16 %v5989_v35, %v5981_v30  ;;  %v5549_v30 = vld [vmem:[%s5789_s29 + $0x228] sm:$0xff]  }
  0xec   : > { %v5993_v37 = vpop.f32.mrf.mxu0  ;;  %5234 = vmatmul.mubr.msk.bf16.gmra.mxu0 %vm1252_vm0, %v5519_v32  ;;  %v5541_v32 = vld [vmem:[%s5789_s29 + $0x208] sm:$0xff]  }
  0xed   : > { %5237 = vmatprep.mubr.msk.bf16.mxu0 %vm1252_vm0, %v5520_v34 }
  0xee   : > { %v5997_v38 = vpop.f32.mrf.mxu0 }
  0xf0   : > { %v5140_v39 = vpop.f32.mrf.mxu0 }
  0xf1   : > { %v2699_v14 = vpack.c.bf16 %v5140_v39, %v5993_v37 }
  0xf2   : > { %v6001_v42 = vpop.f32.mrf.mxu0 }
  0xf3   : > { %v2698_v37 = vpack.c.bf16 %v6001_v42, %v5997_v38 }
  0xf4   : > { %v5143_v43 = vpop.f32.mrf.mxu0  ;;  %5238 = vmatmul.mubr.msk.bf16.gmra.mxu0 %vm1252_vm0, %v5521_v40 }
  0xf5   : > { %5241 = vmatprep.mubr.msk.bf16.mxu0 %vm1252_vm0, %v5524_v41  ;;  %v5544_v41 = vld [vmem:[%s5789_s29 + $0x210] sm:$0xff]  }
  0xf6   : > { %v1719_v44 = vpop.f32.mrf.mxu0 }
  0xf8   : > { %v5144_v45 = vpop.f32.mrf.mxu0 }
  0xf9   : > { %v2701_v4 = vpack.c.bf16 %v5144_v45, %v5143_v43  ;;  %v6054_v43 = vadd.bf16 %v6035_v7, %v2699_v14  ;;  %v5548_v14 = vld [vmem:[%s5789_s29 + $0x220] sm:$0xff]  }
  0xfa   : > { %v1722_v48 = vpop.f32.mrf.mxu0 }
  0xfb   : > { %v6039_v10 = vadd.bf16 %v6035_v7, %v2701_v4  ;;  %v2700_v11 = vpack.c.bf16 %v1722_v48, %v1719_v44  ;;  %v7763_v44 = vmov 0   ;;  %v2963_v60 = vadd.bf16 1077952576, %v6054_v43 }
  0xfc   : > { %v6007_v49 = vpop.f32.mrf.mxu0  ;;  %5242 = vmatmul.mubr.msk.bf16.gmra.mxu0 %vm1252_vm0, %v5525_v46 }
  0xfd   : > { %5245 = vmatprep.mubr.msk.bf16.mxu0 %vm1252_vm0, %v5528_v47  ;;  %v2965_v17 = vadd.bf16 1077952576, %v6039_v10  ;;  %v6046_v20 = vadd.bf16 %v6035_v7, %v2700_v11 }
  0xfe   : > { %v6011_v50 = vpop.f32.mrf.mxu0 }
  0xff   : > { %v3093_v45 = vmax.bf16 %v7763_v44, %v2965_v17  ;;  %v2964_v48 = vadd.bf16 1077952576, %v6046_v20 }
 0x100   : > { %v6013_v51 = vpop.f32.mrf.mxu0 }
 0x101   : > { %v3092_v2 = vmax.bf16 %v7763_v44, %v2964_v48 }
 0x102   : > { %v6017_v54 = vpop.f32.mrf.mxu0 }
 0x104   : > { %v6019_v55 = vpop.f32.mrf.mxu0  ;;  %5246 = vmatmul.mubr.msk.bf16.gmra.mxu0 %vm1252_vm0, %v5529_v52 }
 0x105   : > { %5249 = vmatprep.mubr.msk.bf16.mxu0 %vm1252_vm0, %v5532_v53 }
 0x106   : > { %v6023_v57 = vpop.f32.mrf.mxu0 }
 0x108   : > { %v5152_v58 = vpop.f32.mrf.mxu0 }
 0x109   : > { %v2705_v52 = vpack.c.bf16 %v5152_v58, %v6019_v55  ;;  %v7761_v58 = vmov 1086341312  }
 0x10a   : > { %v6030_v63 = vpop.f32.mrf.mxu0  ;;  %v3221_v62 = vmin.bf16 %v7761_v58, %v3093_v45  ;;  %v3220_v31 = vmin.bf16 %v7761_v58, %v3092_v2 }
 0x10b   : > { %v2704_v4 = vpack.c.bf16 %v6030_v63, %v6023_v57  ;;  %v6099_v57 = vadd.bf16 %v6035_v7, %v2697_v33  ;;  %v3091_v63 = vmax.bf16 %v7763_v44, %v2963_v60 }
 0x10c   : > { %v5155_v0 = vpop.f32.mrf.mxu0  ;;  %5250 = vmatmul.mubr.msk.bf16.gmra.mxu0 %vm1252_vm0, %v5533_v59  ;;  %v3349_v28 = vmul.bf16 %v3221_v62, %v6039_v10 }
 0x10d   : > { %5253 = vmatprep.mubr.msk.bf16.mxu0 %vm1252_vm0, %v5536_v61  ;;  %v6073_v61 = vadd.bf16 %v6035_v7, %v2698_v37  ;;  %v2961_v45 = vadd.bf16 1077952576, %v6099_v57 }
 0x10e   : > { %v1767_v3 = vpop.f32.mrf.mxu0 }
 0x110   : > { %v5156_v5 = vpop.f32.mrf.mxu0 }
 0x111   : > { %v2707_v12 = vpack.c.bf16 %v5156_v5, %v5155_v0 }
 0x112   : > { %v1770_v9 = vpop.f32.mrf.mxu0 }
 0x113   : > { %v6049_v22 = vadd.bf16 %v6035_v7, %v2707_v12  ;;  %v2706_v34 = vpack.c.bf16 %v1770_v9, %v1767_v3  ;;  %v6081_v3 = vadd.bf16 %v6035_v7, %v2705_v52  ;;  %v3348_v52 = vmul.bf16 %v3220_v31, %v6046_v20 }
 0x114   : > { %v5159_v13 = vpop.f32.mrf.mxu0  ;;  %5254 = vmatmul.mubr.msk.bf16.gmra.mxu0 %vm1252_vm0, %v5537_v6 }
 0x115   : > { %5257 = vmatprep.mubr.msk.bf16.mxu0 %vm1252_vm0, %v5540_v8  ;;  %v2971_v53 = vadd.bf16 1077952576, %v6049_v22  ;;  %v6067_v59 = vadd.bf16 %v6035_v7, %v2706_v34  ;;  %v5545_v8 = vld [vmem:[%s5789_s29 + $0x218] sm:$0xff]   ;;  %v2969_v33 = vadd.bf16 1077952576, %v6081_v3 }
 0x116   : > { %v1783_v15 = vpop.f32.mrf.mxu0 }
 0x117   : > { %v3099_v5 = vmax.bf16 %v7763_v44, %v2971_v53  ;;  %v2970_v9 = vadd.bf16 1077952576, %v6067_v59 }
 0x118   : > { %v5160_v27 = vpop.f32.mrf.mxu0 }
 0x119   : > { %v2709_v40 = vpack.c.bf16 %v5160_v27, %v5159_v13  ;;  %v2703_v27 = vpack.c.bf16 %v6013_v51, %v6007_v49  ;;  %v3098_v49 = vmax.bf16 %v7763_v44, %v2970_v9  ;;  %v3227_v10 = vmin.bf16 %v7761_v58, %v3099_v5 }
 0x11a   : > { %v1786_v39 = vpop.f32.mrf.mxu0 }
 0x11b   : > { %v2845_v46 = vadd.bf16 %v6035_v7, %v2709_v40  ;;  %v2708_v47 = vpack.c.bf16 %v1786_v39, %v1783_v15  ;;  %v2962_v15 = vadd.bf16 1077952576, %v6073_v61  ;;  %v6135_v53 = vadd.bf16 %v6035_v7, %v2703_v27 }
 0x11c   : > { %v6063_v56 = vpop.f32.mrf.mxu0  ;;  %5258 = vmatmul.mubr.msk.bf16.gmra.mxu0 %vm1252_vm0, %v5541_v32  ;;  %v3355_v62 = vmul.bf16 %v3227_v10, %v6049_v22  ;;  %v3226_v20 = vmin.bf16 %v7761_v58, %v3098_v49  ;;  %v5556_v49 = vld [vmem:[%s5789_s29 + $0x240] sm:$0xff]  }
 0x11d   : > { %v2973_v38 = vadd.bf16 1077952576, %v2845_v46  ;;  %v2844_v42 = vadd.bf16 %v6035_v7, %v2708_v47  ;;  %5261 = vmatprep.mubr.msk.bf16.mxu0 %vm1252_vm0, %v5544_v41  ;;  %v6114_v41 = vadd.bf16 %v6035_v7, %v2704_v4  ;;  %v3219_v47 = vmin.bf16 %v7761_v58, %v3091_v63 }
 0x11e   : > { %v6075_v55 = vpop.f32.mrf.mxu0  ;;  %v3090_v48 = vmax.bf16 %v7763_v44, %v2962_v15 }
 0x11f   : > { %v3101_v0 = vmax.bf16 %v7763_v44, %v2973_v38  ;;  %v2972_v1 = vadd.bf16 1077952576, %v2844_v42  ;;  %v2702_v38 = vpack.c.bf16 %v6017_v54, %v6011_v50  ;;  %v2968_v35 = vadd.bf16 1077952576, %v6114_v41 }
 0x120   : > { %v6086_v6 = vpop.f32.mrf.mxu0  ;;  %v6155_v50 = vadd.bf16 %v6035_v7, %v2695_v21  ;;  %v3089_v54 = vmax.bf16 %v7763_v44, %v2961_v45  ;;  %v3347_v4 = vmul.bf16 %v3219_v47, %v6054_v43  ;;  %v3218_v5 = vmin.bf16 %v7761_v58, %v3090_v48 }
 0x121   : > { %v3100_v11 = vmax.bf16 %v7763_v44, %v2972_v1  ;;  %v2711_v12 = vpack.c.bf16 %v6086_v6, %v6063_v56  ;;  %v3229_v13 = vmin.bf16 %v7761_v58, %v3101_v0  ;;  %v5552_v0 = vld [vmem:[%s5789_s29 + $0x230] sm:$0xff]   ;;  %v2838_v16 = vadd.bf16 %v6035_v7, %v2702_v38 }
 0x122   : > { %v6103_v17 = vpop.f32.mrf.mxu0  ;;  %v3096_v19 = vmax.bf16 %v7763_v44, %v2968_v35  ;;  %v3354_v21 = vmul.bf16 %v3226_v20, %v6067_v59  ;;  %v3217_v63 = vmin.bf16 %v7761_v58, %v3089_v54  ;;  %v3346_v15 = vmul.bf16 %v3218_v5, %v6073_v61 }
 0x123   : > { %v2710_v32 = vpack.c.bf16 %v6103_v17, %v6075_v55  ;;  %v3357_v34 = vmul.bf16 %v3229_v13, %v2845_v46  ;;  %v3228_v40 = vmin.bf16 %v7761_v58, %v3100_v11  ;;  %v6129_v46 = vadd.bf16 %v6035_v7, %v2696_v36 }
 0x124   : > { %v6116_v37 = vpop.f32.mrf.mxu0  ;;  %5262 = vmatmul.mubr.msk.bf16.gmra.mxu0 %vm1252_vm0, %v5545_v8  ;;  %v2967_v8 = vadd.bf16 1077952576, %v6135_v53  ;;  %v2959_v13 = vadd.bf16 1077952576, %v6155_v50  ;;  %v3345_v61 = vmul.bf16 %v3217_v63, %v6099_v57  ;;  %v6242_v63 = vld [vmem:[%s7752_s1 + $0x8] sm:$0xff] }
 0x125   : > { %4885 = vmatprep.subr.bf16.mxu1 %v3357_v34  ;;  %v3356_v51 = vmul.bf16 %v3228_v40, %v2844_v42  ;;  %5265 = vmatprep.mubr.msk.bf16.mxu0 %vm1252_vm0, %v5548_v14  ;;  %v3097_v42 = vmax.bf16 %v7763_v44, %v2969_v33  ;;  %v2960_v22 = vadd.bf16 1077952576, %v6129_v46  ;;  %v2830_v14 = vadd.bf16 %v6035_v7, %v2694_v26  ;;  %v5553_v34 = vld [vmem:[%s5789_s29 + $0x238] sm:$0xff]  }
 0x126   : > { %v6122_v39 = vpop.f32.mrf.mxu0  ;;  %4886 = vmatpush3.bf16.msra.mxu1 %v3349_v28  ;;  %v3095_v40 = vmax.bf16 %v7763_v44, %v2967_v8  ;;  %v2966_v28 = vadd.bf16 1077952576, %v2838_v16  ;;  %v3224_v33 = vmin.bf16 %v7761_v58, %v3096_v19  ;;  %v3087_v23 = vmax.bf16 %v7763_v44, %v2959_v13  ;;  %v5564_v19 = vld [vmem:[%s5789_s29 + $0x260] sm:$0xff]  }
 0x127   : > { %4887 = vmatprep.subr.bf16.mxu1 %v3356_v51  ;;  %v3225_v43 = vmin.bf16 %v7761_v58, %v3097_v42  ;;  %v3088_v59 = vmax.bf16 %v7763_v44, %v2960_v22  ;;  %v2958_v26 = vadd.bf16 1077952576, %v2830_v14 }
 0x128   : > { %v6140_v60 = vpop.f32.mrf.mxu0  ;;  %v3352_v45 = vmul.bf16 %v3224_v33, %v6114_v41  ;;  %v3223_v47 = vmin.bf16 %v7761_v58, %v3095_v40  ;;  %v3215_v57 = vmin.bf16 %v7761_v58, %v3087_v23  ;;  %v5568_v40 = vld [vmem:[%s5789_s29 + $0x270] sm:$0xff]   ;;  %v5569_v23 = vld [vmem:[%s5789_s29 + $0x278] sm:$0xff]  }
 0x129   : > { %v2713_v36 = vpack.c.bf16 %v6140_v60, %v6116_v37  ;;  %v3353_v31 = vmul.bf16 %v3225_v43, %v6081_v3  ;;  %v3216_v51 = vmin.bf16 %v7761_v58, %v3088_v59  ;;  %v3094_v3 = vmax.bf16 %v7763_v44, %v2966_v28  ;;  %v6247_v59 = vld [vmem:[%s7752_s1 + $0x48] sm:$0xff] }
 0x12a   : > { %v6149_v1 = vpop.f32.mrf.mxu0  ;;  %4888 = vmatpush3.bf16.msra.mxu1 %v3348_v52  ;;  %v3086_v52 = vmax.bf16 %v7763_v44, %v2958_v26  ;;  %v3351_v35 = vmul.bf16 %v3223_v47, %v6135_v53  ;;  %v5572_v26 = vld [vmem:[%s5789_s29 + $0x280] sm:$0xff]  }
 0x12b   : > { %v2712_v2 = vpack.c.bf16 %v6149_v1, %v6122_v39  ;;  %4889 = vmatprep.subr.bf16.mxu1 %v3355_v62  ;;  %v3344_v38 = vmul.bf16 %v3216_v51, %v6129_v46  ;;  %v3222_v41 = vmin.bf16 %v7761_v58, %v3094_v3  ;;  %v5560_v62 = vld [vmem:[%s5789_s29 + $0x250] sm:$0xff]   ;;  %v5579_v39 = vld [vmem:[%s5789_s29 + $0x2a8] sm:$0xff]  }
 0x12c   : > { %v6164_v9 = vpop.f32.mrf.mxu0  ;;  %5266 = vmatmul.mubr.msk.bf16.gmra.mxu0 %vm1252_vm0, %v5549_v30  ;;  %v5557_v30 = vld [vmem:[%s5789_s29 + $0x248] sm:$0xff]   ;;  %v3214_v54 = vmin.bf16 %v7761_v58, %v3086_v52 }
 0x12d   : > { %5269 = vmatprep.mubr.msk.bf16.mxu0 %vm1252_vm0, %v5552_v0  ;;  %v3343_v0 = vmul.bf16 %v3215_v57, %v6155_v50  ;;  %v3350_v46 = vmul.bf16 %v3222_v41, %v2838_v16  ;;  %v3494_v50 = vld [vmem:[%s7752_s1 + $0xc0] sm:$0xff]  ;;  %v5561_v16 = vld [vmem:[%s5789_s29 + $0x258] sm:$0xff]  }
 0x12e   : > { %v6172_v11 = vpop.f32.mrf.mxu0  ;;  %4890 = vmatpush3.bf16.msra.mxu1 %v3347_v4  ;;  %v3486_v4 = vld [vmem:[%s7752_s1 + $0x80] sm:$0xff]  ;;  %v3342_v5 = vmul.bf16 %v3214_v54, %v2830_v14 }
 0x12f   : > { %4891 = vmatprep.subr.bf16.mxu1 %v3354_v21  ;;  %v4716_v43 = vcombine.high %v3486_v4, %v3494_v50  ;;  %v4715_v24 = vcombine.low %v3486_v4, %v3494_v50 }
 0x130   : > { %v6182_v27 = vpop.f32.mrf.mxu0 }
 0x132   : > { %v6189_v18 = vpop.f32.mrf.mxu0  ;;  %4892 = vmatpush3.bf16.msra.mxu1 %v3346_v15 }
 0x133   : > { %4893 = vmatprep.subr.bf16.mxu1 %v3353_v31 }
 0x134   : > { %v6194_v10 = vpop.f32.mrf.mxu0  ;;  %5270 = vmatmul.mubr.msk.bf16.gmra.mxu0 %vm1252_vm0, %v5553_v34  ;;  %v5565_v34 = vld [vmem:[%s5789_s29 + $0x268] sm:$0xff]  }
 0x135   : > { %5273 = vmatprep.mubr.msk.bf16.mxu0 %vm1252_vm0, %v5556_v49 }
 0x136   : > { %v6201_v48 = vpop.f32.mrf.mxu0  ;;  %4894 = vmatpush3.bf16.msra.mxu1 %v3345_v61 }
 0x137   : > { %4895 = vmatprep.subr.bf16.mxu1 %v3352_v45 }
 0x138   : > { %v5176_v42 = vpop.f32.mrf.mxu0 }
 0x139   : > { %v2717_v33 = vpack.c.bf16 %v5176_v42, %v6194_v10  ;;  %v2715_v10 = vpack.c.bf16 %v6182_v27, %v6164_v9  ;;  %v2714_v9 = vpack.c.bf16 %v6189_v18, %v6172_v11 }
 0x13a   : > { %v1850_v20 = vpop.f32.mrf.mxu0  ;;  %4896 = vmatpush3.bf16.msra.mxu1 %v3344_v38 }
 0x13b   : > { %4897 = vmatprep.subr.bf16.mxu1 %v3351_v35  ;;  %v6261_v51 = vadd.bf16 %v6035_v7, %v2717_v33  ;;  %v2716_v3 = vpack.c.bf16 %v1850_v20, %v6201_v48  ;;  %v5573_v48 = vld [vmem:[%s5789_s29 + $0x288] sm:$0xff]   ;;  %v6278_v20 = vadd.bf16 %v6035_v7, %v2715_v10 }
 0x13c   : > { %v6212_v22 = vpop.f32.mrf.mxu0  ;;  %5274 = vmatmul.mubr.msk.bf16.gmra.mxu0 %vm1252_vm0, %v5557_v30 }
 0x13d   : > { %5277 = vmatprep.mubr.msk.bf16.mxu0 %vm1252_vm0, %v5560_v62  ;;  %v2981_v52 = vadd.bf16 1077952576, %v6261_v51  ;;  %v6270_v38 = vadd.bf16 %v6035_v7, %v2716_v3  ;;  %v5576_v62 = vld [vmem:[%s5789_s29 + $0x290] sm:$0xff]  }
 0x13e   : > { %v6216_v53 = vpop.f32.mrf.mxu0  ;;  %4898 = vmatpush3.bf16.msra.mxu1 %v3343_v0 }
 0x13f   : > { %4899 = vmatprep.subr.bf16.mxu1 %v3350_v46  ;;  %v3109_v0 = vmax.bf16 %v7763_v44, %v2981_v52  ;;  %v2980_v4 = vadd.bf16 1077952576, %v6270_v38 }
 0x140   : > { %v6224_v8 = vpop.f32.mrf.mxu0 }
 0x141   : > { %v2719_v52 = vpack.c.bf16 %v6224_v8, %v6212_v22 }
 0x142   : > { %v6228_v21 = vpop.f32.mrf.mxu0  ;;  %4900 = vmatpush3.bf16.msra.mxu1 %v3342_v5 }
 0x144   : > { %v6230_v13 = vpop.f32.mrf.mxu0  ;;  %5278 = vmatmul.mubr.msk.bf16.gmra.mxu0 %vm1252_vm0, %v5561_v16 }
 0x145   : > { %5281 = vmatprep.mubr.msk.bf16.mxu0 %vm1252_vm0, %v5564_v19  ;;  %3695 = vmatmul.mubr.bf16.vlgmr.msra.gmra.mxu1 %v4699_v29  ;;  %v4702_v29 = vcombine.high %v6242_v63, %v6247_v59 }
 0x146   : > { %v6237_v14 = vpop.f32.mrf.mxu0  ;;  %3702 = vmatprep.mubr.bf16.mxu1 %v4716_v43  ;;  %v2979_v43 = vadd.bf16 1077952576, %v6278_v20 }
 0x148   : > { %v5184_v15 = vpop.f32.mrf.mxu0 }
 0x149   : > { %v2721_v50 = vpack.c.bf16 %v5184_v15, %v6230_v13  ;;  %v6297_v13 = vadd.bf16 %v6035_v7, %v2714_v9 }
 0x14a   : > { %v6251_v25 = vpop.f32.mrf.mxu0 }
 0x14b   : > { %v2978_v10 = vadd.bf16 1077952576, %v6297_v13 }
 0x14c   : > { %v5187_v28 = vpop.f32.mrf.mxu0  ;;  %5282 = vmatmul.mubr.msk.bf16.gmra.mxu0 %vm1252_vm0, %v5565_v34  ;;  %v3237_v34 = vmin.bf16 %v7761_v58, %v3109_v0  ;;  %v6353_v0 = vadd.bf16 %v6035_v7, %v2712_v2 }
 0x14d   : > { %5285 = vmatprep.mubr.msk.bf16.mxu0 %vm1252_vm0, %v5568_v40  ;;  %3703 = vmatmul.mubr.bf16.gmra.mxu1 %v4715_v24 }
 0x14e   : > { %v1895_v31 = vpop.f32.mrf.mxu0  ;;  %3743 = vmatprep.mubr.bf16.mxu1 %v4702_v29  ;;  %v3108_v29 = vmax.bf16 %v7763_v44, %v2980_v4  ;;  %v3365_v37 = vmul.bf16 %v3237_v34, %v6261_v51  ;;  %v5580_v34 = vld [vmem:[%s5789_s29 + $0x2b0] sm:$0xff]  }
 0x150   : > { %v5188_v49 = vpop.f32.mrf.mxu0  ;;  %v3236_v60 = vmin.bf16 %v7761_v58, %v3108_v29 }
 0x151   : > { %v2723_v45 = vpack.c.bf16 %v5188_v49, %v5187_v28  ;;  %v6305_v28 = vadd.bf16 %v6035_v7, %v2721_v50  ;;  %v6359_v50 = vadd.bf16 %v6035_v7, %v2719_v52  ;;  %v5581_v52 = vld [vmem:[%s5789_s29 + $0x2b8] sm:$0xff]  }
 0x152   : > { %v1898_v61 = vpop.f32.mrf.mxu0  ;;  %v3364_v4 = vmul.bf16 %v3236_v60, %v6270_v38 }
 0x153   : > { %v6273_v42 = vadd.bf16 %v6035_v7, %v2723_v45  ;;  %v2722_v35 = vpack.c.bf16 %v1898_v61, %v1895_v31  ;;  %v2720_v31 = vpack.c.bf16 %v6251_v25, %v6237_v14  ;;  %v6323_v14 = vadd.bf16 %v6035_v7, %v2713_v36 }
 0x154   : > { %v5191_v47 = vpop.f32.mrf.mxu0  ;;  %5286 = vmatmul.mubr.msk.bf16.gmra.mxu0 %vm1252_vm0, %v5569_v23  ;;  %v5577_v23 = vld [vmem:[%s5789_s29 + $0x298] sm:$0xff]   ;;  %v3107_v25 = vmax.bf16 %v7763_v44, %v2979_v43  ;;  %v2985_v36 = vadd.bf16 1077952576, %v6305_v28 }
 0x155   : > { %5289 = vmatprep.mubr.msk.bf16.mxu0 %vm1252_vm0, %v5572_v26  ;;  %v2987_v5 = vadd.bf16 1077952576, %v6273_v42  ;;  %v6291_v19 = vadd.bf16 %v6035_v7, %v2722_v35 }
 0x156   : > { %v1911_v57 = vpop.f32.mrf.mxu0 }
 0x157   : > { %v3115_v33 = vmax.bf16 %v7763_v44, %v2987_v5  ;;  %v2986_v26 = vadd.bf16 1077952576, %v6291_v19  ;;  %v2718_v5 = vpack.c.bf16 %v6228_v21, %v6216_v53  ;;  %v6379_v53 = vadd.bf16 %v6035_v7, %v2711_v12 }
 0x158   : > { %v5192_v30 = vpop.f32.mrf.mxu0 }
 0x159   : > { %v2725_v41 = vpack.c.bf16 %v5192_v30, %v5191_v47  ;;  %v5578_v47 = vld [vmem:[%s5789_s29 + $0x2a0] sm:$0xff]   ;;  %v3114_v22 = vmax.bf16 %v7763_v44, %v2986_v26  ;;  %v3243_v51 = vmin.bf16 %v7761_v58, %v3115_v33  ;;  %v2983_v33 = vadd.bf16 1077952576, %v6359_v50 }
 0x15a   : > { %v1914_v27 = vpop.f32.mrf.mxu0  ;;  %v2854_v56 = vadd.bf16 %v6035_v7, %v2718_v5 }
 0x15b   : > { %v2861_v54 = vadd.bf16 %v6035_v7, %v2725_v41  ;;  %v2724_v46 = vpack.c.bf16 %v1914_v27, %v1911_v57  ;;  %v6338_v41 = vadd.bf16 %v6035_v7, %v2720_v31  ;;  %v2977_v27 = vadd.bf16 1077952576, %v6323_v14 }
 0x15c   : > { %v6287_v16 = vpop.f32.mrf.mxu0  ;;  %5290 = vmatmul.mubr.msk.bf16.gmra.mxu0 %vm1252_vm0, %v5573_v48  ;;  %v3371_v43 = vmul.bf16 %v3243_v51, %v6273_v42  ;;  %v3242_v38 = vmin.bf16 %v7761_v58, %v3114_v22  ;;  %v2976_v42 = vadd.bf16 1077952576, %v6353_v0 }
 0x15d   : > { %v2989_v11 = vadd.bf16 1077952576, %v2861_v54  ;;  %v2860_v18 = vadd.bf16 %v6035_v7, %v2724_v46  ;;  %5293 = vmatprep.mubr.msk.bf16.mxu0 %vm1252_vm0, %v5576_v62  ;;  %v3106_v46 = vmax.bf16 %v7763_v44, %v2978_v10  ;;  %v2984_v1 = vadd.bf16 1077952576, %v6338_v41 }
 0x15e   : > { %v6299_v15 = vpop.f32.mrf.mxu0  ;;  %v3105_v21 = vmax.bf16 %v7763_v44, %v2977_v27  ;;  %v3370_v12 = vmul.bf16 %v3242_v38, %v6291_v19  ;;  %v3104_v19 = vmax.bf16 %v7763_v44, %v2976_v42  ;;  %v3487_v42 = vld [vmem:[%s7752_s1 + $0x88] sm:$0xff] }
 0x15f   : > { %v3117_v40 = vmax.bf16 %v7763_v44, %v2989_v11  ;;  %v2988_v24 = vadd.bf16 1077952576, %v2860_v18  ;;  %v3113_v11 = vmax.bf16 %v7763_v44, %v2985_v36  ;;  %v3234_v31 = vmin.bf16 %v7761_v58, %v3106_v46  ;;  %v5582_v36 = vld [vmem:[%s5789_s29 + $0x2c0] sm:$0xff]  }
 0x160   : > { %v6310_v49 = vpop.f32.mrf.mxu0  ;;  %v3112_v6 = vmax.bf16 %v7763_v44, %v2984_v1  ;;  %v3232_v22 = vmin.bf16 %v7761_v58, %v3104_v19  ;;  %v5584_v1 = vld [vmem:[%s5789_s29 + $0x2d0] sm:$0xff]   ;;  %v5587_v19 = vld [vmem:[%s5789_s29 + $0x2e8] sm:$0xff]  }
 0x161   : > { %v3116_v61 = vmax.bf16 %v7763_v44, %v2988_v24  ;;  %v2727_v3 = vpack.c.bf16 %v6310_v49, %v6287_v16  ;;  %v3245_v45 = vmin.bf16 %v7761_v58, %v3117_v40 }
 0x162   : > { %v6327_v57 = vpop.f32.mrf.mxu0  ;;  %v3240_v60 = vmin.bf16 %v7761_v58, %v3112_v6  ;;  %v4701_v6 = vcombine.low %v6242_v63, %v6247_v59  ;;  %v6470_v63 = vld [vmem:[%s7752_s1 + $0x50] sm:$0xff] }
 0x163   : > { %v2726_v30 = vpack.c.bf16 %v6327_v57, %v6299_v15  ;;  %v3373_v48 = vmul.bf16 %v3245_v45, %v2861_v54  ;;  %v3244_v35 = vmin.bf16 %v7761_v58, %v3116_v61  ;;  %v3235_v54 = vmin.bf16 %v7761_v58, %v3107_v25 }
 0x164   : > { %v6340_v62 = vpop.f32.mrf.mxu0  ;;  %5294 = vmatmul.mubr.msk.bf16.gmra.mxu0 %vm1252_vm0, %v5577_v23  ;;  %v2975_v61 = vadd.bf16 1077952576, %v6379_v53  ;;  %v2846_v45 = vadd.bf16 %v6035_v7, %v2710_v32  ;;  %v3362_v25 = vmul.bf16 %v3234_v31, %v6297_v13  ;;  %v3368_v51 = vmul.bf16 %v3240_v60, %v6338_v41 }
 0x165   : > { %4913 = vmatprep.subr.bf16.mxu1 %v3373_v48  ;;  %v3372_v8 = vmul.bf16 %v3244_v35, %v2860_v18  ;;  %5297 = vmatprep.mubr.msk.bf16.mxu0 %vm1252_vm0, %v5578_v47  ;;  %v3363_v29 = vmul.bf16 %v3235_v54, %v6278_v20  ;;  %v3241_v20 = vmin.bf16 %v7761_v58, %v3113_v11  ;;  %v2982_v35 = vadd.bf16 1077952576, %v2854_v56  ;;  %v5583_v11 = vld [vmem:[%s5789_s29 + $0x2c8] sm:$0xff]  }
 0x166   : > { %v6346_v9 = vpop.f32.mrf.mxu0  ;;  %4914 = vmatpush3.bf16.msra.mxu1 %v3365_v37  ;;  %v3233_v47 = vmin.bf16 %v7761_v58, %v3105_v21  ;;  %v3111_v48 = vmax.bf16 %v7763_v44, %v2983_v33  ;;  %v3103_v17 = vmax.bf16 %v7763_v44, %v2975_v61  ;;  %v2974_v32 = vadd.bf16 1077952576, %v2846_v45  ;;  %v5585_v33 = vld [vmem:[%s5789_s29 + $0x2d8] sm:$0xff]  }
 0x167   : > { %4915 = vmatprep.subr.bf16.mxu1 %v3372_v8  ;;  %v3369_v37 = vmul.bf16 %v3241_v20, %v6305_v28  ;;  %v3110_v28 = vmax.bf16 %v7763_v44, %v2982_v35 }
 0x168   : > { %v6364_v18 = vpop.f32.mrf.mxu0  ;;  %v3361_v13 = vmul.bf16 %v3233_v47, %v6323_v14  ;;  %v3239_v27 = vmin.bf16 %v7761_v58, %v3111_v48  ;;  %v3231_v14 = vmin.bf16 %v7761_v58, %v3103_v17  ;;  %v3102_v46 = vmax.bf16 %v7763_v44, %v2974_v32  ;;  %v6465_v47 = vld [vmem:[%s7752_s1 + $0x10] sm:$0xff]  ;;  %v5589_v32 = vld [vmem:[%s5789_s29 + $0x2f8] sm:$0xff]  }
 0x169   : > { %v2729_v2 = vpack.c.bf16 %v6364_v18, %v6340_v62  ;;  %v3238_v41 = vmin.bf16 %v7761_v58, %v3110_v28  ;;  %v4704_v35 = vcombine.high %v6465_v47, %v6470_v63  ;;  %v6485_v28 = vpop.f32.mrf.mxu1 }
 0x16a   : > { %v6373_v40 = vpop.f32.mrf.mxu0  ;;  %4916 = vmatpush3.bf16.msra.mxu1 %v3364_v4  ;;  %v3360_v4 = vmul.bf16 %v3232_v22, %v6353_v0  ;;  %v3359_v38 = vmul.bf16 %v3231_v14, %v6379_v53  ;;  %v3495_v53 = vld [vmem:[%s7752_s1 + $0xc8] sm:$0xff]  ;;  %7781 = vst [vmem:[#allocation5_spill] sm:$0xff] %v6485_v28 }
 0x16b   : > { %v2728_v24 = vpack.c.bf16 %v6373_v40, %v6346_v9  ;;  %4917 = vmatprep.subr.bf16.mxu1 %v3371_v43  ;;  %v3366_v0 = vmul.bf16 %v3238_v41, %v2854_v56  ;;  %v5586_v56 = vld [vmem:[%s5789_s29 + $0x2e0] sm:$0xff]   ;;  %v4718_v20 = vcombine.high %v3487_v42, %v3495_v53 }
 0x16c   : > { %v6388_v23 = vpop.f32.mrf.mxu0  ;;  %5298 = vmatmul.mubr.msk.bf16.gmra.mxu0 %vm1252_vm0, %v5579_v39  ;;  %v3367_v39 = vmul.bf16 %v3239_v27, %v6359_v50 }
 0x16d   : > { %5301 = vmatprep.mubr.msk.bf16.mxu0 %vm1252_vm0, %v5580_v34  ;;  %v3230_v34 = vmin.bf16 %v7761_v58, %v3102_v46 }
 0x16e   : > { %v6396_v26 = vpop.f32.mrf.mxu0  ;;  %4918 = vmatpush3.bf16.msra.mxu1 %v3363_v29 }
 0x16f   : > { %4919 = vmatprep.subr.bf16.mxu1 %v3370_v12  ;;  %v3358_v29 = vmul.bf16 %v3230_v34, %v2846_v45 }
 0x170   : > { %v6406_v10 = vpop.f32.mrf.mxu0 }
 0x172   : > { %v6413_v55 = vpop.f32.mrf.mxu0  ;;  %4920 = vmatpush3.bf16.msra.mxu1 %v3362_v25  ;;  %v5588_v25 = vld [vmem:[%s5789_s29 + $0x2f0] sm:$0xff]  }
 0x173   : > { %4921 = vmatprep.subr.bf16.mxu1 %v3369_v37 }
 0x174   : > { %v6418_v8 = vpop.f32.mrf.mxu0  ;;  %5302 = vmatmul.mubr.msk.bf16.gmra.mxu0 %vm1252_vm0, %v5581_v52  ;;  %v4717_v52 = vcombine.low %v3487_v42, %v3495_v53  ;;  %v5592_v42 = vld [vmem:[%s5789_s29 + $0x310] sm:$0xff]  }
 0x175   : > { %5305 = vmatprep.mubr.msk.bf16.mxu0 %vm1252_vm0, %v5582_v36 }
 0x176   : > { %v6425_v54 = vpop.f32.mrf.mxu0  ;;  %4922 = vmatpush3.bf16.msra.mxu1 %v3361_v13  ;;  %v5590_v13 = vld [vmem:[%s5789_s29 + $0x300] sm:$0xff]  }
 0x177   : > { %4923 = vmatprep.subr.bf16.mxu1 %v3368_v51 }
 0x178   : > { %v5208_v5 = vpop.f32.mrf.mxu0 }
 0x179   : > { %v2733_v36 = vpack.c.bf16 %v5208_v5, %v6418_v8  ;;  %v2731_v8 = vpack.c.bf16 %v6406_v10, %v6388_v23 }
 0x17a   : > { %v1978_v43 = vpop.f32.mrf.mxu0  ;;  %4924 = vmatpush3.bf16.msra.mxu1 %v3360_v4  ;;  %v6492_v4 = vpop.f32.mrf.mxu1 }
 0x17b   : > { %4925 = vmatprep.subr.bf16.mxu1 %v3367_v39  ;;  %v6488_v51 = vadd.bf16 %v6035_v7, %v2733_v36  ;;  %v2732_v27 = vpack.c.bf16 %v1978_v43, %v6425_v54  ;;  %7782 = vst [vmem:[#allocation6_spill] sm:$0xff] %v6492_v4  ;;  %v5591_v43 = vld [vmem:[%s5789_s29 + $0x308] sm:$0xff]   ;;  %v6513_v10 = vadd.bf16 %v6035_v7, %v2731_v8 }
 0x17c   : > { %v6436_v21 = vpop.f32.mrf.mxu0  ;;  %5306 = vmatmul.mubr.msk.bf16.gmra.mxu0 %vm1252_vm0, %v5583_v11  ;;  %v6497_v11 = vpop.f32.mrf.mxu1 }
 0x17d   : > { %5309 = vmatprep.mubr.msk.bf16.mxu0 %vm1252_vm0, %v5584_v1  ;;  %7783 = vst [vmem:[#allocation7_spill] sm:$0xff] %v6497_v11  ;;  %v2997_v39 = vadd.bf16 1077952576, %v6488_v51  ;;  %v6501_v41 = vadd.bf16 %v6035_v7, %v2732_v27  ;;  %v2995_v36 = vadd.bf16 1077952576, %v6513_v10 }
 0x17e   : > { %v6440_v50 = vpop.f32.mrf.mxu0  ;;  %4926 = vmatpush3.bf16.msra.mxu1 %v3359_v38  ;;  %v6507_v38 = vpop.f32.mrf.mxu1 }
 0x17f   : > { %4927 = vmatprep.subr.bf16.mxu1 %v3366_v0  ;;  %7784 = vst [vmem:[#allocation8_spill] sm:$0xff] %v6507_v38 }
 0x180   : > { %v6448_v31 = vpop.f32.mrf.mxu0 }
 0x182   : > { %v6454_v12 = vpop.f32.mrf.mxu0  ;;  %4928 = vmatpush3.bf16.msra.mxu1 %v3358_v29  ;;  %v6515_v29 = vpop.f32.mrf.mxu1 }
 0x184   : > { %v6456_v61 = vpop.f32.mrf.mxu0  ;;  %5310 = vmatmul.mubr.msk.bf16.gmra.mxu0 %vm1252_vm0, %v5585_v33  ;;  %v2730_v33 = vpack.c.bf16 %v6413_v55, %v6396_v26 }
 0x185   : > { %5313 = vmatprep.mubr.msk.bf16.mxu0 %vm1252_vm0, %v5586_v56  ;;  %3744 = vmatmul.mubr.bf16.vlgmr.msra.gmra.mxu1 %v4701_v6  ;;  %v3125_v56 = vmax.bf16 %v7763_v44, %v2997_v39  ;;  %v5593_v39 = vld [vmem:[%s5789_s29 + $0x318] sm:$0xff]   ;;  %s326_s29 = sand.u32 1, %s5666_s10  }
 0x186   : > { %v6460_v45 = vpop.f32.mrf.mxu0  ;;  %3751 = vmatprep.mubr.bf16.mxu1 %v4718_v20  ;;  %s4437_s14 = sshll.u32 %s326_s29, 5  ;;  %s7711_s27 = scalar_lea.sflag [#allocation3], %s326_s29 }
 0x187   : > { %s328_s21 = scalar_lea.vmem [#allocation2], %s4437_s14  ;;  %s5618_s14 = sshll.u32 %s5678_s13, 4  ;;  %s5619_s14 = int_to_ptr.vmem [resolvable:$false] %s5618_s14 }
 0x188   : > { %v6472_v59 = vpop.f32.mrf.mxu0  ;;  %s4371_s22 = sshll.u32 %s328_s21, 4  ;;  %s5620_s16 = scalar_lea.vmem %s5619_s14, 1024  ;;  %s7704_s22 = int_to_ptr.vmem [resolvable:$true] %s4371_s22 }
 0x189   : > { %s5614_s28 = scalar_lea.vmem %s7704_s22, 512  ;;  %p5621_p0 = scmp.lt.s32.totalorder %s7704_s22, %s5619_s14 }
 0x18a   : > { %v6476_v48 = vpop.f32.mrf.mxu0  ;;  %p5615_p11 = scmp.ne.s32.totalorder %s7704_s22, %s5614_s28  ;;  %p5622_p1 = scmp.lt.s32.totalorder %s5620_s16, %s5614_s28 }
 0x18c   : > { %v5219_v37 = vpop.f32.mrf.mxu0  ;;  %5314 = vmatmul.mubr.msk.bf16.gmra.mxu0 %vm1252_vm0, %v5587_v19  ;;  %v2996_v19 = vadd.bf16 1077952576, %v6501_v41  ;;  %p5616_p12 = pnand %p5615_p11, %p5769_p5  ;;  %p5623_p2 = por %p5622_p1, %p5621_p0 }
 0x18d   : > { %5317 = vmatprep.mubr.msk.bf16.mxu0 %vm1252_vm0, %v5588_v25  ;;  %3752 = vmatmul.mubr.bf16.gmra.mxu1 %v4717_v52  ;;  %v2737_v25 = vpack.c.bf16 %v6472_v59, %v6456_v61 }
 0x18e   : > { %v2023_v60 = vpop.f32.mrf.mxu0  ;;  %3792 = vmatprep.mubr.bf16.mxu1 %v4704_v35  ;;  %v3124_v27 = vmax.bf16 %v7763_v44, %v2996_v19  ;;  %p5617_p13 = pneg %p5616_p12 }
 0x190   : > { %v5220_v17 = vpop.f32.mrf.mxu0  ;;  %p5624_p3 = pnand %p5623_p2, %p5617_p13 }
 0x191   : > { %v2739_v14 = vpack.c.bf16 %v5220_v17, %v5219_v37  ;;  %v6528_v37 = vpop.f32.mrf.mxu1  ;;  %v6541_v17 = vadd.bf16 %v6035_v7, %v2730_v33 }
 0x192   : > { %v2026_v22 = vpop.f32.mrf.mxu0 }
 0x193   : > { %v6504_v54 = vadd.bf16 %v6035_v7, %v2739_v14  ;;  %v2738_v34 = vpack.c.bf16 %v2026_v22, %v2023_v60  ;;  %v6538_v59 = vpop.f32.mrf.mxu1  ;;  %v6547_v14 = vadd.bf16 %v6035_v7, %v2737_v25 }
 0x194   : > { %v5223_v46 = vpop.f32.mrf.mxu0  ;;  %5318 = vmatmul.mubr.msk.bf16.gmra.mxu0 %vm1252_vm0, %v5589_v32  ;;  %v3253_v32 = vmin.bf16 %v7761_v58, %v3125_v56 }
 0x195   : > { %5321 = vmatprep.mubr.msk.bf16.mxu0 %vm1252_vm0, %v5590_v13  ;;  %v3003_v52 = vadd.bf16 1077952576, %v6504_v54  ;;  %v6531_v26 = vadd.bf16 %v6035_v7, %v2738_v34 }
 0x196   : > { %v2039_v5 = vpop.f32.mrf.mxu0  ;;  %v3381_v18 = vmul.bf16 %v3253_v32, %v6488_v51 }
 0x197   : > { %v3131_v8 = vmax.bf16 %v7763_v44, %v3003_v52  ;;  %v2735_v52 = vpack.c.bf16 %v6448_v31, %v6436_v21 }
 0x198   : > { %v5224_v1 = vpop.f32.mrf.mxu0 }
 0x199   : > { %v2741_v0 = vpack.c.bf16 %v5224_v1, %v5223_v46  ;;  %v2736_v46 = vpack.c.bf16 %v6476_v48, %v6460_v45  ;;  %v6555_v1 = vpop.f32.mrf.mxu1  ;;  %v6566_v45 = vadd.bf16 %v6035_v7, %v2729_v2  ;;  %v3123_v48 = vmax.bf16 %v7763_v44, %v2995_v36 }
 0x19a   : > { %v2042_v53 = vpop.f32.mrf.mxu0  ;;  %v3252_v2 = vmin.bf16 %v7761_v58, %v3124_v27  ;;  %v3259_v32 = vmin.bf16 %v7761_v58, %v3131_v8  ;;  %v6609_v8 = vadd.bf16 %v6035_v7, %v2735_v52 }
 0x19b   : > { %v2877_v6 = vadd.bf16 %v6035_v7, %v2741_v0  ;;  %v2740_v20 = vpack.c.bf16 %v2042_v53, %v2039_v5  ;;  %v6573_v56 = vpop.f32.mrf.mxu1  ;;  %v2993_v31 = vadd.bf16 1077952576, %v6566_v45 }
 0x19c   : > { %v6525_v35 = vpop.f32.mrf.mxu0  ;;  %5322 = vmatmul.mubr.msk.bf16.gmra.mxu0 %vm1252_vm0, %v5591_v43  ;;  %v3002_v43 = vadd.bf16 1077952576, %v6531_v26  ;;  %7785 = vst [vmem:[#allocation9_spill] sm:$0xff] %v6573_v56 }
 0x19d   : > { %v3005_v55 = vadd.bf16 1077952576, %v2877_v6  ;;  %v2876_v60 = vadd.bf16 %v6035_v7, %v2740_v20  ;;  %5325 = vmatprep.mubr.msk.bf16.mxu0 %vm1252_vm0, %v5592_v42  ;;  %v2994_v20 = vadd.bf16 1077952576, %v6541_v17 }
 0x19e   : > { %v6536_v61 = vpop.f32.mrf.mxu0 }
 0x19f   : > { %v3133_v13 = vmax.bf16 %v7763_v44, %v3005_v55  ;;  %v3004_v22 = vadd.bf16 1077952576, %v2876_v60  ;;  %v3001_v55 = vadd.bf16 1077952576, %v6547_v14 }
 0x1a0   : > { %v6552_v5 = vpop.f32.mrf.mxu0 }
 0x1a1   : > { %v3132_v34 = vmax.bf16 %v7763_v44, %v3004_v22  ;;  %v3261_v42 = vmin.bf16 %v7761_v58, %v3133_v13  ;;  %v6587_v13 = vpop.f32.mrf.mxu1  ;;  %v6590_v22 = vadd.bf16 %v6035_v7, %v2736_v46  ;;  %v3251_v46 = vmin.bf16 %v7761_v58, %v3123_v48 }
 0x1a2   : > { %v6569_v53 = vpop.f32.mrf.mxu0  ;;  %7786 = vst [vmem:[#allocation10_spill] sm:$0xff] %v6587_v13  ;;  %v3387_v48 = vmul.bf16 %v3259_v32, %v6504_v54 }
 0x1a3   : > { %v3389_v25 = vmul.bf16 %v3261_v42, %v2877_v6  ;;  %v3260_v62 = vmin.bf16 %v7761_v58, %v3132_v34  ;;  %v3130_v6 = vmax.bf16 %v7763_v44, %v3002_v43  ;;  %v6596_v21 = vpop.f32.mrf.mxu1  ;;  %v3122_v43 = vmax.bf16 %v7763_v44, %v2994_v20 }
 0x1a4   : > { %v6584_v36 = vpop.f32.mrf.mxu0  ;;  %5326 = vmatmul.mubr.msk.bf16.gmra.mxu0 %vm1252_vm0, %v5593_v39  ;;  %7787 = vst [vmem:[#allocation11_spill] sm:$0xff] %v6596_v21  ;;  %v6603_v39 = vadd.bf16 %v6035_v7, %v2728_v24  ;;  %v2734_v34 = vpack.c.bf16 %v6454_v12, %v6440_v50  ;;  %v3129_v42 = vmax.bf16 %v7763_v44, %v3001_v55  ;;  %v3000_v40 = vadd.bf16 1077952576, %v6590_v22 }
 0x1a5   : > { %4941 = vmatprep.subr.bf16.mxu1 %v3389_v25  ;;  %v3388_v51 = vmul.bf16 %v3260_v62, %v2876_v60  ;;  %v3380_v60 = vmul.bf16 %v3252_v2, %v6501_v41  ;;  %v6616_v9 = vpop.f32.mrf.mxu1  ;;  %v3258_v41 = vmin.bf16 %v7761_v58, %v3130_v6  ;;  %v6631_v50 = vadd.bf16 %v6035_v7, %v2727_v3 }
 0x1a6   : > { %v6594_v27 = vpop.f32.mrf.mxu0  ;;  %4942 = vmatpush3.bf16.msra.mxu1 %v3381_v18  ;;  %7788 = vst [vmem:[#allocation12_spill] sm:$0xff] %v6616_v9  ;;  %v3121_v12 = vmax.bf16 %v7763_v44, %v2993_v31  ;;  %v2992_v18 = vadd.bf16 1077952576, %v6603_v39  ;;  %v3379_v2 = vmul.bf16 %v3251_v46, %v6513_v10  ;;  %v3250_v52 = vmin.bf16 %v7761_v58, %v3122_v43 }
 0x1a7   : > { %4943 = vmatprep.subr.bf16.mxu1 %v3388_v51  ;;  %v6625_v62 = vpop.f32.mrf.mxu1  ;;  %v2999_v55 = vadd.bf16 1077952576, %v6609_v8  ;;  %v2870_v6 = vadd.bf16 %v6035_v7, %v2734_v34  ;;  %v3128_v3 = vmax.bf16 %v7763_v44, %v3000_v40  ;;  %v3386_v51 = vmul.bf16 %v3258_v41, %v6531_v26 }
 0x1a8   : > { %v6614_v25 = vpop.f32.mrf.mxu0  ;;  %7789 = vst [vmem:[#allocation13_spill] sm:$0xff] %v6625_v62  ;;  %v3257_v32 = vmin.bf16 %v7761_v58, %v3129_v42  ;;  %v2991_v43 = vadd.bf16 1077952576, %v6631_v50  ;;  %v3249_v26 = vmin.bf16 %v7761_v58, %v3121_v12  ;;  %v3120_v34 = vmax.bf16 %v7763_v44, %v2992_v18 }
 0x1a9   : > { %v6643_v49 = vpop.f32.mrf.mxu1  ;;  %v3378_v42 = vmul.bf16 %v3250_v52, %v6541_v17  ;;  %v3127_v41 = vmax.bf16 %v7763_v44, %v2999_v55  ;;  %v3256_v31 = vmin.bf16 %v7761_v58, %v3128_v3 }
 0x1aa   : > { %v6623_v20 = vpop.f32.mrf.mxu0  ;;  %4944 = vmatpush3.bf16.msra.mxu1 %v3380_v60  ;;  %7790 = vst [vmem:[#allocation14_spill] sm:$0xff] %v6643_v49  ;;  %v2862_v60 = vadd.bf16 %v6035_v7, %v2726_v30  ;;  %v3119_v30 = vmax.bf16 %v7763_v44, %v2991_v43  ;;  %v3377_v12 = vmul.bf16 %v3249_v26, %v6566_v45 }
 0x1ab   : > { %4945 = vmatprep.subr.bf16.mxu1 %v3387_v48  ;;  %v6652_v46 = vpop.f32.mrf.mxu1  ;;  %v3248_v18 = vmin.bf16 %v7761_v58, %v3120_v34  ;;  %v3384_v3 = vmul.bf16 %v3256_v31, %v6590_v22 }
 0x1ac   : > { %v6641_v16 = vpop.f32.mrf.mxu0  ;;  %7791 = vst [vmem:[#allocation15_spill] sm:$0xff] %v6652_v46  ;;  %v2990_v17 = vadd.bf16 1077952576, %v2862_v60  ;;  %v3247_v45 = vmin.bf16 %v7761_v58, %v3119_v30 }
 0x1ad   : > { %v6664_v48 = vpop.f32.mrf.mxu1  ;;  %v3376_v34 = vmul.bf16 %v3248_v18, %v6603_v39 }
 0x1ae   : > { %v6650_v10 = vpop.f32.mrf.mxu0  ;;  %4946 = vmatpush3.bf16.msra.mxu1 %v3379_v2  ;;  %7792 = vst [vmem:[#allocation16_spill] sm:$0xff] %v6664_v48  ;;  %v2998_v2 = vadd.bf16 1077952576, %v2870_v6  ;;  %v3118_v26 = vmax.bf16 %v7763_v44, %v2990_v17 }
 0x1af   : > { %4947 = vmatprep.subr.bf16.mxu1 %v3386_v51  ;;  %v3385_v51 = vmul.bf16 %v3257_v32, %v6547_v14  ;;  %v6671_v57 = vpop.f32.mrf.mxu1  ;;  %v3255_v32 = vmin.bf16 %v7761_v58, %v3127_v41 }
 0x1b0   : > { %v6662_v40 = vpop.f32.mrf.mxu0  ;;  %v3126_v14 = vmax.bf16 %v7763_v44, %v2998_v2  ;;  %v3246_v30 = vmin.bf16 %v7761_v58, %v3118_v26 }
 0x1b1   : > { %v6678_v55 = vpop.f32.mrf.mxu1  ;;  %v3383_v22 = vmul.bf16 %v3255_v32, %v6609_v8 }
 0x1b2   : > { %v6669_v15 = vpop.f32.mrf.mxu0  ;;  %4948 = vmatpush3.bf16.msra.mxu1 %v3378_v42  ;;  %v3254_v31 = vmin.bf16 %v7761_v58, %v3126_v14  ;;  %v3488_v14 = vld [vmem:[%s7752_s1 + $0x90] sm:$0xff]  ;;  %v3374_v32 = vmul.bf16 %v3246_v30, %v2862_v60 }
 0x1b3   : > { %4949 = vmatprep.subr.bf16.mxu1 %v3385_v51  ;;  %v6687_v43 = vpop.f32.mrf.mxu1  ;;  %v2746_v0 = vpack.c.bf16 %v6669_v15, %v6650_v10 }
 0x1b4   : > { %v6676_v52 = vpop.f32.mrf.mxu0  ;;  %v3382_v39 = vmul.bf16 %v3254_v31, %v2870_v6  ;;  %v4703_v6 = vcombine.low %v6465_v47, %v6470_v63  ;;  %v6735_v47 = vld [vmem:[%s7752_s1 + $0x18] sm:$0xff] }
 0x1b5   : > { %v6692_v23 = vpop.f32.mrf.mxu1  ;;  %v6740_v63 = vld [vmem:[%s7752_s1 + $0x58] sm:$0xff] }
 0x1b6   : > { %v6685_v51 = vpop.f32.mrf.mxu0  ;;  %4950 = vmatpush3.bf16.msra.mxu1 %v3377_v12  ;;  %7793 = vst [vmem:[#allocation17_spill] sm:$0xff] %v6692_v23  ;;  %v3375_v12 = vmul.bf16 %v3247_v45, %v6631_v50  ;;  %v3496_v50 = vld [vmem:[%s7752_s1 + $0xd0] sm:$0xff] }
 0x1b7   : > { %4951 = vmatprep.subr.bf16.mxu1 %v3384_v3  ;;  %v6696_v42 = vpop.f32.mrf.mxu1  ;;  %v4719_v19 = vcombine.low %v3488_v14, %v3496_v50 }
 0x1b8   : > { %v5240_v2 = vpop.f32.mrf.mxu0 }
 0x1b9   : > { %v6702_v17 = vpop.f32.mrf.mxu1 }
 0x1ba   : > { %v2106_v41 = vpop.f32.mrf.mxu0  ;;  %4952 = vmatpush3.bf16.msra.mxu1 %v3376_v34 }
 0x1bb   : > { %4953 = vmatprep.subr.bf16.mxu1 %v3383_v22  ;;  %v6706_v8 = vpop.f32.mrf.mxu1  ;;  %v4720_v22 = vcombine.high %v3488_v14, %v3496_v50  ;;  %v2749_v14 = vpack.c.bf16 %v5240_v2, %v6676_v52  ;;  %v2747_v2 = vpack.c.bf16 %v6662_v40, %v6641_v16 }
 0x1bc   : > { %v6700_v3 = vpop.f32.mrf.mxu0 }
 0x1bd   : > { %v6716_v26 = vpop.f32.mrf.mxu1  ;;  %v6787_v16 = vadd.bf16 %v6035_v7, %v2747_v2 }
 0x1be   : > { %v6704_v18 = vpop.f32.mrf.mxu0  ;;  %4954 = vmatpush3.bf16.msra.mxu1 %v3375_v12 }
 0x1bf   : > { %4955 = vmatprep.subr.bf16.mxu1 %v3382_v39  ;;  %v6722_v31 = vpop.f32.mrf.mxu1  ;;  %v3011_v15 = vadd.bf16 1077952576, %v6787_v16 }
 0x1c0   : > { %v6714_v45 = vpop.f32.mrf.mxu0  ;;  %7794 = vst [vmem:[#allocation18_spill] sm:$0xff] %v6722_v31 }
 0x1c1   : > { %v6726_v39 = vpop.f32.mrf.mxu1 }
 0x1c2   : > { %v6720_v34 = vpop.f32.mrf.mxu0  ;;  %4956 = vmatpush3.bf16.msra.mxu1 %v3374_v32  ;;  %7795 = vst [vmem:[#allocation19_spill] sm:$0xff] %v6726_v39 }
 0x1c3   : > { %v6730_v60 = vpop.f32.mrf.mxu1 }
 0x1c4   : > { %v6724_v12 = vpop.f32.mrf.mxu0  ;;  %7796 = vst [vmem:[#allocation20_spill] sm:$0xff] %v6730_v60 }
 0x1c5   : > { %3793 = vmatmul.mubr.bf16.vlgmr.msra.gmra.mxu1 %v4703_v6  ;;  %v6742_v32 = vpop.f32.mrf.mxu1 }
 0x1c6   : > { %v6728_v33 = vpop.f32.mrf.mxu0  ;;  %3800 = vmatprep.mubr.bf16.mxu1 %v4720_v22  ;;  %7797 = vst [vmem:[#allocation21_spill] sm:$0xff] %v6742_v32  ;;  %v4706_v22 = vcombine.high %v6735_v47, %v6740_v63 }
 0x1c7   : > { %v6750_v54 = vpop.f32.mrf.mxu1 }
 0x1c8   : > { %v5248_v30 = vpop.f32.mrf.mxu0  ;;  %7798 = vst [vmem:[#allocation22_spill] sm:$0xff] %v6750_v54 }
 0x1c9   : > { %v6752_v58 = vpop.f32.mrf.mxu1 }
 0x1ca   : > { %v6744_v6 = vpop.f32.mrf.mxu0  ;;  %7799 = vst [vmem:[#allocation23_spill] sm:$0xff] %v6752_v58  ;;  %v7807_v58 = vmov 0  }
 0x1cb   : > { %v6754_v56 = vpop.f32.mrf.mxu1 }
 0x1cc   : > { %v5251_v24 = vpop.f32.mrf.mxu0  ;;  %7800 = vst [vmem:[#allocation24_spill] sm:$0xff] %v6754_v56 }
 0x1cd   : > { %3801 = vmatmul.mubr.bf16.gmra.mxu1 %v4719_v19  ;;  %v6759_v9 = vpop.f32.mrf.mxu1  ;;  %v6766_v19 = vadd.bf16 %v6035_v7, %v2749_v14 }
 0x1ce   : > { %v2151_v44 = vpop.f32.mrf.mxu0  ;;  %3841 = vmatprep.mubr.bf16.mxu1 %v4706_v22  ;;  %7801 = vst [vmem:[#allocation25_spill] sm:$0xff] %v6759_v9  ;;  %v2748_v22 = vpack.c.bf16 %v2106_v41, %v6685_v51 }
 0x1cf   : > { %v6763_v31 = vpop.f32.mrf.mxu1  ;;  %v3013_v32 = vadd.bf16 1077952576, %v6766_v19 }
 0x1d0   : > { %v5252_v21 = vpop.f32.mrf.mxu0  ;;  %7802 = vst [vmem:[#allocation26_spill] sm:$0xff] %v6763_v31  ;;  %v6779_v14 = vadd.bf16 %v6035_v7, %v2748_v22 }
 0x1d1   : > { %v2755_v60 = vpack.c.bf16 %v5252_v21, %v5251_v24  ;;  %v6769_v52 = vpop.f32.mrf.mxu1  ;;  %v3141_v22 = vmax.bf16 %v7807_v58, %v3013_v32 }
 0x1d2   : > { %v2154_v13 = vpop.f32.mrf.mxu0  ;;  %7803 = vst [vmem:[#allocation27_spill] sm:$0xff] %v6769_v52  ;;  %v3012_v52 = vadd.bf16 1077952576, %v6779_v14 }
 0x1d3   : > { %v6773_v39 = vpop.f32.mrf.mxu1  ;;  %v6782_v51 = vadd.bf16 %v6035_v7, %v2755_v60  ;;  %v2754_v41 = vpack.c.bf16 %v2154_v13, %v2151_v44 }
 0x1d4   : > { %v5255_v48 = vpop.f32.mrf.mxu0  ;;  %7804 = vst [vmem:[#allocation28_spill] sm:$0xff] %v6773_v39 }
 0x1d5   : > { %v6784_v24 = vpop.f32.mrf.mxu1  ;;  %v3019_v44 = vadd.bf16 1077952576, %v6782_v51  ;;  %v6803_v2 = vadd.bf16 %v6035_v7, %v2754_v41  ;;  %v3140_v41 = vmax.bf16 %v7807_v58, %v3012_v52 }
 0x1d6   : > { %v2167_v50 = vpop.f32.mrf.mxu0  ;;  %7805 = vst [vmem:[#allocation29_spill] sm:$0xff] %v6784_v24  ;;  %v2753_v24 = vpack.c.bf16 %v5248_v30, %v6724_v12  ;;  %v6812_v12 = vadd.bf16 %v6035_v7, %v2746_v0  ;;  %v7810_v30 = vmov 1086341312  }
 0x1d7   : > { %v6789_v56 = vpop.f32.mrf.mxu1  ;;  %v3018_v0 = vadd.bf16 1077952576, %v6803_v2 }
 0x1d8   : > { %v5256_v21 = vpop.f32.mrf.mxu0  ;;  %7806 = vst [vmem:[#allocation30_spill] sm:$0xff] %v6789_v56  ;;  %v6818_v31 = vadd.bf16 %v6035_v7, %v2753_v24  ;;  %v7812_v24 = vpack.c.bf16 %v6614_v25, %v6584_v36  ;;  %v3010_v49 = vadd.bf16 1077952576, %v6812_v12  ;;  %v3268_v36 = vmin.bf16 %v7810_v30, %v3140_v41 }
 0x1d9   : > { %v2757_v54 = vpack.c.bf16 %v5256_v21, %v5255_v48  ;;  %v6800_v48 = vpop.f32.mrf.mxu1  ;;  %v2751_v25 = vpack.c.bf16 %v6714_v45, %v6700_v3  ;;  %v7816_v45 = vpack.c.bf16 %v6623_v20, %v6594_v27 }
 0x1da   : > { %v2170_v40 = vpop.f32.mrf.mxu0  ;;  %7808 = vst [vmem:[#allocation31_spill] sm:$0xff] %v6800_v48  ;;  %v3147_v48 = vmax.bf16 %v7807_v58, %v3019_v44 }
 0x1db   : > { %v2893_v9 = vadd.bf16 %v6035_v7, %v2757_v54  ;;  %v2756_v60 = vpack.c.bf16 %v2170_v40, %v2167_v50  ;;  %v6809_v32 = vpop.f32.mrf.mxu1  ;;  %v3269_v50 = vmin.bf16 %v7810_v30, %v3141_v22 }
 0x1dc   : > { %v6798_v13 = vpop.f32.mrf.mxu0  ;;  %7809 = vst [vmem:[#allocation32_spill] sm:$0xff] %v6809_v32 }
 0x1dd   : > { %v3021_v21 = vadd.bf16 1077952576, %v2893_v9  ;;  %v2892_v10 = vadd.bf16 %v6035_v7, %v2756_v60  ;;  %v2752_v60 = vpack.c.bf16 %v6744_v6, %v6728_v33  ;;  %v6825_v32 = vpop.f32.mrf.mxu1  ;;  %v6836_v33 = vadd.bf16 %v6035_v7, %v7812_v24 }
 0x1de   : > { %v6807_v54 = vpop.f32.mrf.mxu0  ;;  %7811 = vst [vmem:[#allocation33_spill] sm:$0xff] %v6825_v32  ;;  %v3139_v6 = vmax.bf16 %v7807_v58, %v3011_v15  ;;  %v3397_v62 = vmul.bf16 %v3269_v50, %v6766_v19  ;;  %v3017_v15 = vadd.bf16 1077952576, %v6818_v31  ;;  %v3275_v19 = vmin.bf16 %v7810_v30, %v3147_v48 }
 0x1df   : > { %v3149_v40 = vmax.bf16 %v7807_v58, %v3021_v21  ;;  %v3020_v39 = vadd.bf16 1077952576, %v2892_v10  ;;  %v6841_v32 = vpop.f32.mrf.mxu1  ;;  %v6857_v46 = vadd.bf16 %v6035_v7, %v2752_v60  ;;  %v3009_v3 = vadd.bf16 1077952576, %v6836_v33 }
 0x1e0   : > { %v6823_v56 = vpop.f32.mrf.mxu0  ;;  %7813 = vst [vmem:[#allocation34_spill] sm:$0xff] %v6841_v32  ;;  %v3267_v60 = vmin.bf16 %v7810_v30, %v3139_v6  ;;  %v3396_v48 = vmul.bf16 %v3268_v36, %v6779_v14  ;;  %v3403_v6 = vmul.bf16 %v3275_v19, %v6782_v51 }
 0x1e1   : > { %v3148_v22 = vmax.bf16 %v7807_v58, %v3020_v39  ;;  %v3277_v52 = vmin.bf16 %v7810_v30, %v3149_v40  ;;  %v6854_v32 = vpop.f32.mrf.mxu1  ;;  %v3016_v20 = vadd.bf16 1077952576, %v6857_v46 }
 0x1e2   : > { %v6839_v44 = vpop.f32.mrf.mxu0  ;;  %7814 = vst [vmem:[#allocation35_spill] sm:$0xff] %v6854_v32 }
 0x1e3   : > { %v3405_v21 = vmul.bf16 %v3277_v52, %v2893_v9  ;;  %v3276_v40 = vmin.bf16 %v7810_v30, %v3148_v22  ;;  %v3146_v9 = vmax.bf16 %v7807_v58, %v3018_v0  ;;  %v6863_v41 = vpop.f32.mrf.mxu1  ;;  %v6870_v52 = vadd.bf16 %v6035_v7, %v7816_v45 }
 0x1e4   : > { %v6852_v24 = vpop.f32.mrf.mxu0  ;;  %7815 = vst [vmem:[#allocation36_spill] sm:$0xff] %v6863_v41  ;;  %v3138_v0 = vmax.bf16 %v7807_v58, %v3010_v49 }
 0x1e5   : > { %4969 = vmatprep.subr.bf16.mxu1 %v3405_v21  ;;  %v3404_v22 = vmul.bf16 %v3276_v40, %v2892_v10  ;;  %v6876_v10 = vadd.bf16 %v6035_v7, %v2751_v25  ;;  %v3145_v21 = vmax.bf16 %v7807_v58, %v3017_v15  ;;  %v6883_v27 = vpop.f32.mrf.mxu1  ;;  %v3274_v14 = vmin.bf16 %v7810_v30, %v3146_v9 }
 0x1e6   : > { %v6861_v50 = vpop.f32.mrf.mxu0  ;;  %4970 = vmatpush3.bf16.msra.mxu1 %v3397_v62  ;;  %v2750_v62 = vpack.c.bf16 %v6720_v34, %v6704_v18  ;;  %7817 = vst [vmem:[#allocation37_spill] sm:$0xff] %v6883_v27  ;;  %v7819_v18 = vpack.c.bf16 %v6552_v5, %v6525_v35  ;;  %v3137_v15 = vmax.bf16 %v7807_v58, %v3009_v3  ;;  %v3008_v51 = vadd.bf16 1077952576, %v6870_v52 }
 0x1e7   : > { %4971 = vmatprep.subr.bf16.mxu1 %v3404_v22  ;;  %v6892_v25 = vpop.f32.mrf.mxu1  ;;  %v3395_v9 = vmul.bf16 %v3267_v60, %v6787_v16  ;;  %v3266_v19 = vmin.bf16 %v7810_v30, %v3138_v0  ;;  %v3015_v45 = vadd.bf16 1077952576, %v6876_v10  ;;  %v3144_v3 = vmax.bf16 %v7807_v58, %v3016_v20 }
 0x1e8   : > { %v6881_v40 = vpop.f32.mrf.mxu0  ;;  %7818 = vst [vmem:[#allocation38_spill] sm:$0xff] %v6892_v25  ;;  %v6898_v34 = vadd.bf16 %v6035_v7, %v7819_v18  ;;  %v2886_v5 = vadd.bf16 %v6035_v7, %v2750_v62  ;;  %v3402_v18 = vmul.bf16 %v3274_v14, %v6803_v2  ;;  %v7822_v0 = vpack.c.bf16 %v6569_v53, %v6536_v61 }
 0x1e9   : > { %v6909_v35 = vpop.f32.mrf.mxu1  ;;  %v3265_v62 = vmin.bf16 %v7810_v30, %v3137_v15  ;;  %v3136_v20 = vmax.bf16 %v7807_v58, %v3008_v51  ;;  %v3394_v2 = vmul.bf16 %v3266_v19, %v6812_v12  ;;  %v3272_v27 = vmin.bf16 %v7810_v30, %v3144_v3 }
 0x1ea   : > { %v6890_v36 = vpop.f32.mrf.mxu0  ;;  %4972 = vmatpush3.bf16.msra.mxu1 %v3396_v48  ;;  %7820 = vst [vmem:[#allocation39_spill] sm:$0xff] %v6909_v35  ;;  %v3007_v60 = vadd.bf16 1077952576, %v6898_v34  ;;  %v2878_v22 = vadd.bf16 %v6035_v7, %v7822_v0  ;;  %v3014_v49 = vadd.bf16 1077952576, %v2886_v5 }
 0x1eb   : > { %4973 = vmatprep.subr.bf16.mxu1 %v3403_v6  ;;  %v3273_v6 = vmin.bf16 %v7810_v30, %v3145_v21  ;;  %v6917_v16 = vpop.f32.mrf.mxu1  ;;  %v3393_v51 = vmul.bf16 %v3265_v62, %v6836_v33  ;;  %v3264_v19 = vmin.bf16 %v7810_v30, %v3136_v20  ;;  %v3400_v3 = vmul.bf16 %v3272_v27, %v6857_v46 }
 0x1ec   : > { %v6907_v48 = vpop.f32.mrf.mxu0  ;;  %7821 = vst [vmem:[#allocation40_spill] sm:$0xff] %v6917_v16  ;;  %v3135_v15 = vmax.bf16 %v7807_v58, %v3007_v60  ;;  %v3006_v12 = vadd.bf16 1077952576, %v2878_v22 }
 0x1ed   : > { %v6929_v14 = vpop.f32.mrf.mxu1  ;;  %v3392_v62 = vmul.bf16 %v3264_v19, %v6870_v52 }
 0x1ee   : > { %v6915_v39 = vpop.f32.mrf.mxu0  ;;  %4974 = vmatpush3.bf16.msra.mxu1 %v3395_v9  ;;  %7823 = vst [vmem:[#allocation41_spill] sm:$0xff] %v6929_v14  ;;  %v3143_v9 = vmax.bf16 %v7807_v58, %v3015_v45  ;;  %v3263_v33 = vmin.bf16 %v7810_v30, %v3135_v15  ;;  %v3134_v60 = vmax.bf16 %v7807_v58, %v3006_v12 }
 0x1ef   : > { %4975 = vmatprep.subr.bf16.mxu1 %v3402_v18  ;;  %v3401_v18 = vmul.bf16 %v3273_v6, %v6818_v31  ;;  %v6936_v53 = vpop.f32.mrf.mxu1  ;;  %v3142_v31 = vmax.bf16 %v7807_v58, %v3014_v49 }
 0x1f0   : > { %v6927_v21 = vpop.f32.mrf.mxu0  ;;  %7824 = vst [vmem:[#allocation42_spill] sm:$0xff] %v6936_v53  ;;  %v3271_v6 = vmin.bf16 %v7810_v30, %v3143_v9  ;;  %v3262_v15 = vmin.bf16 %v7810_v30, %v3134_v60 }
 0x1f1   : > { %v6943_v45 = vpop.f32.mrf.mxu1  ;;  %v3270_v46 = vmin.bf16 %v7810_v30, %v3142_v31  ;;  %v3489_v31 = vld [vmem:[%s7752_s1 + $0x98] sm:$0xff] }
 0x1f2   : > { %v6934_v61 = vpop.f32.mrf.mxu0  ;;  %4976 = vmatpush3.bf16.msra.mxu1 %v3394_v2  ;;  %7825 = vst [vmem:[#allocation43_spill] sm:$0xff] %v6943_v45  ;;  %v3399_v49 = vmul.bf16 %v3271_v6, %v6876_v10  ;;  %v3390_v6 = vmul.bf16 %v3262_v15, %v2878_v22  ;;  %v6990_v22 = vld [vmem:[%s7752_s1 + $0x20] sm:$0xff] }
 0x1f3   : > { %4977 = vmatprep.subr.bf16.mxu1 %v3401_v18  ;;  %v6950_v18 = vpop.f32.mrf.mxu1  ;;  %v3398_v52 = vmul.bf16 %v3270_v46, %v2886_v5  ;;  %v4705_v5 = vcombine.low %v6735_v47, %v6740_v63  ;;  %v6995_v47 = vld [vmem:[%s7752_s1 + $0x60] sm:$0xff] }
 0x1f4   : > { %v6941_v0 = vpop.f32.mrf.mxu0  ;;  %7826 = vst [vmem:[#allocation44_spill] sm:$0xff] %v6950_v18 }
 0x1f5   : > { %v6955_v32 = vpop.f32.mrf.mxu1 }
 0x1f6   : > { %v6948_v2 = vpop.f32.mrf.mxu0  ;;  %4978 = vmatpush3.bf16.msra.mxu1 %v3393_v51  ;;  %7827 = vst [vmem:[#allocation45_spill] sm:$0xff] %v6955_v32  ;;  %v3391_v51 = vmul.bf16 %v3263_v33, %v6898_v34  ;;  %v3497_v34 = vld [vmem:[%s7752_s1 + $0xd8] sm:$0xff] }
 0x1f7   : > { %4979 = vmatprep.subr.bf16.mxu1 %v3400_v3  ;;  %v6959_v9 = vpop.f32.mrf.mxu1  ;;  %v4721_v41 = vcombine.low %v3489_v31, %v3497_v34 }
 0x1f8   : > { %v5272_v20 = vpop.f32.mrf.mxu0  ;;  %7828 = vst [vmem:[#allocation46_spill] sm:$0xff] %v6959_v9 }
 0x1f9   : > { %v6965_v12 = vpop.f32.mrf.mxu1  ;;  %v2765_v18 = vpack.c.bf16 %v5272_v20, %v6941_v0 }
 0x1fa   : > { %v2234_v27 = vpop.f32.mrf.mxu0  ;;  %4980 = vmatpush3.bf16.msra.mxu1 %v3392_v62  ;;  %7829 = vst [vmem:[#allocation47_spill] sm:$0xff] %v6965_v12 }
 0x1fb   : > { %4981 = vmatprep.subr.bf16.mxu1 %v3399_v49  ;;  %v6969_v10 = vpop.f32.mrf.mxu1  ;;  %v4722_v49 = vcombine.high %v3489_v31, %v3497_v34 }
 0x1fc   : > { %v6963_v3 = vpop.f32.mrf.mxu0  ;;  %7830 = vst [vmem:[#allocation48_spill] sm:$0xff] %v6969_v10  ;;  %v2764_v10 = vpack.c.bf16 %v2234_v27, %v6948_v2  ;;  %v2762_v27 = vpack.c.bf16 %v6934_v61, %v6915_v39 }
 0x1fd   : > { %v6981_v60 = vpop.f32.mrf.mxu1 }
 0x1fe   : > { %v6967_v19 = vpop.f32.mrf.mxu0  ;;  %4982 = vmatpush3.bf16.msra.mxu1 %v3391_v51  ;;  %7831 = vst [vmem:[#allocation49_spill] sm:$0xff] %v6981_v60  ;;  %v2901_v60 = vadd.bf16 %v6035_v7, %v2765_v18  ;;  %v7015_v20 = vadd.bf16 %v6035_v7, %v2764_v10 }
 0x1ff   : > { %4983 = vmatprep.subr.bf16.mxu1 %v3398_v52 }
 0x200   : > { %v6977_v33 = vpop.f32.mrf.mxu0  ;;  %v3029_v0 = vadd.bf16 1077952576, %v2901_v60  ;;  %v3028_v10 = vadd.bf16 1077952576, %v7015_v20 }
 0x202   : > { %v6983_v62 = vpop.f32.mrf.mxu0  ;;  %4984 = vmatpush3.bf16.msra.mxu1 %v3390_v6 }
 0x204   : > { %v5279_v46 = vpop.f32.mrf.mxu0 }
 0x205   : > { %3842 = vmatmul.mubr.bf16.vlgmr.msra.gmra.mxu1 %v4705_v5  ;;  %v4901_v51 = vpop.f32.mrf.mxu1 }
 0x206   : > { %v6985_v52 = vpop.f32.mrf.mxu0  ;;  %3849 = vmatprep.mubr.bf16.mxu1 %v4722_v49  ;;  %v4708_v49 = vcombine.high %v6990_v22, %v6995_v47 }
 0x207   : > { %v4902_v63 = vpop.f32.mrf.mxu1 }
 0x208   : > { %v5280_v15 = vpop.f32.mrf.mxu0  ;;  %v6997_v6 = vadd.f32 %v4902_v63, %v4901_v51 }
 0x209   : > { %v4904_v5 = vpop.f32.mrf.mxu1 }
 0x20a   : > { %v6999_v14 = vpop.f32.mrf.mxu0 }
 0x20b   : > { %v4905_v35 = vpop.f32.mrf.mxu1 }
 0x20c   : > { %v5283_v16 = vpop.f32.mrf.mxu0  ;;  %v7003_v25 = vadd.f32 %v4905_v35, %v4904_v5 }
 0x20d   : > { %3850 = vmatmul.mubr.bf16.gmra.mxu1 %v4721_v41  ;;  %v4907_v32 = vpop.f32.mrf.mxu1  ;;  %v2763_v41 = vpack.c.bf16 %v6927_v21, %v6907_v48  ;;  %v3157_v48 = vmax.bf16 %v7807_v58, %v3029_v0 }
 0x20e   : > { %v2279_v45 = vpop.f32.mrf.mxu0  ;;  %3890 = vmatprep.mubr.bf16.mxu1 %v4708_v49 }
 0x20f   : > { %v4908_v53 = vpop.f32.mrf.mxu1  ;;  %v7021_v2 = vadd.bf16 %v6035_v7, %v2763_v41  ;;  %v3285_v41 = vmin.bf16 %v7810_v30, %v3157_v48 }
 0x210   : > { %v5284_v51 = vpop.f32.mrf.mxu0  ;;  %v7006_v63 = vadd.f32 %v4908_v53, %v4907_v32 }
 0x211   : > { %v4910_v31 = vpop.f32.mrf.mxu1  ;;  %v2771_v9 = vpack.c.bf16 %v5284_v51, %v5283_v16  ;;  %v2769_v51 = vpack.c.bf16 %v5280_v15, %v5279_v46  ;;  %v3027_v39 = vadd.bf16 1077952576, %v7021_v2  ;;  %v3413_v28 = vmul.bf16 %v3285_v41, %v2901_v60 }
 0x212   : > { %v2282_v34 = vpop.f32.mrf.mxu0 }
 0x213   : > { %v4911_v12 = vpop.f32.mrf.mxu1  ;;  %v7018_v32 = vadd.bf16 %v6035_v7, %v2771_v9  ;;  %v2770_v18 = vpack.c.bf16 %v2282_v34, %v2279_v45  ;;  %v7045_v0 = vadd.bf16 %v6035_v7, %v2769_v51 }
 0x214   : > { %v5287_v35 = vpop.f32.mrf.mxu0  ;;  %v7010_v5 = vadd.f32 %v4911_v12, %v4910_v31 }
 0x215   : > { %v3035_v9 = vadd.bf16 1077952576, %v7018_v32  ;;  %v7032_v45 = vadd.bf16 %v6035_v7, %v2770_v18 }
 0x216   : > { %v2295_v49 = vpop.f32.mrf.mxu0 }
 0x217   : > { %v3163_v18 = vmax.bf16 %v7807_v58, %v3035_v9 }
 0x218   : > { %v5288_v53 = vpop.f32.mrf.mxu0 }
 0x219   : > { %v2773_v38 = vpack.c.bf16 %v5288_v53, %v5287_v35  ;;  %v2768_v53 = vpack.c.bf16 %v6999_v14, %v6985_v52  ;;  %v3155_v14 = vmax.bf16 %v7807_v58, %v3027_v39 }
 0x21a   : > { %v2298_v16 = vpop.f32.mrf.mxu0 }
 0x21b   : > { %v2909_v21 = vadd.bf16 %v6035_v7, %v2773_v38  ;;  %v2772_v12 = vpack.c.bf16 %v2298_v16, %v2295_v49  ;;  %v7039_v38 = vadd.bf16 %v6035_v7, %v2762_v27  ;;  %v3156_v49 = vmax.bf16 %v7807_v58, %v3028_v10 }
 0x21c   : > { %v7029_v31 = vpop.f32.mrf.mxu0  ;;  %v3034_v27 = vadd.bf16 1077952576, %v7032_v45  ;;  %v7832_v10 = vpack.c.bf16 %v6881_v40, %v6852_v24  ;;  %v2767_v24 = vpack.c.bf16 %v6977_v33, %v6963_v3  ;;  %v3033_v40 = vadd.bf16 1077952576, %v7045_v0 }
 0x21d   : > { %v3037_v34 = vadd.bf16 1077952576, %v2909_v21  ;;  %v2908_v35 = vadd.bf16 %v6035_v7, %v2772_v12  ;;  %v3026_v9 = vadd.bf16 1077952576, %v7039_v38  ;;  %v2904_v39 = vadd.bf16 %v6035_v7, %v2768_v53 }
 0x21e   : > { %v7036_v61 = vpop.f32.mrf.mxu0  ;;  %v7061_v51 = vadd.bf16 %v6035_v7, %v7832_v10  ;;  %v3162_v11 = vmax.bf16 %v7807_v58, %v3034_v27  ;;  %v7833_v3 = vpack.c.bf16 %v6890_v36, %v6861_v50  ;;  %v3283_v41 = vmin.bf16 %v7810_v30, %v3155_v14 }
 0x21f   : > { %v3165_v46 = vmax.bf16 %v7807_v58, %v3037_v34  ;;  %v3036_v15 = vadd.bf16 1077952576, %v2908_v35  ;;  %v2766_v53 = vpack.c.bf16 %v6983_v62, %v6967_v19  ;;  %v3032_v27 = vadd.bf16 1077952576, %v2904_v39 }
 0x220   : > { %v7050_v16 = vpop.f32.mrf.mxu0  ;;  %v3025_v60 = vadd.bf16 1077952576, %v7061_v51  ;;  %v2896_v33 = vadd.bf16 %v6035_v7, %v7833_v3 }
 0x221   : > { %v3164_v12 = vmax.bf16 %v7807_v58, %v3036_v15  ;;  %v3293_v34 = vmin.bf16 %v7810_v30, %v3165_v46  ;;  %v3284_v46 = vmin.bf16 %v7810_v30, %v3156_v49  ;;  %v3154_v49 = vmax.bf16 %v7807_v58, %v3026_v9 }
 0x222   : > { %v7064_v52 = vpop.f32.mrf.mxu0  ;;  %v3153_v62 = vmax.bf16 %v7807_v58, %v3025_v60  ;;  %v3024_v14 = vadd.bf16 1077952576, %v2896_v33  ;;  %v3411_v9 = vmul.bf16 %v3283_v41, %v7021_v2  ;;  %v7835_v2 = vpack.c.bf16 %v6839_v44, %v6807_v54 }
 0x223   : > { %v3421_v4 = vmul.bf16 %v3293_v34, %v2909_v21  ;;  %v3292_v48 = vmin.bf16 %v7810_v30, %v3164_v12  ;;  %v3291_v21 = vmin.bf16 %v7810_v30, %v3163_v18  ;;  %v3290_v12 = vmin.bf16 %v7810_v30, %v3162_v11 }
 0x224   : > { %v7074_v10 = vpop.f32.mrf.mxu0  ;;  %v2894_v3 = vadd.bf16 %v6035_v7, %v7835_v2  ;;  %v3281_v41 = vmin.bf16 %v7810_v30, %v3153_v62 }
 0x225   : > { %4997 = vmatprep.subr.bf16.mxu1 %v3421_v4  ;;  %v3420_v23 = vmul.bf16 %v3292_v48, %v2908_v35  ;;  %v3412_v4 = vmul.bf16 %v3284_v46, %v7015_v20  ;;  %v2903_v35 = vadd.bf16 %v6035_v7, %v2767_v24  ;;  %v3419_v36 = vmul.bf16 %v3291_v21, %v7018_v32 }
 0x226   : > { %v7079_v34 = vpop.f32.mrf.mxu0  ;;  %4998 = vmatpush3.bf16.msra.mxu1 %v3413_v28  ;;  %v3161_v28 = vmax.bf16 %v7807_v58, %v3033_v40  ;;  %v7834_v20 = vpack.c.bf16 %v6823_v56, %v6798_v13  ;;  %v3282_v32 = vmin.bf16 %v7810_v30, %v3154_v49  ;;  %v2902_v24 = vadd.bf16 %v6035_v7, %v2766_v53 }
 0x227   : > { %4999 = vmatprep.subr.bf16.mxu1 %v3420_v23  ;;  %v3031_v11 = vadd.bf16 1077952576, %v2903_v35  ;;  %v3160_v56 = vmax.bf16 %v7807_v58, %v3032_v27  ;;  %v3418_v13 = vmul.bf16 %v3290_v12, %v7032_v45  ;;  %v3152_v49 = vmax.bf16 %v7807_v58, %v3024_v14 }
 0x228   : > { %v7093_v18 = vpop.f32.mrf.mxu0  ;;  %v2895_v19 = vadd.bf16 %v6035_v7, %v7834_v20  ;;  %v3289_v40 = vmin.bf16 %v7810_v30, %v3161_v28  ;;  %v3030_v28 = vadd.bf16 1077952576, %v2902_v24  ;;  %v3022_v44 = vadd.bf16 1077952576, %v2894_v3 }
 0x229   : > { %v2777_v50 = vpack.c.bf16 %v7093_v18, %v7074_v10  ;;  %v3159_v45 = vmax.bf16 %v7807_v58, %v3031_v11  ;;  %v3409_v20 = vmul.bf16 %v3281_v41, %v7061_v51 }
 0x22a   : > { %v7099_v23 = vpop.f32.mrf.mxu0  ;;  %5000 = vmatpush3.bf16.msra.mxu1 %v3412_v4  ;;  %v3023_v60 = vadd.bf16 1077952576, %v2895_v19  ;;  %v3410_v4 = vmul.bf16 %v3282_v32, %v7039_v38  ;;  %v3417_v27 = vmul.bf16 %v3289_v40, %v7045_v0  ;;  %v3280_v38 = vmin.bf16 %v7810_v30, %v3152_v49 }
 0x22b   : > { %5001 = vmatprep.subr.bf16.mxu1 %v3419_v36  ;;  %v3288_v36 = vmin.bf16 %v7810_v30, %v3160_v56  ;;  %v3158_v14 = vmax.bf16 %v7807_v58, %v3030_v28  ;;  %v3287_v0 = vmin.bf16 %v7810_v30, %v3159_v45  ;;  %v3150_v56 = vmax.bf16 %v7807_v58, %v3022_v44 }
 0x22c   : > { %v7110_v46 = vpop.f32.mrf.mxu0  ;;  %v3151_v54 = vmax.bf16 %v7807_v58, %v3023_v60 }
 0x22d   : > { %v3415_v51 = vmul.bf16 %v3287_v0, %v2903_v35  ;;  %v3286_v60 = vmin.bf16 %v7810_v30, %v3158_v14  ;;  %v3498_v35 = vld [vmem:[%s7752_s1 + $0xe0] sm:$0xff] }
 0x22e   : > { %v7116_v21 = vpop.f32.mrf.mxu0  ;;  %5002 = vmatpush3.bf16.msra.mxu1 %v3411_v9  ;;  %v3416_v9 = vmul.bf16 %v3288_v36, %v2904_v39  ;;  %v3279_v11 = vmin.bf16 %v7810_v30, %v3151_v54  ;;  %v3278_v39 = vmin.bf16 %v7810_v30, %v3150_v56 }
 0x22f   : > { %5003 = vmatprep.subr.bf16.mxu1 %v3418_v13  ;;  %v3408_v13 = vmul.bf16 %v3280_v38, %v2896_v33  ;;  %v3490_v33 = vld [vmem:[%s7752_s1 + $0xa0] sm:$0xff] }
 0x230   : > { %v7125_v53 = vpop.f32.mrf.mxu0  ;;  %v3407_v41 = vmul.bf16 %v3279_v11, %v2895_v19  ;;  %v3406_v28 = vmul.bf16 %v3278_v39, %v2894_v3  ;;  %v4707_v19 = vcombine.low %v6990_v22, %v6995_v47  ;;  %v7168_v3 = vld [vmem:[%s7752_s1 + $0x28] sm:$0xff] }
 0x231   : > { %v7173_v22 = vld [vmem:[%s7752_s1 + $0x68] sm:$0xff] }
 0x232   : > { %v7130_v12 = vpop.f32.mrf.mxu0  ;;  %5004 = vmatpush3.bf16.msra.mxu1 %v3410_v4  ;;  %v3414_v4 = vmul.bf16 %v3286_v60, %v2902_v24  ;;  %v4724_v24 = vcombine.high %v3490_v33, %v3498_v35  ;;  %v4710_v56 = vcombine.high %v7168_v3, %v7173_v22 }
 0x233   : > { %5005 = vmatprep.subr.bf16.mxu1 %v3417_v27 }
 0x234   : > { %v7135_v62 = vpop.f32.mrf.mxu0 }
 0x236   : > { %v7139_v32 = vpop.f32.mrf.mxu0  ;;  %5006 = vmatpush3.bf16.msra.mxu1 %v3409_v20 }
 0x237   : > { %5007 = vmatprep.subr.bf16.mxu1 %v3416_v9  ;;  %v4723_v9 = vcombine.low %v3490_v33, %v3498_v35 }
 0x238   : > { %v5304_v40 = vpop.f32.mrf.mxu0 }
 0x239   : > { %v2781_v35 = vpack.c.bf16 %v5304_v40, %v7135_v62  ;;  %v2779_v62 = vpack.c.bf16 %v7125_v53, %v7110_v46 }
 0x23a   : > { %v2362_v2 = vpop.f32.mrf.mxu0  ;;  %5008 = vmatpush3.bf16.msra.mxu1 %v3408_v13 }
 0x23b   : > { %5009 = vmatprep.subr.bf16.mxu1 %v3415_v51 }
 0x23c   : > { %v7145_v49 = vpop.f32.mrf.mxu0 }
 0x23e   : > { %v7147_v45 = vpop.f32.mrf.mxu0  ;;  %5010 = vmatpush3.bf16.msra.mxu1 %v3407_v41 }
 0x23f   : > { %5011 = vmatprep.subr.bf16.mxu1 %v3414_v4 }
 0x240   : > { %v7155_v27 = vpop.f32.mrf.mxu0 }
 0x242   : > { %v7159_v36 = vpop.f32.mrf.mxu0  ;;  %5012 = vmatpush3.bf16.msra.mxu1 %v3406_v28 }
 0x244   : > { %v7161_v54 = vpop.f32.mrf.mxu0 }
 0x245   : > { %3891 = vmatmul.mubr.bf16.vlgmr.msra.gmra.mxu1 %v4707_v19  ;;  %v4929_v44 = vpop.f32.mrf.mxu1 }
 0x246   : > { %v7163_v20 = vpop.f32.mrf.mxu0  ;;  %3898 = vmatprep.mubr.bf16.mxu1 %v4724_v24 }
 0x247   : > { %v4930_v47 = vpop.f32.mrf.mxu1 }
 0x248   : > { %v5312_v38 = vpop.f32.mrf.mxu0  ;;  %v4931_v14 = vadd.f32 %v4930_v47, %v4929_v44 }
 0x249   : > { %v4932_v0 = vpop.f32.mrf.mxu1 }
 0x24a   : > { %v7175_v11 = vpop.f32.mrf.mxu0  ;;  %v7180_v13 = vadd.f32 %v4931_v14, %v6997_v6 }
 0x24b   : > { %v4933_v51 = vpop.f32.mrf.mxu1 }
 0x24c   : > { %v5315_v60 = vpop.f32.mrf.mxu0  ;;  %v4934_v41 = vadd.f32 %v4933_v51, %v4932_v0  ;;  %v2917_v0 = vadd.bf16 %v6035_v7, %v2781_v35 }
 0x24d   : > { %3899 = vmatmul.mubr.bf16.gmra.mxu1 %v4723_v9  ;;  %v4935_v39 = vpop.f32.mrf.mxu1  ;;  %v2780_v9 = vpack.c.bf16 %v2362_v2, %v7139_v32  ;;  %v7199_v32 = vadd.bf16 %v6035_v7, %v2779_v62  ;;  %v2778_v2 = vpack.c.bf16 %v7130_v12, %v7116_v21 }
 0x24e   : > { %v2407_v4 = vpop.f32.mrf.mxu0  ;;  %3939 = vmatprep.mubr.bf16.mxu1 %v4710_v56  ;;  %v7183_v28 = vadd.f32 %v4934_v41, %v7003_v25  ;;  %v3045_v40 = vadd.bf16 1077952576, %v2917_v0 }
 0x24f   : > { %v4936_v33 = vpop.f32.mrf.mxu1 }
 0x250   : > { %v5316_v19 = vpop.f32.mrf.mxu0  ;;  %v4937_v24 = vadd.f32 %v4936_v33, %v4935_v39  ;;  %v2916_v39 = vadd.bf16 %v6035_v7, %v2780_v9  ;;  %v3173_v46 = vmax.bf16 %v7807_v58, %v3045_v40  ;;  %v7210_v9 = vadd.bf16 %v6035_v7, %v2778_v2 }
 0x251   : > { %v4938_v44 = vpop.f32.mrf.mxu1  ;;  %v2787_v15 = vpack.c.bf16 %v5316_v19, %v5315_v60  ;;  %v2785_v19 = vpack.c.bf16 %v5312_v38, %v7161_v54  ;;  %v2784_v38 = vpack.c.bf16 %v7175_v11, %v7163_v20 }
 0x252   : > { %v2410_v47 = vpop.f32.mrf.mxu0  ;;  %v7187_v6 = vadd.f32 %v4937_v24, %v7006_v63  ;;  %v3044_v53 = vadd.bf16 1077952576, %v2916_v39 }
 0x253   : > { %v4939_v14 = vpop.f32.mrf.mxu1  ;;  %v2923_v33 = vadd.bf16 %v6035_v7, %v2787_v15  ;;  %v2786_v24 = vpack.c.bf16 %v2410_v47, %v2407_v4  ;;  %v7216_v54 = vadd.bf16 %v6035_v7, %v2785_v19  ;;  %v7237_v10 = vadd.bf16 %v6035_v7, %v2784_v38 }
 0x254   : > { %v5319_v51 = vpop.f32.mrf.mxu0  ;;  %v4940_v56 = vadd.f32 %v4939_v14, %v4938_v44  ;;  %v3043_v14 = vadd.bf16 1077952576, %v7199_v32  ;;  %v7837_v38 = vpack.c.bf16 %v7050_v16, %v7029_v31 }
 0x255   : > { %v3051_v44 = vadd.bf16 1077952576, %v2923_v33  ;;  %v2922_v15 = vadd.bf16 %v6035_v7, %v2786_v24 }
 0x256   : > { %v2423_v25 = vpop.f32.mrf.mxu0  ;;  %v7192_v41 = vadd.f32 %v4940_v56, %v7010_v5  ;;  %v3171_v24 = vmax.bf16 %v7807_v58, %v3043_v14 }
 0x257   : > { %v3179_v56 = vmax.bf16 %v7807_v58, %v3051_v44  ;;  %v7836_v44 = vpack.c.bf16 %v7099_v23, %v7079_v34 }
 0x258   : > { %v5320_v63 = vpop.f32.mrf.mxu0 }
 0x259   : > { %v2789_v35 = vpack.c.bf16 %v5320_v63, %v5319_v51  ;;  %v3172_v51 = vmax.bf16 %v7807_v58, %v3044_v53  ;;  %v7227_v63 = vadd.bf16 %v6035_v7, %v2777_v50  ;;  %v3049_v53 = vadd.bf16 1077952576, %v7216_v54 }
 0x25a   : > { %v2426_v48 = vpop.f32.mrf.mxu0  ;;  %v3307_v19 = vmin.bf16 %v7810_v30, %v3179_v56 }
 0x25b   : > { %v2925_v5 = vadd.bf16 %v6035_v7, %v2789_v35  ;;  %v2788_v60 = vpack.c.bf16 %v2426_v48, %v2423_v25  ;;  %v3301_v48 = vmin.bf16 %v7810_v30, %v3173_v46  ;;  %v3050_v25 = vadd.bf16 1077952576, %v2922_v15 }
 0x25c   : > { %v3042_v35 = vadd.bf16 1077952576, %v7210_v9  ;;  %v2783_v46 = vpack.c.bf16 %v7155_v27, %v7145_v49  ;;  %v7248_v49 = vadd.bf16 %v6035_v7, %v7836_v44  ;;  %v3299_v27 = vmin.bf16 %v7810_v30, %v3171_v24 }
 0x25d   : > { %v3053_v4 = vadd.bf16 1077952576, %v2925_v5  ;;  %v2924_v47 = vadd.bf16 %v6035_v7, %v2788_v60  ;;  %v3429_v11 = vmul.bf16 %v3301_v48, %v2917_v0  ;;  %v3300_v60 = vmin.bf16 %v7810_v30, %v3172_v51 }
 0x25e   : > { %v3178_v18 = vmax.bf16 %v7807_v58, %v3050_v25  ;;  %v3041_v0 = vadd.bf16 1077952576, %v7227_v63  ;;  %v3048_v48 = vadd.bf16 1077952576, %v7237_v10  ;;  %v3435_v34 = vmul.bf16 %v3307_v19, %v2923_v33 }
 0x25f   : > { %v3181_v21 = vmax.bf16 %v7807_v58, %v3053_v4  ;;  %v3052_v12 = vadd.bf16 1077952576, %v2924_v47  ;;  %v3170_v4 = vmax.bf16 %v7807_v58, %v3042_v35  ;;  %v3428_v14 = vmul.bf16 %v3300_v60, %v2916_v39 }
 0x260   : > { %v3306_v23 = vmin.bf16 %v7810_v30, %v3178_v18  ;;  %v7266_v39 = vadd.bf16 %v6035_v7, %v7837_v38  ;;  %v3169_v56 = vmax.bf16 %v7807_v58, %v3041_v0  ;;  %v3427_v33 = vmul.bf16 %v3299_v27, %v7199_v32 }
 0x261   : > { %v3180_v62 = vmax.bf16 %v7807_v58, %v3052_v12  ;;  %v3309_v40 = vmin.bf16 %v7810_v30, %v3181_v21  ;;  %v2782_v21 = vpack.c.bf16 %v7159_v36, %v7147_v45  ;;  %v3177_v12 = vmax.bf16 %v7807_v58, %v3049_v53 }
 0x262   : > { %v2805_v45 = vpack.c.bf16 %v6706_v8, %v6696_v42  ;;  %v3040_v36 = vadd.bf16 1077952576, %v7248_v49  ;;  %v3298_v25 = vmin.bf16 %v7810_v30, %v3170_v4  ;;  %v3176_v31 = vmax.bf16 %v7807_v58, %v3048_v48 }
 0x263   : > { %v3437_v2 = vmul.bf16 %v3309_v40, %v2925_v5  ;;  %v3308_v20 = vmin.bf16 %v7810_v30, %v3180_v62  ;;  %v7241_v5 = vpop.f32.mrf.mxu0  ;;  %v7276_v40 = vadd.bf16 %v6035_v7, %v2782_v21  ;;  %v3434_v16 = vmul.bf16 %v3306_v23, %v2922_v15 }
 0x264   : > { %v3305_v24 = vmin.bf16 %v7810_v30, %v3177_v12  ;;  %v3039_v42 = vadd.bf16 1077952576, %v7266_v39  ;;  %v7284_v8 = vadd.bf16 %v6035_v7, %v2805_v45  ;;  %v2804_v32 = vpack.c.bf16 %v6716_v26, %v6702_v17 }
 0x265   : > { %5025 = vmatprep.subr.bf16.mxu1 %v3437_v2  ;;  %v3436_v50 = vmul.bf16 %v3308_v20, %v2924_v47  ;;  %v7253_v47 = vadd.bf16 %v6035_v7, %v2783_v46  ;;  %v7260_v51 = vpop.f32.mrf.mxu0  ;;  %v7838_v2 = vpack.c.bf16 %v7064_v52, %v7036_v61  ;;  %v3297_v15 = vmin.bf16 %v7810_v30, %v3169_v56 }
 0x266   : > { %5026 = vmatpush3.bf16.msra.mxu1 %v3429_v11  ;;  %v3168_v11 = vmax.bf16 %v7807_v58, %v3040_v36  ;;  %v3426_v60 = vmul.bf16 %v3298_v25, %v7210_v9  ;;  %v3046_v53 = vadd.bf16 1077952576, %v7276_v40  ;;  %v3433_v18 = vmul.bf16 %v3305_v24, %v7216_v54  ;;  %v7841_v36 = vld [vmem:[#allocation7_spill] sm:$0xff] }
 0x267   : > { %5027 = vmatprep.subr.bf16.mxu1 %v3436_v50  ;;  %v3047_v62 = vadd.bf16 1077952576, %v7253_v47  ;;  %v7280_v35 = vpop.f32.mrf.mxu0  ;;  %v7292_v20 = vadd.bf16 %v6035_v7, %v7838_v2  ;;  %v3304_v26 = vmin.bf16 %v7810_v30, %v3176_v31  ;;  %v7839_v61 = vpack.c.bf16 %v6538_v59, %v6515_v29  ;;  %v7845_v31 = vld [vmem:[#allocation8_spill] sm:$0xff] }
 0x268   : > { %v2796_v9 = vpack.c.bf16 %v6555_v1, %v6528_v37  ;;  %v2803_v50 = vpack.c.bf16 %v6687_v43, %v6671_v57  ;;  %v3069_v19 = vadd.bf16 1077952576, %v7284_v8  ;;  %v3167_v54 = vmax.bf16 %v7807_v58, %v3039_v42 }
 0x269   : > { %v3175_v46 = vmax.bf16 %v7807_v58, %v3047_v62  ;;  %v7300_v17 = vpop.f32.mrf.mxu0  ;;  %v7307_v52 = vadd.bf16 %v6035_v7, %v7839_v61  ;;  %v3038_v0 = vadd.bf16 1077952576, %v7292_v20  ;;  %v3425_v44 = vmul.bf16 %v3297_v15, %v7227_v63  ;;  %v7846_v61 = vld [vmem:[#allocation15_spill] sm:$0xff] }
 0x26a   : > { %5028 = vmatpush3.bf16.msra.mxu1 %v3428_v14  ;;  %v3296_v29 = vmin.bf16 %v7810_v30, %v3168_v11  ;;  %v7319_v59 = vadd.bf16 %v6035_v7, %v2804_v32  ;;  %v3174_v27 = vmax.bf16 %v7807_v58, %v3046_v53  ;;  %v3432_v37 = vmul.bf16 %v3304_v26, %v7237_v10  ;;  %v7840_v10 = vld [vmem:[#allocation17_spill] sm:$0xff] }
 0x26b   : > { %5029 = vmatprep.subr.bf16.mxu1 %v3435_v34  ;;  %v5327_v1 = vpop.f32.mrf.mxu0  ;;  %v3303_v57 = vmin.bf16 %v7810_v30, %v3175_v46  ;;  %v3061_v43 = vadd.bf16 1077952576, %v7307_v52  ;;  %v7326_v4 = vadd.bf16 %v6035_v7, %v2796_v9  ;;  %v7329_v63 = vadd.bf16 %v6035_v7, %v2803_v50  ;;  %v7847_v9 = vld [vmem:[#allocation13_spill] sm:$0xff] }
 0x26c   : > { %v3295_v14 = vmin.bf16 %v7810_v30, %v3167_v54  ;;  %v3166_v21 = vmax.bf16 %v7807_v58, %v3038_v0  ;;  %v3424_v12 = vmul.bf16 %v3296_v29, %v7248_v49  ;;  %v2802_v48 = vpack.c.bf16 %v7840_v10, %v6678_v55  ;;  %v7844_v49 = vld [vmem:[#allocation6_spill] sm:$0xff]  ;;  %v7850_v29 = vld [vmem:[#allocation16_spill] sm:$0xff] }
 0x26d   : > { %v3197_v34 = vmax.bf16 %v7807_v58, %v3069_v19  ;;  %v3068_v23 = vadd.bf16 1077952576, %v7319_v59  ;;  %v7338_v38 = vpop.f32.mrf.mxu0  ;;  %v3431_v56 = vmul.bf16 %v3303_v57, %v7253_v47  ;;  %v3302_v45 = vmin.bf16 %v7810_v30, %v3174_v27  ;;  %v7381_v54 = vld [vmem:[%s7752_s1 + $0xe8] sm:$0xff] }
 0x26e   : > { %5030 = vmatpush3.bf16.msra.mxu1 %v3427_v33  ;;  %v7842_v33 = vld [vmem:[#allocation5_spill] sm:$0xff]  ;;  %v2794_v55 = vpack.c.bf16 %v7845_v31, %v7844_v49  ;;  %v3060_v24 = vadd.bf16 1077952576, %v7326_v4  ;;  %v3423_v42 = vmul.bf16 %v3295_v14, %v7266_v39  ;;  %v3294_v47 = vmin.bf16 %v7810_v30, %v3166_v21  ;;  %v7851_v49 = vld [vmem:[#allocation10_spill] sm:$0xff]  ;;  %v7852_v31 = vld [vmem:[#allocation12_spill] sm:$0xff] }
 0x26f   : > { %5031 = vmatprep.subr.bf16.mxu1 %v3434_v16  ;;  %v7843_v25 = vpack.c.bf16 %v7841_v36, %v7842_v33  ;;  %v3189_v16 = vmax.bf16 %v7807_v58, %v3061_v43  ;;  %v3067_v32 = vadd.bf16 1077952576, %v7329_v63  ;;  %v7356_v2 = vadd.bf16 %v6035_v7, %v2802_v48  ;;  %v5328_v11 = vpop.f32.mrf.mxu0 }
 0x270   : > { %v3196_v15 = vmax.bf16 %v7807_v58, %v3068_v23  ;;  %v3325_v46 = vmin.bf16 %v7810_v30, %v3197_v34  ;;  %v3188_v26 = vmax.bf16 %v7807_v58, %v3060_v24  ;;  %v7848_v50 = vpack.c.bf16 %v7846_v61, %v7847_v9  ;;  %v7853_v24 = vld [vmem:[#allocation11_spill] sm:$0xff] }
 0x271   : > { %v7346_v62 = vadd.bf16 %v6035_v7, %v7843_v25  ;;  %v3317_v39 = vmin.bf16 %v7810_v30, %v3189_v16  ;;  %v3422_v0 = vmul.bf16 %v3294_v47, %v7292_v20  ;;  %v2793_v57 = vpack.c.bf16 %v5328_v11, %v5327_v1  ;;  %v2458_v14 = vpop.f32.mrf.mxu0  ;;  %v7425_v11 = vld [vmem:[%s7752_s1 + $0x30] sm:$0xff] }
 0x272   : > { %5032 = vmatpush3.bf16.msra.mxu1 %v3426_v60  ;;  %v3430_v60 = vmul.bf16 %v3302_v45, %v7276_v40  ;;  %v7371_v19 = vadd.bf16 %v6035_v7, %v7848_v50  ;;  %v7376_v40 = vld [vmem:[%s7752_s1 + $0xa8] sm:$0xff]  ;;  %v3066_v43 = vadd.bf16 1077952576, %v7356_v2  ;;  %v3453_v21 = vmul.bf16 %v3325_v46, %v7284_v8 }
 0x273   : > { %5033 = vmatprep.subr.bf16.mxu1 %v3433_v18  ;;  %v3059_v53 = vadd.bf16 1077952576, %v7346_v62  ;;  %v7363_v18 = vadd.bf16 %v6035_v7, %v2794_v55  ;;  %v3324_v10 = vmin.bf16 %v7810_v30, %v3196_v15  ;;  %v4726_v20 = vcombine.high %v7376_v40, %v7381_v54 }
 0x274   : > { %v3316_v1 = vmin.bf16 %v7810_v30, %v3188_v26  ;;  %v3445_v23 = vmul.bf16 %v3317_v39, %v7307_v52  ;;  %v3065_v8 = vadd.bf16 1077952576, %v7371_v19  ;;  %v3194_v45 = vmax.bf16 %v7807_v58, %v3066_v43 }
 0x275   : > { %v3187_v48 = vmax.bf16 %v7807_v58, %v3059_v53  ;;  %v3058_v34 = vadd.bf16 1077952576, %v7363_v18  ;;  %v3452_v36 = vmul.bf16 %v3324_v10, %v7319_v59  ;;  %v2798_v55 = vpack.c.bf16 %v7852_v31, %v7851_v49  ;;  %v7861_v49 = vld [vmem:[#allocation49_spill] sm:$0xff] }
 0x276   : > { %5034 = vmatpush3.bf16.msra.mxu1 %v3425_v44  ;;  %v7849_v44 = vld [vmem:[#allocation14_spill] sm:$0xff]  ;;  %v3444_v16 = vmul.bf16 %v3316_v1, %v7326_v4  ;;  %v2791_v59 = vpack.c.bf16 %v7280_v35, %v7241_v5  ;;  %v7430_v4 = vld [vmem:[%s7752_s1 + $0x70] sm:$0xff]  ;;  %v4725_v26 = vcombine.low %v7376_v40, %v7381_v54  ;;  %v3322_v61 = vmin.bf16 %v7810_v30, %v3194_v45 }
 0x277   : > { %5035 = vmatprep.subr.bf16.mxu1 %v3432_v37  ;;  %v2800_v27 = vpack.c.bf16 %v7850_v29, %v7849_v44  ;;  %v3195_v37 = vmax.bf16 %v7807_v58, %v3067_v32  ;;  %v3315_v52 = vmin.bf16 %v7810_v30, %v3187_v48  ;;  %v7443_v50 = vadd.bf16 %v6035_v7, %v2798_v55 }
 0x278   : > { %v4712_v44 = vcombine.high %v7425_v11, %v7430_v4  ;;  %v7454_v40 = vadd.bf16 %v6035_v7, %v2791_v59  ;;  %v3450_v10 = vmul.bf16 %v3322_v61, %v7356_v2  ;;  %v7862_v59 = vld [vmem:[#allocation31_spill] sm:$0xff] }
 0x279   : > { %v3323_v33 = vmin.bf16 %v7810_v30, %v3195_v37  ;;  %v3443_v29 = vmul.bf16 %v3315_v52, %v7346_v62  ;;  %v2790_v37 = vpack.c.bf16 %v7300_v17, %v7260_v51  ;;  %v7856_v62 = vld [vmem:[#allocation46_spill] sm:$0xff] }
 0x27a   : > { %5036 = vmatpush3.bf16.msra.mxu1 %v3424_v12  ;;  %v4709_v12 = vcombine.low %v7168_v3, %v7173_v22  ;;  %v2792_v3 = vpack.c.bf16 %v2458_v14, %v7338_v38  ;;  %v7404_v22 = vadd.bf16 %v6035_v7, %v2800_v27  ;;  %v3186_v38 = vmax.bf16 %v7807_v58, %v3058_v34 }
 0x27b   : > { %5037 = vmatprep.subr.bf16.mxu1 %v3431_v56  ;;  %v7400_v56 = vadd.bf16 %v6035_v7, %v2793_v57  ;;  %v3451_v39 = vmul.bf16 %v3323_v33, %v7329_v63  ;;  %v3062_v34 = vadd.bf16 1077952576, %v7443_v50  ;;  %v3055_v45 = vadd.bf16 1077952576, %v7454_v40 }
 0x27c   : > { %v7435_v53 = vadd.bf16 %v6035_v7, %v2792_v3  ;;  %v3064_v35 = vadd.bf16 1077952576, %v7404_v22  ;;  %v3314_v63 = vmin.bf16 %v7810_v30, %v3186_v38 }
 0x27d   : > { %v3057_v46 = vadd.bf16 1077952576, %v7400_v56 }
 0x27e   : > { %5038 = vmatpush3.bf16.msra.mxu1 %v3423_v42  ;;  %v7854_v42 = vld [vmem:[#allocation9_spill] sm:$0xff]  ;;  %v3056_v57 = vadd.bf16 1077952576, %v7435_v53  ;;  %v3192_v14 = vmax.bf16 %v7807_v58, %v3064_v35  ;;  %v3442_v17 = vmul.bf16 %v3314_v63, %v7363_v18  ;;  %v7860_v18 = vld [vmem:[#allocation47_spill] sm:$0xff]  ;;  %v7865_v35 = vld [vmem:[#allocation44_spill] sm:$0xff] }
 0x27f   : > { %5039 = vmatprep.subr.bf16.mxu1 %v3430_v60  ;;  %v7855_v47 = vpack.c.bf16 %v7853_v24, %v7854_v42  ;;  %v3193_v60 = vmax.bf16 %v7807_v58, %v3065_v8  ;;  %v7859_v8 = vld [vmem:[#allocation32_spill] sm:$0xff]  ;;  %v2820_v31 = vpack.c.bf16 %v7861_v49, %v7860_v18  ;;  %v3190_v24 = vmax.bf16 %v7807_v58, %v3062_v34 }
 0x280   : > { %v3320_v38 = vmin.bf16 %v7810_v30, %v3192_v14 }
 0x281   : > { %v7418_v32 = vadd.bf16 %v6035_v7, %v7855_v47  ;;  %v3321_v48 = vmin.bf16 %v7810_v30, %v3193_v60  ;;  %v3318_v14 = vmin.bf16 %v7810_v30, %v3190_v24 }
 0x282   : > { %5040 = vmatpush3.bf16.msra.mxu1 %v3422_v0  ;;  %v3448_v63 = vmul.bf16 %v3320_v38, %v7404_v22 }
 0x283   : > { %5053 = vmatprep.subr.bf16.mxu1 %v3453_v21  ;;  %v3063_v27 = vadd.bf16 1077952576, %v7418_v32  ;;  %v7857_v21 = vld [vmem:[#allocation48_spill] sm:$0xff]  ;;  %v3449_v55 = vmul.bf16 %v3321_v48, %v7371_v19 }
 0x285   : > { %3940 = vmatmul.mubr.bf16.vlgmr.msra.gmra.mxu1 %v4709_v12  ;;  %v4957_v25 = vpop.f32.mrf.mxu1  ;;  %v2821_v12 = vpack.c.bf16 %v7857_v21, %v7856_v62  ;;  %v3191_v1 = vmax.bf16 %v7807_v58, %v3063_v27 }
 0x286   : > { %5054 = vmatpush3.bf16.msra.mxu1 %v3445_v23  ;;  %3947 = vmatprep.mubr.bf16.mxu1 %v4726_v20  ;;  %v7858_v23 = vld [vmem:[#allocation30_spill] sm:$0xff] }
 0x287   : > { %5055 = vmatprep.subr.bf16.mxu1 %v3452_v36  ;;  %v4958_v15 = vpop.f32.mrf.mxu1  ;;  %v2813_v3 = vpack.c.bf16 %v7859_v8, %v7858_v23  ;;  %v7475_v36 = vadd.bf16 %v6035_v7, %v2790_v37  ;;  %v7480_v52 = vadd.bf16 %v6035_v7, %v2821_v12  ;;  %v3319_v27 = vmin.bf16 %v7810_v30, %v3191_v1  ;;  %v7866_v37 = vld [vmem:[#allocation26_spill] sm:$0xff]  ;;  %v7868_v12 = vld [vmem:[#allocation43_spill] sm:$0xff]  ;;  %v7871_v8 = vld [vmem:[#allocation29_spill] sm:$0xff] }
 0x288   : > { %v4959_v5 = vadd.f32 %v4958_v15, %v4957_v25  ;;  %v3184_v25 = vmax.bf16 %v7807_v58, %v3056_v57  ;;  %v7863_v15 = vld [vmem:[#allocation33_spill] sm:$0xff]  ;;  %v7870_v23 = vld [vmem:[#allocation27_spill] sm:$0xff] }
 0x289   : > { %v4960_v9 = vpop.f32.mrf.mxu1  ;;  %v7491_v47 = vadd.bf16 %v6035_v7, %v2813_v3  ;;  %v2812_v60 = vpack.c.bf16 %v7863_v15, %v7862_v59  ;;  %v2810_v3 = vpack.c.bf16 %v7871_v8, %v7870_v23  ;;  %v3492_v15 = vld [vmem:[%s7752_s1 + $0xb0] sm:$0xff] }
 0x28a   : > { %5056 = vmatpush3.bf16.msra.mxu1 %v3444_v16  ;;  %v7446_v0 = vadd.f32 %v4959_v5, %v7180_v13  ;;  %v3185_v13 = vmax.bf16 %v7807_v58, %v3057_v46  ;;  %v3183_v46 = vmax.bf16 %v7807_v58, %v3055_v45  ;;  %v7864_v5 = vld [vmem:[#allocation42_spill] sm:$0xff] }
 0x28b   : > { %5057 = vmatprep.subr.bf16.mxu1 %v3451_v39  ;;  %v4961_v54 = vpop.f32.mrf.mxu1  ;;  %v2819_v19 = vpack.c.bf16 %v7865_v35, %v7864_v5  ;;  %v7548_v24 = vadd.bf16 %v6035_v7, %v2810_v3  ;;  %v7875_v5 = vld [vmem:[#allocation41_spill] sm:$0xff]  ;;  %v7602_v3 = vld [vmem:[%s7752_s1 + $0x78] sm:$0xff] }
 0x28c   : > { %v4962_v43 = vadd.f32 %v4961_v54, %v4960_v9  ;;  %v3313_v33 = vmin.bf16 %v7810_v30, %v3185_v13  ;;  %v7867_v13 = vld [vmem:[#allocation28_spill] sm:$0xff]  ;;  %v3311_v62 = vmin.bf16 %v7810_v30, %v3183_v46  ;;  %v7874_v46 = vld [vmem:[#allocation39_spill] sm:$0xff] }
 0x28d   : > { %3948 = vmatmul.mubr.bf16.gmra.mxu1 %v4725_v26  ;;  %v4963_v20 = vpop.f32.mrf.mxu1  ;;  %v3054_v26 = vadd.bf16 1077952576, %v7475_v36  ;;  %v2811_v57 = vpack.c.bf16 %v7867_v13, %v7866_v37  ;;  %v7519_v22 = vadd.bf16 %v6035_v7, %v2819_v19  ;;  %v2816_v35 = vpack.c.bf16 %v7875_v5, %v7874_v46 }
 0x28e   : > { %5058 = vmatpush3.bf16.msra.mxu1 %v3443_v29  ;;  %3988 = vmatprep.mubr.bf16.mxu1 %v4712_v44  ;;  %v7467_v51 = vadd.f32 %v4962_v43, %v7183_v28  ;;  %v3441_v61 = vmul.bf16 %v3313_v33, %v7400_v56  ;;  %v3085_v44 = vadd.bf16 1077952576, %v7480_v52  ;;  %v7503_v29 = vadd.bf16 %v6035_v7, %v2820_v31  ;;  %v7873_v33 = vld [vmem:[#allocation40_spill] sm:$0xff] }
 0x28f   : > { %5059 = vmatprep.subr.bf16.mxu1 %v3450_v10  ;;  %v4964_v2 = vpop.f32.mrf.mxu1  ;;  %v3077_v56 = vadd.bf16 1077952576, %v7491_v47  ;;  %v7514_v43 = vadd.bf16 %v6035_v7, %v2812_v60  ;;  %v3182_v21 = vmax.bf16 %v7807_v58, %v3054_v26  ;;  %v7869_v10 = vld [vmem:[#allocation45_spill] sm:$0xff]  ;;  %v7529_v1 = vadd.bf16 %v6035_v7, %v2811_v57 }
 0x290   : > { %v4965_v28 = vadd.f32 %v4964_v2, %v4963_v20  ;;  %v2818_v48 = vpack.c.bf16 %v7869_v10, %v7868_v12  ;;  %v3213_v20 = vmax.bf16 %v7807_v58, %v3085_v44  ;;  %v3084_v34 = vadd.bf16 1077952576, %v7503_v29  ;;  %v7872_v2 = vld [vmem:[#allocation38_spill] sm:$0xff] }
 0x291   : > { %v4966_v16 = vpop.f32.mrf.mxu1  ;;  %v3205_v45 = vmax.bf16 %v7807_v58, %v3077_v56  ;;  %v3083_v18 = vadd.bf16 1077952576, %v7519_v22 }
 0x292   : > { %5060 = vmatpush3.bf16.msra.mxu1 %v3442_v17  ;;  %v7488_v42 = vadd.f32 %v4965_v28, %v7187_v6  ;;  %v3312_v6 = vmin.bf16 %v7810_v30, %v3184_v25  ;;  %v3447_v17 = vmul.bf16 %v3319_v27, %v7418_v32  ;;  %v2817_v25 = vpack.c.bf16 %v7873_v33, %v7872_v2  ;;  %v7877_v27 = vld [vmem:[#allocation22_spill] sm:$0xff]  ;;  %v7884_v2 = vld [vmem:[#allocation35_spill] sm:$0xff]  ;;  %v7885_v33 = vld [vmem:[#allocation37_spill] sm:$0xff] }
 0x293   : > { %5061 = vmatprep.subr.bf16.mxu1 %v3449_v55  ;;  %v4967_v39 = vpop.f32.mrf.mxu1  ;;  %v3439_v28 = vmul.bf16 %v3311_v62, %v7454_v40  ;;  %v3310_v32 = vmin.bf16 %v7810_v30, %v3182_v21  ;;  %v7541_v49 = vadd.bf16 %v6035_v7, %v2818_v48  ;;  %v3212_v31 = vmax.bf16 %v7807_v58, %v3084_v34  ;;  %v7881_v48 = vld [vmem:[#allocation25_spill] sm:$0xff] }
 0x294   : > { %v4968_v9 = vadd.f32 %v4967_v39, %v4966_v16  ;;  %v3446_v55 = vmul.bf16 %v3318_v14, %v7443_v50  ;;  %v3341_v38 = vmin.bf16 %v7810_v30, %v3213_v20  ;;  %v3075_v16 = vadd.bf16 1077952576, %v7529_v1  ;;  %v3500_v50 = vld [vmem:[%s7752_s1 + $0xf0] sm:$0xff] }
 0x295   : > { %v3333_v40 = vmin.bf16 %v7810_v30, %v3205_v45  ;;  %v7559_v60 = vadd.bf16 %v6035_v7, %v2817_v25  ;;  %v3211_v19 = vmax.bf16 %v7807_v58, %v3083_v18  ;;  %v3438_v39 = vmul.bf16 %v3310_v32, %v7475_v36  ;;  %v7882_v20 = vld [vmem:[#allocation23_spill] sm:$0xff] }
 0x296   : > { %5062 = vmatpush3.bf16.msra.mxu1 %v3441_v61  ;;  %v7508_v54 = vadd.f32 %v4968_v9, %v7192_v41  ;;  %v3440_v41 = vmul.bf16 %v3312_v6, %v7435_v53  ;;  %v3076_v53 = vadd.bf16 1077952576, %v7514_v43  ;;  %v3082_v26 = vadd.bf16 1077952576, %v7541_v49 }
 0x297   : > { %5063 = vmatprep.subr.bf16.mxu1 %v3448_v63  ;;  %v3469_v61 = vmul.bf16 %v3341_v38, %v7480_v52  ;;  %v4711_v6 = vcombine.low %v7425_v11, %v7430_v4  ;;  %v3340_v9 = vmin.bf16 %v7810_v30, %v3212_v31  ;;  %v4728_v44 = vcombine.high %v3492_v15, %v3500_v50  ;;  %v7876_v63 = vld [vmem:[#allocation24_spill] sm:$0xff]  ;;  %v7879_v11 = vld [vmem:[#allocation34_spill] sm:$0xff] }
 0x298   : > { %v3204_v59 = vmax.bf16 %v7807_v58, %v3076_v53  ;;  %v7878_v37 = vpack.c.bf16 %v7876_v63, %v7877_v27  ;;  %v3203_v57 = vmax.bf16 %v7807_v58, %v3075_v16  ;;  %v3074_v36 = vadd.bf16 1077952576, %v7548_v24  ;;  %v7880_v4 = vld [vmem:[#allocation36_spill] sm:$0xff] }
 0x299   : > { %v3461_v52 = vmul.bf16 %v3333_v40, %v7491_v47  ;;  %v2815_v14 = vpack.c.bf16 %v7880_v4, %v7879_v11  ;;  %v3081_v62 = vadd.bf16 1077952576, %v7559_v60  ;;  %v2952_v21 = vadd.bf16 %v6035_v7, %v2816_v35  ;;  %v7886_v16 = vld [vmem:[#allocation20_spill] sm:$0xff]  ;;  %v7887_v40 = vld [vmem:[#allocation18_spill] sm:$0xff] }
 0x29a   : > { %5064 = vmatpush3.bf16.msra.mxu1 %v3440_v41  ;;  %v7574_v13 = vadd.bf16 %v6035_v7, %v7878_v37  ;;  %v3332_v56 = vmin.bf16 %v7810_v30, %v3204_v59  ;;  %v3210_v41 = vmax.bf16 %v7807_v58, %v3082_v26  ;;  %v3468_v12 = vmul.bf16 %v3340_v9, %v7503_v29  ;;  %v7597_v29 = vld [vmem:[%s7752_s1 + $0x38] sm:$0xff]  ;;  %v7890_v9 = vld [vmem:[#allocation19_spill] sm:$0xff] }
 0x29b   : > { %5065 = vmatprep.subr.bf16.mxu1 %v3447_v17  ;;  %v3339_v10 = vmin.bf16 %v7810_v30, %v3211_v19  ;;  %v7883_v34 = vpack.c.bf16 %v7881_v48, %v7882_v20  ;;  %v3331_v23 = vmin.bf16 %v7810_v30, %v3203_v57  ;;  %v3202_v8 = vmax.bf16 %v7807_v58, %v3074_v36 }
 0x29c   : > { %v3073_v47 = vadd.bf16 1077952576, %v7574_v13  ;;  %v3460_v45 = vmul.bf16 %v3332_v56, %v7514_v43  ;;  %v2951_v53 = vadd.bf16 %v6035_v7, %v2815_v14  ;;  %v2814_v25 = vpack.c.bf16 %v7885_v33, %v7884_v2  ;;  %v5597_v2 = vld [vmem:[%s7755_s4] sm:$0xff]  }
 0x29d   : > { %v2944_v17 = vadd.bf16 %v6035_v7, %v7883_v34  ;;  %v3080_v18 = vadd.bf16 1077952576, %v2952_v21  ;;  %v3467_v32 = vmul.bf16 %v3339_v10, %v7519_v22  ;;  %v4727_v31 = vcombine.low %v3492_v15, %v3500_v50 }
 0x29e   : > { %5066 = vmatpush3.bf16.msra.mxu1 %v3439_v28  ;;  %v3209_v28 = vmax.bf16 %v7807_v58, %v3081_v62  ;;  %v4714_v38 = vcombine.high %v7597_v29, %v7602_v3  ;;  %v7888_v43 = vpack.c.bf16 %v7886_v16, %v7887_v40  ;;  %v3201_v46 = vmax.bf16 %v7807_v58, %v3073_v47 }
 0x29f   : > { %5067 = vmatprep.subr.bf16.mxu1 %v3446_v55  ;;  %v3338_v55 = vmin.bf16 %v7810_v30, %v3210_v41  ;;  %v3072_v5 = vadd.bf16 1077952576, %v2944_v17  ;;  %v3459_v35 = vmul.bf16 %v3331_v23, %v7529_v1  ;;  %v3330_v22 = vmin.bf16 %v7810_v30, %v3202_v8  ;;  %v5594_v8 = vld [vmem:[%s7755_s4 + $0x18] sm:$0xff]  }
 0x2a0   : > { %v2943_v59 = vadd.bf16 %v6035_v7, %v7888_v43  ;;  %v3079_v15 = vadd.bf16 1077952576, %v2951_v53  ;;  %v2950_v50 = vadd.bf16 %v6035_v7, %v2814_v25  ;;  %v3208_v19 = vmax.bf16 %v7807_v58, %v3080_v18 }
 0x2a1   : > { %v3337_v26 = vmin.bf16 %v7810_v30, %v3209_v28  ;;  %v3329_v63 = vmin.bf16 %v7810_v30, %v3201_v46  ;;  %v3200_v27 = vmax.bf16 %v7807_v58, %v3072_v5  ;;  %v3458_v37 = vmul.bf16 %v3330_v22, %v7548_v24 }
 0x2a2   : > { %5068 = vmatpush3.bf16.msra.mxu1 %v3438_v39  ;;  %v3466_v39 = vmul.bf16 %v3338_v55, %v7541_v49  ;;  %v3207_v57 = vmax.bf16 %v7807_v58, %v3079_v15  ;;  %v3078_v49 = vadd.bf16 1077952576, %v2950_v50 }
 0x2a3   : > { %5081 = vmatprep.subr.bf16.mxu1 %v3469_v61  ;;  %v3071_v61 = vadd.bf16 1077952576, %v2943_v59  ;;  %v3465_v36 = vmul.bf16 %v3337_v26, %v7559_v60  ;;  %v3328_v4 = vmin.bf16 %v7810_v30, %v3200_v27 }
 0x2a4   : > { %v3206_v14 = vmax.bf16 %v7807_v58, %v3078_v49  ;;  %v3335_v24 = vmin.bf16 %v7810_v30, %v3207_v57 }
 0x2a5   : > { %3989 = vmatmul.mubr.bf16.vlgmr.msra.gmra.mxu1 %v4711_v6  ;;  %v7889_v6 = vld [vmem:[#allocation21_spill] sm:$0xff]  ;;  %v3199_v56 = vmax.bf16 %v7807_v58, %v3071_v61 }
 0x2a6   : > { %5082 = vmatpush3.bf16.msra.mxu1 %v3461_v52  ;;  %3996 = vmatprep.mubr.bf16.mxu1 %v4728_v44  ;;  %v7891_v44 = vpack.c.bf16 %v7889_v6, %v7890_v9  ;;  %v3336_v52 = vmin.bf16 %v7810_v30, %v3208_v19  ;;  %v3463_v10 = vmul.bf16 %v3335_v24, %v2951_v53 }
 0x2a7   : > { %5083 = vmatprep.subr.bf16.mxu1 %v3468_v12  ;;  %v3327_v60 = vmin.bf16 %v7810_v30, %v3199_v56  ;;  %v3456_v12 = vmul.bf16 %v3328_v4, %v2944_v17  ;;  %v3334_v47 = vmin.bf16 %v7810_v30, %v3206_v14  ;;  %v4713_v17 = vcombine.low %v7597_v29, %v7602_v3  ;;  %v5596_v29 = vld [vmem:[%s7755_s4 + $0x8] sm:$0xff]  }
 0x2a8   : > { %v2942_v1 = vadd.bf16 %v6035_v7, %v7891_v44  ;;  %v3457_v7 = vmul.bf16 %v3329_v63, %v7574_v13  ;;  %v3464_v62 = vmul.bf16 %v3336_v52, %v2952_v21  ;;  %v3493_v21 = vld [vmem:[%s7752_s1 + $0xb8] sm:$0xff] }
 0x2a9   : > { %v3455_v13 = vmul.bf16 %v3327_v60, %v2943_v59  ;;  %v3462_v20 = vmul.bf16 %v3334_v47, %v2950_v50 }
 0x2aa   : > { %5084 = vmatpush3.bf16.msra.mxu1 %v3460_v45  ;;  %v3070_v11 = vadd.bf16 1077952576, %v2942_v1  ;;  %v5595_v45 = vld [vmem:[%s7755_s4 + $0x10] sm:$0xff]  }
 0x2ab   : > { %5085 = vmatprep.subr.bf16.mxu1 %v3467_v32 }
 0x2ac   : > { %v3198_v41 = vmax.bf16 %v7807_v58, %v3070_v11  ;;  %v3501_v58 = vld [vmem:[%s7752_s1 + $0xf8] sm:$0xff] }
 0x2ad   : > { %3997 = vmatmul.mubr.bf16.gmra.mxu1 %v4727_v31  ;;  %v4730_v23 = vcombine.high %v3493_v21, %v3501_v58 }
 0x2ae   : > { %5086 = vmatpush3.bf16.msra.mxu1 %v3459_v35  ;;  %4037 = vmatprep.mubr.bf16.mxu1 %v4714_v38  ;;  %v3326_v48 = vmin.bf16 %v7810_v30, %v3198_v41  ;;  %v4729_v30 = vcombine.low %v3493_v21, %v3501_v58 }
 0x2af   : > { %5087 = vmatprep.subr.bf16.mxu1 %v3466_v39 }
 0x2b0   : > { %v3454_v34 = vmul.bf16 %v3326_v48, %v2942_v1 }
 0x2b2   : > { %5088 = vmatpush3.bf16.msra.mxu1 %v3458_v37 }
 0x2b3   : > { %5089 = vmatprep.subr.bf16.mxu1 %v3465_v36 }
 0x2b6   : > { %5090 = vmatpush3.bf16.msra.mxu1 %v3457_v7 }
 0x2b7   : > { %5091 = vmatprep.subr.bf16.mxu1 %v3464_v62 }
 0x2ba   : > { %5092 = vmatpush3.bf16.msra.mxu1 %v3456_v12 }
 0x2bb   : > { %5093 = vmatprep.subr.bf16.mxu1 %v3463_v10 }
 0x2be   : > { %5094 = vmatpush3.bf16.msra.mxu1 %v3455_v13 }
 0x2bf   : > { %5095 = vmatprep.subr.bf16.mxu1 %v3462_v20 }
 0x2c2   : > { %5096 = vmatpush3.bf16.msra.mxu1 %v3454_v34 }
 0x2c3   : > { %5385 = vmatprep.subr.bf16.mxu1 %v5594_v8 }
 0x2c5   : > { %4038 = vmatmul.mubr.bf16.vlgmr.msra.gmra.mxu1 %v4713_v17  ;;  %v4985_v53 = vpop.f32.mrf.mxu1 }
 0x2c6   : > { %4045 = vmatprep.mubr.bf16.mxu1 %v4730_v23  ;;  %5386 = vmatpush3.bf16.msra.mxu1 %v5594_v8 }
 0x2c7   : > { %5387 = vmatprep.subr.bf16.mxu1 %v5595_v45  ;;  %v4986_v3 = vpop.f32.mrf.mxu1 }
 0x2c8   : > { %v4987_v57 = vadd.f32 %v4986_v3, %v4985_v53 }
 0x2c9   : > { %v4988_v33 = vpop.f32.mrf.mxu1 }
 0x2ca   : > { %5388 = vmatpush3.bf16.msra.mxu1 %v5595_v45  ;;  %v3844_v7 = vadd.f32 %v4987_v57, %v7446_v0 }
 0x2cb   : > { %5389 = vmatprep.subr.bf16.mxu1 %v5596_v29  ;;  %v4989_v25 = vpop.f32.mrf.mxu1 }
 0x2cc   : > { %v4990_v49 = vadd.f32 %v4989_v25, %v4988_v33 }
 0x2cd   : > { %4046 = vmatmul.mubr.bf16.gmra.mxu1 %v4729_v30  ;;  %v4991_v28 = vpop.f32.mrf.mxu1 }
 0x2ce   : > { %5390 = vmatpush3.bf16.msra.mxu1 %v5596_v29  ;;  %v3847_v4 = vadd.f32 %v4990_v49, %v7467_v51 }
 0x2cf   : > { %5391 = vmatprep.subr.bf16.mxu1 %v5597_v2  ;;  %v4992_v18 = vpop.f32.mrf.mxu1 }
 0x2d0   : > { %v4993_v47 = vadd.f32 %v4992_v18, %v4991_v28 }
 0x2d1   : > { %v4994_v32 = vpop.f32.mrf.mxu1 }
 0x2d2   : > { %5392 = vmatpush3.bf16.msra.mxu1 %v5597_v2  ;;  %v3852_v51 = vadd.f32 %v4993_v47, %v7488_v42 }
 0x2d3   : > { %v4995_v31 = vpop.f32.mrf.mxu1 }
 0x2d4   : > { %v4996_v13 = vadd.f32 %v4995_v31, %v4994_v32 }
 0x2d6   : > { %v3855_v45 = vadd.f32 %v4996_v13, %v7508_v54 }
 0x305   : > { %v5013_v55 = vpop.f32.mrf.mxu1 }
 0x307   : > { %v5014_v38 = vpop.f32.mrf.mxu1 }
 0x308   : > { %v5015_v52 = vadd.f32 %v5014_v38, %v5013_v55 }
 0x309   : > { %v5016_v16 = vpop.f32.mrf.mxu1 }
 0x30a   : > { %v3893_v60 = vadd.f32 %v5015_v52, %v3844_v7 }
 0x30b   : > { %v5017_v40 = vpop.f32.mrf.mxu1 }
 0x30c   : > { %v5018_v56 = vadd.f32 %v5017_v40, %v5016_v16 }
 0x30d   : > { %v5019_v43 = vpop.f32.mrf.mxu1 }
 0x30e   : > { %v3896_v41 = vadd.f32 %v5018_v56, %v3847_v4  ;;  %v5598_v4 = vld [vmem:[%s7758_s7 + $0x38] sm:$0xff]  }
 0x30f   : > { %v5020_v59 = vpop.f32.mrf.mxu1  ;;  %5397 = vmatprep.subr.bf16.mxu1 %v5598_v4 }
 0x310   : > { %v5021_v34 = vadd.f32 %v5020_v59, %v5019_v43 }
 0x311   : > { %v5022_v46 = vpop.f32.mrf.mxu1 }
 0x312   : > { %v3901_v25 = vadd.f32 %v5021_v34, %v3852_v51 }
 0x313   : > { %v5023_v5 = vpop.f32.mrf.mxu1 }
 0x314   : > { %v5024_v23 = vadd.f32 %v5023_v5, %v5022_v46 }
 0x316   : > { %v3904_v18 = vadd.f32 %v5024_v23, %v3855_v45  ;;  %v4737_v45 = vld [vmem:[%s7756_s5] ss:$0 sm:$0xff] }
 0x345   : > { %v5041_v35 = vpop.f32.mrf.mxu1 }
 0x347   : > { %v5042_v22 = vpop.f32.mrf.mxu1 }
 0x348   : > { %v5043_v14 = vadd.f32 %v5042_v22, %v5041_v35 }
 0x349   : > { %v5044_v15 = vpop.f32.mrf.mxu1 }
 0x34a   : > { %v3942_v20 = vadd.f32 %v5043_v14, %v3893_v60  ;;  %v5599_v14 = vld [vmem:[%s7758_s7 + $0x30] sm:$0xff]   ;;  %v5602_v60 = vld [vmem:[%s7758_s7 + $0x18] sm:$0xff]  }
 0x34b   : > { %v5045_v50 = vpop.f32.mrf.mxu1 }
 0x34c   : > { %v5046_v62 = vadd.f32 %v5045_v50, %v5044_v15 }
 0x34d   : > { %v5047_v19 = vpop.f32.mrf.mxu1 }
 0x34e   : > { %v3945_v21 = vadd.f32 %v5046_v62, %v3896_v41  ;;  %v5600_v62 = vld [vmem:[%s7758_s7 + $0x28] sm:$0xff]   ;;  %v5603_v41 = vld [vmem:[%s7758_s7 + $0x10] sm:$0xff]  }
 0x34f   : > { %v5048_v39 = vpop.f32.mrf.mxu1 }
 0x350   : > { %v5049_v29 = vadd.f32 %v5048_v39, %v5047_v19 }
 0x351   : > { %v5050_v26 = vpop.f32.mrf.mxu1 }
 0x352   : > { %v3950_v16 = vadd.f32 %v5049_v29, %v3901_v25  ;;  %v4738_v29 = vld [vmem:[%s7757_s6] ss:$0 sm:$0xff] }
 0x353   : > { %v5051_v61 = vpop.f32.mrf.mxu1 }
 0x354   : > { %v5052_v3 = vadd.f32 %v5051_v61, %v5050_v26 }
 0x356   : > { %v3953_v40 = vadd.f32 %v5052_v3, %v3904_v18 }
 0x365   : > { %v5069_v6 = vpop.f32.mrf.mxu1 }
 0x367   : > { %v5070_v9 = vpop.f32.mrf.mxu1 }
 0x368   : > { %v5071_v12 = vadd.f32 %v5070_v9, %v5069_v6 }
 0x369   : > { %v5072_v44 = vpop.f32.mrf.mxu1 }
 0x36a   : > { %v3991_v30 = vadd.f32 %v5071_v12, %v3942_v20  ;;  %v5604_v12 = vld [vmem:[%s7758_s7 + $0x8] sm:$0xff]  }
 0x36b   : > { %v5073_v1 = vpop.f32.mrf.mxu1 }
 0x36c   : > { %v5074_v10 = vadd.f32 %v5073_v1, %v5072_v44 }
 0x36d   : > { %v5075_v63 = vpop.f32.mrf.mxu1 }
 0x36e   : > { %v3994_v0 = vadd.f32 %v5074_v10, %v3945_v21  ;;  %v5605_v10 = vld [vmem:[%s7758_s7] sm:$0xff]  }
 0x36f   : > { %v5076_v27 = vpop.f32.mrf.mxu1 }
 0x370   : > { %v5077_v32 = vadd.f32 %v5076_v27, %v5075_v63 }
 0x371   : > { %v5078_v37 = vpop.f32.mrf.mxu1 }
 0x372   : > { %v3999_v54 = vadd.f32 %v5077_v32, %v3950_v16 }
 0x373   : > { %v5079_v36 = vpop.f32.mrf.mxu1 }
 0x374   : > { %v5080_v31 = vadd.f32 %v5079_v36, %v5078_v37 }
 0x376   : > { %v4002_v59 = vadd.f32 %v5080_v31, %v3953_v40 }
 0x385   : > { %v5097_v11 = vpop.f32.mrf.mxu1 }
 0x387   : > { %v5098_v24 = vpop.f32.mrf.mxu1 }
 0x388   : > { %v5099_v58 = vadd.f32 %v5098_v24, %v5097_v11  ;;  %v5601_v24 = vld [vmem:[%s7758_s7 + $0x20] sm:$0xff]  }
 0x389   : > { %v5100_v48 = vpop.f32.mrf.mxu1 }
 0x38a   : > { %v4040_v2 = vadd.f32 %v5099_v58, %v3991_v30 }
 0x38b   : > { %v5101_v17 = vpop.f32.mrf.mxu1 }
 0x38c   : > { %v5102_v8 = vadd.f32 %v5101_v17, %v5100_v48 }
 0x38d   : > { %v5103_v53 = vpop.f32.mrf.mxu1 }
 0x38e   : > { %v4043_v33 = vadd.f32 %v5102_v8, %v3994_v0 }
 0x38f   : > { %v5104_v28 = vpop.f32.mrf.mxu1 }
 0x390   : > { %v4054_v55 = vpack.c.bf16 %v4043_v33, %v4040_v2  ;;  %v5105_v43 = vadd.f32 %v5104_v28, %v5103_v53 }
 0x391   : > { %v5106_v38 = vpop.f32.mrf.mxu1 }
 0x392   : > { %5393 = vmatprep.mubr.msk.bf16.mxu1 %vm4088_vm1, %v4054_v55  ;;  %v4048_v5 = vadd.f32 %v5105_v43, %v3999_v54 }
 0x393   : > { %v5107_v42 = vpop.f32.mrf.mxu1 }
 0x394   : > { %v5108_v46 = vadd.f32 %v5107_v42, %v5106_v38 }
 0x396   : > { %v4051_v35 = vadd.f32 %v5108_v46, %v4002_v59 }
 0x398   : > { %v4055_v22 = vpack.c.bf16 %v4051_v35, %v4048_v5 }
 0x39a   : > { %5394 = vmatmul.mubr.msk.bf16.vlgmr.msra.gmra.mxu1 %vm4088_vm1, %v4055_v22 }
 0x39b   : > { %5398 = vmatpush3.bf16.msra.mxu1 %v5598_v4 }
 0x39c   : > { %5399 = vmatprep.subr.bf16.mxu1 %v5599_v14 }
 0x39f   : > { %5400 = vmatpush3.bf16.msra.mxu1 %v5599_v14 }
 0x3a0   : > { %5401 = vmatprep.subr.bf16.mxu1 %v5600_v62 }
 0x3a3   : > { %5402 = vmatpush3.bf16.msra.mxu1 %v5600_v62 }
 0x3a4   : > { %5403 = vmatprep.subr.bf16.mxu1 %v5601_v24 }
 0x3a7   : > { %5404 = vmatpush3.bf16.msra.mxu1 %v5601_v24 }
 0x3a8   : > { %5405 = vmatprep.subr.bf16.mxu1 %v5602_v60 }
 0x3ab   : > { %5406 = vmatpush3.bf16.msra.mxu1 %v5602_v60 }
 0x3ac   : > { %5407 = vmatprep.subr.bf16.mxu1 %v5603_v41 }
 0x3af   : > { %5408 = vmatpush3.bf16.msra.mxu1 %v5603_v41 }
 0x3b0   : > { %5409 = vmatprep.subr.bf16.mxu1 %v5604_v12 }
 0x3b3   : > { %5410 = vmatpush3.bf16.msra.mxu1 %v5604_v12 }
 0x3b4   : > { %5411 = vmatprep.subr.bf16.mxu1 %v5605_v10 }
 0x3b7   : > { %5412 = vmatpush3.bf16.msra.mxu1 %v5605_v10 }
 0x45a   : > { %v5395_v15 = vpop.f32.mrf.mxu1 }
 0x45b   : > { %4148 = vadd.xlane.f32.xlu1 %v5395_v15 }
 0x45c   : > { %v4129_v50 = vpop.f32.mrf.mxu1 }
 0x45d   : > { %4144 = vadd.xlane.f32.xlu0 %v4129_v50 }
 0x45e   : > { %v5396_v19 = vpop.f32.mrf.mxu1 }
 0x45f   : > { %4150 = vadd.xlane.f32.xlu1 %v5396_v19 }
 0x460   : > { %v4132_v39 = vpop.f32.mrf.mxu1 }
 0x461   : > { %4146 = vadd.xlane.f32.xlu0 %v4132_v39 }
 0x4e4   : > { %v4149_v26 = vpop.xlane.xlu1 %4148 }
 0x4e5   : > { %v4155_v6 = vmul.f32 0.0078125, %v4149_v26 }
 0x4e6   : > { %v4145_v61 = vpop.xlane.xlu0 %4144 }
 0x4e7   : > { %v4153_v9 = vmul.f32 0.0078125, %v4145_v61  ;;  %v4159_v27 = vsub.f32 %v5395_v15, %v4155_v6 }
 0x4e8   : > { %v4151_v44 = vpop.xlane.xlu1 %4150 }
 0x4e9   : > { %v4157_v1 = vsub.f32 %v4129_v50, %v4153_v9  ;;  %v4156_v37 = vmul.f32 0.0078125, %v4151_v44  ;;  %v4163_v56 = vmul.f32 %v4159_v27, %v4159_v27 }
 0x4ea   : > { %v4147_v63 = vpop.xlane.xlu0 %4146 }
 0x4eb   : > { %v4154_v57 = vmul.f32 0.0078125, %v4147_v63  ;;  %v4161_v49 = vmul.f32 %v4157_v1, %v4157_v1  ;;  %v4160_v52 = vsub.f32 %v5396_v19, %v4156_v37 }
 0x4ed   : > { %v4158_v36 = vsub.f32 %v4132_v39, %v4154_v57  ;;  %4165 = vadd.xlane.f32.xlu0 %v4161_v49  ;;  %v4164_v7 = vmul.f32 %v4160_v52, %v4160_v52 }
 0x4ef   : > { %v4162_v11 = vmul.f32 %v4158_v36, %v4158_v36 }
 0x4f1   : > { %4169 = vadd.xlane.f32.xlu0 %v4163_v56  ;;  %4167 = vadd.xlane.f32.xlu1 %v4162_v11 }
 0x4f5   : > { %4171 = vadd.xlane.f32.xlu1 %v4164_v7 }
 0x576   : > { %v4166_v47 = vpop.xlane.xlu0 %4165 }
 0x577   : > { %v4173_v13 = vmul.f32 0.0078125, %v4166_v47 }
 0x579   : > { %v4177_v48 = vadd.f32 1e-05, %v4173_v13 }
 0x57a   : > { %v4168_v20 = vpop.xlane.xlu1 %4167  ;;  %v4170_v21 = vpop.xlane.xlu0 %4169 }
 0x57b   : > { %5606 = vrsqrt.f32 %v4177_v48  ;;  %v4174_v58 = vmul.f32 0.0078125, %v4168_v20  ;;  %v4175_v34 = vmul.f32 0.0078125, %v4170_v21 }
 0x57d   : > { %v4178_v17 = vadd.f32 1e-05, %v4174_v58  ;;  %v4179_v23 = vadd.f32 1e-05, %v4175_v34 }
 0x57e   : > { %v4172_v30 = vpop.xlane.xlu1 %4171 }
 0x57f   : > { %5608 = vrsqrt.f32 %v4178_v17  ;;  %v4176_v0 = vmul.f32 0.0078125, %v4172_v30 }
 0x580   : > { %5610 = vrsqrt.f32 %v4179_v23 }
 0x581   : > { %v4180_v8 = vadd.f32 1e-05, %v4176_v0 }
 0x583   : > { %5612 = vrsqrt.f32 %v4180_v8 }
 0x588   : > { %v5607_v51 = vpop.eup %5606 }
 0x589   : > { %v4185_v53 = vmul.f32 %v5607_v51, %v4157_v1 }
 0x58b   : > { %v4196_v3 = vmul.f32 %v4737_v45, %v4185_v53 }
 0x58c   : > { %v5609_v2 = vpop.eup %5608 }
 0x58d   : > { %v5611_v33 = vpop.eup %5610  ;;  %v4186_v25 = vmul.f32 %v5609_v2, %v4158_v36  ;;  %v4207_v28 = vadd.f32 %v4738_v29, %v4196_v3 }
 0x58e   : > { %v4187_v18 = vmul.f32 %v5611_v33, %v4159_v27 }
 0x58f   : > { %v4197_v32 = vmul.f32 %v4737_v45, %v4186_v25  ;;  %v4211_v31 = vadd.f32 3.0, %v4207_v28 }
 0x590   : > { %v5613_v55 = vpop.eup %5612  ;;  %v4198_v38 = vmul.f32 %v4737_v45, %v4187_v18 }
 0x591   : > { %v4188_v16 = vmul.f32 %v5613_v55, %v4160_v52  ;;  %v4208_v40 = vadd.f32 %v4738_v29, %v4197_v32  ;;  %v4215_v43 = vmax.f32 %v4211_v31, 0.0  ;;  %v4739_v52 = vld [vmem:[%s7759_s8] ss:$0 sm:$0xff] }
 0x592   : > { %v4209_v42 = vadd.f32 %v4738_v29, %v4198_v38 }
 0x593   : > { %v4212_v54 = vadd.f32 3.0, %v4208_v40  ;;  %v4219_v59 = vmin.f32 %v4215_v43, 6.0  ;;  %v4199_v46 = vmul.f32 %v4737_v45, %v4188_v16 }
 0x594   : > { %v4213_v5 = vadd.f32 3.0, %v4209_v42 }
 0x595   : > { %v4216_v35 = vmax.f32 %v4212_v54, 0.0  ;;  %v4210_v22 = vadd.f32 %v4738_v29, %v4199_v46  ;;  %v4223_v19 = vmul.f32 %v4219_v59, %v4207_v28 }
 0x596   : > { %v4217_v15 = vmax.f32 %v4213_v5, 0.0 }
 0x597   : > { %v4220_v50 = vmin.f32 %v4216_v35, 6.0  ;;  %v4214_v39 = vadd.f32 3.0, %v4210_v22  ;;  %v4227_v9 = vmul.f32 0.16666667, %v4223_v19 }
 0x598   : > { %v4221_v26 = vmin.f32 %v4217_v15, 6.0 }
 0x599   : > { %v4224_v61 = vmul.f32 %v4220_v50, %v4208_v40  ;;  %v4218_v6 = vmax.f32 %v4214_v39, 0.0 }
 0x59a   : > { %v4225_v63 = vmul.f32 %v4221_v26, %v4209_v42 }
 0x59b   : > { %v4228_v44 = vmul.f32 0.16666667, %v4224_v61  ;;  %v4222_v1 = vmin.f32 %v4218_v6, 6.0 }
 0x59c   : > { %v4229_v57 = vmul.f32 0.16666667, %v4225_v63 }
 0x59d   : > { %v4231_v27 = vpack.c.bf16 %v4228_v44, %v4227_v9  ;;  %v4226_v37 = vmul.f32 %v4222_v1, %v4210_v22 }
 0x59f   : > { %5413 = vmatprep.mubr.bf16.mxu1 %v4231_v27  ;;  %v4230_v49 = vmul.f32 0.16666667, %v4226_v37 }
 0x5a1   : > { %v4232_v36 = vpack.c.bf16 %v4230_v49, %v4229_v57 }
 0x5a3   : > { %5414 = vmatmul.mubr.bf16.vlgmr.msra.gmra.mxu1 %v4232_v36 }
 0x663   : > { %v5415_v56 = vpop.f32.mrf.mxu1 }
 0x664   : > { %v4347_v11 = vadd.f32 %v5415_v56, %v4739_v52 }
 0x665   : > { %v4338_v7 = vpop.f32.mrf.mxu1 }
 0x666   : > { %4355 = vst [vmem:[%s328_s21 + $0x10] sm:$0xff] %v4347_v11  ;;  %v4339_v4 = vadd.f32 %v4739_v52, %v4338_v7 }
 0x667   : > { %v5416_v14 = vpop.f32.mrf.mxu1 }
 0x668   : > { %4353 = vst [vmem:[%s328_s21] sm:$0xff] %v4339_v4  ;;  %v4350_v62 = vadd.f32 %v5416_v14, %v4739_v52 }
 0x669   : > { %v4341_v24 = vpop.f32.mrf.mxu1 }
 0x66a   : > { %4356 = vst [vmem:[%s328_s21 + $0x18] sm:$0xff] %v4350_v62  ;;  %v4342_v60 = vadd.f32 %v4739_v52, %v4341_v24 }
 0x66c   : > { %4354 = vst [vmem:[%s328_s21 + $0x8] sm:$0xff] %v4342_v60 }
 0x66d   : > { %5627 = shalt.err (!%p5624_p3)
}
 0x66e   : > { %s5628_s29 = scalar_lea.hbm %s7709_s26, 512  ;;  %s5632_s23 = scalar_lea.hbm %s7760_s9, 1024 }
 0x66f   : > { %p5629_p4 = scmp.ne.s32.totalorder %s7709_s26, %s5628_s29  ;;  %p5633_p9 = scmp.lt.s32.totalorder %s7709_s26, %s7760_s9 }
 0x670   : > { %p5634_p10 = scmp.lt.s32.totalorder %s5632_s23, %s5628_s29 }
 0x671   : > { %p5630_p7 = pnand %p5629_p4, %p5769_p5 }
 0x672   : > { %p5635_p11 = por %p5634_p10, %p5633_p9 }
 0x673   : > { %p5631_p8 = pneg %p5630_p7 }
 0x675   : > { %p5636_p12 = pnand %p5635_p11, %p5631_p8 }
 0x677   : > { %5639 = shalt.err (!%p5636_p12)
}
 0x678   : > { %s5679_s28 = smov 128   ;;  %s5680_s13 = smov 8  }
 0x679   : > { %5421 = dma.vmem_to_hbm [thread:$0]  (%p5769_p5), %s7704_s22, 512, %s7709_s26, %s7711_s27, %s5679_s28, %s5679_s28, %s5680_s13  }
 0x67a PF: > { %p5427_p13 = scmp.ge.s32.totalorder %s5674_s12, 2  ;;  %s4386_s14 = sand.u32 1, %s5662_s30  }
 0x67b   : > { %s4387_s16 = scalar_lea.sflag [#allocation3], %s4386_s14 }
 0x67c   : > { %p5424_p0 = pnand %p5427_p13, %p5773_p6 }
 0x67e   : > { %p5425_p1 = pneg %p5424_p0 }
 0x680   : > { %5657 = dma.done.wait (%p5425_p1), %s4387_s16, 512  }
 0x681   : > { %5659 = vsyncadd (%p5425_p1), %s4387_s16, 4294966784  ;;  %p19_p2 = scmp.ge.s32.totalorder %s5756_s15, 4   ;;  %s7892_s30 = smov %s5666_s10 }
 0x682   : > { %s7893_s10 = smov %s5670_s11  ;;  %s7894_s11 = smov %s5767_s18 }
 0x683   : > { %s7895_s12 = smov %s5756_s15  ;;  %21 = sbr.rel (!%p19_p2) target bundleno = 3 (0x3), region = 91 }
 0x688   :  { %4392 = vsyncpa [#allocation3], 1 }
 0x689   :  { %4394 = vsyncpa [#allocation3 + $0x1], 1 }

// kernel: tpu_custom_call.1
= control target key start
LH: loop header
LB: loop body
LE: loop exit
PB: predicated region body
PF: predicated region fallthrough
CT: control target
= control target key end

     0   :  { %14 = vsyncpa [#allocation3], 0  ;;  %s7751_s0 = inlined_call_operand.vmem [shape: bf16[64,64,32], index: 0, kind: input, shape index: {}]   ;;  %s7752_s1 = inlined_call_operand.vmem [shape: bf16[32,2048], index: 1, kind: input, shape index: {}]   ;;  %s7753_s2 = inlined_call_operand.vmem [shape: bf16[32,64], index: 2, kind: input, shape index: {}]   ;;  %s7754_s3 = inlined_call_operand.vmem [shape: bf16[1,64], index: 3, kind: input, shape index: {}]   ;;  %s7755_s4 = inlined_call_operand.vmem [shape: bf16[64,128], index: 4, kind: input, shape index: {}]   ;;  %s7756_s5 = inlined_call_operand.vmem [shape: f32[1,128], index: 5, kind: input, shape index: {}]   ;;  %s7757_s6 = inlined_call_operand.vmem [shape: f32[1,128], index: 6, kind: input, shape index: {}]   ;;  %s7758_s7 = inlined_call_operand.vmem [shape: bf16[128,128], index: 7, kind: input, shape index: {}]   ;;  %s7759_s8 = inlined_call_operand.vmem [shape: f32[1,128], index: 8, kind: input, shape index: {}]   ;;  %s7760_s9 = inlined_call_operand.hbm [shape: f32[64,128], index: 9, kind: output, shape index: {}]  }
   0x1   :  { %16 = vsyncpa [#allocation3 + $0x1], 0  ;;  %s5731_s30 = smov 0   ;;  %s5733_s10 = smov 0  }
   0x2   :  { %s5735_s11 = smov 0   ;;  %s5737_s12 = smov 0  }
   0x3 LB: > { %s5752_s13 = sadd.s32 4294967295, %s5674_s12   ;;  %s4433_s14 = sadd.s32 4294967294, %s5674_s12   ;;  %s5674_s12 = sphi %s5737_s12, %s7895_s12   ;;  %s5670_s11 = sphi %s5735_s11, %s7894_s11   ;;  %s5666_s10 = sphi %s5733_s10, %s7893_s10   ;;  %s5662_s30 = sphi %s5731_s30, %s7892_s30  }
   0x4   : > { %s5756_s15 = sadd.s32 1, %s5674_s12   ;;  %s223_s16 = sadd.s32 1, %s5670_s11 }
   0x5   : > { %s220_s17 = ssub.s32 %s5674_s12, %s5756_s15  ;;  %p233_p0 = scmp.ne.s32.totalorder %s5670_s11, %s5666_s10 }
   0x6   : > { %p221_p1 = scmp.eq.s32.totalorder %s220_s17, 0  ;;  %p234_p2 = scmp.eq.s32.totalorder %s5752_s13, 1 }
   0x7   : > { %p239_p3 = scmp.ne.s32.totalorder %s5666_s10, %s5662_s30  ;;  %p240_p4 = scmp.eq.s32.totalorder %s4433_s14, 1 }
   0x8   : > { %s5767_s18 = scalar_select %p221_p1, %s5670_s11, %s223_s16  }
   0x9   : > { %p5769_p5 = por %p234_p2, %p233_p0  ;;  %p5773_p6 = por %p240_p4, %p239_p3 }
   0xa   : > { %p4436_p7 = scmp.ge.s32.totalorder %s5674_s12, 1  ;;  %p292_p8 = scmp.lt.s32.totalorder %s5674_s12, 3 }
   0xc   : > { %p293_p9 = pnand %p4436_p7, %p292_p8 }
   0xe   : > { %296 = sbr.rel (%p293_p9) target bundleno = 1658 (0x67a), region = 56 }
  0x13   : > { %v5464_v0 = vld [vmem:[%s7753_s2 + $0x8] sm:$0xff]   ;;  %s4438_s23 = sshll.u32 %s5752_s13, 5  ;;  %v5465_v1 = vld [vmem:[%s7753_s2] sm:$0xff]   ;;  %vm1252_vm0 = vcmask 261120   ;;  %vm4088_vm1 = vcmask 523264  }
  0x14   : > { %p330_p10 = scmp.lt.s32.totalorder %s4438_s23, 63  ;;  %5125 = vmatprep.subr.bf16.mxu0 %v5464_v0  ;;  %5417 = vmatprep.subr.bf16.mxu1 %v5464_v0 }
  0x15   : > { %5126 = vmatpush3.bf16.msra.mxu0 %v5464_v0  ;;  %5419 = vmatpush3.bf16.msra.mxu1 %v5464_v0 }
  0x16   : > { %s7897_s23 = smov (!%p330_p10, %s4438_s23), 63  ;;  %5127 = vmatprep.subr.bf16.mxu0 %v5465_v1  ;;  %5418 = vmatprep.subr.bf16.mxu1 %v5465_v1 }
  0x17   : > { %s4753_s26 = sshll.u32 %s7897_s23, 5  ;;  %s4754_s23 = sshll.u32 %s5752_s13, 9 }
  0x18   : > { %s5789_s29 = scalar_lea.vmem %s7751_s0, %s4753_s26  ;;  %s7709_s26 = scalar_lea.hbm %s7760_s9, %s4754_s23 }
  0x19   : > { %5128 = vmatpush3.bf16.msra.mxu0 %v5465_v1  ;;  %v5466_v2 = vld [vmem:[%s5789_s29] sm:$0xff]   ;;  %5420 = vmatpush3.bf16.msra.mxu1 %v5465_v1  ;;  %v5467_v3 = vld [vmem:[%s5789_s29 + $0x8] sm:$0xff]   ;;  %v5468_v4 = vld [vmem:[%s5789_s29 + $0x10] sm:$0xff]   ;;  %s5678_s13 = smov [#allocation2]  }
  0x1a   : > { %5129 = vmatprep.mubr.msk.bf16.mxu0 %vm1252_vm0, %v5466_v2  ;;  %v5469_v5 = vld [vmem:[%s5789_s29 + $0x18] sm:$0xff]   ;;  %v5470_v6 = vld [vmem:[%s5789_s29 + $0x20] sm:$0xff]   ;;  %v5471_v7 = vld [vmem:[%s5789_s29 + $0x28] sm:$0xff]  }
  0x1b   : > { %v5472_v8 = vld [vmem:[%s5789_s29 + $0x30] sm:$0xff]   ;;  %v5473_v9 = vld [vmem:[%s5789_s29 + $0x38] sm:$0xff]   ;;  %v5474_v10 = vld [vmem:[%s5789_s29 + $0x40] sm:$0xff]  }
  0x1c   : > { %5130 = vmatmul.mubr.msk.bf16.vlgmr.msra.gmra.mxu0 %vm1252_vm0, %v5467_v3  ;;  %v5475_v11 = vld [vmem:[%s5789_s29 + $0x48] sm:$0xff]   ;;  %v5476_v12 = vld [vmem:[%s5789_s29 + $0x50] sm:$0xff]   ;;  %v5477_v13 = vld [vmem:[%s5789_s29 + $0x58] sm:$0xff]  }
  0x1d   : > { %5133 = vmatprep.mubr.msk.bf16.mxu0 %vm1252_vm0, %v5468_v4  ;;  %v5478_v14 = vld [vmem:[%s5789_s29 + $0x60] sm:$0xff]   ;;  %v5479_v15 = vld [vmem:[%s5789_s29 + $0x68] sm:$0xff]   ;;  %v5480_v16 = vld [vmem:[%s5789_s29 + $0x70] sm:$0xff]  }
  0x1e   : > { %v5481_v17 = vld [vmem:[%s5789_s29 + $0x78] sm:$0xff]   ;;  %v5482_v18 = vld [vmem:[%s5789_s29 + $0x80] sm:$0xff]   ;;  %v5483_v19 = vld [vmem:[%s5789_s29 + $0x88] sm:$0xff]  }
  0x1f   : > { %v5484_v20 = vld [vmem:[%s5789_s29 + $0x90] sm:$0xff]   ;;  %v5485_v21 = vld [vmem:[%s5789_s29 + $0x98] sm:$0xff]   ;;  %v5486_v22 = vld [vmem:[%s5789_s29 + $0xa0] sm:$0xff]  }
  0x20   : > { %v5487_v23 = vld [vmem:[%s5789_s29 + $0xa8] sm:$0xff]   ;;  %v5488_v24 = vld [vmem:[%s5789_s29 + $0xb0] sm:$0xff]   ;;  %v5489_v25 = vld [vmem:[%s5789_s29 + $0xb8] sm:$0xff]  }
  0x21   : > { %v5490_v26 = vld [vmem:[%s5789_s29 + $0xc0] sm:$0xff]   ;;  %v5523_v28 = vld [vmem:[%s5789_s29 + $0x328] sm:$0xff]   ;;  %v5492_v30 = vld [vmem:[%s5789_s29 + $0xd0] sm:$0xff]  }
  0x22   : > { %v5522_v27 = vld [vmem:[%s5789_s29 + $0x320] sm:$0xff]   ;;  %v5491_v29 = vld [vmem:[%s5789_s29 + $0xc8] sm:$0xff]   ;;  %v5526_v31 = vld [vmem:[%s5789_s29 + $0x330] sm:$0xff]  }
  0x23   : > { %5329 = vmatprep.mubr.msk.bf16.mxu1 %vm1252_vm0, %v5522_v27  ;;  %v5527_v32 = vld [vmem:[%s5789_s29 + $0x338] sm:$0xff]   ;;  %v5494_v34 = vld [vmem:[%s5789_s29 + $0xe0] sm:$0xff]   ;;  %v5531_v36 = vld [vmem:[%s5789_s29 + $0x348] sm:$0xff]  }
  0x24   : > { %5134 = vmatmul.mubr.msk.bf16.gmra.mxu0 %vm1252_vm0, %v5469_v5  ;;  %5330 = vmatmul.mubr.msk.bf16.vlgmr.msra.gmra.mxu1 %vm1252_vm0, %v5523_v28  ;;  %v5493_v33 = vld [vmem:[%s5789_s29 + $0xd8] sm:$0xff]   ;;  %v5530_v35 = vld [vmem:[%s5789_s29 + $0x340] sm:$0xff]   ;;  %v5495_v37 = vld [vmem:[%s5789_s29 + $0xe8] sm:$0xff]  }
  0x25   : > { %5137 = vmatprep.mubr.msk.bf16.mxu0 %vm1252_vm0, %v5470_v6  ;;  %5333 = vmatprep.mubr.msk.bf16.mxu1 %vm1252_vm0, %v5526_v31  ;;  %v5496_v38 = vld [vmem:[%s5789_s29 + $0xf0] sm:$0xff]   ;;  %v5535_v40 = vld [vmem:[%s5789_s29 + $0x358] sm:$0xff]   ;;  %v5498_v42 = vld [vmem:[%s5789_s29 + $0x100] sm:$0xff]  }
  0x26   : > { %v5534_v39 = vld [vmem:[%s5789_s29 + $0x350] sm:$0xff]   ;;  %v5497_v41 = vld [vmem:[%s5789_s29 + $0xf8] sm:$0xff]   ;;  %v5538_v43 = vld [vmem:[%s5789_s29 + $0x360] sm:$0xff]  }
  0x27   : > { %v5539_v44 = vld [vmem:[%s5789_s29 + $0x368] sm:$0xff]   ;;  %v5500_v46 = vld [vmem:[%s5789_s29 + $0x110] sm:$0xff]   ;;  %v5543_v48 = vld [vmem:[%s5789_s29 + $0x378] sm:$0xff]  }
  0x28   : > { %v5499_v45 = vld [vmem:[%s5789_s29 + $0x108] sm:$0xff]   ;;  %v5542_v47 = vld [vmem:[%s5789_s29 + $0x370] sm:$0xff]   ;;  %v5501_v49 = vld [vmem:[%s5789_s29 + $0x118] sm:$0xff]  }
  0x29   : > { %v5502_v50 = vld [vmem:[%s5789_s29 + $0x120] sm:$0xff]   ;;  %v5547_v52 = vld [vmem:[%s5789_s29 + $0x388] sm:$0xff]   ;;  %v5504_v54 = vld [vmem:[%s5789_s29 + $0x130] sm:$0xff]  }
  0x2a   : > { %v5546_v51 = vld [vmem:[%s5789_s29 + $0x380] sm:$0xff]   ;;  %v5503_v53 = vld [vmem:[%s5789_s29 + $0x128] sm:$0xff]   ;;  %v5550_v55 = vld [vmem:[%s5789_s29 + $0x390] sm:$0xff]  }
  0x2b   : > { %v5551_v56 = vld [vmem:[%s5789_s29 + $0x398] sm:$0xff]   ;;  %v5506_v58 = vld [vmem:[%s5789_s29 + $0x140] sm:$0xff]   ;;  %v5555_v60 = vld [vmem:[%s5789_s29 + $0x3a8] sm:$0xff]  }
  0x2c   : > { %5138 = vmatmul.mubr.msk.bf16.gmra.mxu0 %vm1252_vm0, %v5471_v7  ;;  %5334 = vmatmul.mubr.msk.bf16.gmra.mxu1 %vm1252_vm0, %v5527_v32  ;;  %v5505_v57 = vld [vmem:[%s5789_s29 + $0x138] sm:$0xff]   ;;  %v5554_v59 = vld [vmem:[%s5789_s29 + $0x3a0] sm:$0xff]   ;;  %v5507_v61 = vld [vmem:[%s5789_s29 + $0x148] sm:$0xff]  }
  0x2d   : > { %5141 = vmatprep.mubr.msk.bf16.mxu0 %vm1252_vm0, %v5472_v8  ;;  %5337 = vmatprep.mubr.msk.bf16.mxu1 %vm1252_vm0, %v5530_v35  ;;  %v5508_v62 = vld [vmem:[%s5789_s29 + $0x150] sm:$0xff]   ;;  %v5559_v0 = vld [vmem:[%s5789_s29 + $0x3b8] sm:$0xff]   ;;  %v5510_v2 = vld [vmem:[%s5789_s29 + $0x160] sm:$0xff]  }
  0x2e   : > { %v5558_v63 = vld [vmem:[%s5789_s29 + $0x3b0] sm:$0xff]   ;;  %v5509_v1 = vld [vmem:[%s5789_s29 + $0x158] sm:$0xff]   ;;  %v5562_v3 = vld [vmem:[%s5789_s29 + $0x3c0] sm:$0xff]  }
  0x2f   : > { %v5563_v4 = vld [vmem:[%s5789_s29 + $0x3c8] sm:$0xff]   ;;  %v5512_v6 = vld [vmem:[%s5789_s29 + $0x170] sm:$0xff]   ;;  %v5567_v8 = vld [vmem:[%s5789_s29 + $0x3d8] sm:$0xff]  }
  0x30   : > { %v5511_v5 = vld [vmem:[%s5789_s29 + $0x168] sm:$0xff]   ;;  %v5566_v7 = vld [vmem:[%s5789_s29 + $0x3d0] sm:$0xff]  }
  0x31   : > { %v5519_v32 = vld [vmem:[%s5789_s29 + $0x1a8] sm:$0xff]  }
  0x34   : > { %5142 = vmatmul.mubr.msk.bf16.gmra.mxu0 %vm1252_vm0, %v5473_v9  ;;  %5338 = vmatmul.mubr.msk.bf16.gmra.mxu1 %vm1252_vm0, %v5531_v36  ;;  %v5513_v9 = vld [vmem:[%s5789_s29 + $0x178] sm:$0xff]  }
  0x35   : > { %5145 = vmatprep.mubr.msk.bf16.mxu0 %vm1252_vm0, %v5474_v10  ;;  %5341 = vmatprep.mubr.msk.bf16.mxu1 %vm1252_vm0, %v5534_v39  ;;  %v5514_v10 = vld [vmem:[%s5789_s29 + $0x180] sm:$0xff]  }
  0x3c   : > { %5146 = vmatmul.mubr.msk.bf16.gmra.mxu0 %vm1252_vm0, %v5475_v11  ;;  %5342 = vmatmul.mubr.msk.bf16.gmra.mxu1 %vm1252_vm0, %v5535_v40  ;;  %v5570_v11 = vld [vmem:[%s5789_s29 + $0x3e0] sm:$0xff]   ;;  %v5521_v40 = vld [vmem:[%s5789_s29 + $0x1b8] sm:$0xff]  }
  0x3d   : > { %5149 = vmatprep.mubr.msk.bf16.mxu0 %vm1252_vm0, %v5476_v12  ;;  %5345 = vmatprep.mubr.msk.bf16.mxu1 %vm1252_vm0, %v5538_v43  ;;  %v5571_v12 = vld [vmem:[%s5789_s29 + $0x3e8] sm:$0xff]  }
  0x44   : > { %5150 = vmatmul.mubr.msk.bf16.gmra.mxu0 %vm1252_vm0, %v5477_v13  ;;  %5346 = vmatmul.mubr.msk.bf16.gmra.mxu1 %vm1252_vm0, %v5539_v44  ;;  %v5515_v13 = vld [vmem:[%s5789_s29 + $0x188] sm:$0xff]  }
  0x45   : > { %5153 = vmatprep.mubr.msk.bf16.mxu0 %vm1252_vm0, %v5478_v14  ;;  %5349 = vmatprep.mubr.msk.bf16.mxu1 %vm1252_vm0, %v5542_v47  ;;  %v5516_v14 = vld [vmem:[%s5789_s29 + $0x190] sm:$0xff]  }
  0x46   : > { %v5528_v47 = vld [vmem:[%s5789_s29 + $0x1d0] sm:$0xff]  }
  0x4c   : > { %5154 = vmatmul.mubr.msk.bf16.gmra.mxu0 %vm1252_vm0, %v5479_v15  ;;  %5350 = vmatmul.mubr.msk.bf16.gmra.mxu1 %vm1252_vm0, %v5543_v48  ;;  %v5574_v15 = vld [vmem:[%s5789_s29 + $0x3f0] sm:$0xff]  }
  0x4d   : > { %5157 = vmatprep.mubr.msk.bf16.mxu0 %vm1252_vm0, %v5480_v16  ;;  %5353 = vmatprep.mubr.msk.bf16.mxu1 %vm1252_vm0, %v5546_v51 }
  0x54   : > { %5158 = vmatmul.mubr.msk.bf16.gmra.mxu0 %vm1252_vm0, %v5481_v17  ;;  %5354 = vmatmul.mubr.msk.bf16.gmra.mxu1 %vm1252_vm0, %v5547_v52  ;;  %v5575_v17 = vld [vmem:[%s5789_s29 + $0x3f8] sm:$0xff]  }
  0x55   : > { %5161 = vmatprep.mubr.msk.bf16.mxu0 %vm1252_vm0, %v5482_v18  ;;  %5357 = vmatprep.mubr.msk.bf16.mxu1 %vm1252_vm0, %v5550_v55  ;;  %v5529_v52 = vld [vmem:[%s5789_s29 + $0x1d8] sm:$0xff]  }
  0x5c   : > { %5162 = vmatmul.mubr.msk.bf16.gmra.mxu0 %vm1252_vm0, %v5483_v19  ;;  %5358 = vmatmul.mubr.msk.bf16.gmra.mxu1 %vm1252_vm0, %v5551_v56  ;;  %v2826_v56 = vlaneseq }
  0x5d   : > { %5165 = vmatprep.mubr.msk.bf16.mxu0 %vm1252_vm0, %v5484_v20  ;;  %5361 = vmatprep.mubr.msk.bf16.mxu1 %vm1252_vm0, %v5554_v59  ;;  %v5517_v20 = vld [vmem:[%s5789_s29 + $0x198] sm:$0xff]   ;;  %v5533_v59 = vld [vmem:[%s5789_s29 + $0x1e8] sm:$0xff]  }
  0x64   : > { %5166 = vmatmul.mubr.msk.bf16.gmra.mxu0 %vm1252_vm0, %v5485_v21  ;;  %5362 = vmatmul.mubr.msk.bf16.gmra.mxu1 %vm1252_vm0, %v5555_v60  ;;  %v2827_v60 = vshrl.u32 %v2826_v56, 7 }
  0x65   : > { %5169 = vmatprep.mubr.msk.bf16.mxu0 %vm1252_vm0, %v5486_v22  ;;  %5365 = vmatprep.mubr.msk.bf16.mxu1 %vm1252_vm0, %v5558_v63  ;;  %v5518_v22 = vld [vmem:[%s5789_s29 + $0x1a0] sm:$0xff]  }
  0x6c   : > { %5170 = vmatmul.mubr.msk.bf16.gmra.mxu0 %vm1252_vm0, %v5487_v23  ;;  %5366 = vmatmul.mubr.msk.bf16.gmra.mxu1 %vm1252_vm0, %v5559_v0 }
  0x6d   : > { %5173 = vmatprep.mubr.msk.bf16.mxu0 %vm1252_vm0, %v5488_v24  ;;  %5369 = vmatprep.mubr.msk.bf16.mxu1 %vm1252_vm0, %v5562_v3  ;;  %v5964_v24 = vld [vmem:[%s7752_s1] sm:$0xff] }
  0x74   : > { %5174 = vmatmul.mubr.msk.bf16.gmra.mxu0 %vm1252_vm0, %v5489_v25  ;;  %5370 = vmatmul.mubr.msk.bf16.gmra.mxu1 %vm1252_vm0, %v5563_v4  ;;  %v5969_v25 = vld [vmem:[%s7752_s1 + $0x40] sm:$0xff] }
  0x75   : > { %5177 = vmatprep.mubr.msk.bf16.mxu0 %vm1252_vm0, %v5490_v26  ;;  %5373 = vmatprep.mubr.msk.bf16.mxu1 %vm1252_vm0, %v5566_v7  ;;  %v4700_v27 = vcombine.high %v5964_v24, %v5969_v25 }
  0x7c   : > { %5178 = vmatmul.mubr.msk.bf16.gmra.mxu0 %vm1252_vm0, %v5491_v29  ;;  %5374 = vmatmul.mubr.msk.bf16.gmra.mxu1 %vm1252_vm0, %v5567_v8  ;;  %v4699_v29 = vcombine.low %v5964_v24, %v5969_v25  ;;  %v5540_v8 = vld [vmem:[%s5789_s29 + $0x200] sm:$0xff]  }
  0x7d   : > { %5181 = vmatprep.mubr.msk.bf16.mxu0 %vm1252_vm0, %v5492_v30  ;;  %5377 = vmatprep.mubr.msk.bf16.mxu1 %vm1252_vm0, %v5570_v11 }
  0x84   : > { %5182 = vmatmul.mubr.msk.bf16.gmra.mxu0 %vm1252_vm0, %v5493_v33  ;;  %5378 = vmatmul.mubr.msk.bf16.gmra.mxu1 %vm1252_vm0, %v5571_v12 }
  0x85   : > { %5185 = vmatprep.mubr.msk.bf16.mxu0 %vm1252_vm0, %v5494_v34  ;;  %5381 = vmatprep.mubr.msk.bf16.mxu1 %vm1252_vm0, %v5574_v15  ;;  %v5520_v34 = vld [vmem:[%s5789_s29 + $0x1b0] sm:$0xff]  }
  0x8c   : > { %5186 = vmatmul.mubr.msk.bf16.gmra.mxu0 %vm1252_vm0, %v5495_v37  ;;  %5382 = vmatmul.mubr.msk.bf16.gmra.mxu1 %vm1252_vm0, %v5575_v17 }
  0x8d   : > { %5189 = vmatprep.mubr.msk.bf16.mxu0 %vm1252_vm0, %v5496_v38  ;;  %3694 = vmatprep.mubr.bf16.mxu1 %v4700_v27 }
  0x94   : > { %5190 = vmatmul.mubr.msk.bf16.gmra.mxu0 %vm1252_vm0, %v5497_v41  ;;  %v5524_v41 = vld [vmem:[%s5789_s29 + $0x1c0] sm:$0xff]  }
  0x95   : > { %5193 = vmatprep.mubr.msk.bf16.mxu0 %vm1252_vm0, %v5498_v42 }
  0x9c   : > { %5194 = vmatmul.mubr.msk.bf16.gmra.mxu0 %vm1252_vm0, %v5499_v45 }
  0x9d   : > { %5197 = vmatprep.mubr.msk.bf16.mxu0 %vm1252_vm0, %v5500_v46  ;;  %v5525_v46 = vld [vmem:[%s5789_s29 + $0x1c8] sm:$0xff]  }
  0xa4   : > { %5198 = vmatmul.mubr.msk.bf16.gmra.mxu0 %vm1252_vm0, %v5501_v49 }
  0xa5   : > { %5201 = vmatprep.mubr.msk.bf16.mxu0 %vm1252_vm0, %v5502_v50 }
  0xac   : > { %5202 = vmatmul.mubr.msk.bf16.gmra.mxu0 %vm1252_vm0, %v5503_v53  ;;  %v5532_v53 = vld [vmem:[%s5789_s29 + $0x1e0] sm:$0xff]  }
  0xad   : > { %5205 = vmatprep.mubr.msk.bf16.mxu0 %vm1252_vm0, %v5504_v54 }
  0xb4   : > { %5206 = vmatmul.mubr.msk.bf16.gmra.mxu0 %vm1252_vm0, %v5505_v57 }
  0xb5   : > { %5209 = vmatprep.mubr.msk.bf16.mxu0 %vm1252_vm0, %v5506_v58 }
  0xbc   : > { %5210 = vmatmul.mubr.msk.bf16.gmra.mxu0 %vm1252_vm0, %v5507_v61  ;;  %v5536_v61 = vld [vmem:[%s5789_s29 + $0x1f0] sm:$0xff]  }
  0xbd   : > { %5213 = vmatprep.mubr.msk.bf16.mxu0 %vm1252_vm0, %v5508_v62  ;;  %v2822_v62 = vld [vmem:[%s7754_s3] sm:$0x1] }
  0xc4   : > { %5214 = vmatmul.mubr.msk.bf16.gmra.mxu0 %vm1252_vm0, %v5509_v1  ;;  %v2824_v1 = vpack.i.b16 %v2822_v62, %v2822_v62 }
  0xc5   : > { %5217 = vmatprep.mubr.msk.bf16.mxu0 %vm1252_vm0, %v5510_v2  ;;  %v2828_v2 = vsub.s32 0, %v2827_v60 }
  0xc7   : > { %v6035_v7 = vrot.slane %v2824_v1, %v2828_v2 }
  0xcc   : > { %5218 = vmatmul.mubr.msk.bf16.gmra.mxu0 %vm1252_vm0, %v5511_v5 }
  0xcd   : > { %5221 = vmatprep.mubr.msk.bf16.mxu0 %vm1252_vm0, %v5512_v6  ;;  %v5537_v6 = vld [vmem:[%s5789_s29 + $0x1f8] sm:$0xff]  }
  0xd4   : > { %5222 = vmatmul.mubr.msk.bf16.gmra.mxu0 %vm1252_vm0, %v5513_v9 }
  0xd5   : > { %5225 = vmatprep.mubr.msk.bf16.mxu0 %vm1252_vm0, %v5514_v10 }
  0xdc   : > { %v5944_v16 = vpop.f32.mrf.mxu0  ;;  %5226 = vmatmul.mubr.msk.bf16.gmra.mxu0 %vm1252_vm0, %v5515_v13 }
  0xdd   : > { %5229 = vmatprep.mubr.msk.bf16.mxu0 %vm1252_vm0, %v5516_v14 }
  0xde   : > { %v5950_v18 = vpop.f32.mrf.mxu0 }
  0xe0   : > { %v5953_v19 = vpop.f32.mrf.mxu0 }
  0xe1   : > { %v2695_v21 = vpack.c.bf16 %v5953_v19, %v5944_v16 }
  0xe2   : > { %v5959_v23 = vpop.f32.mrf.mxu0 }
  0xe3   : > { %v2694_v26 = vpack.c.bf16 %v5959_v23, %v5950_v18 }
  0xe4   : > { %v5975_v28 = vpop.f32.mrf.mxu0  ;;  %5230 = vmatmul.mubr.msk.bf16.gmra.mxu0 %vm1252_vm0, %v5517_v20 }
  0xe5   : > { %5233 = vmatprep.mubr.msk.bf16.mxu0 %vm1252_vm0, %v5518_v22 }
  0xe6   : > { %v5981_v30 = vpop.f32.mrf.mxu0 }
  0xe8   : > { %v5983_v31 = vpop.f32.mrf.mxu0 }
  0xe9   : > { %v2697_v33 = vpack.c.bf16 %v5983_v31, %v5975_v28 }
  0xea   : > { %v5989_v35 = vpop.f32.mrf.mxu0 }
  0xeb   : > { %v2696_v36 = vpack.c.bf16 %v5989_v35, %v5981_v30  ;;  %v5549_v30 = vld [vmem:[%s5789_s29 + $0x228] sm:$0xff]  }
  0xec   : > { %v5993_v37 = vpop.f32.mrf.mxu0  ;;  %5234 = vmatmul.mubr.msk.bf16.gmra.mxu0 %vm1252_vm0, %v5519_v32  ;;  %v5541_v32 = vld [vmem:[%s5789_s29 + $0x208] sm:$0xff]  }
  0xed   : > { %5237 = vmatprep.mubr.msk.bf16.mxu0 %vm1252_vm0, %v5520_v34 }
  0xee   : > { %v5997_v38 = vpop.f32.mrf.mxu0 }
  0xf0   : > { %v5140_v39 = vpop.f32.mrf.mxu0 }
  0xf1   : > { %v2699_v14 = vpack.c.bf16 %v5140_v39, %v5993_v37 }
  0xf2   : > { %v6001_v42 = vpop.f32.mrf.mxu0 }
  0xf3   : > { %v2698_v37 = vpack.c.bf16 %v6001_v42, %v5997_v38 }
  0xf4   : > { %v5143_v43 = vpop.f32.mrf.mxu0  ;;  %5238 = vmatmul.mubr.msk.bf16.gmra.mxu0 %vm1252_vm0, %v5521_v40 }
  0xf5   : > { %5241 = vmatprep.mubr.msk.bf16.mxu0 %vm1252_vm0, %v5524_v41  ;;  %v5544_v41 = vld [vmem:[%s5789_s29 + $0x210] sm:$0xff]  }
  0xf6   : > { %v1719_v44 = vpop.f32.mrf.mxu0 }
  0xf8   : > { %v5144_v45 = vpop.f32.mrf.mxu0 }
  0xf9   : > { %v2701_v4 = vpack.c.bf16 %v5144_v45, %v5143_v43  ;;  %v6054_v43 = vadd.bf16 %v6035_v7, %v2699_v14  ;;  %v5548_v14 = vld [vmem:[%s5789_s29 + $0x220] sm:$0xff]  }
  0xfa   : > { %v1722_v48 = vpop.f32.mrf.mxu0 }
  0xfb   : > { %v6039_v10 = vadd.bf16 %v6035_v7, %v2701_v4  ;;  %v2700_v11 = vpack.c.bf16 %v1722_v48, %v1719_v44  ;;  %v7763_v44 = vmov 0   ;;  %v2963_v60 = vadd.bf16 1077952576, %v6054_v43 }
  0xfc   : > { %v6007_v49 = vpop.f32.mrf.mxu0  ;;  %5242 = vmatmul.mubr.msk.bf16.gmra.mxu0 %vm1252_vm0, %v5525_v46 }
  0xfd   : > { %5245 = vmatprep.mubr.msk.bf16.mxu0 %vm1252_vm0, %v5528_v47  ;;  %v2965_v17 = vadd.bf16 1077952576, %v6039_v10  ;;  %v6046_v20 = vadd.bf16 %v6035_v7, %v2700_v11 }
  0xfe   : > { %v6011_v50 = vpop.f32.mrf.mxu0 }
  0xff   : > { %v3093_v45 = vmax.bf16 %v7763_v44, %v2965_v17  ;;  %v2964_v48 = vadd.bf16 1077952576, %v6046_v20 }
 0x100   : > { %v6013_v51 = vpop.f32.mrf.mxu0 }
 0x101   : > { %v3092_v2 = vmax.bf16 %v7763_v44, %v2964_v48 }
 0x102   : > { %v6017_v54 = vpop.f32.mrf.mxu0 }
 0x104   : > { %v6019_v55 = vpop.f32.mrf.mxu0  ;;  %5246 = vmatmul.mubr.msk.bf16.gmra.mxu0 %vm1252_vm0, %v5529_v52 }
 0x105   : > { %5249 = vmatprep.mubr.msk.bf16.mxu0 %vm1252_vm0, %v5532_v53 }
 0x106   : > { %v6023_v57 = vpop.f32.mrf.mxu0 }
 0x108   : > { %v5152_v58 = vpop.f32.mrf.mxu0 }
 0x109   : > { %v2705_v52 = vpack.c.bf16 %v5152_v58, %v6019_v55  ;;  %v7761_v58 = vmov 1086341312  }
 0x10a   : > { %v6030_v63 = vpop.f32.mrf.mxu0  ;;  %v3221_v62 = vmin.bf16 %v7761_v58, %v3093_v45  ;;  %v3220_v31 = vmin.bf16 %v7761_v58, %v3092_v2 }
 0x10b   : > { %v2704_v4 = vpack.c.bf16 %v6030_v63, %v6023_v57  ;;  %v6099_v57 = vadd.bf16 %v6035_v7, %v2697_v33  ;;  %v3091_v63 = vmax.bf16 %v7763_v44, %v2963_v60 }
 0x10c   : > { %v5155_v0 = vpop.f32.mrf.mxu0  ;;  %5250 = vmatmul.mubr.msk.bf16.gmra.mxu0 %vm1252_vm0, %v5533_v59  ;;  %v3349_v28 = vmul.bf16 %v3221_v62, %v6039_v10 }
 0x10d   : > { %5253 = vmatprep.mubr.msk.bf16.mxu0 %vm1252_vm0, %v5536_v61  ;;  %v6073_v61 = vadd.bf16 %v6035_v7, %v2698_v37  ;;  %v2961_v45 = vadd.bf16 1077952576, %v6099_v57 }
 0x10e   : > { %v1767_v3 = vpop.f32.mrf.mxu0 }
 0x110   : > { %v5156_v5 = vpop.f32.mrf.mxu0 }
 0x111   : > { %v2707_v12 = vpack.c.bf16 %v5156_v5, %v5155_v0 }
 0x112   : > { %v1770_v9 = vpop.f32.mrf.mxu0 }
 0x113   : > { %v6049_v22 = vadd.bf16 %v6035_v7, %v2707_v12  ;;  %v2706_v34 = vpack.c.bf16 %v1770_v9, %v1767_v3  ;;  %v6081_v3 = vadd.bf16 %v6035_v7, %v2705_v52  ;;  %v3348_v52 = vmul.bf16 %v3220_v31, %v6046_v20 }
 0x114   : > { %v5159_v13 = vpop.f32.mrf.mxu0  ;;  %5254 = vmatmul.mubr.msk.bf16.gmra.mxu0 %vm1252_vm0, %v5537_v6 }
 0x115   : > { %5257 = vmatprep.mubr.msk.bf16.mxu0 %vm1252_vm0, %v5540_v8  ;;  %v2971_v53 = vadd.bf16 1077952576, %v6049_v22  ;;  %v6067_v59 = vadd.bf16 %v6035_v7, %v2706_v34  ;;  %v5545_v8 = vld [vmem:[%s5789_s29 + $0x218] sm:$0xff]   ;;  %v2969_v33 = vadd.bf16 1077952576, %v6081_v3 }
 0x116   : > { %v1783_v15 = vpop.f32.mrf.mxu0 }
 0x117   : > { %v3099_v5 = vmax.bf16 %v7763_v44, %v2971_v53  ;;  %v2970_v9 = vadd.bf16 1077952576, %v6067_v59 }
 0x118   : > { %v5160_v27 = vpop.f32.mrf.mxu0 }
 0x119   : > { %v2709_v40 = vpack.c.bf16 %v5160_v27, %v5159_v13  ;;  %v2703_v27 = vpack.c.bf16 %v6013_v51, %v6007_v49  ;;  %v3098_v49 = vmax.bf16 %v7763_v44, %v2970_v9  ;;  %v3227_v10 = vmin.bf16 %v7761_v58, %v3099_v5 }
 0x11a   : > { %v1786_v39 = vpop.f32.mrf.mxu0 }
 0x11b   : > { %v2845_v46 = vadd.bf16 %v6035_v7, %v2709_v40  ;;  %v2708_v47 = vpack.c.bf16 %v1786_v39, %v1783_v15  ;;  %v2962_v15 = vadd.bf16 1077952576, %v6073_v61  ;;  %v6135_v53 = vadd.bf16 %v6035_v7, %v2703_v27 }
 0x11c   : > { %v6063_v56 = vpop.f32.mrf.mxu0  ;;  %5258 = vmatmul.mubr.msk.bf16.gmra.mxu0 %vm1252_vm0, %v5541_v32  ;;  %v3355_v62 = vmul.bf16 %v3227_v10, %v6049_v22  ;;  %v3226_v20 = vmin.bf16 %v7761_v58, %v3098_v49  ;;  %v5556_v49 = vld [vmem:[%s5789_s29 + $0x240] sm:$0xff]  }
 0x11d   : > { %v2973_v38 = vadd.bf16 1077952576, %v2845_v46  ;;  %v2844_v42 = vadd.bf16 %v6035_v7, %v2708_v47  ;;  %5261 = vmatprep.mubr.msk.bf16.mxu0 %vm1252_vm0, %v5544_v41  ;;  %v6114_v41 = vadd.bf16 %v6035_v7, %v2704_v4  ;;  %v3219_v47 = vmin.bf16 %v7761_v58, %v3091_v63 }
 0x11e   : > { %v6075_v55 = vpop.f32.mrf.mxu0  ;;  %v3090_v48 = vmax.bf16 %v7763_v44, %v2962_v15 }
 0x11f   : > { %v3101_v0 = vmax.bf16 %v7763_v44, %v2973_v38  ;;  %v2972_v1 = vadd.bf16 1077952576, %v2844_v42  ;;  %v2702_v38 = vpack.c.bf16 %v6017_v54, %v6011_v50  ;;  %v2968_v35 = vadd.bf16 1077952576, %v6114_v41 }
 0x120   : > { %v6086_v6 = vpop.f32.mrf.mxu0  ;;  %v6155_v50 = vadd.bf16 %v6035_v7, %v2695_v21  ;;  %v3089_v54 = vmax.bf16 %v7763_v44, %v2961_v45  ;;  %v3347_v4 = vmul.bf16 %v3219_v47, %v6054_v43  ;;  %v3218_v5 = vmin.bf16 %v7761_v58, %v3090_v48 }
 0x121   : > { %v3100_v11 = vmax.bf16 %v7763_v44, %v2972_v1  ;;  %v2711_v12 = vpack.c.bf16 %v6086_v6, %v6063_v56  ;;  %v3229_v13 = vmin.bf16 %v7761_v58, %v3101_v0  ;;  %v5552_v0 = vld [vmem:[%s5789_s29 + $0x230] sm:$0xff]   ;;  %v2838_v16 = vadd.bf16 %v6035_v7, %v2702_v38 }
 0x122   : > { %v6103_v17 = vpop.f32.mrf.mxu0  ;;  %v3096_v19 = vmax.bf16 %v7763_v44, %v2968_v35  ;;  %v3354_v21 = vmul.bf16 %v3226_v20, %v6067_v59  ;;  %v3217_v63 = vmin.bf16 %v7761_v58, %v3089_v54  ;;  %v3346_v15 = vmul.bf16 %v3218_v5, %v6073_v61 }
 0x123   : > { %v2710_v32 = vpack.c.bf16 %v6103_v17, %v6075_v55  ;;  %v3357_v34 = vmul.bf16 %v3229_v13, %v2845_v46  ;;  %v3228_v40 = vmin.bf16 %v7761_v58, %v3100_v11  ;;  %v6129_v46 = vadd.bf16 %v6035_v7, %v2696_v36 }
 0x124   : > { %v6116_v37 = vpop.f32.mrf.mxu0  ;;  %5262 = vmatmul.mubr.msk.bf16.gmra.mxu0 %vm1252_vm0, %v5545_v8  ;;  %v2967_v8 = vadd.bf16 1077952576, %v6135_v53  ;;  %v2959_v13 = vadd.bf16 1077952576, %v6155_v50  ;;  %v3345_v61 = vmul.bf16 %v3217_v63, %v6099_v57  ;;  %v6242_v63 = vld [vmem:[%s7752_s1 + $0x8] sm:$0xff] }
 0x125   : > { %4885 = vmatprep.subr.bf16.mxu1 %v3357_v34  ;;  %v3356_v51 = vmul.bf16 %v3228_v40, %v2844_v42  ;;  %5265 = vmatprep.mubr.msk.bf16.mxu0 %vm1252_vm0, %v5548_v14  ;;  %v3097_v42 = vmax.bf16 %v7763_v44, %v2969_v33  ;;  %v2960_v22 = vadd.bf16 1077952576, %v6129_v46  ;;  %v2830_v14 = vadd.bf16 %v6035_v7, %v2694_v26  ;;  %v5553_v34 = vld [vmem:[%s5789_s29 + $0x238] sm:$0xff]  }
 0x126   : > { %v6122_v39 = vpop.f32.mrf.mxu0  ;;  %4886 = vmatpush3.bf16.msra.mxu1 %v3349_v28  ;;  %v3095_v40 = vmax.bf16 %v7763_v44, %v2967_v8  ;;  %v2966_v28 = vadd.bf16 1077952576, %v2838_v16  ;;  %v3224_v33 = vmin.bf16 %v7761_v58, %v3096_v19  ;;  %v3087_v23 = vmax.bf16 %v7763_v44, %v2959_v13  ;;  %v5564_v19 = vld [vmem:[%s5789_s29 + $0x260] sm:$0xff]  }
 0x127   : > { %4887 = vmatprep.subr.bf16.mxu1 %v3356_v51  ;;  %v3225_v43 = vmin.bf16 %v7761_v58, %v3097_v42  ;;  %v3088_v59 = vmax.bf16 %v7763_v44, %v2960_v22  ;;  %v2958_v26 = vadd.bf16 1077952576, %v2830_v14 }
 0x128   : > { %v6140_v60 = vpop.f32.mrf.mxu0  ;;  %v3352_v45 = vmul.bf16 %v3224_v33, %v6114_v41  ;;  %v3223_v47 = vmin.bf16 %v7761_v58, %v3095_v40  ;;  %v3215_v57 = vmin.bf16 %v7761_v58, %v3087_v23  ;;  %v5568_v40 = vld [vmem:[%s5789_s29 + $0x270] sm:$0xff]   ;;  %v5569_v23 = vld [vmem:[%s5789_s29 + $0x278] sm:$0xff]  }
 0x129   : > { %v2713_v36 = vpack.c.bf16 %v6140_v60, %v6116_v37  ;;  %v3353_v31 = vmul.bf16 %v3225_v43, %v6081_v3  ;;  %v3216_v51 = vmin.bf16 %v7761_v58, %v3088_v59  ;;  %v3094_v3 = vmax.bf16 %v7763_v44, %v2966_v28  ;;  %v6247_v59 = vld [vmem:[%s7752_s1 + $0x48] sm:$0xff] }
 0x12a   : > { %v6149_v1 = vpop.f32.mrf.mxu0  ;;  %4888 = vmatpush3.bf16.msra.mxu1 %v3348_v52  ;;  %v3086_v52 = vmax.bf16 %v7763_v44, %v2958_v26  ;;  %v3351_v35 = vmul.bf16 %v3223_v47, %v6135_v53  ;;  %v5572_v26 = vld [vmem:[%s5789_s29 + $0x280] sm:$0xff]  }
 0x12b   : > { %v2712_v2 = vpack.c.bf16 %v6149_v1, %v6122_v39  ;;  %4889 = vmatprep.subr.bf16.mxu1 %v3355_v62  ;;  %v3344_v38 = vmul.bf16 %v3216_v51, %v6129_v46  ;;  %v3222_v41 = vmin.bf16 %v7761_v58, %v3094_v3  ;;  %v5560_v62 = vld [vmem:[%s5789_s29 + $0x250] sm:$0xff]   ;;  %v5579_v39 = vld [vmem:[%s5789_s29 + $0x2a8] sm:$0xff]  }
 0x12c   : > { %v6164_v9 = vpop.f32.mrf.mxu0  ;;  %5266 = vmatmul.mubr.msk.bf16.gmra.mxu0 %vm1252_vm0, %v5549_v30  ;;  %v5557_v30 = vld [vmem:[%s5789_s29 + $0x248] sm:$0xff]   ;;  %v3214_v54 = vmin.bf16 %v7761_v58, %v3086_v52 }
 0x12d   : > { %5269 = vmatprep.mubr.msk.bf16.mxu0 %vm1252_vm0, %v5552_v0  ;;  %v3343_v0 = vmul.bf16 %v3215_v57, %v6155_v50  ;;  %v3350_v46 = vmul.bf16 %v3222_v41, %v2838_v16  ;;  %v3494_v50 = vld [vmem:[%s7752_s1 + $0xc0] sm:$0xff]  ;;  %v5561_v16 = vld [vmem:[%s5789_s29 + $0x258] sm:$0xff]  }
 0x12e   : > { %v6172_v11 = vpop.f32.mrf.mxu0  ;;  %4890 = vmatpush3.bf16.msra.mxu1 %v3347_v4  ;;  %v3486_v4 = vld [vmem:[%s7752_s1 + $0x80] sm:$0xff]  ;;  %v3342_v5 = vmul.bf16 %v3214_v54, %v2830_v14 }
 0x12f   : > { %4891 = vmatprep.subr.bf16.mxu1 %v3354_v21  ;;  %v4716_v43 = vcombine.high %v3486_v4, %v3494_v50  ;;  %v4715_v24 = vcombine.low %v3486_v4, %v3494_v50 }
 0x130   : > { %v6182_v27 = vpop.f32.mrf.mxu0 }
 0x132   : > { %v6189_v18 = vpop.f32.mrf.mxu0  ;;  %4892 = vmatpush3.bf16.msra.mxu1 %v3346_v15 }
 0x133   : > { %4893 = vmatprep.subr.bf16.mxu1 %v3353_v31 }
 0x134   : > { %v6194_v10 = vpop.f32.mrf.mxu0  ;;  %5270 = vmatmul.mubr.msk.bf16.gmra.mxu0 %vm1252_vm0, %v5553_v34  ;;  %v5565_v34 = vld [vmem:[%s5789_s29 + $0x268] sm:$0xff]  }
 0x135   : > { %5273 = vmatprep.mubr.msk.bf16.mxu0 %vm1252_vm0, %v5556_v49 }
 0x136   : > { %v6201_v48 = vpop.f32.mrf.mxu0  ;;  %4894 = vmatpush3.bf16.msra.mxu1 %v3345_v61 }
 0x137   : > { %4895 = vmatprep.subr.bf16.mxu1 %v3352_v45 }
 0x138   : > { %v5176_v42 = vpop.f32.mrf.mxu0 }
 0x139   : > { %v2717_v33 = vpack.c.bf16 %v5176_v42, %v6194_v10  ;;  %v2715_v10 = vpack.c.bf16 %v6182_v27, %v6164_v9  ;;  %v2714_v9 = vpack.c.bf16 %v6189_v18, %v6172_v11 }
 0x13a   : > { %v1850_v20 = vpop.f32.mrf.mxu0  ;;  %4896 = vmatpush3.bf16.msra.mxu1 %v3344_v38 }
 0x13b   : > { %4897 = vmatprep.subr.bf16.mxu1 %v3351_v35  ;;  %v6261_v51 = vadd.bf16 %v6035_v7, %v2717_v33  ;;  %v2716_v3 = vpack.c.bf16 %v1850_v20, %v6201_v48  ;;  %v5573_v48 = vld [vmem:[%s5789_s29 + $0x288] sm:$0xff]   ;;  %v6278_v20 = vadd.bf16 %v6035_v7, %v2715_v10 }
 0x13c   : > { %v6212_v22 = vpop.f32.mrf.mxu0  ;;  %5274 = vmatmul.mubr.msk.bf16.gmra.mxu0 %vm1252_vm0, %v5557_v30 }
 0x13d   : > { %5277 = vmatprep.mubr.msk.bf16.mxu0 %vm1252_vm0, %v5560_v62  ;;  %v2981_v52 = vadd.bf16 1077952576, %v6261_v51  ;;  %v6270_v38 = vadd.bf16 %v6035_v7, %v2716_v3  ;;  %v5576_v62 = vld [vmem:[%s5789_s29 + $0x290] sm:$0xff]  }
 0x13e   : > { %v6216_v53 = vpop.f32.mrf.mxu0  ;;  %4898 = vmatpush3.bf16.msra.mxu1 %v3343_v0 }
 0x13f   : > { %4899 = vmatprep.subr.bf16.mxu1 %v3350_v46  ;;  %v3109_v0 = vmax.bf16 %v7763_v44, %v2981_v52  ;;  %v2980_v4 = vadd.bf16 1077952576, %v6270_v38 }
 0x140   : > { %v6224_v8 = vpop.f32.mrf.mxu0 }
 0x141   : > { %v2719_v52 = vpack.c.bf16 %v6224_v8, %v6212_v22 }
 0x142   : > { %v6228_v21 = vpop.f32.mrf.mxu0  ;;  %4900 = vmatpush3.bf16.msra.mxu1 %v3342_v5 }
 0x144   : > { %v6230_v13 = vpop.f32.mrf.mxu0  ;;  %5278 = vmatmul.mubr.msk.bf16.gmra.mxu0 %vm1252_vm0, %v5561_v16 }
 0x145   : > { %5281 = vmatprep.mubr.msk.bf16.mxu0 %vm1252_vm0, %v5564_v19  ;;  %3695 = vmatmul.mubr.bf16.vlgmr.msra.gmra.mxu1 %v4699_v29  ;;  %v4702_v29 = vcombine.high %v6242_v63, %v6247_v59 }
 0x146   : > { %v6237_v14 = vpop.f32.mrf.mxu0  ;;  %3702 = vmatprep.mubr.bf16.mxu1 %v4716_v43  ;;  %v2979_v43 = vadd.bf16 1077952576, %v6278_v20 }
 0x148   : > { %v5184_v15 = vpop.f32.mrf.mxu0 }
 0x149   : > { %v2721_v50 = vpack.c.bf16 %v5184_v15, %v6230_v13  ;;  %v6297_v13 = vadd.bf16 %v6035_v7, %v2714_v9 }
 0x14a   : > { %v6251_v25 = vpop.f32.mrf.mxu0 }
 0x14b   : > { %v2978_v10 = vadd.bf16 1077952576, %v6297_v13 }
 0x14c   : > { %v5187_v28 = vpop.f32.mrf.mxu0  ;;  %5282 = vmatmul.mubr.msk.bf16.gmra.mxu0 %vm1252_vm0, %v5565_v34  ;;  %v3237_v34 = vmin.bf16 %v7761_v58, %v3109_v0  ;;  %v6353_v0 = vadd.bf16 %v6035_v7, %v2712_v2 }
 0x14d   : > { %5285 = vmatprep.mubr.msk.bf16.mxu0 %vm1252_vm0, %v5568_v40  ;;  %3703 = vmatmul.mubr.bf16.gmra.mxu1 %v4715_v24 }
 0x14e   : > { %v1895_v31 = vpop.f32.mrf.mxu0  ;;  %3743 = vmatprep.mubr.bf16.mxu1 %v4702_v29  ;;  %v3108_v29 = vmax.bf16 %v7763_v44, %v2980_v4  ;;  %v3365_v37 = vmul.bf16 %v3237_v34, %v6261_v51  ;;  %v5580_v34 = vld [vmem:[%s5789_s29 + $0x2b0] sm:$0xff]  }
 0x150   : > { %v5188_v49 = vpop.f32.mrf.mxu0  ;;  %v3236_v60 = vmin.bf16 %v7761_v58, %v3108_v29 }
 0x151   : > { %v2723_v45 = vpack.c.bf16 %v5188_v49, %v5187_v28  ;;  %v6305_v28 = vadd.bf16 %v6035_v7, %v2721_v50  ;;  %v6359_v50 = vadd.bf16 %v6035_v7, %v2719_v52  ;;  %v5581_v52 = vld [vmem:[%s5789_s29 + $0x2b8] sm:$0xff]  }
 0x152   : > { %v1898_v61 = vpop.f32.mrf.mxu0  ;;  %v3364_v4 = vmul.bf16 %v3236_v60, %v6270_v38 }
 0x153   : > { %v6273_v42 = vadd.bf16 %v6035_v7, %v2723_v45  ;;  %v2722_v35 = vpack.c.bf16 %v1898_v61, %v1895_v31  ;;  %v2720_v31 = vpack.c.bf16 %v6251_v25, %v6237_v14  ;;  %v6323_v14 = vadd.bf16 %v6035_v7, %v2713_v36 }
 0x154   : > { %v5191_v47 = vpop.f32.mrf.mxu0  ;;  %5286 = vmatmul.mubr.msk.bf16.gmra.mxu0 %vm1252_vm0, %v5569_v23  ;;  %v5577_v23 = vld [vmem:[%s5789_s29 + $0x298] sm:$0xff]   ;;  %v3107_v25 = vmax.bf16 %v7763_v44, %v2979_v43  ;;  %v2985_v36 = vadd.bf16 1077952576, %v6305_v28 }
 0x155   : > { %5289 = vmatprep.mubr.msk.bf16.mxu0 %vm1252_vm0, %v5572_v26  ;;  %v2987_v5 = vadd.bf16 1077952576, %v6273_v42  ;;  %v6291_v19 = vadd.bf16 %v6035_v7, %v2722_v35 }
 0x156   : > { %v1911_v57 = vpop.f32.mrf.mxu0 }
 0x157   : > { %v3115_v33 = vmax.bf16 %v7763_v44, %v2987_v5  ;;  %v2986_v26 = vadd.bf16 1077952576, %v6291_v19  ;;  %v2718_v5 = vpack.c.bf16 %v6228_v21, %v6216_v53  ;;  %v6379_v53 = vadd.bf16 %v6035_v7, %v2711_v12 }
 0x158   : > { %v5192_v30 = vpop.f32.mrf.mxu0 }
 0x159   : > { %v2725_v41 = vpack.c.bf16 %v5192_v30, %v5191_v47  ;;  %v5578_v47 = vld [vmem:[%s5789_s29 + $0x2a0] sm:$0xff]   ;;  %v3114_v22 = vmax.bf16 %v7763_v44, %v2986_v26  ;;  %v3243_v51 = vmin.bf16 %v7761_v58, %v3115_v33  ;;  %v2983_v33 = vadd.bf16 1077952576, %v6359_v50 }
 0x15a   : > { %v1914_v27 = vpop.f32.mrf.mxu0  ;;  %v2854_v56 = vadd.bf16 %v6035_v7, %v2718_v5 }
 0x15b   : > { %v2861_v54 = vadd.bf16 %v6035_v7, %v2725_v41  ;;  %v2724_v46 = vpack.c.bf16 %v1914_v27, %v1911_v57  ;;  %v6338_v41 = vadd.bf16 %v6035_v7, %v2720_v31  ;;  %v2977_v27 = vadd.bf16 1077952576, %v6323_v14 }
 0x15c   : > { %v6287_v16 = vpop.f32.mrf.mxu0  ;;  %5290 = vmatmul.mubr.msk.bf16.gmra.mxu0 %vm1252_vm0, %v5573_v48  ;;  %v3371_v43 = vmul.bf16 %v3243_v51, %v6273_v42  ;;  %v3242_v38 = vmin.bf16 %v7761_v58, %v3114_v22  ;;  %v2976_v42 = vadd.bf16 1077952576, %v6353_v0 }
 0x15d   : > { %v2989_v11 = vadd.bf16 1077952576, %v2861_v54  ;;  %v2860_v18 = vadd.bf16 %v6035_v7, %v2724_v46  ;;  %5293 = vmatprep.mubr.msk.bf16.mxu0 %vm1252_vm0, %v5576_v62  ;;  %v3106_v46 = vmax.bf16 %v7763_v44, %v2978_v10  ;;  %v2984_v1 = vadd.bf16 1077952576, %v6338_v41 }
 0x15e   : > { %v6299_v15 = vpop.f32.mrf.mxu0  ;;  %v3105_v21 = vmax.bf16 %v7763_v44, %v2977_v27  ;;  %v3370_v12 = vmul.bf16 %v3242_v38, %v6291_v19  ;;  %v3104_v19 = vmax.bf16 %v7763_v44, %v2976_v42  ;;  %v3487_v42 = vld [vmem:[%s7752_s1 + $0x88] sm:$0xff] }
 0x15f   : > { %v3117_v40 = vmax.bf16 %v7763_v44, %v2989_v11  ;;  %v2988_v24 = vadd.bf16 1077952576, %v2860_v18  ;;  %v3113_v11 = vmax.bf16 %v7763_v44, %v2985_v36  ;;  %v3234_v31 = vmin.bf16 %v7761_v58, %v3106_v46  ;;  %v5582_v36 = vld [vmem:[%s5789_s29 + $0x2c0] sm:$0xff]  }
 0x160   : > { %v6310_v49 = vpop.f32.mrf.mxu0  ;;  %v3112_v6 = vmax.bf16 %v7763_v44, %v2984_v1  ;;  %v3232_v22 = vmin.bf16 %v7761_v58, %v3104_v19  ;;  %v5584_v1 = vld [vmem:[%s5789_s29 + $0x2d0] sm:$0xff]   ;;  %v5587_v19 = vld [vmem:[%s5789_s29 + $0x2e8] sm:$0xff]  }
 0x161   : > { %v3116_v61 = vmax.bf16 %v7763_v44, %v2988_v24  ;;  %v2727_v3 = vpack.c.bf16 %v6310_v49, %v6287_v16  ;;  %v3245_v45 = vmin.bf16 %v7761_v58, %v3117_v40 }
 0x162   : > { %v6327_v57 = vpop.f32.mrf.mxu0  ;;  %v3240_v60 = vmin.bf16 %v7761_v58, %v3112_v6  ;;  %v4701_v6 = vcombine.low %v6242_v63, %v6247_v59  ;;  %v6470_v63 = vld [vmem:[%s7752_s1 + $0x50] sm:$0xff] }
 0x163   : > { %v2726_v30 = vpack.c.bf16 %v6327_v57, %v6299_v15  ;;  %v3373_v48 = vmul.bf16 %v3245_v45, %v2861_v54  ;;  %v3244_v35 = vmin.bf16 %v7761_v58, %v3116_v61  ;;  %v3235_v54 = vmin.bf16 %v7761_v58, %v3107_v25 }
 0x164   : > { %v6340_v62 = vpop.f32.mrf.mxu0  ;;  %5294 = vmatmul.mubr.msk.bf16.gmra.mxu0 %vm1252_vm0, %v5577_v23  ;;  %v2975_v61 = vadd.bf16 1077952576, %v6379_v53  ;;  %v2846_v45 = vadd.bf16 %v6035_v7, %v2710_v32  ;;  %v3362_v25 = vmul.bf16 %v3234_v31, %v6297_v13  ;;  %v3368_v51 = vmul.bf16 %v3240_v60, %v6338_v41 }
 0x165   : > { %4913 = vmatprep.subr.bf16.mxu1 %v3373_v48  ;;  %v3372_v8 = vmul.bf16 %v3244_v35, %v2860_v18  ;;  %5297 = vmatprep.mubr.msk.bf16.mxu0 %vm1252_vm0, %v5578_v47  ;;  %v3363_v29 = vmul.bf16 %v3235_v54, %v6278_v20  ;;  %v3241_v20 = vmin.bf16 %v7761_v58, %v3113_v11  ;;  %v2982_v35 = vadd.bf16 1077952576, %v2854_v56  ;;  %v5583_v11 = vld [vmem:[%s5789_s29 + $0x2c8] sm:$0xff]  }
 0x166   : > { %v6346_v9 = vpop.f32.mrf.mxu0  ;;  %4914 = vmatpush3.bf16.msra.mxu1 %v3365_v37  ;;  %v3233_v47 = vmin.bf16 %v7761_v58, %v3105_v21  ;;  %v3111_v48 = vmax.bf16 %v7763_v44, %v2983_v33  ;;  %v3103_v17 = vmax.bf16 %v7763_v44, %v2975_v61  ;;  %v2974_v32 = vadd.bf16 1077952576, %v2846_v45  ;;  %v5585_v33 = vld [vmem:[%s5789_s29 + $0x2d8] sm:$0xff]  }
 0x167   : > { %4915 = vmatprep.subr.bf16.mxu1 %v3372_v8  ;;  %v3369_v37 = vmul.bf16 %v3241_v20, %v6305_v28  ;;  %v3110_v28 = vmax.bf16 %v7763_v44, %v2982_v35 }
 0x168   : > { %v6364_v18 = vpop.f32.mrf.mxu0  ;;  %v3361_v13 = vmul.bf16 %v3233_v47, %v6323_v14  ;;  %v3239_v27 = vmin.bf16 %v7761_v58, %v3111_v48  ;;  %v3231_v14 = vmin.bf16 %v7761_v58, %v3103_v17  ;;  %v3102_v46 = vmax.bf16 %v7763_v44, %v2974_v32  ;;  %v6465_v47 = vld [vmem:[%s7752_s1 + $0x10] sm:$0xff]  ;;  %v5589_v32 = vld [vmem:[%s5789_s29 + $0x2f8] sm:$0xff]  }
 0x169   : > { %v2729_v2 = vpack.c.bf16 %v6364_v18, %v6340_v62  ;;  %v3238_v41 = vmin.bf16 %v7761_v58, %v3110_v28  ;;  %v4704_v35 = vcombine.high %v6465_v47, %v6470_v63  ;;  %v6485_v28 = vpop.f32.mrf.mxu1 }
 0x16a   : > { %v6373_v40 = vpop.f32.mrf.mxu0  ;;  %4916 = vmatpush3.bf16.msra.mxu1 %v3364_v4  ;;  %v3360_v4 = vmul.bf16 %v3232_v22, %v6353_v0  ;;  %v3359_v38 = vmul.bf16 %v3231_v14, %v6379_v53  ;;  %v3495_v53 = vld [vmem:[%s7752_s1 + $0xc8] sm:$0xff]  ;;  %7781 = vst [vmem:[#allocation5_spill] sm:$0xff] %v6485_v28 }
 0x16b   : > { %v2728_v24 = vpack.c.bf16 %v6373_v40, %v6346_v9  ;;  %4917 = vmatprep.subr.bf16.mxu1 %v3371_v43  ;;  %v3366_v0 = vmul.bf16 %v3238_v41, %v2854_v56  ;;  %v5586_v56 = vld [vmem:[%s5789_s29 + $0x2e0] sm:$0xff]   ;;  %v4718_v20 = vcombine.high %v3487_v42, %v3495_v53 }
 0x16c   : > { %v6388_v23 = vpop.f32.mrf.mxu0  ;;  %5298 = vmatmul.mubr.msk.bf16.gmra.mxu0 %vm1252_vm0, %v5579_v39  ;;  %v3367_v39 = vmul.bf16 %v3239_v27, %v6359_v50 }
 0x16d   : > { %5301 = vmatprep.mubr.msk.bf16.mxu0 %vm1252_vm0, %v5580_v34  ;;  %v3230_v34 = vmin.bf16 %v7761_v58, %v3102_v46 }
 0x16e   : > { %v6396_v26 = vpop.f32.mrf.mxu0  ;;  %4918 = vmatpush3.bf16.msra.mxu1 %v3363_v29 }
 0x16f   : > { %4919 = vmatprep.subr.bf16.mxu1 %v3370_v12  ;;  %v3358_v29 = vmul.bf16 %v3230_v34, %v2846_v45 }
 0x170   : > { %v6406_v10 = vpop.f32.mrf.mxu0 }
 0x172   : > { %v6413_v55 = vpop.f32.mrf.mxu0  ;;  %4920 = vmatpush3.bf16.msra.mxu1 %v3362_v25  ;;  %v5588_v25 = vld [vmem:[%s5789_s29 + $0x2f0] sm:$0xff]  }
 0x173   : > { %4921 = vmatprep.subr.bf16.mxu1 %v3369_v37 }
 0x174   : > { %v6418_v8 = vpop.f32.mrf.mxu0  ;;  %5302 = vmatmul.mubr.msk.bf16.gmra.mxu0 %vm1252_vm0, %v5581_v52  ;;  %v4717_v52 = vcombine.low %v3487_v42, %v3495_v53  ;;  %v5592_v42 = vld [vmem:[%s5789_s29 + $0x310] sm:$0xff]  }
 0x175   : > { %5305 = vmatprep.mubr.msk.bf16.mxu0 %vm1252_vm0, %v5582_v36 }
 0x176   : > { %v6425_v54 = vpop.f32.mrf.mxu0  ;;  %4922 = vmatpush3.bf16.msra.mxu1 %v3361_v13  ;;  %v5590_v13 = vld [vmem:[%s5789_s29 + $0x300] sm:$0xff]  }
 0x177   : > { %4923 = vmatprep.subr.bf16.mxu1 %v3368_v51 }
 0x178   : > { %v5208_v5 = vpop.f32.mrf.mxu0 }
 0x179   : > { %v2733_v36 = vpack.c.bf16 %v5208_v5, %v6418_v8  ;;  %v2731_v8 = vpack.c.bf16 %v6406_v10, %v6388_v23 }
 0x17a   : > { %v1978_v43 = vpop.f32.mrf.mxu0  ;;  %4924 = vmatpush3.bf16.msra.mxu1 %v3360_v4  ;;  %v6492_v4 = vpop.f32.mrf.mxu1 }
 0x17b   : > { %4925 = vmatprep.subr.bf16.mxu1 %v3367_v39  ;;  %v6488_v51 = vadd.bf16 %v6035_v7, %v2733_v36  ;;  %v2732_v27 = vpack.c.bf16 %v1978_v43, %v6425_v54  ;;  %7782 = vst [vmem:[#allocation6_spill] sm:$0xff] %v6492_v4  ;;  %v5591_v43 = vld [vmem:[%s5789_s29 + $0x308] sm:$0xff]   ;;  %v6513_v10 = vadd.bf16 %v6035_v7, %v2731_v8 }
 0x17c   : > { %v6436_v21 = vpop.f32.mrf.mxu0  ;;  %5306 = vmatmul.mubr.msk.bf16.gmra.mxu0 %vm1252_vm0, %v5583_v11  ;;  %v6497_v11 = vpop.f32.mrf.mxu1 }
 0x17d   : > { %5309 = vmatprep.mubr.msk.bf16.mxu0 %vm1252_vm0, %v5584_v1  ;;  %7783 = vst [vmem:[#allocation7_spill] sm:$0xff] %v6497_v11  ;;  %v2997_v39 = vadd.bf16 1077952576, %v6488_v51  ;;  %v6501_v41 = vadd.bf16 %v6035_v7, %v2732_v27  ;;  %v2995_v36 = vadd.bf16 1077952576, %v6513_v10 }
 0x17e   : > { %v6440_v50 = vpop.f32.mrf.mxu0  ;;  %4926 = vmatpush3.bf16.msra.mxu1 %v3359_v38  ;;  %v6507_v38 = vpop.f32.mrf.mxu1 }
 0x17f   : > { %4927 = vmatprep.subr.bf16.mxu1 %v3366_v0  ;;  %7784 = vst [vmem:[#allocation8_spill] sm:$0xff] %v6507_v38 }
 0x180   : > { %v6448_v31 = vpop.f32.mrf.mxu0 }
 0x182   : > { %v6454_v12 = vpop.f32.mrf.mxu0  ;;  %4928 = vmatpush3.bf16.msra.mxu1 %v3358_v29  ;;  %v6515_v29 = vpop.f32.mrf.mxu1 }
 0x184   : > { %v6456_v61 = vpop.f32.mrf.mxu0  ;;  %5310 = vmatmul.mubr.msk.bf16.gmra.mxu0 %vm1252_vm0, %v5585_v33  ;;  %v2730_v33 = vpack.c.bf16 %v6413_v55, %v6396_v26 }
 0x185   : > { %5313 = vmatprep.mubr.msk.bf16.mxu0 %vm1252_vm0, %v5586_v56  ;;  %3744 = vmatmul.mubr.bf16.vlgmr.msra.gmra.mxu1 %v4701_v6  ;;  %v3125_v56 = vmax.bf16 %v7763_v44, %v2997_v39  ;;  %v5593_v39 = vld [vmem:[%s5789_s29 + $0x318] sm:$0xff]   ;;  %s326_s29 = sand.u32 1, %s5666_s10  }
 0x186   : > { %v6460_v45 = vpop.f32.mrf.mxu0  ;;  %3751 = vmatprep.mubr.bf16.mxu1 %v4718_v20  ;;  %s4437_s14 = sshll.u32 %s326_s29, 5  ;;  %s7711_s27 = scalar_lea.sflag [#allocation3], %s326_s29 }
 0x187   : > { %s328_s21 = scalar_lea.vmem [#allocation2], %s4437_s14  ;;  %s5618_s14 = sshll.u32 %s5678_s13, 4  ;;  %s5619_s14 = int_to_ptr.vmem [resolvable:$false] %s5618_s14 }
 0x188   : > { %v6472_v59 = vpop.f32.mrf.mxu0  ;;  %s4371_s22 = sshll.u32 %s328_s21, 4  ;;  %s5620_s16 = scalar_lea.vmem %s5619_s14, 1024  ;;  %s7704_s22 = int_to_ptr.vmem [resolvable:$true] %s4371_s22 }
 0x189   : > { %s5614_s28 = scalar_lea.vmem %s7704_s22, 512  ;;  %p5621_p0 = scmp.lt.s32.totalorder %s7704_s22, %s5619_s14 }
 0x18a   : > { %v6476_v48 = vpop.f32.mrf.mxu0  ;;  %p5615_p11 = scmp.ne.s32.totalorder %s7704_s22, %s5614_s28  ;;  %p5622_p1 = scmp.lt.s32.totalorder %s5620_s16, %s5614_s28 }
 0x18c   : > { %v5219_v37 = vpop.f32.mrf.mxu0  ;;  %5314 = vmatmul.mubr.msk.bf16.gmra.mxu0 %vm1252_vm0, %v5587_v19  ;;  %v2996_v19 = vadd.bf16 1077952576, %v6501_v41  ;;  %p5616_p12 = pnand %p5615_p11, %p5769_p5  ;;  %p5623_p2 = por %p5622_p1, %p5621_p0 }
 0x18d   : > { %5317 = vmatprep.mubr.msk.bf16.mxu0 %vm1252_vm0, %v5588_v25  ;;  %3752 = vmatmul.mubr.bf16.gmra.mxu1 %v4717_v52  ;;  %v2737_v25 = vpack.c.bf16 %v6472_v59, %v6456_v61 }
 0x18e   : > { %v2023_v60 = vpop.f32.mrf.mxu0  ;;  %3792 = vmatprep.mubr.bf16.mxu1 %v4704_v35  ;;  %v3124_v27 = vmax.bf16 %v7763_v44, %v2996_v19  ;;  %p5617_p13 = pneg %p5616_p12 }
 0x190   : > { %v5220_v17 = vpop.f32.mrf.mxu0  ;;  %p5624_p3 = pnand %p5623_p2, %p5617_p13 }
 0x191   : > { %v2739_v14 = vpack.c.bf16 %v5220_v17, %v5219_v37  ;;  %v6528_v37 = vpop.f32.mrf.mxu1  ;;  %v6541_v17 = vadd.bf16 %v6035_v7, %v2730_v33 }
 0x192   : > { %v2026_v22 = vpop.f32.mrf.mxu0 }
 0x193   : > { %v6504_v54 = vadd.bf16 %v6035_v7, %v2739_v14  ;;  %v2738_v34 = vpack.c.bf16 %v2026_v22, %v2023_v60  ;;  %v6538_v59 = vpop.f32.mrf.mxu1  ;;  %v6547_v14 = vadd.bf16 %v6035_v7, %v2737_v25 }
 0x194   : > { %v5223_v46 = vpop.f32.mrf.mxu0  ;;  %5318 = vmatmul.mubr.msk.bf16.gmra.mxu0 %vm1252_vm0, %v5589_v32  ;;  %v3253_v32 = vmin.bf16 %v7761_v58, %v3125_v56 }
 0x195   : > { %5321 = vmatprep.mubr.msk.bf16.mxu0 %vm1252_vm0, %v5590_v13  ;;  %v3003_v52 = vadd.bf16 1077952576, %v6504_v54  ;;  %v6531_v26 = vadd.bf16 %v6035_v7, %v2738_v34 }
 0x196   : > { %v2039_v5 = vpop.f32.mrf.mxu0  ;;  %v3381_v18 = vmul.bf16 %v3253_v32, %v6488_v51 }
 0x197   : > { %v3131_v8 = vmax.bf16 %v7763_v44, %v3003_v52  ;;  %v2735_v52 = vpack.c.bf16 %v6448_v31, %v6436_v21 }
 0x198   : > { %v5224_v1 = vpop.f32.mrf.mxu0 }
 0x199   : > { %v2741_v0 = vpack.c.bf16 %v5224_v1, %v5223_v46  ;;  %v2736_v46 = vpack.c.bf16 %v6476_v48, %v6460_v45  ;;  %v6555_v1 = vpop.f32.mrf.mxu1  ;;  %v6566_v45 = vadd.bf16 %v6035_v7, %v2729_v2  ;;  %v3123_v48 = vmax.bf16 %v7763_v44, %v2995_v36 }
 0x19a   : > { %v2042_v53 = vpop.f32.mrf.mxu0  ;;  %v3252_v2 = vmin.bf16 %v7761_v58, %v3124_v27  ;;  %v3259_v32 = vmin.bf16 %v7761_v58, %v3131_v8  ;;  %v6609_v8 = vadd.bf16 %v6035_v7, %v2735_v52 }
 0x19b   : > { %v2877_v6 = vadd.bf16 %v6035_v7, %v2741_v0  ;;  %v2740_v20 = vpack.c.bf16 %v2042_v53, %v2039_v5  ;;  %v6573_v56 = vpop.f32.mrf.mxu1  ;;  %v2993_v31 = vadd.bf16 1077952576, %v6566_v45 }
 0x19c   : > { %v6525_v35 = vpop.f32.mrf.mxu0  ;;  %5322 = vmatmul.mubr.msk.bf16.gmra.mxu0 %vm1252_vm0, %v5591_v43  ;;  %v3002_v43 = vadd.bf16 1077952576, %v6531_v26  ;;  %7785 = vst [vmem:[#allocation9_spill] sm:$0xff] %v6573_v56 }
 0x19d   : > { %v3005_v55 = vadd.bf16 1077952576, %v2877_v6  ;;  %v2876_v60 = vadd.bf16 %v6035_v7, %v2740_v20  ;;  %5325 = vmatprep.mubr.msk.bf16.mxu0 %vm1252_vm0, %v5592_v42  ;;  %v2994_v20 = vadd.bf16 1077952576, %v6541_v17 }
 0x19e   : > { %v6536_v61 = vpop.f32.mrf.mxu0 }
 0x19f   : > { %v3133_v13 = vmax.bf16 %v7763_v44, %v3005_v55  ;;  %v3004_v22 = vadd.bf16 1077952576, %v2876_v60  ;;  %v3001_v55 = vadd.bf16 1077952576, %v6547_v14 }
 0x1a0   : > { %v6552_v5 = vpop.f32.mrf.mxu0 }
 0x1a1   : > { %v3132_v34 = vmax.bf16 %v7763_v44, %v3004_v22  ;;  %v3261_v42 = vmin.bf16 %v7761_v58, %v3133_v13  ;;  %v6587_v13 = vpop.f32.mrf.mxu1  ;;  %v6590_v22 = vadd.bf16 %v6035_v7, %v2736_v46  ;;  %v3251_v46 = vmin.bf16 %v7761_v58, %v3123_v48 }
 0x1a2   : > { %v6569_v53 = vpop.f32.mrf.mxu0  ;;  %7786 = vst [vmem:[#allocation10_spill] sm:$0xff] %v6587_v13  ;;  %v3387_v48 = vmul.bf16 %v3259_v32, %v6504_v54 }
 0x1a3   : > { %v3389_v25 = vmul.bf16 %v3261_v42, %v2877_v6  ;;  %v3260_v62 = vmin.bf16 %v7761_v58, %v3132_v34  ;;  %v3130_v6 = vmax.bf16 %v7763_v44, %v3002_v43  ;;  %v6596_v21 = vpop.f32.mrf.mxu1  ;;  %v3122_v43 = vmax.bf16 %v7763_v44, %v2994_v20 }
 0x1a4   : > { %v6584_v36 = vpop.f32.mrf.mxu0  ;;  %5326 = vmatmul.mubr.msk.bf16.gmra.mxu0 %vm1252_vm0, %v5593_v39  ;;  %7787 = vst [vmem:[#allocation11_spill] sm:$0xff] %v6596_v21  ;;  %v6603_v39 = vadd.bf16 %v6035_v7, %v2728_v24  ;;  %v2734_v34 = vpack.c.bf16 %v6454_v12, %v6440_v50  ;;  %v3129_v42 = vmax.bf16 %v7763_v44, %v3001_v55  ;;  %v3000_v40 = vadd.bf16 1077952576, %v6590_v22 }
 0x1a5   : > { %4941 = vmatprep.subr.bf16.mxu1 %v3389_v25  ;;  %v3388_v51 = vmul.bf16 %v3260_v62, %v2876_v60  ;;  %v3380_v60 = vmul.bf16 %v3252_v2, %v6501_v41  ;;  %v6616_v9 = vpop.f32.mrf.mxu1  ;;  %v3258_v41 = vmin.bf16 %v7761_v58, %v3130_v6  ;;  %v6631_v50 = vadd.bf16 %v6035_v7, %v2727_v3 }
 0x1a6   : > { %v6594_v27 = vpop.f32.mrf.mxu0  ;;  %4942 = vmatpush3.bf16.msra.mxu1 %v3381_v18  ;;  %7788 = vst [vmem:[#allocation12_spill] sm:$0xff] %v6616_v9  ;;  %v3121_v12 = vmax.bf16 %v7763_v44, %v2993_v31  ;;  %v2992_v18 = vadd.bf16 1077952576, %v6603_v39  ;;  %v3379_v2 = vmul.bf16 %v3251_v46, %v6513_v10  ;;  %v3250_v52 = vmin.bf16 %v7761_v58, %v3122_v43 }
 0x1a7   : > { %4943 = vmatprep.subr.bf16.mxu1 %v3388_v51  ;;  %v6625_v62 = vpop.f32.mrf.mxu1  ;;  %v2999_v55 = vadd.bf16 1077952576, %v6609_v8  ;;  %v2870_v6 = vadd.bf16 %v6035_v7, %v2734_v34  ;;  %v3128_v3 = vmax.bf16 %v7763_v44, %v3000_v40  ;;  %v3386_v51 = vmul.bf16 %v3258_v41, %v6531_v26 }
 0x1a8   : > { %v6614_v25 = vpop.f32.mrf.mxu0  ;;  %7789 = vst [vmem:[#allocation13_spill] sm:$0xff] %v6625_v62  ;;  %v3257_v32 = vmin.bf16 %v7761_v58, %v3129_v42  ;;  %v2991_v43 = vadd.bf16 1077952576, %v6631_v50  ;;  %v3249_v26 = vmin.bf16 %v7761_v58, %v3121_v12  ;;  %v3120_v34 = vmax.bf16 %v7763_v44, %v2992_v18 }
 0x1a9   : > { %v6643_v49 = vpop.f32.mrf.mxu1  ;;  %v3378_v42 = vmul.bf16 %v3250_v52, %v6541_v17  ;;  %v3127_v41 = vmax.bf16 %v7763_v44, %v2999_v55  ;;  %v3256_v31 = vmin.bf16 %v7761_v58, %v3128_v3 }
 0x1aa   : > { %v6623_v20 = vpop.f32.mrf.mxu0  ;;  %4944 = vmatpush3.bf16.msra.mxu1 %v3380_v60  ;;  %7790 = vst [vmem:[#allocation14_spill] sm:$0xff] %v6643_v49  ;;  %v2862_v60 = vadd.bf16 %v6035_v7, %v2726_v30  ;;  %v3119_v30 = vmax.bf16 %v7763_v44, %v2991_v43  ;;  %v3377_v12 = vmul.bf16 %v3249_v26, %v6566_v45 }
 0x1ab   : > { %4945 = vmatprep.subr.bf16.mxu1 %v3387_v48  ;;  %v6652_v46 = vpop.f32.mrf.mxu1  ;;  %v3248_v18 = vmin.bf16 %v7761_v58, %v3120_v34  ;;  %v3384_v3 = vmul.bf16 %v3256_v31, %v6590_v22 }
 0x1ac   : > { %v6641_v16 = vpop.f32.mrf.mxu0  ;;  %7791 = vst [vmem:[#allocation15_spill] sm:$0xff] %v6652_v46  ;;  %v2990_v17 = vadd.bf16 1077952576, %v2862_v60  ;;  %v3247_v45 = vmin.bf16 %v7761_v58, %v3119_v30 }
 0x1ad   : > { %v6664_v48 = vpop.f32.mrf.mxu1  ;;  %v3376_v34 = vmul.bf16 %v3248_v18, %v6603_v39 }
 0x1ae   : > { %v6650_v10 = vpop.f32.mrf.mxu0  ;;  %4946 = vmatpush3.bf16.msra.mxu1 %v3379_v2  ;;  %7792 = vst [vmem:[#allocation16_spill] sm:$0xff] %v6664_v48  ;;  %v2998_v2 = vadd.bf16 1077952576, %v2870_v6  ;;  %v3118_v26 = vmax.bf16 %v7763_v44, %v2990_v17 }
 0x1af   : > { %4947 = vmatprep.subr.bf16.mxu1 %v3386_v51  ;;  %v3385_v51 = vmul.bf16 %v3257_v32, %v6547_v14  ;;  %v6671_v57 = vpop.f32.mrf.mxu1  ;;  %v3255_v32 = vmin.bf16 %v7761_v58, %v3127_v41 }
 0x1b0   : > { %v6662_v40 = vpop.f32.mrf.mxu0  ;;  %v3126_v14 = vmax.bf16 %v7763_v44, %v2998_v2  ;;  %v3246_v30 = vmin.bf16 %v7761_v58, %v3118_v26 }
 0x1b1   : > { %v6678_v55 = vpop.f32.mrf.mxu1  ;;  %v3383_v22 = vmul.bf16 %v3255_v32, %v6609_v8 }
 0x1b2   : > { %v6669_v15 = vpop.f32.mrf.mxu0  ;;  %4948 = vmatpush3.bf16.msra.mxu1 %v3378_v42  ;;  %v3254_v31 = vmin.bf16 %v7761_v58, %v3126_v14  ;;  %v3488_v14 = vld [vmem:[%s7752_s1 + $0x90] sm:$0xff]  ;;  %v3374_v32 = vmul.bf16 %v3246_v30, %v2862_v60 }
 0x1b3   : > { %4949 = vmatprep.subr.bf16.mxu1 %v3385_v51  ;;  %v6687_v43 = vpop.f32.mrf.mxu1  ;;  %v2746_v0 = vpack.c.bf16 %v6669_v15, %v6650_v10 }
 0x1b4   : > { %v6676_v52 = vpop.f32.mrf.mxu0  ;;  %v3382_v39 = vmul.bf16 %v3254_v31, %v2870_v6  ;;  %v4703_v6 = vcombine.low %v6465_v47, %v6470_v63  ;;  %v6735_v47 = vld [vmem:[%s7752_s1 + $0x18] sm:$0xff] }
 0x1b5   : > { %v6692_v23 = vpop.f32.mrf.mxu1  ;;  %v6740_v63 = vld [vmem:[%s7752_s1 + $0x58] sm:$0xff] }
 0x1b6   : > { %v6685_v51 = vpop.f32.mrf.mxu0  ;;  %4950 = vmatpush3.bf16.msra.mxu1 %v3377_v12  ;;  %7793 = vst [vmem:[#allocation17_spill] sm:$0xff] %v6692_v23  ;;  %v3375_v12 = vmul.bf16 %v3247_v45, %v6631_v50  ;;  %v3496_v50 = vld [vmem:[%s7752_s1 + $0xd0] sm:$0xff] }
 0x1b7   : > { %4951 = vmatprep.subr.bf16.mxu1 %v3384_v3  ;;  %v6696_v42 = vpop.f32.mrf.mxu1  ;;  %v4719_v19 = vcombine.low %v3488_v14, %v3496_v50 }
 0x1b8   : > { %v5240_v2 = vpop.f32.mrf.mxu0 }
 0x1b9   : > { %v6702_v17 = vpop.f32.mrf.mxu1 }
 0x1ba   : > { %v2106_v41 = vpop.f32.mrf.mxu0  ;;  %4952 = vmatpush3.bf16.msra.mxu1 %v3376_v34 }
 0x1bb   : > { %4953 = vmatprep.subr.bf16.mxu1 %v3383_v22  ;;  %v6706_v8 = vpop.f32.mrf.mxu1  ;;  %v4720_v22 = vcombine.high %v3488_v14, %v3496_v50  ;;  %v2749_v14 = vpack.c.bf16 %v5240_v2, %v6676_v52  ;;  %v2747_v2 = vpack.c.bf16 %v6662_v40, %v6641_v16 }
 0x1bc   : > { %v6700_v3 = vpop.f32.mrf.mxu0 }
 0x1bd   : > { %v6716_v26 = vpop.f32.mrf.mxu1  ;;  %v6787_v16 = vadd.bf16 %v6035_v7, %v2747_v2 }
 0x1be   : > { %v6704_v18 = vpop.f32.mrf.mxu0  ;;  %4954 = vmatpush3.bf16.msra.mxu1 %v3375_v12 }
 0x1bf   : > { %4955 = vmatprep.subr.bf16.mxu1 %v3382_v39  ;;  %v6722_v31 = vpop.f32.mrf.mxu1  ;;  %v3011_v15 = vadd.bf16 1077952576, %v6787_v16 }
 0x1c0   : > { %v6714_v45 = vpop.f32.mrf.mxu0  ;;  %7794 = vst [vmem:[#allocation18_spill] sm:$0xff] %v6722_v31 }
 0x1c1   : > { %v6726_v39 = vpop.f32.mrf.mxu1 }
 0x1c2   : > { %v6720_v34 = vpop.f32.mrf.mxu0  ;;  %4956 = vmatpush3.bf16.msra.mxu1 %v3374_v32  ;;  %7795 = vst [vmem:[#allocation19_spill] sm:$0xff] %v6726_v39 }
 0x1c3   : > { %v6730_v60 = vpop.f32.mrf.mxu1 }
 0x1c4   : > { %v6724_v12 = vpop.f32.mrf.mxu0  ;;  %7796 = vst [vmem:[#allocation20_spill] sm:$0xff] %v6730_v60 }
 0x1c5   : > { %3793 = vmatmul.mubr.bf16.vlgmr.msra.gmra.mxu1 %v4703_v6  ;;  %v6742_v32 = vpop.f32.mrf.mxu1 }
 0x1c6   : > { %v6728_v33 = vpop.f32.mrf.mxu0  ;;  %3800 = vmatprep.mubr.bf16.mxu1 %v4720_v22  ;;  %7797 = vst [vmem:[#allocation21_spill] sm:$0xff] %v6742_v32  ;;  %v4706_v22 = vcombine.high %v6735_v47, %v6740_v63 }
 0x1c7   : > { %v6750_v54 = vpop.f32.mrf.mxu1 }
 0x1c8   : > { %v5248_v30 = vpop.f32.mrf.mxu0  ;;  %7798 = vst [vmem:[#allocation22_spill] sm:$0xff] %v6750_v54 }
 0x1c9   : > { %v6752_v58 = vpop.f32.mrf.mxu1 }
 0x1ca   : > { %v6744_v6 = vpop.f32.mrf.mxu0  ;;  %7799 = vst [vmem:[#allocation23_spill] sm:$0xff] %v6752_v58  ;;  %v7807_v58 = vmov 0  }
 0x1cb   : > { %v6754_v56 = vpop.f32.mrf.mxu1 }
 0x1cc   : > { %v5251_v24 = vpop.f32.mrf.mxu0  ;;  %7800 = vst [vmem:[#allocation24_spill] sm:$0xff] %v6754_v56 }
 0x1cd   : > { %3801 = vmatmul.mubr.bf16.gmra.mxu1 %v4719_v19  ;;  %v6759_v9 = vpop.f32.mrf.mxu1  ;;  %v6766_v19 = vadd.bf16 %v6035_v7, %v2749_v14 }
 0x1ce   : > { %v2151_v44 = vpop.f32.mrf.mxu0  ;;  %3841 = vmatprep.mubr.bf16.mxu1 %v4706_v22  ;;  %7801 = vst [vmem:[#allocation25_spill] sm:$0xff] %v6759_v9  ;;  %v2748_v22 = vpack.c.bf16 %v2106_v41, %v6685_v51 }
 0x1cf   : > { %v6763_v31 = vpop.f32.mrf.mxu1  ;;  %v3013_v32 = vadd.bf16 1077952576, %v6766_v19 }
 0x1d0   : > { %v5252_v21 = vpop.f32.mrf.mxu0  ;;  %7802 = vst [vmem:[#allocation26_spill] sm:$0xff] %v6763_v31  ;;  %v6779_v14 = vadd.bf16 %v6035_v7, %v2748_v22 }
 0x1d1   : > { %v2755_v60 = vpack.c.bf16 %v5252_v21, %v5251_v24  ;;  %v6769_v52 = vpop.f32.mrf.mxu1  ;;  %v3141_v22 = vmax.bf16 %v7807_v58, %v3013_v32 }
 0x1d2   : > { %v2154_v13 = vpop.f32.mrf.mxu0  ;;  %7803 = vst [vmem:[#allocation27_spill] sm:$0xff] %v6769_v52  ;;  %v3012_v52 = vadd.bf16 1077952576, %v6779_v14 }
 0x1d3   : > { %v6773_v39 = vpop.f32.mrf.mxu1  ;;  %v6782_v51 = vadd.bf16 %v6035_v7, %v2755_v60  ;;  %v2754_v41 = vpack.c.bf16 %v2154_v13, %v2151_v44 }
 0x1d4   : > { %v5255_v48 = vpop.f32.mrf.mxu0  ;;  %7804 = vst [vmem:[#allocation28_spill] sm:$0xff] %v6773_v39 }
 0x1d5   : > { %v6784_v24 = vpop.f32.mrf.mxu1  ;;  %v3019_v44 = vadd.bf16 1077952576, %v6782_v51  ;;  %v6803_v2 = vadd.bf16 %v6035_v7, %v2754_v41  ;;  %v3140_v41 = vmax.bf16 %v7807_v58, %v3012_v52 }
 0x1d6   : > { %v2167_v50 = vpop.f32.mrf.mxu0  ;;  %7805 = vst [vmem:[#allocation29_spill] sm:$0xff] %v6784_v24  ;;  %v2753_v24 = vpack.c.bf16 %v5248_v30, %v6724_v12  ;;  %v6812_v12 = vadd.bf16 %v6035_v7, %v2746_v0  ;;  %v7810_v30 = vmov 1086341312  }
 0x1d7   : > { %v6789_v56 = vpop.f32.mrf.mxu1  ;;  %v3018_v0 = vadd.bf16 1077952576, %v6803_v2 }
 0x1d8   : > { %v5256_v21 = vpop.f32.mrf.mxu0  ;;  %7806 = vst [vmem:[#allocation30_spill] sm:$0xff] %v6789_v56  ;;  %v6818_v31 = vadd.bf16 %v6035_v7, %v2753_v24  ;;  %v7812_v24 = vpack.c.bf16 %v6614_v25, %v6584_v36  ;;  %v3010_v49 = vadd.bf16 1077952576, %v6812_v12  ;;  %v3268_v36 = vmin.bf16 %v7810_v30, %v3140_v41 }
 0x1d9   : > { %v2757_v54 = vpack.c.bf16 %v5256_v21, %v5255_v48  ;;  %v6800_v48 = vpop.f32.mrf.mxu1  ;;  %v2751_v25 = vpack.c.bf16 %v6714_v45, %v6700_v3  ;;  %v7816_v45 = vpack.c.bf16 %v6623_v20, %v6594_v27 }
 0x1da   : > { %v2170_v40 = vpop.f32.mrf.mxu0  ;;  %7808 = vst [vmem:[#allocation31_spill] sm:$0xff] %v6800_v48  ;;  %v3147_v48 = vmax.bf16 %v7807_v58, %v3019_v44 }
 0x1db   : > { %v2893_v9 = vadd.bf16 %v6035_v7, %v2757_v54  ;;  %v2756_v60 = vpack.c.bf16 %v2170_v40, %v2167_v50  ;;  %v6809_v32 = vpop.f32.mrf.mxu1  ;;  %v3269_v50 = vmin.bf16 %v7810_v30, %v3141_v22 }
 0x1dc   : > { %v6798_v13 = vpop.f32.mrf.mxu0  ;;  %7809 = vst [vmem:[#allocation32_spill] sm:$0xff] %v6809_v32 }
 0x1dd   : > { %v3021_v21 = vadd.bf16 1077952576, %v2893_v9  ;;  %v2892_v10 = vadd.bf16 %v6035_v7, %v2756_v60  ;;  %v2752_v60 = vpack.c.bf16 %v6744_v6, %v6728_v33  ;;  %v6825_v32 = vpop.f32.mrf.mxu1  ;;  %v6836_v33 = vadd.bf16 %v6035_v7, %v7812_v24 }
 0x1de   : > { %v6807_v54 = vpop.f32.mrf.mxu0  ;;  %7811 = vst [vmem:[#allocation33_spill] sm:$0xff] %v6825_v32  ;;  %v3139_v6 = vmax.bf16 %v7807_v58, %v3011_v15  ;;  %v3397_v62 = vmul.bf16 %v3269_v50, %v6766_v19  ;;  %v3017_v15 = vadd.bf16 1077952576, %v6818_v31  ;;  %v3275_v19 = vmin.bf16 %v7810_v30, %v3147_v48 }
 0x1df   : > { %v3149_v40 = vmax.bf16 %v7807_v58, %v3021_v21  ;;  %v3020_v39 = vadd.bf16 1077952576, %v2892_v10  ;;  %v6841_v32 = vpop.f32.mrf.mxu1  ;;  %v6857_v46 = vadd.bf16 %v6035_v7, %v2752_v60  ;;  %v3009_v3 = vadd.bf16 1077952576, %v6836_v33 }
 0x1e0   : > { %v6823_v56 = vpop.f32.mrf.mxu0  ;;  %7813 = vst [vmem:[#allocation34_spill] sm:$0xff] %v6841_v32  ;;  %v3267_v60 = vmin.bf16 %v7810_v30, %v3139_v6  ;;  %v3396_v48 = vmul.bf16 %v3268_v36, %v6779_v14  ;;  %v3403_v6 = vmul.bf16 %v3275_v19, %v6782_v51 }
 0x1e1   : > { %v3148_v22 = vmax.bf16 %v7807_v58, %v3020_v39  ;;  %v3277_v52 = vmin.bf16 %v7810_v30, %v3149_v40  ;;  %v6854_v32 = vpop.f32.mrf.mxu1  ;;  %v3016_v20 = vadd.bf16 1077952576, %v6857_v46 }
 0x1e2   : > { %v6839_v44 = vpop.f32.mrf.mxu0  ;;  %7814 = vst [vmem:[#allocation35_spill] sm:$0xff] %v6854_v32 }
 0x1e3   : > { %v3405_v21 = vmul.bf16 %v3277_v52, %v2893_v9  ;;  %v3276_v40 = vmin.bf16 %v7810_v30, %v3148_v22  ;;  %v3146_v9 = vmax.bf16 %v7807_v58, %v3018_v0  ;;  %v6863_v41 = vpop.f32.mrf.mxu1  ;;  %v6870_v52 = vadd.bf16 %v6035_v7, %v7816_v45 }
 0x1e4   : > { %v6852_v24 = vpop.f32.mrf.mxu0  ;;  %7815 = vst [vmem:[#allocation36_spill] sm:$0xff] %v6863_v41  ;;  %v3138_v0 = vmax.bf16 %v7807_v58, %v3010_v49 }
 0x1e5   : > { %4969 = vmatprep.subr.bf16.mxu1 %v3405_v21  ;;  %v3404_v22 = vmul.bf16 %v3276_v40, %v2892_v10  ;;  %v6876_v10 = vadd.bf16 %v6035_v7, %v2751_v25  ;;  %v3145_v21 = vmax.bf16 %v7807_v58, %v3017_v15  ;;  %v6883_v27 = vpop.f32.mrf.mxu1  ;;  %v3274_v14 = vmin.bf16 %v7810_v30, %v3146_v9 }
 0x1e6   : > { %v6861_v50 = vpop.f32.mrf.mxu0  ;;  %4970 = vmatpush3.bf16.msra.mxu1 %v3397_v62  ;;  %v2750_v62 = vpack.c.bf16 %v6720_v34, %v6704_v18  ;;  %7817 = vst [vmem:[#allocation37_spill] sm:$0xff] %v6883_v27  ;;  %v7819_v18 = vpack.c.bf16 %v6552_v5, %v6525_v35  ;;  %v3137_v15 = vmax.bf16 %v7807_v58, %v3009_v3  ;;  %v3008_v51 = vadd.bf16 1077952576, %v6870_v52 }
 0x1e7   : > { %4971 = vmatprep.subr.bf16.mxu1 %v3404_v22  ;;  %v6892_v25 = vpop.f32.mrf.mxu1  ;;  %v3395_v9 = vmul.bf16 %v3267_v60, %v6787_v16  ;;  %v3266_v19 = vmin.bf16 %v7810_v30, %v3138_v0  ;;  %v3015_v45 = vadd.bf16 1077952576, %v6876_v10  ;;  %v3144_v3 = vmax.bf16 %v7807_v58, %v3016_v20 }
 0x1e8   : > { %v6881_v40 = vpop.f32.mrf.mxu0  ;;  %7818 = vst [vmem:[#allocation38_spill] sm:$0xff] %v6892_v25  ;;  %v6898_v34 = vadd.bf16 %v6035_v7, %v7819_v18  ;;  %v2886_v5 = vadd.bf16 %v6035_v7, %v2750_v62  ;;  %v3402_v18 = vmul.bf16 %v3274_v14, %v6803_v2  ;;  %v7822_v0 = vpack.c.bf16 %v6569_v53, %v6536_v61 }
 0x1e9   : > { %v6909_v35 = vpop.f32.mrf.mxu1  ;;  %v3265_v62 = vmin.bf16 %v7810_v30, %v3137_v15  ;;  %v3136_v20 = vmax.bf16 %v7807_v58, %v3008_v51  ;;  %v3394_v2 = vmul.bf16 %v3266_v19, %v6812_v12  ;;  %v3272_v27 = vmin.bf16 %v7810_v30, %v3144_v3 }
 0x1ea   : > { %v6890_v36 = vpop.f32.mrf.mxu0  ;;  %4972 = vmatpush3.bf16.msra.mxu1 %v3396_v48  ;;  %7820 = vst [vmem:[#allocation39_spill] sm:$0xff] %v6909_v35  ;;  %v3007_v60 = vadd.bf16 1077952576, %v6898_v34  ;;  %v2878_v22 = vadd.bf16 %v6035_v7, %v7822_v0  ;;  %v3014_v49 = vadd.bf16 1077952576, %v2886_v5 }
 0x1eb   : > { %4973 = vmatprep.subr.bf16.mxu1 %v3403_v6  ;;  %v3273_v6 = vmin.bf16 %v7810_v30, %v3145_v21  ;;  %v6917_v16 = vpop.f32.mrf.mxu1  ;;  %v3393_v51 = vmul.bf16 %v3265_v62, %v6836_v33  ;;  %v3264_v19 = vmin.bf16 %v7810_v30, %v3136_v20  ;;  %v3400_v3 = vmul.bf16 %v3272_v27, %v6857_v46 }
 0x1ec   : > { %v6907_v48 = vpop.f32.mrf.mxu0  ;;  %7821 = vst [vmem:[#allocation40_spill] sm:$0xff] %v6917_v16  ;;  %v3135_v15 = vmax.bf16 %v7807_v58, %v3007_v60  ;;  %v3006_v12 = vadd.bf16 1077952576, %v2878_v22 }
 0x1ed   : > { %v6929_v14 = vpop.f32.mrf.mxu1  ;;  %v3392_v62 = vmul.bf16 %v3264_v19, %v6870_v52 }
 0x1ee   : > { %v6915_v39 = vpop.f32.mrf.mxu0  ;;  %4974 = vmatpush3.bf16.msra.mxu1 %v3395_v9  ;;  %7823 = vst [vmem:[#allocation41_spill] sm:$0xff] %v6929_v14  ;;  %v3143_v9 = vmax.bf16 %v7807_v58, %v3015_v45  ;;  %v3263_v33 = vmin.bf16 %v7810_v30, %v3135_v15  ;;  %v3134_v60 = vmax.bf16 %v7807_v58, %v3006_v12 }
 0x1ef   : > { %4975 = vmatprep.subr.bf16.mxu1 %v3402_v18  ;;  %v3401_v18 = vmul.bf16 %v3273_v6, %v6818_v31  ;;  %v6936_v53 = vpop.f32.mrf.mxu1  ;;  %v3142_v31 = vmax.bf16 %v7807_v58, %v3014_v49 }
 0x1f0   : > { %v6927_v21 = vpop.f32.mrf.mxu0  ;;  %7824 = vst [vmem:[#allocation42_spill] sm:$0xff] %v6936_v53  ;;  %v3271_v6 = vmin.bf16 %v7810_v30, %v3143_v9  ;;  %v3262_v15 = vmin.bf16 %v7810_v30, %v3134_v60 }
 0x1f1   : > { %v6943_v45 = vpop.f32.mrf.mxu1  ;;  %v3270_v46 = vmin.bf16 %v7810_v30, %v3142_v31  ;;  %v3489_v31 = vld [vmem:[%s7752_s1 + $0x98] sm:$0xff] }
 0x1f2   : > { %v6934_v61 = vpop.f32.mrf.mxu0  ;;  %4976 = vmatpush3.bf16.msra.mxu1 %v3394_v2  ;;  %7825 = vst [vmem:[#allocation43_spill] sm:$0xff] %v6943_v45  ;;  %v3399_v49 = vmul.bf16 %v3271_v6, %v6876_v10  ;;  %v3390_v6 = vmul.bf16 %v3262_v15, %v2878_v22  ;;  %v6990_v22 = vld [vmem:[%s7752_s1 + $0x20] sm:$0xff] }
 0x1f3   : > { %4977 = vmatprep.subr.bf16.mxu1 %v3401_v18  ;;  %v6950_v18 = vpop.f32.mrf.mxu1  ;;  %v3398_v52 = vmul.bf16 %v3270_v46, %v2886_v5  ;;  %v4705_v5 = vcombine.low %v6735_v47, %v6740_v63  ;;  %v6995_v47 = vld [vmem:[%s7752_s1 + $0x60] sm:$0xff] }
 0x1f4   : > { %v6941_v0 = vpop.f32.mrf.mxu0  ;;  %7826 = vst [vmem:[#allocation44_spill] sm:$0xff] %v6950_v18 }
 0x1f5   : > { %v6955_v32 = vpop.f32.mrf.mxu1 }
 0x1f6   : > { %v6948_v2 = vpop.f32.mrf.mxu0  ;;  %4978 = vmatpush3.bf16.msra.mxu1 %v3393_v51  ;;  %7827 = vst [vmem:[#allocation45_spill] sm:$0xff] %v6955_v32  ;;  %v3391_v51 = vmul.bf16 %v3263_v33, %v6898_v34  ;;  %v3497_v34 = vld [vmem:[%s7752_s1 + $0xd8] sm:$0xff] }
 0x1f7   : > { %4979 = vmatprep.subr.bf16.mxu1 %v3400_v3  ;;  %v6959_v9 = vpop.f32.mrf.mxu1  ;;  %v4721_v41 = vcombine.low %v3489_v31, %v3497_v34 }
 0x1f8   : > { %v5272_v20 = vpop.f32.mrf.mxu0  ;;  %7828 = vst [vmem:[#allocation46_spill] sm:$0xff] %v6959_v9 }
 0x1f9   : > { %v6965_v12 = vpop.f32.mrf.mxu1  ;;  %v2765_v18 = vpack.c.bf16 %v5272_v20, %v6941_v0 }
 0x1fa   : > { %v2234_v27 = vpop.f32.mrf.mxu0  ;;  %4980 = vmatpush3.bf16.msra.mxu1 %v3392_v62  ;;  %7829 = vst [vmem:[#allocation47_spill] sm:$0xff] %v6965_v12 }
 0x1fb   : > { %4981 = vmatprep.subr.bf16.mxu1 %v3399_v49  ;;  %v6969_v10 = vpop.f32.mrf.mxu1  ;;  %v4722_v49 = vcombine.high %v3489_v31, %v3497_v34 }
 0x1fc   : > { %v6963_v3 = vpop.f32.mrf.mxu0  ;;  %7830 = vst [vmem:[#allocation48_spill] sm:$0xff] %v6969_v10  ;;  %v2764_v10 = vpack.c.bf16 %v2234_v27, %v6948_v2  ;;  %v2762_v27 = vpack.c.bf16 %v6934_v61, %v6915_v39 }
 0x1fd   : > { %v6981_v60 = vpop.f32.mrf.mxu1 }
 0x1fe   : > { %v6967_v19 = vpop.f32.mrf.mxu0  ;;  %4982 = vmatpush3.bf16.msra.mxu1 %v3391_v51  ;;  %7831 = vst [vmem:[#allocation49_spill] sm:$0xff] %v6981_v60  ;;  %v2901_v60 = vadd.bf16 %v6035_v7, %v2765_v18  ;;  %v7015_v20 = vadd.bf16 %v6035_v7, %v2764_v10 }
 0x1ff   : > { %4983 = vmatprep.subr.bf16.mxu1 %v3398_v52 }
 0x200   : > { %v6977_v33 = vpop.f32.mrf.mxu0  ;;  %v3029_v0 = vadd.bf16 1077952576, %v2901_v60  ;;  %v3028_v10 = vadd.bf16 1077952576, %v7015_v20 }
 0x202   : > { %v6983_v62 = vpop.f32.mrf.mxu0  ;;  %4984 = vmatpush3.bf16.msra.mxu1 %v3390_v6 }
 0x204   : > { %v5279_v46 = vpop.f32.mrf.mxu0 }
 0x205   : > { %3842 = vmatmul.mubr.bf16.vlgmr.msra.gmra.mxu1 %v4705_v5  ;;  %v4901_v51 = vpop.f32.mrf.mxu1 }
 0x206   : > { %v6985_v52 = vpop.f32.mrf.mxu0  ;;  %3849 = vmatprep.mubr.bf16.mxu1 %v4722_v49  ;;  %v4708_v49 = vcombine.high %v6990_v22, %v6995_v47 }
 0x207   : > { %v4902_v63 = vpop.f32.mrf.mxu1 }
 0x208   : > { %v5280_v15 = vpop.f32.mrf.mxu0  ;;  %v6997_v6 = vadd.f32 %v4902_v63, %v4901_v51 }
 0x209   : > { %v4904_v5 = vpop.f32.mrf.mxu1 }
 0x20a   : > { %v6999_v14 = vpop.f32.mrf.mxu0 }
 0x20b   : > { %v4905_v35 = vpop.f32.mrf.mxu1 }
 0x20c   : > { %v5283_v16 = vpop.f32.mrf.mxu0  ;;  %v7003_v25 = vadd.f32 %v4905_v35, %v4904_v5 }
 0x20d   : > { %3850 = vmatmul.mubr.bf16.gmra.mxu1 %v4721_v41  ;;  %v4907_v32 = vpop.f32.mrf.mxu1  ;;  %v2763_v41 = vpack.c.bf16 %v6927_v21, %v6907_v48  ;;  %v3157_v48 = vmax.bf16 %v7807_v58, %v3029_v0 }
 0x20e   : > { %v2279_v45 = vpop.f32.mrf.mxu0  ;;  %3890 = vmatprep.mubr.bf16.mxu1 %v4708_v49 }
 0x20f   : > { %v4908_v53 = vpop.f32.mrf.mxu1  ;;  %v7021_v2 = vadd.bf16 %v6035_v7, %v2763_v41  ;;  %v3285_v41 = vmin.bf16 %v7810_v30, %v3157_v48 }
 0x210   : > { %v5284_v51 = vpop.f32.mrf.mxu0  ;;  %v7006_v63 = vadd.f32 %v4908_v53, %v4907_v32 }
 0x211   : > { %v4910_v31 = vpop.f32.mrf.mxu1  ;;  %v2771_v9 = vpack.c.bf16 %v5284_v51, %v5283_v16  ;;  %v2769_v51 = vpack.c.bf16 %v5280_v15, %v5279_v46  ;;  %v3027_v39 = vadd.bf16 1077952576, %v7021_v2  ;;  %v3413_v28 = vmul.bf16 %v3285_v41, %v2901_v60 }
 0x212   : > { %v2282_v34 = vpop.f32.mrf.mxu0 }
 0x213   : > { %v4911_v12 = vpop.f32.mrf.mxu1  ;;  %v7018_v32 = vadd.bf16 %v6035_v7, %v2771_v9  ;;  %v2770_v18 = vpack.c.bf16 %v2282_v34, %v2279_v45  ;;  %v7045_v0 = vadd.bf16 %v6035_v7, %v2769_v51 }
 0x214   : > { %v5287_v35 = vpop.f32.mrf.mxu0  ;;  %v7010_v5 = vadd.f32 %v4911_v12, %v4910_v31 }
 0x215   : > { %v3035_v9 = vadd.bf16 1077952576, %v7018_v32  ;;  %v7032_v45 = vadd.bf16 %v6035_v7, %v2770_v18 }
 0x216   : > { %v2295_v49 = vpop.f32.mrf.mxu0 }
 0x217   : > { %v3163_v18 = vmax.bf16 %v7807_v58, %v3035_v9 }
 0x218   : > { %v5288_v53 = vpop.f32.mrf.mxu0 }
 0x219   : > { %v2773_v38 = vpack.c.bf16 %v5288_v53, %v5287_v35  ;;  %v2768_v53 = vpack.c.bf16 %v6999_v14, %v6985_v52  ;;  %v3155_v14 = vmax.bf16 %v7807_v58, %v3027_v39 }
 0x21a   : > { %v2298_v16 = vpop.f32.mrf.mxu0 }
 0x21b   : > { %v2909_v21 = vadd.bf16 %v6035_v7, %v2773_v38  ;;  %v2772_v12 = vpack.c.bf16 %v2298_v16, %v2295_v49  ;;  %v7039_v38 = vadd.bf16 %v6035_v7, %v2762_v27  ;;  %v3156_v49 = vmax.bf16 %v7807_v58, %v3028_v10 }
 0x21c   : > { %v7029_v31 = vpop.f32.mrf.mxu0  ;;  %v3034_v27 = vadd.bf16 1077952576, %v7032_v45  ;;  %v7832_v10 = vpack.c.bf16 %v6881_v40, %v6852_v24  ;;  %v2767_v24 = vpack.c.bf16 %v6977_v33, %v6963_v3  ;;  %v3033_v40 = vadd.bf16 1077952576, %v7045_v0 }
 0x21d   : > { %v3037_v34 = vadd.bf16 1077952576, %v2909_v21  ;;  %v2908_v35 = vadd.bf16 %v6035_v7, %v2772_v12  ;;  %v3026_v9 = vadd.bf16 1077952576, %v7039_v38  ;;  %v2904_v39 = vadd.bf16 %v6035_v7, %v2768_v53 }
 0x21e   : > { %v7036_v61 = vpop.f32.mrf.mxu0  ;;  %v7061_v51 = vadd.bf16 %v6035_v7, %v7832_v10  ;;  %v3162_v11 = vmax.bf16 %v7807_v58, %v3034_v27  ;;  %v7833_v3 = vpack.c.bf16 %v6890_v36, %v6861_v50  ;;  %v3283_v41 = vmin.bf16 %v7810_v30, %v3155_v14 }
 0x21f   : > { %v3165_v46 = vmax.bf16 %v7807_v58, %v3037_v34  ;;  %v3036_v15 = vadd.bf16 1077952576, %v2908_v35  ;;  %v2766_v53 = vpack.c.bf16 %v6983_v62, %v6967_v19  ;;  %v3032_v27 = vadd.bf16 1077952576, %v2904_v39 }
 0x220   : > { %v7050_v16 = vpop.f32.mrf.mxu0  ;;  %v3025_v60 = vadd.bf16 1077952576, %v7061_v51  ;;  %v2896_v33 = vadd.bf16 %v6035_v7, %v7833_v3 }
 0x221   : > { %v3164_v12 = vmax.bf16 %v7807_v58, %v3036_v15  ;;  %v3293_v34 = vmin.bf16 %v7810_v30, %v3165_v46  ;;  %v3284_v46 = vmin.bf16 %v7810_v30, %v3156_v49  ;;  %v3154_v49 = vmax.bf16 %v7807_v58, %v3026_v9 }
 0x222   : > { %v7064_v52 = vpop.f32.mrf.mxu0  ;;  %v3153_v62 = vmax.bf16 %v7807_v58, %v3025_v60  ;;  %v3024_v14 = vadd.bf16 1077952576, %v2896_v33  ;;  %v3411_v9 = vmul.bf16 %v3283_v41, %v7021_v2  ;;  %v7835_v2 = vpack.c.bf16 %v6839_v44, %v6807_v54 }
 0x223   : > { %v3421_v4 = vmul.bf16 %v3293_v34, %v2909_v21  ;;  %v3292_v48 = vmin.bf16 %v7810_v30, %v3164_v12  ;;  %v3291_v21 = vmin.bf16 %v7810_v30, %v3163_v18  ;;  %v3290_v12 = vmin.bf16 %v7810_v30, %v3162_v11 }
 0x224   : > { %v7074_v10 = vpop.f32.mrf.mxu0  ;;  %v2894_v3 = vadd.bf16 %v6035_v7, %v7835_v2  ;;  %v3281_v41 = vmin.bf16 %v7810_v30, %v3153_v62 }
 0x225   : > { %4997 = vmatprep.subr.bf16.mxu1 %v3421_v4  ;;  %v3420_v23 = vmul.bf16 %v3292_v48, %v2908_v35  ;;  %v3412_v4 = vmul.bf16 %v3284_v46, %v7015_v20  ;;  %v2903_v35 = vadd.bf16 %v6035_v7, %v2767_v24  ;;  %v3419_v36 = vmul.bf16 %v3291_v21, %v7018_v32 }
 0x226   : > { %v7079_v34 = vpop.f32.mrf.mxu0  ;;  %4998 = vmatpush3.bf16.msra.mxu1 %v3413_v28  ;;  %v3161_v28 = vmax.bf16 %v7807_v58, %v3033_v40  ;;  %v7834_v20 = vpack.c.bf16 %v6823_v56, %v6798_v13  ;;  %v3282_v32 = vmin.bf16 %v7810_v30, %v3154_v49  ;;  %v2902_v24 = vadd.bf16 %v6035_v7, %v2766_v53 }
 0x227   : > { %4999 = vmatprep.subr.bf16.mxu1 %v3420_v23  ;;  %v3031_v11 = vadd.bf16 1077952576, %v2903_v35  ;;  %v3160_v56 = vmax.bf16 %v7807_v58, %v3032_v27  ;;  %v3418_v13 = vmul.bf16 %v3290_v12, %v7032_v45  ;;  %v3152_v49 = vmax.bf16 %v7807_v58, %v3024_v14 }
 0x228   : > { %v7093_v18 = vpop.f32.mrf.mxu0  ;;  %v2895_v19 = vadd.bf16 %v6035_v7, %v7834_v20  ;;  %v3289_v40 = vmin.bf16 %v7810_v30, %v3161_v28  ;;  %v3030_v28 = vadd.bf16 1077952576, %v2902_v24  ;;  %v3022_v44 = vadd.bf16 1077952576, %v2894_v3 }
 0x229   : > { %v2777_v50 = vpack.c.bf16 %v7093_v18, %v7074_v10  ;;  %v3159_v45 = vmax.bf16 %v7807_v58, %v3031_v11  ;;  %v3409_v20 = vmul.bf16 %v3281_v41, %v7061_v51 }
 0x22a   : > { %v7099_v23 = vpop.f32.mrf.mxu0  ;;  %5000 = vmatpush3.bf16.msra.mxu1 %v3412_v4  ;;  %v3023_v60 = vadd.bf16 1077952576, %v2895_v19  ;;  %v3410_v4 = vmul.bf16 %v3282_v32, %v7039_v38  ;;  %v3417_v27 = vmul.bf16 %v3289_v40, %v7045_v0  ;;  %v3280_v38 = vmin.bf16 %v7810_v30, %v3152_v49 }
 0x22b   : > { %5001 = vmatprep.subr.bf16.mxu1 %v3419_v36  ;;  %v3288_v36 = vmin.bf16 %v7810_v30, %v3160_v56  ;;  %v3158_v14 = vmax.bf16 %v7807_v58, %v3030_v28  ;;  %v3287_v0 = vmin.bf16 %v7810_v30, %v3159_v45  ;;  %v3150_v56 = vmax.bf16 %v7807_v58, %v3022_v44 }
 0x22c   : > { %v7110_v46 = vpop.f32.mrf.mxu0  ;;  %v3151_v54 = vmax.bf16 %v7807_v58, %v3023_v60 }
 0x22d   : > { %v3415_v51 = vmul.bf16 %v3287_v0, %v2903_v35  ;;  %v3286_v60 = vmin.bf16 %v7810_v30, %v3158_v14  ;;  %v3498_v35 = vld [vmem:[%s7752_s1 + $0xe0] sm:$0xff] }
 0x22e   : > { %v7116_v21 = vpop.f32.mrf.mxu0  ;;  %5002 = vmatpush3.bf16.msra.mxu1 %v3411_v9  ;;  %v3416_v9 = vmul.bf16 %v3288_v36, %v2904_v39  ;;  %v3279_v11 = vmin.bf16 %v7810_v30, %v3151_v54  ;;  %v3278_v39 = vmin.bf16 %v7810_v30, %v3150_v56 }
 0x22f   : > { %5003 = vmatprep.subr.bf16.mxu1 %v3418_v13  ;;  %v3408_v13 = vmul.bf16 %v3280_v38, %v2896_v33  ;;  %v3490_v33 = vld [vmem:[%s7752_s1 + $0xa0] sm:$0xff] }
 0x230   : > { %v7125_v53 = vpop.f32.mrf.mxu0  ;;  %v3407_v41 = vmul.bf16 %v3279_v11, %v2895_v19  ;;  %v3406_v28 = vmul.bf16 %v3278_v39, %v2894_v3  ;;  %v4707_v19 = vcombine.low %v6990_v22, %v6995_v47  ;;  %v7168_v3 = vld [vmem:[%s7752_s1 + $0x28] sm:$0xff] }
 0x231   : > { %v7173_v22 = vld [vmem:[%s7752_s1 + $0x68] sm:$0xff] }
 0x232   : > { %v7130_v12 = vpop.f32.mrf.mxu0  ;;  %5004 = vmatpush3.bf16.msra.mxu1 %v3410_v4  ;;  %v3414_v4 = vmul.bf16 %v3286_v60, %v2902_v24  ;;  %v4724_v24 = vcombine.high %v3490_v33, %v3498_v35  ;;  %v4710_v56 = vcombine.high %v7168_v3, %v7173_v22 }
 0x233   : > { %5005 = vmatprep.subr.bf16.mxu1 %v3417_v27 }
 0x234   : > { %v7135_v62 = vpop.f32.mrf.mxu0 }
 0x236   : > { %v7139_v32 = vpop.f32.mrf.mxu0  ;;  %5006 = vmatpush3.bf16.msra.mxu1 %v3409_v20 }
 0x237   : > { %5007 = vmatprep.subr.bf16.mxu1 %v3416_v9  ;;  %v4723_v9 = vcombine.low %v3490_v33, %v3498_v35 }
 0x238   : > { %v5304_v40 = vpop.f32.mrf.mxu0 }
 0x239   : > { %v2781_v35 = vpack.c.bf16 %v5304_v40, %v7135_v62  ;;  %v2779_v62 = vpack.c.bf16 %v7125_v53, %v7110_v46 }
 0x23a   : > { %v2362_v2 = vpop.f32.mrf.mxu0  ;;  %5008 = vmatpush3.bf16.msra.mxu1 %v3408_v13 }
 0x23b   : > { %5009 = vmatprep.subr.bf16.mxu1 %v3415_v51 }
 0x23c   : > { %v7145_v49 = vpop.f32.mrf.mxu0 }
 0x23e   : > { %v7147_v45 = vpop.f32.mrf.mxu0  ;;  %5010 = vmatpush3.bf16.msra.mxu1 %v3407_v41 }
 0x23f   : > { %5011 = vmatprep.subr.bf16.mxu1 %v3414_v4 }
 0x240   : > { %v7155_v27 = vpop.f32.mrf.mxu0 }
 0x242   : > { %v7159_v36 = vpop.f32.mrf.mxu0  ;;  %5012 = vmatpush3.bf16.msra.mxu1 %v3406_v28 }
 0x244   : > { %v7161_v54 = vpop.f32.mrf.mxu0 }
 0x245   : > { %3891 = vmatmul.mubr.bf16.vlgmr.msra.gmra.mxu1 %v4707_v19  ;;  %v4929_v44 = vpop.f32.mrf.mxu1 }
 0x246   : > { %v7163_v20 = vpop.f32.mrf.mxu0  ;;  %3898 = vmatprep.mubr.bf16.mxu1 %v4724_v24 }
 0x247   : > { %v4930_v47 = vpop.f32.mrf.mxu1 }
 0x248   : > { %v5312_v38 = vpop.f32.mrf.mxu0  ;;  %v4931_v14 = vadd.f32 %v4930_v47, %v4929_v44 }
 0x249   : > { %v4932_v0 = vpop.f32.mrf.mxu1 }
 0x24a   : > { %v7175_v11 = vpop.f32.mrf.mxu0  ;;  %v7180_v13 = vadd.f32 %v4931_v14, %v6997_v6 }
 0x24b   : > { %v4933_v51 = vpop.f32.mrf.mxu1 }
 0x24c   : > { %v5315_v60 = vpop.f32.mrf.mxu0  ;;  %v4934_v41 = vadd.f32 %v4933_v51, %v4932_v0  ;;  %v2917_v0 = vadd.bf16 %v6035_v7, %v2781_v35 }
 0x24d   : > { %3899 = vmatmul.mubr.bf16.gmra.mxu1 %v4723_v9  ;;  %v4935_v39 = vpop.f32.mrf.mxu1  ;;  %v2780_v9 = vpack.c.bf16 %v2362_v2, %v7139_v32  ;;  %v7199_v32 = vadd.bf16 %v6035_v7, %v2779_v62  ;;  %v2778_v2 = vpack.c.bf16 %v7130_v12, %v7116_v21 }
 0x24e   : > { %v2407_v4 = vpop.f32.mrf.mxu0  ;;  %3939 = vmatprep.mubr.bf16.mxu1 %v4710_v56  ;;  %v7183_v28 = vadd.f32 %v4934_v41, %v7003_v25  ;;  %v3045_v40 = vadd.bf16 1077952576, %v2917_v0 }
 0x24f   : > { %v4936_v33 = vpop.f32.mrf.mxu1 }
 0x250   : > { %v5316_v19 = vpop.f32.mrf.mxu0  ;;  %v4937_v24 = vadd.f32 %v4936_v33, %v4935_v39  ;;  %v2916_v39 = vadd.bf16 %v6035_v7, %v2780_v9  ;;  %v3173_v46 = vmax.bf16 %v7807_v58, %v3045_v40  ;;  %v7210_v9 = vadd.bf16 %v6035_v7, %v2778_v2 }
 0x251   : > { %v4938_v44 = vpop.f32.mrf.mxu1  ;;  %v2787_v15 = vpack.c.bf16 %v5316_v19, %v5315_v60  ;;  %v2785_v19 = vpack.c.bf16 %v5312_v38, %v7161_v54  ;;  %v2784_v38 = vpack.c.bf16 %v7175_v11, %v7163_v20 }
 0x252   : > { %v2410_v47 = vpop.f32.mrf.mxu0  ;;  %v7187_v6 = vadd.f32 %v4937_v24, %v7006_v63  ;;  %v3044_v53 = vadd.bf16 1077952576, %v2916_v39 }
 0x253   : > { %v4939_v14 = vpop.f32.mrf.mxu1  ;;  %v2923_v33 = vadd.bf16 %v6035_v7, %v2787_v15  ;;  %v2786_v24 = vpack.c.bf16 %v2410_v47, %v2407_v4  ;;  %v7216_v54 = vadd.bf16 %v6035_v7, %v2785_v19  ;;  %v7237_v10 = vadd.bf16 %v6035_v7, %v2784_v38 }
 0x254   : > { %v5319_v51 = vpop.f32.mrf.mxu0  ;;  %v4940_v56 = vadd.f32 %v4939_v14, %v4938_v44  ;;  %v3043_v14 = vadd.bf16 1077952576, %v7199_v32  ;;  %v7837_v38 = vpack.c.bf16 %v7050_v16, %v7029_v31 }
 0x255   : > { %v3051_v44 = vadd.bf16 1077952576, %v2923_v33  ;;  %v2922_v15 = vadd.bf16 %v6035_v7, %v2786_v24 }
 0x256   : > { %v2423_v25 = vpop.f32.mrf.mxu0  ;;  %v7192_v41 = vadd.f32 %v4940_v56, %v7010_v5  ;;  %v3171_v24 = vmax.bf16 %v7807_v58, %v3043_v14 }
 0x257   : > { %v3179_v56 = vmax.bf16 %v7807_v58, %v3051_v44  ;;  %v7836_v44 = vpack.c.bf16 %v7099_v23, %v7079_v34 }
 0x258   : > { %v5320_v63 = vpop.f32.mrf.mxu0 }
 0x259   : > { %v2789_v35 = vpack.c.bf16 %v5320_v63, %v5319_v51  ;;  %v3172_v51 = vmax.bf16 %v7807_v58, %v3044_v53  ;;  %v7227_v63 = vadd.bf16 %v6035_v7, %v2777_v50  ;;  %v3049_v53 = vadd.bf16 1077952576, %v7216_v54 }
 0x25a   : > { %v2426_v48 = vpop.f32.mrf.mxu0  ;;  %v3307_v19 = vmin.bf16 %v7810_v30, %v3179_v56 }
 0x25b   : > { %v2925_v5 = vadd.bf16 %v6035_v7, %v2789_v35  ;;  %v2788_v60 = vpack.c.bf16 %v2426_v48, %v2423_v25  ;;  %v3301_v48 = vmin.bf16 %v7810_v30, %v3173_v46  ;;  %v3050_v25 = vadd.bf16 1077952576, %v2922_v15 }
 0x25c   : > { %v3042_v35 = vadd.bf16 1077952576, %v7210_v9  ;;  %v2783_v46 = vpack.c.bf16 %v7155_v27, %v7145_v49  ;;  %v7248_v49 = vadd.bf16 %v6035_v7, %v7836_v44  ;;  %v3299_v27 = vmin.bf16 %v7810_v30, %v3171_v24 }
 0x25d   : > { %v3053_v4 = vadd.bf16 1077952576, %v2925_v5  ;;  %v2924_v47 = vadd.bf16 %v6035_v7, %v2788_v60  ;;  %v3429_v11 = vmul.bf16 %v3301_v48, %v2917_v0  ;;  %v3300_v60 = vmin.bf16 %v7810_v30, %v3172_v51 }
 0x25e   : > { %v3178_v18 = vmax.bf16 %v7807_v58, %v3050_v25  ;;  %v3041_v0 = vadd.bf16 1077952576, %v7227_v63  ;;  %v3048_v48 = vadd.bf16 1077952576, %v7237_v10  ;;  %v3435_v34 = vmul.bf16 %v3307_v19, %v2923_v33 }
 0x25f   : > { %v3181_v21 = vmax.bf16 %v7807_v58, %v3053_v4  ;;  %v3052_v12 = vadd.bf16 1077952576, %v2924_v47  ;;  %v3170_v4 = vmax.bf16 %v7807_v58, %v3042_v35  ;;  %v3428_v14 = vmul.bf16 %v3300_v60, %v2916_v39 }
 0x260   : > { %v3306_v23 = vmin.bf16 %v7810_v30, %v3178_v18  ;;  %v7266_v39 = vadd.bf16 %v6035_v7, %v7837_v38  ;;  %v3169_v56 = vmax.bf16 %v7807_v58, %v3041_v0  ;;  %v3427_v33 = vmul.bf16 %v3299_v27, %v7199_v32 }
 0x261   : > { %v3180_v62 = vmax.bf16 %v7807_v58, %v3052_v12  ;;  %v3309_v40 = vmin.bf16 %v7810_v30, %v3181_v21  ;;  %v2782_v21 = vpack.c.bf16 %v7159_v36, %v7147_v45  ;;  %v3177_v12 = vmax.bf16 %v7807_v58, %v3049_v53 }
 0x262   : > { %v2805_v45 = vpack.c.bf16 %v6706_v8, %v6696_v42  ;;  %v3040_v36 = vadd.bf16 1077952576, %v7248_v49  ;;  %v3298_v25 = vmin.bf16 %v7810_v30, %v3170_v4  ;;  %v3176_v31 = vmax.bf16 %v7807_v58, %v3048_v48 }
 0x263   : > { %v3437_v2 = vmul.bf16 %v3309_v40, %v2925_v5  ;;  %v3308_v20 = vmin.bf16 %v7810_v30, %v3180_v62  ;;  %v7241_v5 = vpop.f32.mrf.mxu0  ;;  %v7276_v40 = vadd.bf16 %v6035_v7, %v2782_v21  ;;  %v3434_v16 = vmul.bf16 %v3306_v23, %v2922_v15 }
 0x264   : > { %v3305_v24 = vmin.bf16 %v7810_v30, %v3177_v12  ;;  %v3039_v42 = vadd.bf16 1077952576, %v7266_v39  ;;  %v7284_v8 = vadd.bf16 %v6035_v7, %v2805_v45  ;;  %v2804_v32 = vpack.c.bf16 %v6716_v26, %v6702_v17 }
 0x265   : > { %5025 = vmatprep.subr.bf16.mxu1 %v3437_v2  ;;  %v3436_v50 = vmul.bf16 %v3308_v20, %v2924_v47  ;;  %v7253_v47 = vadd.bf16 %v6035_v7, %v2783_v46  ;;  %v7260_v51 = vpop.f32.mrf.mxu0  ;;  %v7838_v2 = vpack.c.bf16 %v7064_v52, %v7036_v61  ;;  %v3297_v15 = vmin.bf16 %v7810_v30, %v3169_v56 }
 0x266   : > { %5026 = vmatpush3.bf16.msra.mxu1 %v3429_v11  ;;  %v3168_v11 = vmax.bf16 %v7807_v58, %v3040_v36  ;;  %v3426_v60 = vmul.bf16 %v3298_v25, %v7210_v9  ;;  %v3046_v53 = vadd.bf16 1077952576, %v7276_v40  ;;  %v3433_v18 = vmul.bf16 %v3305_v24, %v7216_v54  ;;  %v7841_v36 = vld [vmem:[#allocation7_spill] sm:$0xff] }
 0x267   : > { %5027 = vmatprep.subr.bf16.mxu1 %v3436_v50  ;;  %v3047_v62 = vadd.bf16 1077952576, %v7253_v47  ;;  %v7280_v35 = vpop.f32.mrf.mxu0  ;;  %v7292_v20 = vadd.bf16 %v6035_v7, %v7838_v2  ;;  %v3304_v26 = vmin.bf16 %v7810_v30, %v3176_v31  ;;  %v7839_v61 = vpack.c.bf16 %v6538_v59, %v6515_v29  ;;  %v7845_v31 = vld [vmem:[#allocation8_spill] sm:$0xff] }
 0x268   : > { %v2796_v9 = vpack.c.bf16 %v6555_v1, %v6528_v37  ;;  %v2803_v50 = vpack.c.bf16 %v6687_v43, %v6671_v57  ;;  %v3069_v19 = vadd.bf16 1077952576, %v7284_v8  ;;  %v3167_v54 = vmax.bf16 %v7807_v58, %v3039_v42 }
 0x269   : > { %v3175_v46 = vmax.bf16 %v7807_v58, %v3047_v62  ;;  %v7300_v17 = vpop.f32.mrf.mxu0  ;;  %v7307_v52 = vadd.bf16 %v6035_v7, %v7839_v61  ;;  %v3038_v0 = vadd.bf16 1077952576, %v7292_v20  ;;  %v3425_v44 = vmul.bf16 %v3297_v15, %v7227_v63  ;;  %v7846_v61 = vld [vmem:[#allocation15_spill] sm:$0xff] }
 0x26a   : > { %5028 = vmatpush3.bf16.msra.mxu1 %v3428_v14  ;;  %v3296_v29 = vmin.bf16 %v7810_v30, %v3168_v11  ;;  %v7319_v59 = vadd.bf16 %v6035_v7, %v2804_v32  ;;  %v3174_v27 = vmax.bf16 %v7807_v58, %v3046_v53  ;;  %v3432_v37 = vmul.bf16 %v3304_v26, %v7237_v10  ;;  %v7840_v10 = vld [vmem:[#allocation17_spill] sm:$0xff] }
 0x26b   : > { %5029 = vmatprep.subr.bf16.mxu1 %v3435_v34  ;;  %v5327_v1 = vpop.f32.mrf.mxu0  ;;  %v3303_v57 = vmin.bf16 %v7810_v30, %v3175_v46  ;;  %v3061_v43 = vadd.bf16 1077952576, %v7307_v52  ;;  %v7326_v4 = vadd.bf16 %v6035_v7, %v2796_v9  ;;  %v7329_v63 = vadd.bf16 %v6035_v7, %v2803_v50  ;;  %v7847_v9 = vld [vmem:[#allocation13_spill] sm:$0xff] }
 0x26c   : > { %v3295_v14 = vmin.bf16 %v7810_v30, %v3167_v54  ;;  %v3166_v21 = vmax.bf16 %v7807_v58, %v3038_v0  ;;  %v3424_v12 = vmul.bf16 %v3296_v29, %v7248_v49  ;;  %v2802_v48 = vpack.c.bf16 %v7840_v10, %v6678_v55  ;;  %v7844_v49 = vld [vmem:[#allocation6_spill] sm:$0xff]  ;;  %v7850_v29 = vld [vmem:[#allocation16_spill] sm:$0xff] }
 0x26d   : > { %v3197_v34 = vmax.bf16 %v7807_v58, %v3069_v19  ;;  %v3068_v23 = vadd.bf16 1077952576, %v7319_v59  ;;  %v7338_v38 = vpop.f32.mrf.mxu0  ;;  %v3431_v56 = vmul.bf16 %v3303_v57, %v7253_v47  ;;  %v3302_v45 = vmin.bf16 %v7810_v30, %v3174_v27  ;;  %v7381_v54 = vld [vmem:[%s7752_s1 + $0xe8] sm:$0xff] }
 0x26e   : > { %5030 = vmatpush3.bf16.msra.mxu1 %v3427_v33  ;;  %v7842_v33 = vld [vmem:[#allocation5_spill] sm:$0xff]  ;;  %v2794_v55 = vpack.c.bf16 %v7845_v31, %v7844_v49  ;;  %v3060_v24 = vadd.bf16 1077952576, %v7326_v4  ;;  %v3423_v42 = vmul.bf16 %v3295_v14, %v7266_v39  ;;  %v3294_v47 = vmin.bf16 %v7810_v30, %v3166_v21  ;;  %v7851_v49 = vld [vmem:[#allocation10_spill] sm:$0xff]  ;;  %v7852_v31 = vld [vmem:[#allocation12_spill] sm:$0xff] }
 0x26f   : > { %5031 = vmatprep.subr.bf16.mxu1 %v3434_v16  ;;  %v7843_v25 = vpack.c.bf16 %v7841_v36, %v7842_v33  ;;  %v3189_v16 = vmax.bf16 %v7807_v58, %v3061_v43  ;;  %v3067_v32 = vadd.bf16 1077952576, %v7329_v63  ;;  %v7356_v2 = vadd.bf16 %v6035_v7, %v2802_v48  ;;  %v5328_v11 = vpop.f32.mrf.mxu0 }
 0x270   : > { %v3196_v15 = vmax.bf16 %v7807_v58, %v3068_v23  ;;  %v3325_v46 = vmin.bf16 %v7810_v30, %v3197_v34  ;;  %v3188_v26 = vmax.bf16 %v7807_v58, %v3060_v24  ;;  %v7848_v50 = vpack.c.bf16 %v7846_v61, %v7847_v9  ;;  %v7853_v24 = vld [vmem:[#allocation11_spill] sm:$0xff] }
 0x271   : > { %v7346_v62 = vadd.bf16 %v6035_v7, %v7843_v25  ;;  %v3317_v39 = vmin.bf16 %v7810_v30, %v3189_v16  ;;  %v3422_v0 = vmul.bf16 %v3294_v47, %v7292_v20  ;;  %v2793_v57 = vpack.c.bf16 %v5328_v11, %v5327_v1  ;;  %v2458_v14 = vpop.f32.mrf.mxu0  ;;  %v7425_v11 = vld [vmem:[%s7752_s1 + $0x30] sm:$0xff] }
 0x272   : > { %5032 = vmatpush3.bf16.msra.mxu1 %v3426_v60  ;;  %v3430_v60 = vmul.bf16 %v3302_v45, %v7276_v40  ;;  %v7371_v19 = vadd.bf16 %v6035_v7, %v7848_v50  ;;  %v7376_v40 = vld [vmem:[%s7752_s1 + $0xa8] sm:$0xff]  ;;  %v3066_v43 = vadd.bf16 1077952576, %v7356_v2  ;;  %v3453_v21 = vmul.bf16 %v3325_v46, %v7284_v8 }
 0x273   : > { %5033 = vmatprep.subr.bf16.mxu1 %v3433_v18  ;;  %v3059_v53 = vadd.bf16 1077952576, %v7346_v62  ;;  %v7363_v18 = vadd.bf16 %v6035_v7, %v2794_v55  ;;  %v3324_v10 = vmin.bf16 %v7810_v30, %v3196_v15  ;;  %v4726_v20 = vcombine.high %v7376_v40, %v7381_v54 }
 0x274   : > { %v3316_v1 = vmin.bf16 %v7810_v30, %v3188_v26  ;;  %v3445_v23 = vmul.bf16 %v3317_v39, %v7307_v52  ;;  %v3065_v8 = vadd.bf16 1077952576, %v7371_v19  ;;  %v3194_v45 = vmax.bf16 %v7807_v58, %v3066_v43 }
 0x275   : > { %v3187_v48 = vmax.bf16 %v7807_v58, %v3059_v53  ;;  %v3058_v34 = vadd.bf16 1077952576, %v7363_v18  ;;  %v3452_v36 = vmul.bf16 %v3324_v10, %v7319_v59  ;;  %v2798_v55 = vpack.c.bf16 %v7852_v31, %v7851_v49  ;;  %v7861_v49 = vld [vmem:[#allocation49_spill] sm:$0xff] }
 0x276   : > { %5034 = vmatpush3.bf16.msra.mxu1 %v3425_v44  ;;  %v7849_v44 = vld [vmem:[#allocation14_spill] sm:$0xff]  ;;  %v3444_v16 = vmul.bf16 %v3316_v1, %v7326_v4  ;;  %v2791_v59 = vpack.c.bf16 %v7280_v35, %v7241_v5  ;;  %v7430_v4 = vld [vmem:[%s7752_s1 + $0x70] sm:$0xff]  ;;  %v4725_v26 = vcombine.low %v7376_v40, %v7381_v54  ;;  %v3322_v61 = vmin.bf16 %v7810_v30, %v3194_v45 }
 0x277   : > { %5035 = vmatprep.subr.bf16.mxu1 %v3432_v37  ;;  %v2800_v27 = vpack.c.bf16 %v7850_v29, %v7849_v44  ;;  %v3195_v37 = vmax.bf16 %v7807_v58, %v3067_v32  ;;  %v3315_v52 = vmin.bf16 %v7810_v30, %v3187_v48  ;;  %v7443_v50 = vadd.bf16 %v6035_v7, %v2798_v55 }
 0x278   : > { %v4712_v44 = vcombine.high %v7425_v11, %v7430_v4  ;;  %v7454_v40 = vadd.bf16 %v6035_v7, %v2791_v59  ;;  %v3450_v10 = vmul.bf16 %v3322_v61, %v7356_v2  ;;  %v7862_v59 = vld [vmem:[#allocation31_spill] sm:$0xff] }
 0x279   : > { %v3323_v33 = vmin.bf16 %v7810_v30, %v3195_v37  ;;  %v3443_v29 = vmul.bf16 %v3315_v52, %v7346_v62  ;;  %v2790_v37 = vpack.c.bf16 %v7300_v17, %v7260_v51  ;;  %v7856_v62 = vld [vmem:[#allocation46_spill] sm:$0xff] }
 0x27a   : > { %5036 = vmatpush3.bf16.msra.mxu1 %v3424_v12  ;;  %v4709_v12 = vcombine.low %v7168_v3, %v7173_v22  ;;  %v2792_v3 = vpack.c.bf16 %v2458_v14, %v7338_v38  ;;  %v7404_v22 = vadd.bf16 %v6035_v7, %v2800_v27  ;;  %v3186_v38 = vmax.bf16 %v7807_v58, %v3058_v34 }
 0x27b   : > { %5037 = vmatprep.subr.bf16.mxu1 %v3431_v56  ;;  %v7400_v56 = vadd.bf16 %v6035_v7, %v2793_v57  ;;  %v3451_v39 = vmul.bf16 %v3323_v33, %v7329_v63  ;;  %v3062_v34 = vadd.bf16 1077952576, %v7443_v50  ;;  %v3055_v45 = vadd.bf16 1077952576, %v7454_v40 }
 0x27c   : > { %v7435_v53 = vadd.bf16 %v6035_v7, %v2792_v3  ;;  %v3064_v35 = vadd.bf16 1077952576, %v7404_v22  ;;  %v3314_v63 = vmin.bf16 %v7810_v30, %v3186_v38 }
 0x27d   : > { %v3057_v46 = vadd.bf16 1077952576, %v7400_v56 }
 0x27e   : > { %5038 = vmatpush3.bf16.msra.mxu1 %v3423_v42  ;;  %v7854_v42 = vld [vmem:[#allocation9_spill] sm:$0xff]  ;;  %v3056_v57 = vadd.bf16 1077952576, %v7435_v53  ;;  %v3192_v14 = vmax.bf16 %v7807_v58, %v3064_v35  ;;  %v3442_v17 = vmul.bf16 %v3314_v63, %v7363_v18  ;;  %v7860_v18 = vld [vmem:[#allocation47_spill] sm:$0xff]  ;;  %v7865_v35 = vld [vmem:[#allocation44_spill] sm:$0xff] }
 0x27f   : > { %5039 = vmatprep.subr.bf16.mxu1 %v3430_v60  ;;  %v7855_v47 = vpack.c.bf16 %v7853_v24, %v7854_v42  ;;  %v3193_v60 = vmax.bf16 %v7807_v58, %v3065_v8  ;;  %v7859_v8 = vld [vmem:[#allocation32_spill] sm:$0xff]  ;;  %v2820_v31 = vpack.c.bf16 %v7861_v49, %v7860_v18  ;;  %v3190_v24 = vmax.bf16 %v7807_v58, %v3062_v34 }
 0x280   : > { %v3320_v38 = vmin.bf16 %v7810_v30, %v3192_v14 }
 0x281   : > { %v7418_v32 = vadd.bf16 %v6035_v7, %v7855_v47  ;;  %v3321_v48 = vmin.bf16 %v7810_v30, %v3193_v60  ;;  %v3318_v14 = vmin.bf16 %v7810_v30, %v3190_v24 }
 0x282   : > { %5040 = vmatpush3.bf16.msra.mxu1 %v3422_v0  ;;  %v3448_v63 = vmul.bf16 %v3320_v38, %v7404_v22 }
 0x283   : > { %5053 = vmatprep.subr.bf16.mxu1 %v3453_v21  ;;  %v3063_v27 = vadd.bf16 1077952576, %v7418_v32  ;;  %v7857_v21 = vld [vmem:[#allocation48_spill] sm:$0xff]  ;;  %v3449_v55 = vmul.bf16 %v3321_v48, %v7371_v19 }
 0x285   : > { %3940 = vmatmul.mubr.bf16.vlgmr.msra.gmra.mxu1 %v4709_v12  ;;  %v4957_v25 = vpop.f32.mrf.mxu1  ;;  %v2821_v12 = vpack.c.bf16 %v7857_v21, %v7856_v62  ;;  %v3191_v1 = vmax.bf16 %v7807_v58, %v3063_v27 }
 0x286   : > { %5054 = vmatpush3.bf16.msra.mxu1 %v3445_v23  ;;  %3947 = vmatprep.mubr.bf16.mxu1 %v4726_v20  ;;  %v7858_v23 = vld [vmem:[#allocation30_spill] sm:$0xff] }
 0x287   : > { %5055 = vmatprep.subr.bf16.mxu1 %v3452_v36  ;;  %v4958_v15 = vpop.f32.mrf.mxu1  ;;  %v2813_v3 = vpack.c.bf16 %v7859_v8, %v7858_v23  ;;  %v7475_v36 = vadd.bf16 %v6035_v7, %v2790_v37  ;;  %v7480_v52 = vadd.bf16 %v6035_v7, %v2821_v12  ;;  %v3319_v27 = vmin.bf16 %v7810_v30, %v3191_v1  ;;  %v7866_v37 = vld [vmem:[#allocation26_spill] sm:$0xff]  ;;  %v7868_v12 = vld [vmem:[#allocation43_spill] sm:$0xff]  ;;  %v7871_v8 = vld [vmem:[#allocation29_spill] sm:$0xff] }
 0x288   : > { %v4959_v5 = vadd.f32 %v4958_v15, %v4957_v25  ;;  %v3184_v25 = vmax.bf16 %v7807_v58, %v3056_v57  ;;  %v7863_v15 = vld [vmem:[#allocation33_spill] sm:$0xff]  ;;  %v7870_v23 = vld [vmem:[#allocation27_spill] sm:$0xff] }
 0x289   : > { %v4960_v9 = vpop.f32.mrf.mxu1  ;;  %v7491_v47 = vadd.bf16 %v6035_v7, %v2813_v3  ;;  %v2812_v60 = vpack.c.bf16 %v7863_v15, %v7862_v59  ;;  %v2810_v3 = vpack.c.bf16 %v7871_v8, %v7870_v23  ;;  %v3492_v15 = vld [vmem:[%s7752_s1 + $0xb0] sm:$0xff] }
 0x28a   : > { %5056 = vmatpush3.bf16.msra.mxu1 %v3444_v16  ;;  %v7446_v0 = vadd.f32 %v4959_v5, %v7180_v13  ;;  %v3185_v13 = vmax.bf16 %v7807_v58, %v3057_v46  ;;  %v3183_v46 = vmax.bf16 %v7807_v58, %v3055_v45  ;;  %v7864_v5 = vld [vmem:[#allocation42_spill] sm:$0xff] }
 0x28b   : > { %5057 = vmatprep.subr.bf16.mxu1 %v3451_v39  ;;  %v4961_v54 = vpop.f32.mrf.mxu1  ;;  %v2819_v19 = vpack.c.bf16 %v7865_v35, %v7864_v5  ;;  %v7548_v24 = vadd.bf16 %v6035_v7, %v2810_v3  ;;  %v7875_v5 = vld [vmem:[#allocation41_spill] sm:$0xff]  ;;  %v7602_v3 = vld [vmem:[%s7752_s1 + $0x78] sm:$0xff] }
 0x28c   : > { %v4962_v43 = vadd.f32 %v4961_v54, %v4960_v9  ;;  %v3313_v33 = vmin.bf16 %v7810_v30, %v3185_v13  ;;  %v7867_v13 = vld [vmem:[#allocation28_spill] sm:$0xff]  ;;  %v3311_v62 = vmin.bf16 %v7810_v30, %v3183_v46  ;;  %v7874_v46 = vld [vmem:[#allocation39_spill] sm:$0xff] }
 0x28d   : > { %3948 = vmatmul.mubr.bf16.gmra.mxu1 %v4725_v26  ;;  %v4963_v20 = vpop.f32.mrf.mxu1  ;;  %v3054_v26 = vadd.bf16 1077952576, %v7475_v36  ;;  %v2811_v57 = vpack.c.bf16 %v7867_v13, %v7866_v37  ;;  %v7519_v22 = vadd.bf16 %v6035_v7, %v2819_v19  ;;  %v2816_v35 = vpack.c.bf16 %v7875_v5, %v7874_v46 }
 0x28e   : > { %5058 = vmatpush3.bf16.msra.mxu1 %v3443_v29  ;;  %3988 = vmatprep.mubr.bf16.mxu1 %v4712_v44  ;;  %v7467_v51 = vadd.f32 %v4962_v43, %v7183_v28  ;;  %v3441_v61 = vmul.bf16 %v3313_v33, %v7400_v56  ;;  %v3085_v44 = vadd.bf16 1077952576, %v7480_v52  ;;  %v7503_v29 = vadd.bf16 %v6035_v7, %v2820_v31  ;;  %v7873_v33 = vld [vmem:[#allocation40_spill] sm:$0xff] }
 0x28f   : > { %5059 = vmatprep.subr.bf16.mxu1 %v3450_v10  ;;  %v4964_v2 = vpop.f32.mrf.mxu1  ;;  %v3077_v56 = vadd.bf16 1077952576, %v7491_v47  ;;  %v7514_v43 = vadd.bf16 %v6035_v7, %v2812_v60  ;;  %v3182_v21 = vmax.bf16 %v7807_v58, %v3054_v26  ;;  %v7869_v10 = vld [vmem:[#allocation45_spill] sm:$0xff]  ;;  %v7529_v1 = vadd.bf16 %v6035_v7, %v2811_v57 }
 0x290   : > { %v4965_v28 = vadd.f32 %v4964_v2, %v4963_v20  ;;  %v2818_v48 = vpack.c.bf16 %v7869_v10, %v7868_v12  ;;  %v3213_v20 = vmax.bf16 %v7807_v58, %v3085_v44  ;;  %v3084_v34 = vadd.bf16 1077952576, %v7503_v29  ;;  %v7872_v2 = vld [vmem:[#allocation38_spill] sm:$0xff] }
 0x291   : > { %v4966_v16 = vpop.f32.mrf.mxu1  ;;  %v3205_v45 = vmax.bf16 %v7807_v58, %v3077_v56  ;;  %v3083_v18 = vadd.bf16 1077952576, %v7519_v22 }
 0x292   : > { %5060 = vmatpush3.bf16.msra.mxu1 %v3442_v17  ;;  %v7488_v42 = vadd.f32 %v4965_v28, %v7187_v6  ;;  %v3312_v6 = vmin.bf16 %v7810_v30, %v3184_v25  ;;  %v3447_v17 = vmul.bf16 %v3319_v27, %v7418_v32  ;;  %v2817_v25 = vpack.c.bf16 %v7873_v33, %v7872_v2  ;;  %v7877_v27 = vld [vmem:[#allocation22_spill] sm:$0xff]  ;;  %v7884_v2 = vld [vmem:[#allocation35_spill] sm:$0xff]  ;;  %v7885_v33 = vld [vmem:[#allocation37_spill] sm:$0xff] }
 0x293   : > { %5061 = vmatprep.subr.bf16.mxu1 %v3449_v55  ;;  %v4967_v39 = vpop.f32.mrf.mxu1  ;;  %v3439_v28 = vmul.bf16 %v3311_v62, %v7454_v40  ;;  %v3310_v32 = vmin.bf16 %v7810_v30, %v3182_v21  ;;  %v7541_v49 = vadd.bf16 %v6035_v7, %v2818_v48  ;;  %v3212_v31 = vmax.bf16 %v7807_v58, %v3084_v34  ;;  %v7881_v48 = vld [vmem:[#allocation25_spill] sm:$0xff] }
 0x294   : > { %v4968_v9 = vadd.f32 %v4967_v39, %v4966_v16  ;;  %v3446_v55 = vmul.bf16 %v3318_v14, %v7443_v50  ;;  %v3341_v38 = vmin.bf16 %v7810_v30, %v3213_v20  ;;  %v3075_v16 = vadd.bf16 1077952576, %v7529_v1  ;;  %v3500_v50 = vld [vmem:[%s7752_s1 + $0xf0] sm:$0xff] }
 0x295   : > { %v3333_v40 = vmin.bf16 %v7810_v30, %v3205_v45  ;;  %v7559_v60 = vadd.bf16 %v6035_v7, %v2817_v25  ;;  %v3211_v19 = vmax.bf16 %v7807_v58, %v3083_v18  ;;  %v3438_v39 = vmul.bf16 %v3310_v32, %v7475_v36  ;;  %v7882_v20 = vld [vmem:[#allocation23_spill] sm:$0xff] }
 0x296   : > { %5062 = vmatpush3.bf16.msra.mxu1 %v3441_v61  ;;  %v7508_v54 = vadd.f32 %v4968_v9, %v7192_v41  ;;  %v3440_v41 = vmul.bf16 %v3312_v6, %v7435_v53  ;;  %v3076_v53 = vadd.bf16 1077952576, %v7514_v43  ;;  %v3082_v26 = vadd.bf16 1077952576, %v7541_v49 }
 0x297   : > { %5063 = vmatprep.subr.bf16.mxu1 %v3448_v63  ;;  %v3469_v61 = vmul.bf16 %v3341_v38, %v7480_v52  ;;  %v4711_v6 = vcombine.low %v7425_v11, %v7430_v4  ;;  %v3340_v9 = vmin.bf16 %v7810_v30, %v3212_v31  ;;  %v4728_v44 = vcombine.high %v3492_v15, %v3500_v50  ;;  %v7876_v63 = vld [vmem:[#allocation24_spill] sm:$0xff]  ;;  %v7879_v11 = vld [vmem:[#allocation34_spill] sm:$0xff] }
 0x298   : > { %v3204_v59 = vmax.bf16 %v7807_v58, %v3076_v53  ;;  %v7878_v37 = vpack.c.bf16 %v7876_v63, %v7877_v27  ;;  %v3203_v57 = vmax.bf16 %v7807_v58, %v3075_v16  ;;  %v3074_v36 = vadd.bf16 1077952576, %v7548_v24  ;;  %v7880_v4 = vld [vmem:[#allocation36_spill] sm:$0xff] }
 0x299   : > { %v3461_v52 = vmul.bf16 %v3333_v40, %v7491_v47  ;;  %v2815_v14 = vpack.c.bf16 %v7880_v4, %v7879_v11  ;;  %v3081_v62 = vadd.bf16 1077952576, %v7559_v60  ;;  %v2952_v21 = vadd.bf16 %v6035_v7, %v2816_v35  ;;  %v7886_v16 = vld [vmem:[#allocation20_spill] sm:$0xff]  ;;  %v7887_v40 = vld [vmem:[#allocation18_spill] sm:$0xff] }
 0x29a   : > { %5064 = vmatpush3.bf16.msra.mxu1 %v3440_v41  ;;  %v7574_v13 = vadd.bf16 %v6035_v7, %v7878_v37  ;;  %v3332_v56 = vmin.bf16 %v7810_v30, %v3204_v59  ;;  %v3210_v41 = vmax.bf16 %v7807_v58, %v3082_v26  ;;  %v3468_v12 = vmul.bf16 %v3340_v9, %v7503_v29  ;;  %v7597_v29 = vld [vmem:[%s7752_s1 + $0x38] sm:$0xff]  ;;  %v7890_v9 = vld [vmem:[#allocation19_spill] sm:$0xff] }
 0x29b   : > { %5065 = vmatprep.subr.bf16.mxu1 %v3447_v17  ;;  %v3339_v10 = vmin.bf16 %v7810_v30, %v3211_v19  ;;  %v7883_v34 = vpack.c.bf16 %v7881_v48, %v7882_v20  ;;  %v3331_v23 = vmin.bf16 %v7810_v30, %v3203_v57  ;;  %v3202_v8 = vmax.bf16 %v7807_v58, %v3074_v36 }
 0x29c   : > { %v3073_v47 = vadd.bf16 1077952576, %v7574_v13  ;;  %v3460_v45 = vmul.bf16 %v3332_v56, %v7514_v43  ;;  %v2951_v53 = vadd.bf16 %v6035_v7, %v2815_v14  ;;  %v2814_v25 = vpack.c.bf16 %v7885_v33, %v7884_v2  ;;  %v5597_v2 = vld [vmem:[%s7755_s4] sm:$0xff]  }
 0x29d   : > { %v2944_v17 = vadd.bf16 %v6035_v7, %v7883_v34  ;;  %v3080_v18 = vadd.bf16 1077952576, %v2952_v21  ;;  %v3467_v32 = vmul.bf16 %v3339_v10, %v7519_v22  ;;  %v4727_v31 = vcombine.low %v3492_v15, %v3500_v50 }
 0x29e   : > { %5066 = vmatpush3.bf16.msra.mxu1 %v3439_v28  ;;  %v3209_v28 = vmax.bf16 %v7807_v58, %v3081_v62  ;;  %v4714_v38 = vcombine.high %v7597_v29, %v7602_v3  ;;  %v7888_v43 = vpack.c.bf16 %v7886_v16, %v7887_v40  ;;  %v3201_v46 = vmax.bf16 %v7807_v58, %v3073_v47 }
 0x29f   : > { %5067 = vmatprep.subr.bf16.mxu1 %v3446_v55  ;;  %v3338_v55 = vmin.bf16 %v7810_v30, %v3210_v41  ;;  %v3072_v5 = vadd.bf16 1077952576, %v2944_v17  ;;  %v3459_v35 = vmul.bf16 %v3331_v23, %v7529_v1  ;;  %v3330_v22 = vmin.bf16 %v7810_v30, %v3202_v8  ;;  %v5594_v8 = vld [vmem:[%s7755_s4 + $0x18] sm:$0xff]  }
 0x2a0   : > { %v2943_v59 = vadd.bf16 %v6035_v7, %v7888_v43  ;;  %v3079_v15 = vadd.bf16 1077952576, %v2951_v53  ;;  %v2950_v50 = vadd.bf16 %v6035_v7, %v2814_v25  ;;  %v3208_v19 = vmax.bf16 %v7807_v58, %v3080_v18 }
 0x2a1   : > { %v3337_v26 = vmin.bf16 %v7810_v30, %v3209_v28  ;;  %v3329_v63 = vmin.bf16 %v7810_v30, %v3201_v46  ;;  %v3200_v27 = vmax.bf16 %v7807_v58, %v3072_v5  ;;  %v3458_v37 = vmul.bf16 %v3330_v22, %v7548_v24 }
 0x2a2   : > { %5068 = vmatpush3.bf16.msra.mxu1 %v3438_v39  ;;  %v3466_v39 = vmul.bf16 %v3338_v55, %v7541_v49  ;;  %v3207_v57 = vmax.bf16 %v7807_v58, %v3079_v15  ;;  %v3078_v49 = vadd.bf16 1077952576, %v2950_v50 }
 0x2a3   : > { %5081 = vmatprep.subr.bf16.mxu1 %v3469_v61  ;;  %v3071_v61 = vadd.bf16 1077952576, %v2943_v59  ;;  %v3465_v36 = vmul.bf16 %v3337_v26, %v7559_v60  ;;  %v3328_v4 = vmin.bf16 %v7810_v30, %v3200_v27 }
 0x2a4   : > { %v3206_v14 = vmax.bf16 %v7807_v58, %v3078_v49  ;;  %v3335_v24 = vmin.bf16 %v7810_v30, %v3207_v57 }
 0x2a5   : > { %3989 = vmatmul.mubr.bf16.vlgmr.msra.gmra.mxu1 %v4711_v6  ;;  %v7889_v6 = vld [vmem:[#allocation21_spill] sm:$0xff]  ;;  %v3199_v56 = vmax.bf16 %v7807_v58, %v3071_v61 }
 0x2a6   : > { %5082 = vmatpush3.bf16.msra.mxu1 %v3461_v52  ;;  %3996 = vmatprep.mubr.bf16.mxu1 %v4728_v44  ;;  %v7891_v44 = vpack.c.bf16 %v7889_v6, %v7890_v9  ;;  %v3336_v52 = vmin.bf16 %v7810_v30, %v3208_v19  ;;  %v3463_v10 = vmul.bf16 %v3335_v24, %v2951_v53 }
 0x2a7   : > { %5083 = vmatprep.subr.bf16.mxu1 %v3468_v12  ;;  %v3327_v60 = vmin.bf16 %v7810_v30, %v3199_v56  ;;  %v3456_v12 = vmul.bf16 %v3328_v4, %v2944_v17  ;;  %v3334_v47 = vmin.bf16 %v7810_v30, %v3206_v14  ;;  %v4713_v17 = vcombine.low %v7597_v29, %v7602_v3  ;;  %v5596_v29 = vld [vmem:[%s7755_s4 + $0x8] sm:$0xff]  }
 0x2a8   : > { %v2942_v1 = vadd.bf16 %v6035_v7, %v7891_v44  ;;  %v3457_v7 = vmul.bf16 %v3329_v63, %v7574_v13  ;;  %v3464_v62 = vmul.bf16 %v3336_v52, %v2952_v21  ;;  %v3493_v21 = vld [vmem:[%s7752_s1 + $0xb8] sm:$0xff] }
 0x2a9   : > { %v3455_v13 = vmul.bf16 %v3327_v60, %v2943_v59  ;;  %v3462_v20 = vmul.bf16 %v3334_v47, %v2950_v50 }
 0x2aa   : > { %5084 = vmatpush3.bf16.msra.mxu1 %v3460_v45  ;;  %v3070_v11 = vadd.bf16 1077952576, %v2942_v1  ;;  %v5595_v45 = vld [vmem:[%s7755_s4 + $0x10] sm:$0xff]  }
 0x2ab   : > { %5085 = vmatprep.subr.bf16.mxu1 %v3467_v32 }
 0x2ac   : > { %v3198_v41 = vmax.bf16 %v7807_v58, %v3070_v11  ;;  %v3501_v58 = vld [vmem:[%s7752_s1 + $0xf8] sm:$0xff] }
 0x2ad   : > { %3997 = vmatmul.mubr.bf16.gmra.mxu1 %v4727_v31  ;;  %v4730_v23 = vcombine.high %v3493_v21, %v3501_v58 }
 0x2ae   : > { %5086 = vmatpush3.bf16.msra.mxu1 %v3459_v35  ;;  %4037 = vmatprep.mubr.bf16.mxu1 %v4714_v38  ;;  %v3326_v48 = vmin.bf16 %v7810_v30, %v3198_v41  ;;  %v4729_v30 = vcombine.low %v3493_v21, %v3501_v58 }
 0x2af   : > { %5087 = vmatprep.subr.bf16.mxu1 %v3466_v39 }
 0x2b0   : > { %v3454_v34 = vmul.bf16 %v3326_v48, %v2942_v1 }
 0x2b2   : > { %5088 = vmatpush3.bf16.msra.mxu1 %v3458_v37 }
 0x2b3   : > { %5089 = vmatprep.subr.bf16.mxu1 %v3465_v36 }
 0x2b6   : > { %5090 = vmatpush3.bf16.msra.mxu1 %v3457_v7 }
 0x2b7   : > { %5091 = vmatprep.subr.bf16.mxu1 %v3464_v62 }
 0x2ba   : > { %5092 = vmatpush3.bf16.msra.mxu1 %v3456_v12 }
 0x2bb   : > { %5093 = vmatprep.subr.bf16.mxu1 %v3463_v10 }
 0x2be   : > { %5094 = vmatpush3.bf16.msra.mxu1 %v3455_v13 }
 0x2bf   : > { %5095 = vmatprep.subr.bf16.mxu1 %v3462_v20 }
 0x2c2   : > { %5096 = vmatpush3.bf16.msra.mxu1 %v3454_v34 }
 0x2c3   : > { %5385 = vmatprep.subr.bf16.mxu1 %v5594_v8 }
 0x2c5   : > { %4038 = vmatmul.mubr.bf16.vlgmr.msra.gmra.mxu1 %v4713_v17  ;;  %v4985_v53 = vpop.f32.mrf.mxu1 }
 0x2c6   : > { %4045 = vmatprep.mubr.bf16.mxu1 %v4730_v23  ;;  %5386 = vmatpush3.bf16.msra.mxu1 %v5594_v8 }
 0x2c7   : > { %5387 = vmatprep.subr.bf16.mxu1 %v5595_v45  ;;  %v4986_v3 = vpop.f32.mrf.mxu1 }
 0x2c8   : > { %v4987_v57 = vadd.f32 %v4986_v3, %v4985_v53 }
 0x2c9   : > { %v4988_v33 = vpop.f32.mrf.mxu1 }
 0x2ca   : > { %5388 = vmatpush3.bf16.msra.mxu1 %v5595_v45  ;;  %v3844_v7 = vadd.f32 %v4987_v57, %v7446_v0 }
 0x2cb   : > { %5389 = vmatprep.subr.bf16.mxu1 %v5596_v29  ;;  %v4989_v25 = vpop.f32.mrf.mxu1 }
 0x2cc   : > { %v4990_v49 = vadd.f32 %v4989_v25, %v4988_v33 }
 0x2cd   : > { %4046 = vmatmul.mubr.bf16.gmra.mxu1 %v4729_v30  ;;  %v4991_v28 = vpop.f32.mrf.mxu1 }
 0x2ce   : > { %5390 = vmatpush3.bf16.msra.mxu1 %v5596_v29  ;;  %v3847_v4 = vadd.f32 %v4990_v49, %v7467_v51 }
 0x2cf   : > { %5391 = vmatprep.subr.bf16.mxu1 %v5597_v2  ;;  %v4992_v18 = vpop.f32.mrf.mxu1 }
 0x2d0   : > { %v4993_v47 = vadd.f32 %v4992_v18, %v4991_v28 }
 0x2d1   : > { %v4994_v32 = vpop.f32.mrf.mxu1 }
 0x2d2   : > { %5392 = vmatpush3.bf16.msra.mxu1 %v5597_v2  ;;  %v3852_v51 = vadd.f32 %v4993_v47, %v7488_v42 }
 0x2d3   : > { %v4995_v31 = vpop.f32.mrf.mxu1 }
 0x2d4   : > { %v4996_v13 = vadd.f32 %v4995_v31, %v4994_v32 }
 0x2d6   : > { %v3855_v45 = vadd.f32 %v4996_v13, %v7508_v54 }
 0x305   : > { %v5013_v55 = vpop.f32.mrf.mxu1 }
 0x307   : > { %v5014_v38 = vpop.f32.mrf.mxu1 }
 0x308   : > { %v5015_v52 = vadd.f32 %v5014_v38, %v5013_v55 }
 0x309   : > { %v5016_v16 = vpop.f32.mrf.mxu1 }
 0x30a   : > { %v3893_v60 = vadd.f32 %v5015_v52, %v3844_v7 }
 0x30b   : > { %v5017_v40 = vpop.f32.mrf.mxu1 }
 0x30c   : > { %v5018_v56 = vadd.f32 %v5017_v40, %v5016_v16 }
 0x30d   : > { %v5019_v43 = vpop.f32.mrf.mxu1 }
 0x30e   : > { %v3896_v41 = vadd.f32 %v5018_v56, %v3847_v4  ;;  %v5598_v4 = vld [vmem:[%s7758_s7 + $0x38] sm:$0xff]  }
 0x30f   : > { %v5020_v59 = vpop.f32.mrf.mxu1  ;;  %5397 = vmatprep.subr.bf16.mxu1 %v5598_v4 }
 0x310   : > { %v5021_v34 = vadd.f32 %v5020_v59, %v5019_v43 }
 0x311   : > { %v5022_v46 = vpop.f32.mrf.mxu1 }
 0x312   : > { %v3901_v25 = vadd.f32 %v5021_v34, %v3852_v51 }
 0x313   : > { %v5023_v5 = vpop.f32.mrf.mxu1 }
 0x314   : > { %v5024_v23 = vadd.f32 %v5023_v5, %v5022_v46 }
 0x316   : > { %v3904_v18 = vadd.f32 %v5024_v23, %v3855_v45  ;;  %v4737_v45 = vld [vmem:[%s7756_s5] ss:$0 sm:$0xff] }
 0x345   : > { %v5041_v35 = vpop.f32.mrf.mxu1 }
 0x347   : > { %v5042_v22 = vpop.f32.mrf.mxu1 }
 0x348   : > { %v5043_v14 = vadd.f32 %v5042_v22, %v5041_v35 }
 0x349   : > { %v5044_v15 = vpop.f32.mrf.mxu1 }
 0x34a   : > { %v3942_v20 = vadd.f32 %v5043_v14, %v3893_v60  ;;  %v5599_v14 = vld [vmem:[%s7758_s7 + $0x30] sm:$0xff]   ;;  %v5602_v60 = vld [vmem:[%s7758_s7 + $0x18] sm:$0xff]  }
 0x34b   : > { %v5045_v50 = vpop.f32.mrf.mxu1 }
 0x34c   : > { %v5046_v62 = vadd.f32 %v5045_v50, %v5044_v15 }
 0x34d   : > { %v5047_v19 = vpop.f32.mrf.mxu1 }
 0x34e   : > { %v3945_v21 = vadd.f32 %v5046_v62, %v3896_v41  ;;  %v5600_v62 = vld [vmem:[%s7758_s7 + $0x28] sm:$0xff]   ;;  %v5603_v41 = vld [vmem:[%s7758_s7 + $0x10] sm:$0xff]  }
 0x34f   : > { %v5048_v39 = vpop.f32.mrf.mxu1 }
 0x350   : > { %v5049_v29 = vadd.f32 %v5048_v39, %v5047_v19 }
 0x351   : > { %v5050_v26 = vpop.f32.mrf.mxu1 }
 0x352   : > { %v3950_v16 = vadd.f32 %v5049_v29, %v3901_v25  ;;  %v4738_v29 = vld [vmem:[%s7757_s6] ss:$0 sm:$0xff] }
 0x353   : > { %v5051_v61 = vpop.f32.mrf.mxu1 }
 0x354   : > { %v5052_v3 = vadd.f32 %v5051_v61, %v5050_v26 }
 0x356   : > { %v3953_v40 = vadd.f32 %v5052_v3, %v3904_v18 }
 0x365   : > { %v5069_v6 = vpop.f32.mrf.mxu1 }
 0x367   : > { %v5070_v9 = vpop.f32.mrf.mxu1 }
 0x368   : > { %v5071_v12 = vadd.f32 %v5070_v9, %v5069_v6 }
 0x369   : > { %v5072_v44 = vpop.f32.mrf.mxu1 }
 0x36a   : > { %v3991_v30 = vadd.f32 %v5071_v12, %v3942_v20  ;;  %v5604_v12 = vld [vmem:[%s7758_s7 + $0x8] sm:$0xff]  }
 0x36b   : > { %v5073_v1 = vpop.f32.mrf.mxu1 }
 0x36c   : > { %v5074_v10 = vadd.f32 %v5073_v1, %v5072_v44 }
 0x36d   : > { %v5075_v63 = vpop.f32.mrf.mxu1 }
 0x36e   : > { %v3994_v0 = vadd.f32 %v5074_v10, %v3945_v21  ;;  %v5605_v10 = vld [vmem:[%s7758_s7] sm:$0xff]  }
 0x36f   : > { %v5076_v27 = vpop.f32.mrf.mxu1 }
 0x370   : > { %v5077_v32 = vadd.f32 %v5076_v27, %v5075_v63 }
 0x371   : > { %v5078_v37 = vpop.f32.mrf.mxu1 }
 0x372   : > { %v3999_v54 = vadd.f32 %v5077_v32, %v3950_v16 }
 0x373   : > { %v5079_v36 = vpop.f32.mrf.mxu1 }
 0x374   : > { %v5080_v31 = vadd.f32 %v5079_v36, %v5078_v37 }
 0x376   : > { %v4002_v59 = vadd.f32 %v5080_v31, %v3953_v40 }
 0x385   : > { %v5097_v11 = vpop.f32.mrf.mxu1 }
 0x387   : > { %v5098_v24 = vpop.f32.mrf.mxu1 }
 0x388   : > { %v5099_v58 = vadd.f32 %v5098_v24, %v5097_v11  ;;  %v5601_v24 = vld [vmem:[%s7758_s7 + $0x20] sm:$0xff]  }
 0x389   : > { %v5100_v48 = vpop.f32.mrf.mxu1 }
 0x38a   : > { %v4040_v2 = vadd.f32 %v5099_v58, %v3991_v30 }
 0x38b   : > { %v5101_v17 = vpop.f32.mrf.mxu1 }
 0x38c   : > { %v5102_v8 = vadd.f32 %v5101_v17, %v5100_v48 }
 0x38d   : > { %v5103_v53 = vpop.f32.mrf.mxu1 }
 0x38e   : > { %v4043_v33 = vadd.f32 %v5102_v8, %v3994_v0 }
 0x38f   : > { %v5104_v28 = vpop.f32.mrf.mxu1 }
 0x390   : > { %v4054_v55 = vpack.c.bf16 %v4043_v33, %v4040_v2  ;;  %v5105_v43 = vadd.f32 %v5104_v28, %v5103_v53 }
 0x391   : > { %v5106_v38 = vpop.f32.mrf.mxu1 }
 0x392   : > { %5393 = vmatprep.mubr.msk.bf16.mxu1 %vm4088_vm1, %v4054_v55  ;;  %v4048_v5 = vadd.f32 %v5105_v43, %v3999_v54 }
 0x393   : > { %v5107_v42 = vpop.f32.mrf.mxu1 }
 0x394   : > { %v5108_v46 = vadd.f32 %v5107_v42, %v5106_v38 }
 0x396   : > { %v4051_v35 = vadd.f32 %v5108_v46, %v4002_v59 }
 0x398   : > { %v4055_v22 = vpack.c.bf16 %v4051_v35, %v4048_v5 }
 0x39a   : > { %5394 = vmatmul.mubr.msk.bf16.vlgmr.msra.gmra.mxu1 %vm4088_vm1, %v4055_v22 }
 0x39b   : > { %5398 = vmatpush3.bf16.msra.mxu1 %v5598_v4 }
 0x39c   : > { %5399 = vmatprep.subr.bf16.mxu1 %v5599_v14 }
 0x39f   : > { %5400 = vmatpush3.bf16.msra.mxu1 %v5599_v14 }
 0x3a0   : > { %5401 = vmatprep.subr.bf16.mxu1 %v5600_v62 }
 0x3a3   : > { %5402 = vmatpush3.bf16.msra.mxu1 %v5600_v62 }
 0x3a4   : > { %5403 = vmatprep.subr.bf16.mxu1 %v5601_v24 }
 0x3a7   : > { %5404 = vmatpush3.bf16.msra.mxu1 %v5601_v24 }
 0x3a8   : > { %5405 = vmatprep.subr.bf16.mxu1 %v5602_v60 }
 0x3ab   : > { %5406 = vmatpush3.bf16.msra.mxu1 %v5602_v60 }
 0x3ac   : > { %5407 = vmatprep.subr.bf16.mxu1 %v5603_v41 }
 0x3af   : > { %5408 = vmatpush3.bf16.msra.mxu1 %v5603_v41 }
 0x3b0   : > { %5409 = vmatprep.subr.bf16.mxu1 %v5604_v12 }
 0x3b3   : > { %5410 = vmatpush3.bf16.msra.mxu1 %v5604_v12 }
 0x3b4   : > { %5411 = vmatprep.subr.bf16.mxu1 %v5605_v10 }
 0x3b7   : > { %5412 = vmatpush3.bf16.msra.mxu1 %v5605_v10 }
 0x45a   : > { %v5395_v15 = vpop.f32.mrf.mxu1 }
 0x45b   : > { %4148 = vadd.xlane.f32.xlu1 %v5395_v15 }
 0x45c   : > { %v4129_v50 = vpop.f32.mrf.mxu1 }
 0x45d   : > { %4144 = vadd.xlane.f32.xlu0 %v4129_v50 }
 0x45e   : > { %v5396_v19 = vpop.f32.mrf.mxu1 }
 0x45f   : > { %4150 = vadd.xlane.f32.xlu1 %v5396_v19 }
 0x460   : > { %v4132_v39 = vpop.f32.mrf.mxu1 }
 0x461   : > { %4146 = vadd.xlane.f32.xlu0 %v4132_v39 }
 0x4e4   : > { %v4149_v26 = vpop.xlane.xlu1 %4148 }
 0x4e5   : > { %v4155_v6 = vmul.f32 0.0078125, %v4149_v26 }
 0x4e6   : > { %v4145_v61 = vpop.xlane.xlu0 %4144 }
 0x4e7   : > { %v4153_v9 = vmul.f32 0.0078125, %v4145_v61  ;;  %v4159_v27 = vsub.f32 %v5395_v15, %v4155_v6 }
 0x4e8   : > { %v4151_v44 = vpop.xlane.xlu1 %4150 }
 0x4e9   : > { %v4157_v1 = vsub.f32 %v4129_v50, %v4153_v9  ;;  %v4156_v37 = vmul.f32 0.0078125, %v4151_v44  ;;  %v4163_v56 = vmul.f32 %v4159_v27, %v4159_v27 }
 0x4ea   : > { %v4147_v63 = vpop.xlane.xlu0 %4146 }
 0x4eb   : > { %v4154_v57 = vmul.f32 0.0078125, %v4147_v63  ;;  %v4161_v49 = vmul.f32 %v4157_v1, %v4157_v1  ;;  %v4160_v52 = vsub.f32 %v5396_v19, %v4156_v37 }
 0x4ed   : > { %v4158_v36 = vsub.f32 %v4132_v39, %v4154_v57  ;;  %4165 = vadd.xlane.f32.xlu0 %v4161_v49  ;;  %v4164_v7 = vmul.f32 %v4160_v52, %v4160_v52 }
 0x4ef   : > { %v4162_v11 = vmul.f32 %v4158_v36, %v4158_v36 }
 0x4f1   : > { %4169 = vadd.xlane.f32.xlu0 %v4163_v56  ;;  %4167 = vadd.xlane.f32.xlu1 %v4162_v11 }
 0x4f5   : > { %4171 = vadd.xlane.f32.xlu1 %v4164_v7 }
 0x576   : > { %v4166_v47 = vpop.xlane.xlu0 %4165 }
 0x577   : > { %v4173_v13 = vmul.f32 0.0078125, %v4166_v47 }
 0x579   : > { %v4177_v48 = vadd.f32 1e-05, %v4173_v13 }
 0x57a   : > { %v4168_v20 = vpop.xlane.xlu1 %4167  ;;  %v4170_v21 = vpop.xlane.xlu0 %4169 }
 0x57b   : > { %5606 = vrsqrt.f32 %v4177_v48  ;;  %v4174_v58 = vmul.f32 0.0078125, %v4168_v20  ;;  %v4175_v34 = vmul.f32 0.0078125, %v4170_v21 }
 0x57d   : > { %v4178_v17 = vadd.f32 1e-05, %v4174_v58  ;;  %v4179_v23 = vadd.f32 1e-05, %v4175_v34 }
 0x57e   : > { %v4172_v30 = vpop.xlane.xlu1 %4171 }
 0x57f   : > { %5608 = vrsqrt.f32 %v4178_v17  ;;  %v4176_v0 = vmul.f32 0.0078125, %v4172_v30 }
 0x580   : > { %5610 = vrsqrt.f32 %v4179_v23 }
 0x581   : > { %v4180_v8 = vadd.f32 1e-05, %v4176_v0 }
 0x583   : > { %5612 = vrsqrt.f32 %v4180_v8 }
 0x588   : > { %v5607_v51 = vpop.eup %5606 }
 0x589   : > { %v4185_v53 = vmul.f32 %v5607_v51, %v4157_v1 }
 0x58b   : > { %v4196_v3 = vmul.f32 %v4737_v45, %v4185_v53 }
 0x58c   : > { %v5609_v2 = vpop.eup %5608 }
 0x58d   : > { %v5611_v33 = vpop.eup %5610  ;;  %v4186_v25 = vmul.f32 %v5609_v2, %v4158_v36  ;;  %v4207_v28 = vadd.f32 %v4738_v29, %v4196_v3 }
 0x58e   : > { %v4187_v18 = vmul.f32 %v5611_v33, %v4159_v27 }
 0x58f   : > { %v4197_v32 = vmul.f32 %v4737_v45, %v4186_v25  ;;  %v4211_v31 = vadd.f32 3.0, %v4207_v28 }
 0x590   : > { %v5613_v55 = vpop.eup %5612  ;;  %v4198_v38 = vmul.f32 %v4737_v45, %v4187_v18 }
 0x591   : > { %v4188_v16 = vmul.f32 %v5613_v55, %v4160_v52  ;;  %v4208_v40 = vadd.f32 %v4738_v29, %v4197_v32  ;;  %v4215_v43 = vmax.f32 %v4211_v31, 0.0  ;;  %v4739_v52 = vld [vmem:[%s7759_s8] ss:$0 sm:$0xff] }
 0x592   : > { %v4209_v42 = vadd.f32 %v4738_v29, %v4198_v38 }
 0x593   : > { %v4212_v54 = vadd.f32 3.0, %v4208_v40  ;;  %v4219_v59 = vmin.f32 %v4215_v43, 6.0  ;;  %v4199_v46 = vmul.f32 %v4737_v45, %v4188_v16 }
 0x594   : > { %v4213_v5 = vadd.f32 3.0, %v4209_v42 }
 0x595   : > { %v4216_v35 = vmax.f32 %v4212_v54, 0.0  ;;  %v4210_v22 = vadd.f32 %v4738_v29, %v4199_v46  ;;  %v4223_v19 = vmul.f32 %v4219_v59, %v4207_v28 }
 0x596   : > { %v4217_v15 = vmax.f32 %v4213_v5, 0.0 }
 0x597   : > { %v4220_v50 = vmin.f32 %v4216_v35, 6.0  ;;  %v4214_v39 = vadd.f32 3.0, %v4210_v22  ;;  %v4227_v9 = vmul.f32 0.16666667, %v4223_v19 }
 0x598   : > { %v4221_v26 = vmin.f32 %v4217_v15, 6.0 }
 0x599   : > { %v4224_v61 = vmul.f32 %v4220_v50, %v4208_v40  ;;  %v4218_v6 = vmax.f32 %v4214_v39, 0.0 }
 0x59a   : > { %v4225_v63 = vmul.f32 %v4221_v26, %v4209_v42 }
 0x59b   : > { %v4228_v44 = vmul.f32 0.16666667, %v4224_v61  ;;  %v4222_v1 = vmin.f32 %v4218_v6, 6.0 }
 0x59c   : > { %v4229_v57 = vmul.f32 0.16666667, %v4225_v63 }
 0x59d   : > { %v4231_v27 = vpack.c.bf16 %v4228_v44, %v4227_v9  ;;  %v4226_v37 = vmul.f32 %v4222_v1, %v4210_v22 }
 0x59f   : > { %5413 = vmatprep.mubr.bf16.mxu1 %v4231_v27  ;;  %v4230_v49 = vmul.f32 0.16666667, %v4226_v37 }
 0x5a1   : > { %v4232_v36 = vpack.c.bf16 %v4230_v49, %v4229_v57 }
 0x5a3   : > { %5414 = vmatmul.mubr.bf16.vlgmr.msra.gmra.mxu1 %v4232_v36 }
 0x663   : > { %v5415_v56 = vpop.f32.mrf.mxu1 }
 0x664   : > { %v4347_v11 = vadd.f32 %v5415_v56, %v4739_v52 }
 0x665   : > { %v4338_v7 = vpop.f32.mrf.mxu1 }
 0x666   : > { %4355 = vst [vmem:[%s328_s21 + $0x10] sm:$0xff] %v4347_v11  ;;  %v4339_v4 = vadd.f32 %v4739_v52, %v4338_v7 }
 0x667   : > { %v5416_v14 = vpop.f32.mrf.mxu1 }
 0x668   : > { %4353 = vst [vmem:[%s328_s21] sm:$0xff] %v4339_v4  ;;  %v4350_v62 = vadd.f32 %v5416_v14, %v4739_v52 }
 0x669   : > { %v4341_v24 = vpop.f32.mrf.mxu1 }
 0x66a   : > { %4356 = vst [vmem:[%s328_s21 + $0x18] sm:$0xff] %v4350_v62  ;;  %v4342_v60 = vadd.f32 %v4739_v52, %v4341_v24 }
 0x66c   : > { %4354 = vst [vmem:[%s328_s21 + $0x8] sm:$0xff] %v4342_v60 }
 0x66d   : > { %5627 = shalt.err (!%p5624_p3)
}
 0x66e   : > { %s5628_s29 = scalar_lea.hbm %s7709_s26, 512  ;;  %s5632_s23 = scalar_lea.hbm %s7760_s9, 1024 }
 0x66f   : > { %p5629_p4 = scmp.ne.s32.totalorder %s7709_s26, %s5628_s29  ;;  %p5633_p9 = scmp.lt.s32.totalorder %s7709_s26, %s7760_s9 }
 0x670   : > { %p5634_p10 = scmp.lt.s32.totalorder %s5632_s23, %s5628_s29 }
 0x671   : > { %p5630_p7 = pnand %p5629_p4, %p5769_p5 }
 0x672   : > { %p5635_p11 = por %p5634_p10, %p5633_p9 }
 0x673   : > { %p5631_p8 = pneg %p5630_p7 }
 0x675   : > { %p5636_p12 = pnand %p5635_p11, %p5631_p8 }
 0x677   : > { %5639 = shalt.err (!%p5636_p12)
}
 0x678   : > { %s5679_s28 = smov 128   ;;  %s5680_s13 = smov 8  }
 0x679   : > { %5421 = dma.vmem_to_hbm [thread:$0]  (%p5769_p5), %s7704_s22, 512, %s7709_s26, %s7711_s27, %s5679_s28, %s5679_s28, %s5680_s13  }
 0x67a PF: > { %p5427_p13 = scmp.ge.s32.totalorder %s5674_s12, 2  ;;  %s4386_s14 = sand.u32 1, %s5662_s30  }
 0x67b   : > { %s4387_s16 = scalar_lea.sflag [#allocation3], %s4386_s14 }
 0x67c   : > { %p5424_p0 = pnand %p5427_p13, %p5773_p6 }
 0x67e   : > { %p5425_p1 = pneg %p5424_p0 }
 0x680   : > { %5657 = dma.done.wait (%p5425_p1), %s4387_s16, 512  }
 0x681   : > { %5659 = vsyncadd (%p5425_p1), %s4387_s16, 4294966784  ;;  %p19_p2 = scmp.ge.s32.totalorder %s5756_s15, 4   ;;  %s7892_s30 = smov %s5666_s10 }
 0x682   : > { %s7893_s10 = smov %s5670_s11  ;;  %s7894_s11 = smov %s5767_s18 }
 0x683   : > { %s7895_s12 = smov %s5756_s15  ;;  %21 = sbr.rel (!%p19_p2) target bundleno = 3 (0x3), region = 91 }
 0x688   :  { %4392 = vsyncpa [#allocation3], 1 }
 0x689   :  { %4394 = vsyncpa [#allocation3 + $0x1], 1 }

</bundles_post_ra>
